<compile_context>
chip_gen: v5e
topology: v5e:2x2
jax: 0.10.0
libtpu: 0.0.40
codegen_flags: <defaults>
</compile_context>

<pallas_src>
import functools

import jax
import jax.numpy as jnp
import numpy as np
from jax.experimental import pallas as pl
from jax.experimental.pallas import tpu as pltpu


# ----------------------------------------------------------------------------
# Fused whole-network kernel (one batch element per grid step)
# ----------------------------------------------------------------------------
def _pixelda_d_kernel(*refs, meta, H, W, pad, leak):
    """refs = [x, (w, scale, bias) * n_layers, fc_w2, fc_b, out, flat, col]

      x      : (1, H*W, cin_p0)        pre-flattened, channel-padded input
      w      : (9*cin_p, cout)         bf16 conv weights, row = tap*cin_p + c
      scale/b: (1, cout)               per-channel affine (bias or folded BN)
      fc_w2  : (H*W, cout_last)        Linear folded with stride-2 subsample
                                       and PyTorch NCHW flatten order
      fc_b   : (1, 1)
      out    : (1, 1, 1)
      flat   : (pad + H*W + pad, cmax) f32 flat activation buffer (VMEM)
      col    : (H*W, 9*cin_p_max)      bf16 im2col scratch (VMEM)
    """
    n = len(meta)
    x_ref = refs[0]
    conv_refs = refs[1:1 + 3 * n]
    fcw_ref = refs[1 + 3 * n]
    fcb_ref = refs[2 + 3 * n]
    o_ref = refs[3 + 3 * n]
    flat = refs[4 + 3 * n]
    col = refs[5 + 3 * n]

    M = H * W
    cmax = flat.shape[1]

    # Zero ONLY the halo rows (top/bottom pads), across every channel.  The
    # interior is fully rewritten layer by layer.  Done every grid step on
    # purpose: under a megacore "parallel" split each core has its own scratch
    # and a program_id==0 gate would leave one of them never zeroed.
    flat[0:pad, :] = jnp.zeros((pad, cmax), jnp.float32)
    flat[pad + M:pad + M + pad, :] = jnp.zeros((pad, cmax), jnp.float32)

    # Input interior: one sublane-aligned 2-D copy (flattened/padded on host).
    cin0 = x_ref.shape[2]
    flat[pad:pad + M, 0:cin0] = x_ref[0]

    # Column masks fixing the row-wrap of the flattened layout at the image's
    # left/right borders (tap dw=-1 invalid at w==0, dw=+1 invalid at w==W-1).
    w_idx = jax.lax.broadcasted_iota(jnp.int32, (M, 1), 0) % W
    not_left = w_idx != 0
    not_right = w_idx != (W - 1)

    y = None
    for l, (cin_p, cout, _) in enumerate(meta):
        w_ref = conv_refs[3 * l]
        s_ref = conv_refs[3 * l + 1]
        b_ref = conv_refs[3 * l + 2]
        K = 9 * cin_p

        # Build the (M, 9*cin_p) im2col block: 9 sublane-shifted 2-D windows
        # of the flat buffer, cast to bf16, border-masked, stored at static
        # lane offsets.  No 3-D slices, no reshapes, no relayout copies.
        for dh in (-1, 0, 1):
            for dw in (-1, 0, 1):
                tap = (dh + 1) * 3 + (dw + 1)
                off = pad + dh * W + dw
                t = flat[off:off + M, 0:cin_p].astype(jnp.bfloat16)
                if dw == -1:
                    t = jnp.where(not_left, t, 0)
                elif dw == 1:
                    t = jnp.where(not_right, t, 0)
                col[:, tap * cin_p:(tap + 1) * cin_p] = t

        # ONE MXU matmul per layer (K = 72 / 72 / 144), f32 accumulation.
        acc = jnp.dot(col[0:M, 0:K], w_ref[...],
                      preferred_element_type=jnp.float32)
        y = acc * s_ref[...] + b_ref[...]        # conv bias or folded eval-BN
        y = jnp.where(y >= 0.0, y, leak * y)     # LeakyReLU, f32
        if l + 1 < n:
            flat[pad:pad + M, 0:cout] = y        # aligned 2-D writeback

    # Linear head: the final conv's stride-2 subsample + NCHW flatten are
    # folded into fcw (zero rows at non-selected positions), so the FC is an
    # elementwise product with the full-res activated map + reductions.
    t = y * fcw_ref[...]
    r = jnp.sum(t, axis=1, keepdims=True)                    # (M, 1)
    res = jnp.sum(r, axis=0, keepdims=True) + fcb_ref[...]   # (1, 1)
    o_ref[...] = res.reshape(1, 1, 1)


def pixelda_d_forward(x_nchw, fused, leak):
    N, cin0 = x_nchw.shape[0], x_nchw.shape[1]
    H, W = fused["H"], fused["W"]
    M = H * W
    meta = fused["meta"]
    cout_last = meta[-1][1]
    cin_p0 = fused["cin_p0"]
    pad = fused["pad"]

    # Host-side layout work: NCHW -> NHWC flatten -> (N, H*W, cin_p0) with
    # zero channel padding (dense per-step DMA block, aligned in-kernel copy).
    xf = jnp.transpose(x_nchw, (0, 2, 3, 1)).reshape(N, M, cin0)
    xf = xf.astype(jnp.float32)
    if cin_p0 != cin0:
        xf = jnp.concatenate(
            [xf, jnp.zeros((N, M, cin_p0 - cin0), jnp.float32)], axis=-1)

    inputs = [xf]
    in_specs = [pl.BlockSpec((1, M, cin_p0), lambda b: (b, 0, 0))]
    for (wk, s, bb), (cin_p, cout, _) in zip(fused["conv"], meta):
        inputs += [wk, s, bb]
        in_specs += [pl.BlockSpec((9 * cin_p, cout), lambda b: (0, 0)),
                     pl.BlockSpec((1, cout), lambda b: (0, 0)),
                     pl.BlockSpec((1, cout), lambda b: (0, 0))]
    inputs += [fused["w2"], fused["fcb"]]
    in_specs += [pl.BlockSpec((M, cout_last), lambda b: (0, 0)),
                 pl.BlockSpec((1, 1), lambda b: (0, 0))]

    flops = N * (sum(2 * M * 9 * ci * co for ci, co, _ in meta)
                 + 2 * M * cout_last)
    # Weights/FC are DMA'd once (constant block index); x and out move per step.
    bytes_accessed = (sum(int(a.size) * a.dtype.itemsize for a in inputs[1:])
                      + N * (M * cin_p0 * 4 + 4))

    kern = functools.partial(_pixelda_d_kernel, meta=meta, H=H, W=W,
                             pad=pad, leak=leak)
    n_rows = 2 * pad + M

    out = pl.pallas_call(
        kern,
        out_shape=jax.ShapeDtypeStruct((N, 1, 1), jnp.float32),
        grid=(N,),
        in_specs=in_specs,
        out_specs=pl.BlockSpec((1, 1, 1), lambda b: (b, 0, 0)),
        scratch_shapes=[pltpu.VMEM((n_rows, fused["cmax"]), jnp.float32),
                        pltpu.VMEM((M, fused["kmax"]), jnp.bfloat16)],
        compiler_params=pltpu.CompilerParams(
            dimension_semantics=("parallel",)),
        cost_estimate=pl.CostEstimate(flops=int(flops), transcendentals=0,
                                      bytes_accessed=int(bytes_accessed)),
    )(*inputs)
    return out.reshape(N, 1)


# ----------------------------------------------------------------------------
# Parameter construction mirroring pixelda_D.__init__ / make_layers
# ----------------------------------------------------------------------------
def make_params(key, in_channels, image_size, opt):
    def conv_w(k_, cout, cin, ksz):
        bound = 1.0 / float((cin * ksz * ksz) ** 0.5)
        return jax.random.uniform(k_, (cout, cin, ksz, ksz), jnp.float32,
                                  -bound, bound)

    layers = []
    eps = 1e-5
    bn_scale = float(1.0 / (1.0 + eps) ** 0.5)  # gamma=1, var=1 (fresh BN, eval)

    # First conv: Conv2d(in_channels, ndf, 3, 1, 1, bias=True) + LeakyReLU
    key, kw, kb = jax.random.split(key, 3)
    bound = 1.0 / float((in_channels * 9) ** 0.5)
    layers.append(dict(
        w=conv_w(kw, opt.ndf, in_channels, 3),
        scale=jnp.ones((opt.ndf,), jnp.float32),
        bias=jax.random.uniform(kb, (opt.ndf,), jnp.float32, -bound, bound),
        stride=1, pad=1))

    feature_map = image_size[0]
    cin = opt.ndf
    cout = cin
    while feature_map > opt.D_projection_size:
        cout = cin * 2
        for _ in range(1, opt.D_conv_block_size):   # stride-1 conv_blocks
            key, kw = jax.random.split(key)
            layers.append(dict(
                w=conv_w(kw, cout, cin, 3),
                scale=jnp.full((cout,), bn_scale, jnp.float32),
                bias=jnp.zeros((cout,), jnp.float32),
                stride=1, pad=1))
            cin = cout
        key, kw = jax.random.split(key)             # stride-2 conv_block
        layers.append(dict(
            w=conv_w(kw, cout, cin, 3),
            scale=jnp.full((cout,), bn_scale, jnp.float32),
            bias=jnp.zeros((cout,), jnp.float32),
            stride=2, pad=1))
        cin = cout
        # inject_noise(dropout=True): identity here (stddev=0, eval dropout)
        feature_map = (feature_map + 2 * 1 - 3) // 2 + 1
    assert feature_map == opt.D_projection_size

    fc_in = opt.D_projection_size * opt.D_projection_size * cout
    key, kw, kb = jax.random.split(key, 3)
    bound = 1.0 / float(fc_in ** 0.5)
    fc_w = jax.random.uniform(kw, (fc_in, 1), jnp.float32, -bound, bound)
    fc_b = jax.random.uniform(kb, (1,), jnp.float32, -bound, bound)
    return dict(conv_layers=layers, fc_w=fc_w, fc_b=fc_b)


def prepare_fused_params(params, image_hw):
    """One-time (outside the hot path) reshaping / folding of the parameters."""
    H, W = image_hw
    layers = params["conv_layers"]
    n = len(layers)
    conv, meta = [], []
    for i, lp in enumerate(layers):
        w_pt = np.asarray(lp["w"], np.float32)       # (cout, cin, 3, 3) OIHW
        cout, cin, k, k2 = w_pt.shape
        assert k == 3 and k2 == 3 and lp["pad"] == 1
        if i + 1 < n:
            # TODO(synk): configs with more than one downsampling stage (a
            # strided conv that is not the final conv) would need in-kernel
            # spatial subsampling; not required for this module config.
            assert lp["stride"] == 1, "only the final conv may be strided"
        cin_p = -(-cin // 8) * 8                     # pad K blocks to x8
        wk = np.transpose(w_pt, (2, 3, 1, 0))        # (3, 3, cin, cout)
        if cin_p != cin:
            wk = np.concatenate(
                [wk, np.zeros((3, 3, cin_p - cin, cout), np.float32)], axis=2)
        wk = wk.reshape(9 * cin_p, cout)             # row = tap*cin_p + c
        conv.append((jnp.asarray(wk, jnp.bfloat16),
                     jnp.asarray(np.asarray(lp["scale"]).reshape(1, cout),
                                 jnp.float32),
                     jnp.asarray(np.asarray(lp["bias"]).reshape(1, cout),
                                 jnp.float32)))
        meta.append((int(cin_p), int(cout), int(lp["stride"])))

    stride = meta[-1][2]
    cout_last = meta[-1][1]
    Ho = (H + 2 - 3) // stride + 1
    Wo = (W + 2 - 3) // stride + 1
    # Fold the final conv's stride subsample + PyTorch NCHW flatten + Linear
    # weight into an (H*W, cout_last) matrix applied to the full-res NHWC map.
    fcw = np.asarray(params["fc_w"], np.float32).reshape(cout_last, Ho, Wo)
    w2 = np.zeros((H, W, cout_last), np.float32)
    w2[0:stride * Ho:stride, 0:stride * Wo:stride, :] = \
        np.transpose(fcw, (1, 2, 0))

    cmax = max(max(ci, co) for ci, co, _ in meta)
    kmax = max(9 * ci for ci, _, _ in meta)
    pad = -(-(W + 1) // 8) * 8                       # halo depth, x8 aligned
    return dict(conv=conv, meta=tuple(meta), cmax=int(cmax), kmax=int(kmax),
                pad=int(pad), cin_p0=int(meta[0][0]),
                w2=jnp.asarray(w2.reshape(H * W, cout_last)),
                fcb=jnp.asarray(np.asarray(params["fc_b"]).reshape(1, 1),
                                jnp.float32),
                H=int(H), W=int(W))


# ----------------------------------------------------------------------------
# Pure-JAX reference (independent of the kernel path)
# ----------------------------------------------------------------------------
def ref_forward(x_nchw, params, leak):
    x = x_nchw
    for lp in params["conv_layers"]:
        x = jax.lax.conv_general_dilated(
            x, lp["w"], (lp["stride"], lp["stride"]),
            [(lp["pad"], lp["pad"])] * 2,
            dimension_numbers=("NCHW", "OIHW", "NCHW"),
            precision=jax.lax.Precision.HIGHEST)
        x = x * lp["scale"][None, :, None, None] + lp["bias"][None, :, None, None]
        x = jnp.where(x >= 0, x, leak * x)
    feat = x.reshape(x.shape[0], -1)
    return jnp.dot(feat, params["fc_w"],
                   precision=jax.lax.Precision.HIGHEST) + params["fc_b"]


if __name__ == "__main__":
    class Opt:
        ngpu = 1
        ndf = 8
        D_projection_size = 8
        D_conv_block_size = 2
        leakiness = 0.2
        D_noise_mean = 0.0
        D_noise_stddev = 0.0    # noise skipped (matches `if self.noise_stddev != 0`)
        D_keep_prob = 0.5
        cuda = False

    opt = Opt()
    in_channels = 4
    image_size = [16, 16]

    key = jax.random.PRNGKey(0)
    key, kx = jax.random.split(key)
    x = jax.random.normal(kx, (2, in_channels, 16, 16), jnp.float32)  # NCHW
    params = make_params(key, in_channels, image_size, opt)
    fused = prepare_fused_params(params, (image_size[0], image_size[1]))

    fwd = jax.jit(lambda xin: pixelda_d_forward(xin, fused, opt.leakiness))
    out = jax.block_until_ready(fwd(x))

    ref = ref_forward(x, params, opt.leakiness)
    assert out.shape == (2, 1), out.shape
    # bf16 MXU operands (per the perf review) change numerics slightly vs the
    # f32 reference; expected |err| ~1e-3 here, so use a 1e-2 tolerance.
    assert jnp.allclose(out, ref, rtol=1e-2, atol=1e-2), (out, ref)
    print("KERNEL_OK")
</pallas_src>

<mosaic_0001>
module attributes {stable_mosaic.version = 11 : i64} {
  func.func @_pixelda_d_kernel(%arg0: i32, %arg1: memref<1x256x8xf32, #tpu.memory_space<vmem>>, %arg2: memref<72x8xbf16, #tpu.memory_space<vmem>>, %arg3: memref<1x8xf32, #tpu.memory_space<vmem>>, %arg4: memref<1x8xf32, #tpu.memory_space<vmem>>, %arg5: memref<72x16xbf16, #tpu.memory_space<vmem>>, %arg6: memref<1x16xf32, #tpu.memory_space<vmem>>, %arg7: memref<1x16xf32, #tpu.memory_space<vmem>>, %arg8: memref<144x16xbf16, #tpu.memory_space<vmem>>, %arg9: memref<1x16xf32, #tpu.memory_space<vmem>>, %arg10: memref<1x16xf32, #tpu.memory_space<vmem>>, %arg11: memref<256x16xf32, #tpu.memory_space<vmem>>, %arg12: memref<1x1xf32, #tpu.memory_space<vmem>>, %arg13: memref<1x1x1xf32, #tpu.memory_space<vmem>>, %arg14: memref<304x16xf32, #tpu.memory_space<vmem>>, %arg15: memref<256x144xbf16, #tpu.memory_space<vmem>>) attributes {dimension_semantics = [#tpu.dimension_semantics<parallel>], iteration_bounds = array<i64: 2>, scalar_prefetch = 0 : i64, scratch_operands = 2 : i64, tpu.core_type = #tpu.core_type<tc>, window_params = [{transform_indices = @transform_0, window_bounds = array<i64: 1, 256, 8>}, {pipeline_mode = #tpu.pipeline_mode<synchronous>, transform_indices = @transform_1, window_bounds = array<i64: 72, 8>}, {pipeline_mode = #tpu.pipeline_mode<synchronous>, transform_indices = @transform_2, window_bounds = array<i64: 1, 8>}, {pipeline_mode = #tpu.pipeline_mode<synchronous>, transform_indices = @transform_3, window_bounds = array<i64: 1, 8>}, {pipeline_mode = #tpu.pipeline_mode<synchronous>, transform_indices = @transform_4, window_bounds = array<i64: 72, 16>}, {pipeline_mode = #tpu.pipeline_mode<synchronous>, transform_indices = @transform_5, window_bounds = array<i64: 1, 16>}, {pipeline_mode = #tpu.pipeline_mode<synchronous>, transform_indices = @transform_6, window_bounds = array<i64: 1, 16>}, {pipeline_mode = #tpu.pipeline_mode<synchronous>, transform_indices = @transform_7, window_bounds = array<i64: 144, 16>}, {pipeline_mode = #tpu.pipeline_mode<synchronous>, transform_indices = @transform_8, window_bounds = array<i64: 1, 16>}, {pipeline_mode = #tpu.pipeline_mode<synchronous>, transform_indices = @transform_9, window_bounds = array<i64: 1, 16>}, {pipeline_mode = #tpu.pipeline_mode<synchronous>, transform_indices = @transform_10, window_bounds = array<i64: 256, 16>}, {pipeline_mode = #tpu.pipeline_mode<synchronous>, transform_indices = @transform_11, window_bounds = array<i64: 1, 1>}, {transform_indices = @transform_12, window_bounds = array<i64: 1, 1, 1>}]} {
    %cst = arith.constant 0.000000e+00 : f32
    %0 = vector.broadcast %cst : f32 to vector<24x16xf32>
    %c0 = arith.constant 0 : index
    %c0_0 = arith.constant 0 : index
    %1 = vector.load %arg14[%c0, %c0_0] : memref<304x16xf32, #tpu.memory_space<vmem>>, vector<24x16xf32>
    tpu.vector_store %arg14[%c0, %c0_0], %0 {strides = array<i32>} : memref<304x16xf32, #tpu.memory_space<vmem>>, vector<24x16xf32>,
    %cst_1 = arith.constant 0.000000e+00 : f32
    %2 = vector.broadcast %cst_1 : f32 to vector<24x16xf32>
    %c280 = arith.constant 280 : index
    %c0_2 = arith.constant 0 : index
    %3 = vector.load %arg14[%c280, %c0_2] : memref<304x16xf32, #tpu.memory_space<vmem>>, vector<24x16xf32>
    tpu.vector_store %arg14[%c280, %c0_2], %2 {strides = array<i32>} : memref<304x16xf32, #tpu.memory_space<vmem>>, vector<24x16xf32>,
    %c0_3 = arith.constant 0 : index
    %c0_4 = arith.constant 0 : index
    %c0_5 = arith.constant 0 : index
    %4 = vector.load %arg1[%c0_3, %c0_4, %c0_5] : memref<1x256x8xf32, #tpu.memory_space<vmem>>, vector<1x256x8xf32>
    %5 = vector.shape_cast %4 : vector<1x256x8xf32> to vector<256x8xf32>
    %c24 = arith.constant 24 : index
    %c0_6 = arith.constant 0 : index
    %6 = vector.load %arg14[%c24, %c0_6] : memref<304x16xf32, #tpu.memory_space<vmem>>, vector<256x8xf32>
    tpu.vector_store %arg14[%c24, %c0_6], %5 {strides = array<i32>} : memref<304x16xf32, #tpu.memory_space<vmem>>, vector<256x8xf32>,
    %7 = tpu.iota {dimensions = array<i32: 0>} : vector<256x1xi32>
    %c16_i32 = arith.constant 16 : i32
    %c0_i32 = arith.constant 0 : i32
    %8 = arith.cmpi eq, %c16_i32, %c0_i32 : i32
    %c1_i32 = arith.constant 1 : i32
    %9 = arith.select %8, %c1_i32, %c16_i32 : i32
    %10 = vector.broadcast %9 : i32 to vector<256x1xi32>
    %11 = arith.remsi %7, %10 : vector<256x1xi32>
    %c0_i32_7 = arith.constant 0 : i32
    %12 = vector.broadcast %c0_i32_7 : i32 to vector<256x1xi32>
    %13 = arith.cmpi ne, %11, %12 : vector<256x1xi32>
    %c0_i32_8 = arith.constant 0 : i32
    %14 = vector.broadcast %c0_i32_8 : i32 to vector<256x1xi32>
    %15 = arith.cmpi slt, %11, %14 : vector<256x1xi32>
    %c0_i32_9 = arith.constant 0 : i32
    %16 = arith.cmpi slt, %9, %c0_i32_9 : i32
    %17 = vector.broadcast %16 : i1 to vector<256x1xi1>
    %18 = vector.broadcast %17 : vector<256x1xi1> to vector<256x1xi1>
    %19 = arith.xori %15, %18 : vector<256x1xi1>
    %20 = arith.andi %19, %13 : vector<256x1xi1>
    %21 = vector.broadcast %9 : i32 to vector<256x1xi32>
    %22 = arith.addi %11, %21 : vector<256x1xi32>
    %23 = arith.select %20, %22, %11 : vector<256x1xi1>, vector<256x1xi32>
    %c0_i32_10 = arith.constant 0 : i32
    %24 = vector.broadcast %c0_i32_10 : i32 to vector<256x1xi32>
    %25 = arith.cmpi ne, %23, %24 : vector<256x1xi32>
    %c15_i32 = arith.constant 15 : i32
    %26 = vector.broadcast %c15_i32 : i32 to vector<256x1xi32>
    %27 = arith.cmpi ne, %23, %26 : vector<256x1xi32>
    %c7 = arith.constant 7 : index
    %c0_11 = arith.constant 0 : index
    %28 = vector.load %arg14[%c7, %c0_11] : memref<304x16xf32, #tpu.memory_space<vmem>>, vector<256x8xf32>
    %29 = arith.truncf %28 : vector<256x8xf32> to vector<256x8xbf16>
    %c0_i32_12 = arith.constant 0 : i32
    %30 = arith.sitofp %c0_i32_12 : i32 to bf16
    %31 = vector.shape_cast %25 : vector<256x1xi1> to vector<256x1xi1>
    %32 = vector.broadcast %31 : vector<256x1xi1> to vector<256x8xi1>
    %33 = vector.broadcast %30 : bf16 to vector<256x8xbf16>
    %34 = arith.select %32, %29, %33 : vector<256x8xi1>, vector<256x8xbf16>
    %c0_13 = arith.constant 0 : index
    %c0_14 = arith.constant 0 : index
    %35 = vector.load %arg15[%c0_13, %c0_14] : memref<256x144xbf16, #tpu.memory_space<vmem>>, vector<256x8xbf16>
    tpu.vector_store %arg15[%c0_13, %c0_14], %34 {strides = array<i32>} : memref<256x144xbf16, #tpu.memory_space<vmem>>, vector<256x8xbf16>,
    %c8 = arith.constant 8 : index
    %c0_15 = arith.constant 0 : index
    %36 = vector.load %arg14[%c8, %c0_15] : memref<304x16xf32, #tpu.memory_space<vmem>>, vector<256x8xf32>
    %37 = arith.truncf %36 : vector<256x8xf32> to vector<256x8xbf16>
    %c0_16 = arith.constant 0 : index
    %c8_17 = arith.constant 8 : index
    %38 = vector.load %arg15[%c0_16, %c8_17] : memref<256x144xbf16, #tpu.memory_space<vmem>>, vector<256x8xbf16>
    tpu.vector_store %arg15[%c0_16, %c8_17], %37 {strides = array<i32>} : memref<256x144xbf16, #tpu.memory_space<vmem>>, vector<256x8xbf16>,
    %c9 = arith.constant 9 : index
    %c0_18 = arith.constant 0 : index
    %39 = vector.load %arg14[%c9, %c0_18] : memref<304x16xf32, #tpu.memory_space<vmem>>, vector<256x8xf32>
    %40 = arith.truncf %39 : vector<256x8xf32> to vector<256x8xbf16>
    %c0_i32_19 = arith.constant 0 : i32
    %41 = arith.sitofp %c0_i32_19 : i32 to bf16
    %42 = vector.shape_cast %27 : vector<256x1xi1> to vector<256x1xi1>
    %43 = vector.broadcast %42 : vector<256x1xi1> to vector<256x8xi1>
    %44 = vector.broadcast %41 : bf16 to vector<256x8xbf16>
    %45 = arith.select %43, %40, %44 : vector<256x8xi1>, vector<256x8xbf16>
    %c0_20 = arith.constant 0 : index
    %c16 = arith.constant 16 : index
    %46 = vector.load %arg15[%c0_20, %c16] : memref<256x144xbf16, #tpu.memory_space<vmem>>, vector<256x8xbf16>
    tpu.vector_store %arg15[%c0_20, %c16], %45 {strides = array<i32>} : memref<256x144xbf16, #tpu.memory_space<vmem>>, vector<256x8xbf16>,
    %c23 = arith.constant 23 : index
    %c0_21 = arith.constant 0 : index
    %47 = vector.load %arg14[%c23, %c0_21] : memref<304x16xf32, #tpu.memory_space<vmem>>, vector<256x8xf32>
    %48 = arith.truncf %47 : vector<256x8xf32> to vector<256x8xbf16>
    %c0_i32_22 = arith.constant 0 : i32
    %49 = arith.sitofp %c0_i32_22 : i32 to bf16
    %50 = vector.shape_cast %25 : vector<256x1xi1> to vector<256x1xi1>
    %51 = vector.broadcast %50 : vector<256x1xi1> to vector<256x8xi1>
    %52 = vector.broadcast %49 : bf16 to vector<256x8xbf16>
    %53 = arith.select %51, %48, %52 : vector<256x8xi1>, vector<256x8xbf16>
    %c0_23 = arith.constant 0 : index
    %c24_24 = arith.constant 24 : index
    %54 = vector.load %arg15[%c0_23, %c24_24] : memref<256x144xbf16, #tpu.memory_space<vmem>>, vector<256x8xbf16>
    tpu.vector_store %arg15[%c0_23, %c24_24], %53 {strides = array<i32>} : memref<256x144xbf16, #tpu.memory_space<vmem>>, vector<256x8xbf16>,
    %c24_25 = arith.constant 24 : index
    %c0_26 = arith.constant 0 : index
    %55 = vector.load %arg14[%c24_25, %c0_26] : memref<304x16xf32, #tpu.memory_space<vmem>>, vector<256x8xf32>
    %56 = arith.truncf %55 : vector<256x8xf32> to vector<256x8xbf16>
    %c0_27 = arith.constant 0 : index
    %c32 = arith.constant 32 : index
    %57 = vector.load %arg15[%c0_27, %c32] : memref<256x144xbf16, #tpu.memory_space<vmem>>, vector<256x8xbf16>
    tpu.vector_store %arg15[%c0_27, %c32], %56 {strides = array<i32>} : memref<256x144xbf16, #tpu.memory_space<vmem>>, vector<256x8xbf16>,
    %c25 = arith.constant 25 : index
    %c0_28 = arith.constant 0 : index
    %58 = vector.load %arg14[%c25, %c0_28] : memref<304x16xf32, #tpu.memory_space<vmem>>, vector<256x8xf32>
    %59 = arith.truncf %58 : vector<256x8xf32> to vector<256x8xbf16>
    %c0_i32_29 = arith.constant 0 : i32
    %60 = arith.sitofp %c0_i32_29 : i32 to bf16
    %61 = vector.shape_cast %27 : vector<256x1xi1> to vector<256x1xi1>
    %62 = vector.broadcast %61 : vector<256x1xi1> to vector<256x8xi1>
    %63 = vector.broadcast %60 : bf16 to vector<256x8xbf16>
    %64 = arith.select %62, %59, %63 : vector<256x8xi1>, vector<256x8xbf16>
    %c0_30 = arith.constant 0 : index
    %c40 = arith.constant 40 : index
    %65 = vector.load %arg15[%c0_30, %c40] : memref<256x144xbf16, #tpu.memory_space<vmem>>, vector<256x8xbf16>
    tpu.vector_store %arg15[%c0_30, %c40], %64 {strides = array<i32>} : memref<256x144xbf16, #tpu.memory_space<vmem>>, vector<256x8xbf16>,
    %c39 = arith.constant 39 : index
    %c0_31 = arith.constant 0 : index
    %66 = vector.load %arg14[%c39, %c0_31] : memref<304x16xf32, #tpu.memory_space<vmem>>, vector<256x8xf32>
    %67 = arith.truncf %66 : vector<256x8xf32> to vector<256x8xbf16>
    %c0_i32_32 = arith.constant 0 : i32
    %68 = arith.sitofp %c0_i32_32 : i32 to bf16
    %69 = vector.shape_cast %25 : vector<256x1xi1> to vector<256x1xi1>
    %70 = vector.broadcast %69 : vector<256x1xi1> to vector<256x8xi1>
    %71 = vector.broadcast %68 : bf16 to vector<256x8xbf16>
    %72 = arith.select %70, %67, %71 : vector<256x8xi1>, vector<256x8xbf16>
    %c0_33 = arith.constant 0 : index
    %c48 = arith.constant 48 : index
    %73 = vector.load %arg15[%c0_33, %c48] : memref<256x144xbf16, #tpu.memory_space<vmem>>, vector<256x8xbf16>
    tpu.vector_store %arg15[%c0_33, %c48], %72 {strides = array<i32>} : memref<256x144xbf16, #tpu.memory_space<vmem>>, vector<256x8xbf16>,
    %c40_34 = arith.constant 40 : index
    %c0_35 = arith.constant 0 : index
    %74 = vector.load %arg14[%c40_34, %c0_35] : memref<304x16xf32, #tpu.memory_space<vmem>>, vector<256x8xf32>
    %75 = arith.truncf %74 : vector<256x8xf32> to vector<256x8xbf16>
    %c0_36 = arith.constant 0 : index
    %c56 = arith.constant 56 : index
    %76 = vector.load %arg15[%c0_36, %c56] : memref<256x144xbf16, #tpu.memory_space<vmem>>, vector<256x8xbf16>
    tpu.vector_store %arg15[%c0_36, %c56], %75 {strides = array<i32>} : memref<256x144xbf16, #tpu.memory_space<vmem>>, vector<256x8xbf16>,
    %c41 = arith.constant 41 : index
    %c0_37 = arith.constant 0 : index
    %77 = vector.load %arg14[%c41, %c0_37] : memref<304x16xf32, #tpu.memory_space<vmem>>, vector<256x8xf32>
    %78 = arith.truncf %77 : vector<256x8xf32> to vector<256x8xbf16>
    %c0_i32_38 = arith.constant 0 : i32
    %79 = arith.sitofp %c0_i32_38 : i32 to bf16
    %80 = vector.shape_cast %27 : vector<256x1xi1> to vector<256x1xi1>
    %81 = vector.broadcast %80 : vector<256x1xi1> to vector<256x8xi1>
    %82 = vector.broadcast %79 : bf16 to vector<256x8xbf16>
    %83 = arith.select %81, %78, %82 : vector<256x8xi1>, vector<256x8xbf16>
    %c0_39 = arith.constant 0 : index
    %c64 = arith.constant 64 : index
    %84 = vector.load %arg15[%c0_39, %c64] : memref<256x144xbf16, #tpu.memory_space<vmem>>, vector<256x8xbf16>
    tpu.vector_store %arg15[%c0_39, %c64], %83 {strides = array<i32>} : memref<256x144xbf16, #tpu.memory_space<vmem>>, vector<256x8xbf16>,
    %c0_40 = arith.constant 0 : index
    %c0_41 = arith.constant 0 : index
    %85 = vector.load %arg15[%c0_40, %c0_41] : memref<256x144xbf16, #tpu.memory_space<vmem>>, vector<256x72xbf16>
    %c0_42 = arith.constant 0 : index
    %c0_43 = arith.constant 0 : index
    %86 = vector.load %arg2[%c0_42, %c0_43] : memref<72x8xbf16, #tpu.memory_space<vmem>>, vector<72x8xbf16>
    %cst_44 = arith.constant dense<0.000000e+00> : vector<256x8xf32>
    %87 = tpu.matmul %85, %86, %cst_44 {dimension_numbers = #tpu.dot_dimension_numbers<[1], [0], [0], [1], [0, 0, 1, 1], [], []>} : vector<256x72xbf16>, vector<72x8xbf16>, vector<256x8xf32> -> vector<256x8xf32>
    %c0_45 = arith.constant 0 : index
    %c0_46 = arith.constant 0 : index
    %88 = vector.load %arg3[%c0_45, %c0_46] : memref<1x8xf32, #tpu.memory_space<vmem>>, vector<1x8xf32>
    %89 = vector.broadcast %88 : vector<1x8xf32> to vector<256x8xf32>
    %90 = arith.mulf %87, %89 : vector<256x8xf32>
    %c0_47 = arith.constant 0 : index
    %c0_48 = arith.constant 0 : index
    %91 = vector.load %arg4[%c0_47, %c0_48] : memref<1x8xf32, #tpu.memory_space<vmem>>, vector<1x8xf32>
    %92 = vector.broadcast %91 : vector<1x8xf32> to vector<256x8xf32>
    %93 = arith.addf %90, %92 : vector<256x8xf32>
    %cst_49 = arith.constant 0.000000e+00 : f32
    %94 = vector.broadcast %cst_49 : f32 to vector<256x8xf32>
    %95 = arith.cmpf oge, %93, %94 : vector<256x8xf32>
    %cst_50 = arith.constant 2.000000e-01 : f32
    %96 = vector.broadcast %cst_50 : f32 to vector<256x8xf32>
    %97 = arith.mulf %96, %93 : vector<256x8xf32>
    %98 = arith.select %95, %93, %97 : vector<256x8xi1>, vector<256x8xf32>
    %c24_51 = arith.constant 24 : index
    %c0_52 = arith.constant 0 : index
    %99 = vector.load %arg14[%c24_51, %c0_52] : memref<304x16xf32, #tpu.memory_space<vmem>>, vector<256x8xf32>
    tpu.vector_store %arg14[%c24_51, %c0_52], %98 {strides = array<i32>} : memref<304x16xf32, #tpu.memory_space<vmem>>, vector<256x8xf32>,
    %c7_53 = arith.constant 7 : index
    %c0_54 = arith.constant 0 : index
    %100 = vector.load %arg14[%c7_53, %c0_54] : memref<304x16xf32, #tpu.memory_space<vmem>>, vector<256x8xf32>
    %101 = arith.truncf %100 : vector<256x8xf32> to vector<256x8xbf16>
    %c0_i32_55 = arith.constant 0 : i32
    %102 = arith.sitofp %c0_i32_55 : i32 to bf16
    %103 = vector.shape_cast %25 : vector<256x1xi1> to vector<256x1xi1>
    %104 = vector.broadcast %103 : vector<256x1xi1> to vector<256x8xi1>
    %105 = vector.broadcast %102 : bf16 to vector<256x8xbf16>
    %106 = arith.select %104, %101, %105 : vector<256x8xi1>, vector<256x8xbf16>
    %c0_56 = arith.constant 0 : index
    %c0_57 = arith.constant 0 : index
    %107 = vector.load %arg15[%c0_56, %c0_57] : memref<256x144xbf16, #tpu.memory_space<vmem>>, vector<256x8xbf16>
    tpu.vector_store %arg15[%c0_56, %c0_57], %106 {strides = array<i32>} : memref<256x144xbf16, #tpu.memory_space<vmem>>, vector<256x8xbf16>,
    %c8_58 = arith.constant 8 : index
    %c0_59 = arith.constant 0 : index
    %108 = vector.load %arg14[%c8_58, %c0_59] : memref<304x16xf32, #tpu.memory_space<vmem>>, vector<256x8xf32>
    %109 = arith.truncf %108 : vector<256x8xf32> to vector<256x8xbf16>
    %c0_60 = arith.constant 0 : index
    %c8_61 = arith.constant 8 : index
    %110 = vector.load %arg15[%c0_60, %c8_61] : memref<256x144xbf16, #tpu.memory_space<vmem>>, vector<256x8xbf16>
    tpu.vector_store %arg15[%c0_60, %c8_61], %109 {strides = array<i32>} : memref<256x144xbf16, #tpu.memory_space<vmem>>, vector<256x8xbf16>,
    %c9_62 = arith.constant 9 : index
    %c0_63 = arith.constant 0 : index
    %111 = vector.load %arg14[%c9_62, %c0_63] : memref<304x16xf32, #tpu.memory_space<vmem>>, vector<256x8xf32>
    %112 = arith.truncf %111 : vector<256x8xf32> to vector<256x8xbf16>
    %c0_i32_64 = arith.constant 0 : i32
    %113 = arith.sitofp %c0_i32_64 : i32 to bf16
    %114 = vector.shape_cast %27 : vector<256x1xi1> to vector<256x1xi1>
    %115 = vector.broadcast %114 : vector<256x1xi1> to vector<256x8xi1>
    %116 = vector.broadcast %113 : bf16 to vector<256x8xbf16>
    %117 = arith.select %115, %112, %116 : vector<256x8xi1>, vector<256x8xbf16>
    %c0_65 = arith.constant 0 : index
    %c16_66 = arith.constant 16 : index
    %118 = vector.load %arg15[%c0_65, %c16_66] : memref<256x144xbf16, #tpu.memory_space<vmem>>, vector<256x8xbf16>
    tpu.vector_store %arg15[%c0_65, %c16_66], %117 {strides = array<i32>} : memref<256x144xbf16, #tpu.memory_space<vmem>>, vector<256x8xbf16>,
    %c23_67 = arith.constant 23 : index
    %c0_68 = arith.constant 0 : index
    %119 = vector.load %arg14[%c23_67, %c0_68] : memref<304x16xf32, #tpu.memory_space<vmem>>, vector<256x8xf32>
    %120 = arith.truncf %119 : vector<256x8xf32> to vector<256x8xbf16>
    %c0_i32_69 = arith.constant 0 : i32
    %121 = arith.sitofp %c0_i32_69 : i32 to bf16
    %122 = vector.shape_cast %25 : vector<256x1xi1> to vector<256x1xi1>
    %123 = vector.broadcast %122 : vector<256x1xi1> to vector<256x8xi1>
    %124 = vector.broadcast %121 : bf16 to vector<256x8xbf16>
    %125 = arith.select %123, %120, %124 : vector<256x8xi1>, vector<256x8xbf16>
    %c0_70 = arith.constant 0 : index
    %c24_71 = arith.constant 24 : index
    %126 = vector.load %arg15[%c0_70, %c24_71] : memref<256x144xbf16, #tpu.memory_space<vmem>>, vector<256x8xbf16>
    tpu.vector_store %arg15[%c0_70, %c24_71], %125 {strides = array<i32>} : memref<256x144xbf16, #tpu.memory_space<vmem>>, vector<256x8xbf16>,
    %c24_72 = arith.constant 24 : index
    %c0_73 = arith.constant 0 : index
    %127 = vector.load %arg14[%c24_72, %c0_73] : memref<304x16xf32, #tpu.memory_space<vmem>>, vector<256x8xf32>
    %128 = arith.truncf %127 : vector<256x8xf32> to vector<256x8xbf16>
    %c0_74 = arith.constant 0 : index
    %c32_75 = arith.constant 32 : index
    %129 = vector.load %arg15[%c0_74, %c32_75] : memref<256x144xbf16, #tpu.memory_space<vmem>>, vector<256x8xbf16>
    tpu.vector_store %arg15[%c0_74, %c32_75], %128 {strides = array<i32>} : memref<256x144xbf16, #tpu.memory_space<vmem>>, vector<256x8xbf16>,
    %c25_76 = arith.constant 25 : index
    %c0_77 = arith.constant 0 : index
    %130 = vector.load %arg14[%c25_76, %c0_77] : memref<304x16xf32, #tpu.memory_space<vmem>>, vector<256x8xf32>
    %131 = arith.truncf %130 : vector<256x8xf32> to vector<256x8xbf16>
    %c0_i32_78 = arith.constant 0 : i32
    %132 = arith.sitofp %c0_i32_78 : i32 to bf16
    %133 = vector.shape_cast %27 : vector<256x1xi1> to vector<256x1xi1>
    %134 = vector.broadcast %133 : vector<256x1xi1> to vector<256x8xi1>
    %135 = vector.broadcast %132 : bf16 to vector<256x8xbf16>
    %136 = arith.select %134, %131, %135 : vector<256x8xi1>, vector<256x8xbf16>
    %c0_79 = arith.constant 0 : index
    %c40_80 = arith.constant 40 : index
    %137 = vector.load %arg15[%c0_79, %c40_80] : memref<256x144xbf16, #tpu.memory_space<vmem>>, vector<256x8xbf16>
    tpu.vector_store %arg15[%c0_79, %c40_80], %136 {strides = array<i32>} : memref<256x144xbf16, #tpu.memory_space<vmem>>, vector<256x8xbf16>,
    %c39_81 = arith.constant 39 : index
    %c0_82 = arith.constant 0 : index
    %138 = vector.load %arg14[%c39_81, %c0_82] : memref<304x16xf32, #tpu.memory_space<vmem>>, vector<256x8xf32>
    %139 = arith.truncf %138 : vector<256x8xf32> to vector<256x8xbf16>
    %c0_i32_83 = arith.constant 0 : i32
    %140 = arith.sitofp %c0_i32_83 : i32 to bf16
    %141 = vector.shape_cast %25 : vector<256x1xi1> to vector<256x1xi1>
    %142 = vector.broadcast %141 : vector<256x1xi1> to vector<256x8xi1>
    %143 = vector.broadcast %140 : bf16 to vector<256x8xbf16>
    %144 = arith.select %142, %139, %143 : vector<256x8xi1>, vector<256x8xbf16>
    %c0_84 = arith.constant 0 : index
    %c48_85 = arith.constant 48 : index
    %145 = vector.load %arg15[%c0_84, %c48_85] : memref<256x144xbf16, #tpu.memory_space<vmem>>, vector<256x8xbf16>
    tpu.vector_store %arg15[%c0_84, %c48_85], %144 {strides = array<i32>} : memref<256x144xbf16, #tpu.memory_space<vmem>>, vector<256x8xbf16>,
    %c40_86 = arith.constant 40 : index
    %c0_87 = arith.constant 0 : index
    %146 = vector.load %arg14[%c40_86, %c0_87] : memref<304x16xf32, #tpu.memory_space<vmem>>, vector<256x8xf32>
    %147 = arith.truncf %146 : vector<256x8xf32> to vector<256x8xbf16>
    %c0_88 = arith.constant 0 : index
    %c56_89 = arith.constant 56 : index
    %148 = vector.load %arg15[%c0_88, %c56_89] : memref<256x144xbf16, #tpu.memory_space<vmem>>, vector<256x8xbf16>
    tpu.vector_store %arg15[%c0_88, %c56_89], %147 {strides = array<i32>} : memref<256x144xbf16, #tpu.memory_space<vmem>>, vector<256x8xbf16>,
    %c41_90 = arith.constant 41 : index
    %c0_91 = arith.constant 0 : index
    %149 = vector.load %arg14[%c41_90, %c0_91] : memref<304x16xf32, #tpu.memory_space<vmem>>, vector<256x8xf32>
    %150 = arith.truncf %149 : vector<256x8xf32> to vector<256x8xbf16>
    %c0_i32_92 = arith.constant 0 : i32
    %151 = arith.sitofp %c0_i32_92 : i32 to bf16
    %152 = vector.shape_cast %27 : vector<256x1xi1> to vector<256x1xi1>
    %153 = vector.broadcast %152 : vector<256x1xi1> to vector<256x8xi1>
    %154 = vector.broadcast %151 : bf16 to vector<256x8xbf16>
    %155 = arith.select %153, %150, %154 : vector<256x8xi1>, vector<256x8xbf16>
    %c0_93 = arith.constant 0 : index
    %c64_94 = arith.constant 64 : index
    %156 = vector.load %arg15[%c0_93, %c64_94] : memref<256x144xbf16, #tpu.memory_space<vmem>>, vector<256x8xbf16>
    tpu.vector_store %arg15[%c0_93, %c64_94], %155 {strides = array<i32>} : memref<256x144xbf16, #tpu.memory_space<vmem>>, vector<256x8xbf16>,
    %c0_95 = arith.constant 0 : index
    %c0_96 = arith.constant 0 : index
    %157 = vector.load %arg15[%c0_95, %c0_96] : memref<256x144xbf16, #tpu.memory_space<vmem>>, vector<256x72xbf16>
    %c0_97 = arith.constant 0 : index
    %c0_98 = arith.constant 0 : index
    %158 = vector.load %arg5[%c0_97, %c0_98] : memref<72x16xbf16, #tpu.memory_space<vmem>>, vector<72x16xbf16>
    %cst_99 = arith.constant dense<0.000000e+00> : vector<256x16xf32>
    %159 = tpu.matmul %157, %158, %cst_99 {dimension_numbers = #tpu.dot_dimension_numbers<[1], [0], [0], [1], [0, 0, 1, 1], [], []>} : vector<256x72xbf16>, vector<72x16xbf16>, vector<256x16xf32> -> vector<256x16xf32>
    %c0_100 = arith.constant 0 : index
    %c0_101 = arith.constant 0 : index
    %160 = vector.load %arg6[%c0_100, %c0_101] : memref<1x16xf32, #tpu.memory_space<vmem>>, vector<1x16xf32>
    %161 = vector.broadcast %160 : vector<1x16xf32> to vector<256x16xf32>
    %162 = arith.mulf %159, %161 : vector<256x16xf32>
    %c0_102 = arith.constant 0 : index
    %c0_103 = arith.constant 0 : index
    %163 = vector.load %arg7[%c0_102, %c0_103] : memref<1x16xf32, #tpu.memory_space<vmem>>, vector<1x16xf32>
    %164 = vector.broadcast %163 : vector<1x16xf32> to vector<256x16xf32>
    %165 = arith.addf %162, %164 : vector<256x16xf32>
    %cst_104 = arith.constant 0.000000e+00 : f32
    %166 = vector.broadcast %cst_104 : f32 to vector<256x16xf32>
    %167 = arith.cmpf oge, %165, %166 : vector<256x16xf32>
    %cst_105 = arith.constant 2.000000e-01 : f32
    %168 = vector.broadcast %cst_105 : f32 to vector<256x16xf32>
    %169 = arith.mulf %168, %165 : vector<256x16xf32>
    %170 = arith.select %167, %165, %169 : vector<256x16xi1>, vector<256x16xf32>
    %c24_106 = arith.constant 24 : index
    %c0_107 = arith.constant 0 : index
    %171 = vector.load %arg14[%c24_106, %c0_107] : memref<304x16xf32, #tpu.memory_space<vmem>>, vector<256x16xf32>
    tpu.vector_store %arg14[%c24_106, %c0_107], %170 {strides = array<i32>} : memref<304x16xf32, #tpu.memory_space<vmem>>, vector<256x16xf32>,
    %c7_108 = arith.constant 7 : index
    %c0_109 = arith.constant 0 : index
    %172 = vector.load %arg14[%c7_108, %c0_109] : memref<304x16xf32, #tpu.memory_space<vmem>>, vector<256x16xf32>
    %173 = arith.truncf %172 : vector<256x16xf32> to vector<256x16xbf16>
    %c0_i32_110 = arith.constant 0 : i32
    %174 = arith.sitofp %c0_i32_110 : i32 to bf16
    %175 = vector.shape_cast %25 : vector<256x1xi1> to vector<256x1xi1>
    %176 = vector.broadcast %175 : vector<256x1xi1> to vector<256x16xi1>
    %177 = vector.broadcast %174 : bf16 to vector<256x16xbf16>
    %178 = arith.select %176, %173, %177 : vector<256x16xi1>, vector<256x16xbf16>
    %c0_111 = arith.constant 0 : index
    %c0_112 = arith.constant 0 : index
    %179 = vector.load %arg15[%c0_111, %c0_112] : memref<256x144xbf16, #tpu.memory_space<vmem>>, vector<256x16xbf16>
    tpu.vector_store %arg15[%c0_111, %c0_112], %178 {strides = array<i32>} : memref<256x144xbf16, #tpu.memory_space<vmem>>, vector<256x16xbf16>,
    %c8_113 = arith.constant 8 : index
    %c0_114 = arith.constant 0 : index
    %180 = vector.load %arg14[%c8_113, %c0_114] : memref<304x16xf32, #tpu.memory_space<vmem>>, vector<256x16xf32>
    %181 = arith.truncf %180 : vector<256x16xf32> to vector<256x16xbf16>
    %c0_115 = arith.constant 0 : index
    %c16_116 = arith.constant 16 : index
    %182 = vector.load %arg15[%c0_115, %c16_116] : memref<256x144xbf16, #tpu.memory_space<vmem>>, vector<256x16xbf16>
    tpu.vector_store %arg15[%c0_115, %c16_116], %181 {strides = array<i32>} : memref<256x144xbf16, #tpu.memory_space<vmem>>, vector<256x16xbf16>,
    %c9_117 = arith.constant 9 : index
    %c0_118 = arith.constant 0 : index
    %183 = vector.load %arg14[%c9_117, %c0_118] : memref<304x16xf32, #tpu.memory_space<vmem>>, vector<256x16xf32>
    %184 = arith.truncf %183 : vector<256x16xf32> to vector<256x16xbf16>
    %c0_i32_119 = arith.constant 0 : i32
    %185 = arith.sitofp %c0_i32_119 : i32 to bf16
    %186 = vector.shape_cast %27 : vector<256x1xi1> to vector<256x1xi1>
    %187 = vector.broadcast %186 : vector<256x1xi1> to vector<256x16xi1>
    %188 = vector.broadcast %185 : bf16 to vector<256x16xbf16>
    %189 = arith.select %187, %184, %188 : vector<256x16xi1>, vector<256x16xbf16>
    %c0_120 = arith.constant 0 : index
    %c32_121 = arith.constant 32 : index
    %190 = vector.load %arg15[%c0_120, %c32_121] : memref<256x144xbf16, #tpu.memory_space<vmem>>, vector<256x16xbf16>
    tpu.vector_store %arg15[%c0_120, %c32_121], %189 {strides = array<i32>} : memref<256x144xbf16, #tpu.memory_space<vmem>>, vector<256x16xbf16>,
    %c23_122 = arith.constant 23 : index
    %c0_123 = arith.constant 0 : index
    %191 = vector.load %arg14[%c23_122, %c0_123] : memref<304x16xf32, #tpu.memory_space<vmem>>, vector<256x16xf32>
    %192 = arith.truncf %191 : vector<256x16xf32> to vector<256x16xbf16>
    %c0_i32_124 = arith.constant 0 : i32
    %193 = arith.sitofp %c0_i32_124 : i32 to bf16
    %194 = vector.shape_cast %25 : vector<256x1xi1> to vector<256x1xi1>
    %195 = vector.broadcast %194 : vector<256x1xi1> to vector<256x16xi1>
    %196 = vector.broadcast %193 : bf16 to vector<256x16xbf16>
    %197 = arith.select %195, %192, %196 : vector<256x16xi1>, vector<256x16xbf16>
    %c0_125 = arith.constant 0 : index
    %c48_126 = arith.constant 48 : index
    %198 = vector.load %arg15[%c0_125, %c48_126] : memref<256x144xbf16, #tpu.memory_space<vmem>>, vector<256x16xbf16>
    tpu.vector_store %arg15[%c0_125, %c48_126], %197 {strides = array<i32>} : memref<256x144xbf16, #tpu.memory_space<vmem>>, vector<256x16xbf16>,
    %c24_127 = arith.constant 24 : index
    %c0_128 = arith.constant 0 : index
    %199 = vector.load %arg14[%c24_127, %c0_128] : memref<304x16xf32, #tpu.memory_space<vmem>>, vector<256x16xf32>
    %200 = arith.truncf %199 : vector<256x16xf32> to vector<256x16xbf16>
    %c0_129 = arith.constant 0 : index
    %c64_130 = arith.constant 64 : index
    %201 = vector.load %arg15[%c0_129, %c64_130] : memref<256x144xbf16, #tpu.memory_space<vmem>>, vector<256x16xbf16>
    tpu.vector_store %arg15[%c0_129, %c64_130], %200 {strides = array<i32>} : memref<256x144xbf16, #tpu.memory_space<vmem>>, vector<256x16xbf16>,
    %c25_131 = arith.constant 25 : index
    %c0_132 = arith.constant 0 : index
    %202 = vector.load %arg14[%c25_131, %c0_132] : memref<304x16xf32, #tpu.memory_space<vmem>>, vector<256x16xf32>
    %203 = arith.truncf %202 : vector<256x16xf32> to vector<256x16xbf16>
    %c0_i32_133 = arith.constant 0 : i32
    %204 = arith.sitofp %c0_i32_133 : i32 to bf16
    %205 = vector.shape_cast %27 : vector<256x1xi1> to vector<256x1xi1>
    %206 = vector.broadcast %205 : vector<256x1xi1> to vector<256x16xi1>
    %207 = vector.broadcast %204 : bf16 to vector<256x16xbf16>
    %208 = arith.select %206, %203, %207 : vector<256x16xi1>, vector<256x16xbf16>
    %c0_134 = arith.constant 0 : index
    %c80 = arith.constant 80 : index
    %209 = vector.load %arg15[%c0_134, %c80] : memref<256x144xbf16, #tpu.memory_space<vmem>>, vector<256x16xbf16>
    tpu.vector_store %arg15[%c0_134, %c80], %208 {strides = array<i32>} : memref<256x144xbf16, #tpu.memory_space<vmem>>, vector<256x16xbf16>,
    %c39_135 = arith.constant 39 : index
    %c0_136 = arith.constant 0 : index
    %210 = vector.load %arg14[%c39_135, %c0_136] : memref<304x16xf32, #tpu.memory_space<vmem>>, vector<256x16xf32>
    %211 = arith.truncf %210 : vector<256x16xf32> to vector<256x16xbf16>
    %c0_i32_137 = arith.constant 0 : i32
    %212 = arith.sitofp %c0_i32_137 : i32 to bf16
    %213 = vector.shape_cast %25 : vector<256x1xi1> to vector<256x1xi1>
    %214 = vector.broadcast %213 : vector<256x1xi1> to vector<256x16xi1>
    %215 = vector.broadcast %212 : bf16 to vector<256x16xbf16>
    %216 = arith.select %214, %211, %215 : vector<256x16xi1>, vector<256x16xbf16>
    %c0_138 = arith.constant 0 : index
    %c96 = arith.constant 96 : index
    %217 = vector.load %arg15[%c0_138, %c96] : memref<256x144xbf16, #tpu.memory_space<vmem>>, vector<256x16xbf16>
    tpu.vector_store %arg15[%c0_138, %c96], %216 {strides = array<i32>} : memref<256x144xbf16, #tpu.memory_space<vmem>>, vector<256x16xbf16>,
    %c40_139 = arith.constant 40 : index
    %c0_140 = arith.constant 0 : index
    %218 = vector.load %arg14[%c40_139, %c0_140] : memref<304x16xf32, #tpu.memory_space<vmem>>, vector<256x16xf32>
    %219 = arith.truncf %218 : vector<256x16xf32> to vector<256x16xbf16>
    %c0_141 = arith.constant 0 : index
    %c112 = arith.constant 112 : index
    %220 = vector.load %arg15[%c0_141, %c112] : memref<256x144xbf16, #tpu.memory_space<vmem>>, vector<256x16xbf16>
    tpu.vector_store %arg15[%c0_141, %c112], %219 {strides = array<i32>} : memref<256x144xbf16, #tpu.memory_space<vmem>>, vector<256x16xbf16>,
    %c41_142 = arith.constant 41 : index
    %c0_143 = arith.constant 0 : index
    %221 = vector.load %arg14[%c41_142, %c0_143] : memref<304x16xf32, #tpu.memory_space<vmem>>, vector<256x16xf32>
    %222 = arith.truncf %221 : vector<256x16xf32> to vector<256x16xbf16>
    %c0_i32_144 = arith.constant 0 : i32
    %223 = arith.sitofp %c0_i32_144 : i32 to bf16
    %224 = vector.shape_cast %27 : vector<256x1xi1> to vector<256x1xi1>
    %225 = vector.broadcast %224 : vector<256x1xi1> to vector<256x16xi1>
    %226 = vector.broadcast %223 : bf16 to vector<256x16xbf16>
    %227 = arith.select %225, %222, %226 : vector<256x16xi1>, vector<256x16xbf16>
    %c0_145 = arith.constant 0 : index
    %c128 = arith.constant 128 : index
    %228 = vector.load %arg15[%c0_145, %c128] : memref<256x144xbf16, #tpu.memory_space<vmem>>, vector<256x16xbf16>
    tpu.vector_store %arg15[%c0_145, %c128], %227 {strides = array<i32>} : memref<256x144xbf16, #tpu.memory_space<vmem>>, vector<256x16xbf16>,
    %c0_146 = arith.constant 0 : index
    %c0_147 = arith.constant 0 : index
    %229 = vector.load %arg15[%c0_146, %c0_147] : memref<256x144xbf16, #tpu.memory_space<vmem>>, vector<256x144xbf16>
    %c0_148 = arith.constant 0 : index
    %c0_149 = arith.constant 0 : index
    %230 = vector.load %arg8[%c0_148, %c0_149] : memref<144x16xbf16, #tpu.memory_space<vmem>>, vector<144x16xbf16>
    %cst_150 = arith.constant dense<0.000000e+00> : vector<256x16xf32>
    %231 = tpu.matmul %229, %230, %cst_150 {dimension_numbers = #tpu.dot_dimension_numbers<[1], [0], [0], [1], [0, 0, 1, 1], [], []>} : vector<256x144xbf16>, vector<144x16xbf16>, vector<256x16xf32> -> vector<256x16xf32>
    %c0_151 = arith.constant 0 : index
    %c0_152 = arith.constant 0 : index
    %232 = vector.load %arg9[%c0_151, %c0_152] : memref<1x16xf32, #tpu.memory_space<vmem>>, vector<1x16xf32>
    %233 = vector.broadcast %232 : vector<1x16xf32> to vector<256x16xf32>
    %234 = arith.mulf %231, %233 : vector<256x16xf32>
    %c0_153 = arith.constant 0 : index
    %c0_154 = arith.constant 0 : index
    %235 = vector.load %arg10[%c0_153, %c0_154] : memref<1x16xf32, #tpu.memory_space<vmem>>, vector<1x16xf32>
    %236 = vector.broadcast %235 : vector<1x16xf32> to vector<256x16xf32>
    %237 = arith.addf %234, %236 : vector<256x16xf32>
    %cst_155 = arith.constant 0.000000e+00 : f32
    %238 = vector.broadcast %cst_155 : f32 to vector<256x16xf32>
    %239 = arith.cmpf oge, %237, %238 : vector<256x16xf32>
    %cst_156 = arith.constant 2.000000e-01 : f32
    %240 = vector.broadcast %cst_156 : f32 to vector<256x16xf32>
    %241 = arith.mulf %240, %237 : vector<256x16xf32>
    %242 = arith.select %239, %237, %241 : vector<256x16xi1>, vector<256x16xf32>
    %c0_157 = arith.constant 0 : index
    %c0_158 = arith.constant 0 : index
    %243 = vector.load %arg11[%c0_157, %c0_158] : memref<256x16xf32, #tpu.memory_space<vmem>>, vector<256x16xf32>
    %244 = arith.mulf %242, %243 : vector<256x16xf32>
    %cst_159 = arith.constant dense<0.000000e+00> : vector<256xf32>
    %245 = vector.multi_reduction <add>, %244, %cst_159 [1] : vector<256x16xf32> to vector<256xf32>
    %246 = vector.shape_cast %245 : vector<256xf32> to vector<256x1xf32>
    %cst_160 = arith.constant dense<0.000000e+00> : vector<1xf32>
    %247 = vector.multi_reduction <add>, %246, %cst_160 [0] : vector<256x1xf32> to vector<1xf32>
    %248 = vector.shape_cast %247 : vector<1xf32> to vector<1x1xf32>
    %c0_161 = arith.constant 0 : index
    %c0_162 = arith.constant 0 : index
    %249 = vector.load %arg12[%c0_161, %c0_162] : memref<1x1xf32, #tpu.memory_space<vmem>>, vector<1x1xf32>
    %250 = arith.addf %248, %249 : vector<1x1xf32>
    %251 = vector.shape_cast %250 : vector<1x1xf32> to vector<1x1x1xf32>
    %c0_163 = arith.constant 0 : index
    %c0_164 = arith.constant 0 : index
    %c0_165 = arith.constant 0 : index
    %252 = vector.load %arg13[%c0_163, %c0_164, %c0_165] : memref<1x1x1xf32, #tpu.memory_space<vmem>>, vector<1x1x1xf32>
    tpu.vector_store %arg13[%c0_163, %c0_164, %c0_165], %251 {strides = array<i32>} : memref<1x1x1xf32, #tpu.memory_space<vmem>>, vector<1x1x1xf32>,
    return
  }
  func.func @transform_0(%arg0: i32) -> (i32, i32, i32) {
    %c0_i32 = arith.constant 0 : i32
    %c0_i32_0 = arith.constant 0 : i32
    %c0_i32_1 = arith.constant 0 : i32
    return %arg0, %c0_i32, %c0_i32_0 : i32, i32, i32
  }
  func.func @transform_1(%arg0: i32) -> (i32, i32) {
    %c0_i32 = arith.constant 0 : i32
    %c0_i32_0 = arith.constant 0 : i32
    %c0_i32_1 = arith.constant 0 : i32
    return %c0_i32, %c0_i32_0 : i32, i32
  }
  func.func @transform_2(%arg0: i32) -> (i32, i32) {
    %c0_i32 = arith.constant 0 : i32
    %c0_i32_0 = arith.constant 0 : i32
    %c0_i32_1 = arith.constant 0 : i32
    return %c0_i32, %c0_i32_0 : i32, i32
  }
  func.func @transform_3(%arg0: i32) -> (i32, i32) {
    %c0_i32 = arith.constant 0 : i32
    %c0_i32_0 = arith.constant 0 : i32
    %c0_i32_1 = arith.constant 0 : i32
    return %c0_i32, %c0_i32_0 : i32, i32
  }
  func.func @transform_4(%arg0: i32) -> (i32, i32) {
    %c0_i32 = arith.constant 0 : i32
    %c0_i32_0 = arith.constant 0 : i32
    %c0_i32_1 = arith.constant 0 : i32
    return %c0_i32, %c0_i32_0 : i32, i32
  }
  func.func @transform_5(%arg0: i32) -> (i32, i32) {
    %c0_i32 = arith.constant 0 : i32
    %c0_i32_0 = arith.constant 0 : i32
    %c0_i32_1 = arith.constant 0 : i32
    return %c0_i32, %c0_i32_0 : i32, i32
  }
  func.func @transform_6(%arg0: i32) -> (i32, i32) {
    %c0_i32 = arith.constant 0 : i32
    %c0_i32_0 = arith.constant 0 : i32
    %c0_i32_1 = arith.constant 0 : i32
    return %c0_i32, %c0_i32_0 : i32, i32
  }
  func.func @transform_7(%arg0: i32) -> (i32, i32) {
    %c0_i32 = arith.constant 0 : i32
    %c0_i32_0 = arith.constant 0 : i32
    %c0_i32_1 = arith.constant 0 : i32
    return %c0_i32, %c0_i32_0 : i32, i32
  }
  func.func @transform_8(%arg0: i32) -> (i32, i32) {
    %c0_i32 = arith.constant 0 : i32
    %c0_i32_0 = arith.constant 0 : i32
    %c0_i32_1 = arith.constant 0 : i32
    return %c0_i32, %c0_i32_0 : i32, i32
  }
  func.func @transform_9(%arg0: i32) -> (i32, i32) {
    %c0_i32 = arith.constant 0 : i32
    %c0_i32_0 = arith.constant 0 : i32
    %c0_i32_1 = arith.constant 0 : i32
    return %c0_i32, %c0_i32_0 : i32, i32
  }
  func.func @transform_10(%arg0: i32) -> (i32, i32) {
    %c0_i32 = arith.constant 0 : i32
    %c0_i32_0 = arith.constant 0 : i32
    %c0_i32_1 = arith.constant 0 : i32
    return %c0_i32, %c0_i32_0 : i32, i32
  }
  func.func @transform_11(%arg0: i32) -> (i32, i32) {
    %c0_i32 = arith.constant 0 : i32
    %c0_i32_0 = arith.constant 0 : i32
    %c0_i32_1 = arith.constant 0 : i32
    return %c0_i32, %c0_i32_0 : i32, i32
  }
  func.func @transform_12(%arg0: i32) -> (i32, i32, i32) {
    %c0_i32 = arith.constant 0 : i32
    %c0_i32_0 = arith.constant 0 : i32
    %c0_i32_1 = arith.constant 0 : i32
    return %arg0, %c0_i32, %c0_i32_0 : i32, i32, i32
  }
}

</mosaic_0001>

<bundles_post_ra>
// kernel: _lambda_.1
= control target key start
LH: loop header
LB: loop body
LE: loop exit
PB: predicated region body
PF: predicated region fallthrough
CT: control target
= control target key end

     0   :  { %s9738_s23 = smov 0   ;;  %s13828_s0 = inlined_call_operand.vmem [shape: f32[2,256,8], index: 0, kind: input, shape index: {}]   ;;  %s13829_s1 = inlined_call_operand.vmem [shape: bf16[72,8], index: 1, kind: input, shape index: {}]   ;;  %s13830_s2 = inlined_call_operand.vmem [shape: f32[1,8], index: 2, kind: input, shape index: {}]   ;;  %s13831_s3 = inlined_call_operand.vmem [shape: f32[1,8], index: 3, kind: input, shape index: {}]   ;;  %s13832_s4 = inlined_call_operand.vmem [shape: bf16[72,16], index: 4, kind: input, shape index: {}]   ;;  %s13833_s5 = inlined_call_operand.vmem [shape: f32[1,16], index: 5, kind: input, shape index: {}, may-alias: {5,8}]   ;;  %s13834_s6 = inlined_call_operand.vmem [shape: f32[1,16], index: 6, kind: input, shape index: {}, may-alias: {6,9}]   ;;  %s13835_s7 = inlined_call_operand.vmem [shape: bf16[144,16], index: 7, kind: input, shape index: {}]   ;;  %s13836_s8 = inlined_call_operand.vmem [shape: f32[1,16], index: 8, kind: input, shape index: {}, may-alias: {5,8}]   ;;  %s13837_s9 = inlined_call_operand.vmem [shape: f32[1,16], index: 9, kind: input, shape index: {}, may-alias: {6,9}]   ;;  %s13838_s10 = inlined_call_operand.vmem [shape: f32[256,16], index: 10, kind: input, shape index: {}]   ;;  %s13839_s11 = inlined_call_operand.<no memory space> [shape: f32[1,1], index: 11, kind: input, shape index: {}]   ;;  %s13840_s12 = inlined_call_operand.vmem [shape: f32[2,1,1], index: 12, kind: output, shape index: {}]  }
   0x1   :  { %v17_v0 = vstv %s13839_s11 }
   0x2   :  { %18 = vst [vmem:[#allocation4] sm:$0x1] %v17_v0 }
   0x3 LB: > { %s9155_s24 = sadd.s32 4294967295, %s9655_s23   ;;  %p9159_p0 = scmp.ge.s32.totalorder %s9655_s23, 1  ;;  %s9655_s23 = sphi %s9738_s23, %s24_s23  }
   0x4   : > { %p364_p1 = scmp.lt.s32.totalorder %s9655_s23, 3 }
   0x6   : > { %p365_p2 = pnand %p9159_p0, %p364_p1 }
   0x8   : > { %368 = sbr.rel (%p365_p2) target bundleno = 3061 (0xbf5), region = 68 }
   0xd   : > { %vm13841_vm0 = vcmask 130048   ;;  %p404_p3 = scmp.lt.s32.totalorder %s9155_s24, 1  ;;  %v9657_v1 = vmov 0.0   ;;  %vm13842_vm1 = vcmask 64512   ;;  %s9658_s28 = smov 8   ;;  %vm13844_vm5 = vcmask 60416  }
   0xe   : > { %415 = vst.msk [vmem:[#allocation2 + $0x8] sm:$0xff] %vm13841_vm0, %v9657_v1  ;;  %vm9659_vm7 = vmmov 1   ;;  %s9660_s29 = smov 16   ;;  %s9661_s30 = smov 24  }
   0xf   : > { %414 = vst.msk [vmem:[#allocation2] sm:$0xff] %vm13841_vm0, %v9657_v1  ;;  %s14839_s24 = smov (!%p404_p3, %s9155_s24), 1  ;;  %vm9871_vm8 = vmpackc.low %vm9659_vm7, %vm9659_vm7  ;;  %s9662_s13 = smov 32  }
  0x10   : > { %416 = vst.msk [vmem:[#allocation2 + $0x10] sm:$0xff] %vm13841_vm0, %v9657_v1  ;;  %s9536_s11 = sshll.u32 %s14839_s24, 8  ;;  %s9663_s14 = smov 40  }
  0x11   : > { %417 = vst.msk [vmem:[#allocation2 + $0x118] sm:$0xff] %vm13841_vm0, %v9657_v1  ;;  %s9757_s27 = scalar_lea.vmem %s13828_s0, %s9536_s11  ;;  %s9664_s15 = smov 48  }
  0x12   : > { %418 = vst.msk [vmem:[#allocation2 + $0x120] sm:$0xff] %vm13841_vm0, %v9657_v1  ;;  %v424_v2 = vld [vmem:[%s9757_s27 + $0x20] sm:$0xff]  ;;  %v427_v4 = vld [vmem:[%s9757_s27 + $0x38] sm:$0xff]  ;;  %v421_v5 = vld [vmem:[%s9757_s27 + $0x8] sm:$0xff]  ;;  %s9665_s16 = smov 56   ;;  %s9666_s17 = smov 64  }
  0x13   : > { %419 = vst.msk [vmem:[#allocation2 + $0x128] sm:$0xff] %vm13841_vm0, %v9657_v1  ;;  %v420_v3 = vld [vmem:[%s9757_s27] sm:$0xff]  ;;  %v430_v7 = vld [vmem:[%s9757_s27 + $0x50] sm:$0xff]  ;;  %v425_v10 = vld [vmem:[%s9757_s27 + $0x28] sm:$0xff]  ;;  %s9669_s21 = smov 112  }
  0x14   : > { %457 = vst.msk [vmem:[#allocation2 + $0x38] sm:$0xff] %vm13842_vm1, %v424_v2  ;;  %v422_v9 = vld [vmem:[%s9757_s27 + $0x10] sm:$0xff]  ;;  %v433_v11 = vld [vmem:[%s9757_s27 + $0x68] sm:$0xff]  ;;  %v423_v13 = vld [vmem:[%s9757_s27 + $0x18] sm:$0xff] }
  0x15   : > { %v1191_v6 = vld [vmem:[#allocation2 + $0x8] sm:$0xff]  ;;  %453 = vst.msk [vmem:[#allocation2 + $0x18] sm:$0xff] %vm13842_vm1, %v420_v3  ;;  %v428_v14 = vld [vmem:[%s9757_s27 + $0x40] sm:$0xff]  ;;  %v426_v19 = vld [vmem:[%s9757_s27 + $0x30] sm:$0xff] }
  0x16   : > { %v1223_v8 = vpack.c.bf16 %v1191_v6, %v1191_v6  ;;  %460 = vst.msk [vmem:[#allocation2 + $0x50] sm:$0xff] %vm13842_vm1, %v427_v4  ;;  %v436_v18 = vld [vmem:[%s9757_s27 + $0x80] sm:$0xff]  ;;  %v431_v20 = vld [vmem:[%s9757_s27 + $0x58] sm:$0xff]  ;;  %v429_v29 = vld [vmem:[%s9757_s27 + $0x48] sm:$0xff] }
  0x17   : > { %454 = vst.msk [vmem:[#allocation2 + $0x20] sm:$0xff] %vm13842_vm1, %v421_v5  ;;  %v1192_v12 = vld [vmem:[#allocation2 + $0x10] sm:$0xff]  ;;  %v439_v28 = vld [vmem:[%s9757_s27 + $0x98] sm:$0xff]  ;;  %v432_v38 = vld [vmem:[%s9757_s27 + $0x60] sm:$0xff] }
  0x18   : > { %1287 = vrot.lane.b32.xlu0 %v1223_v8, %s9658_s28  ;;  %463 = vst.msk [vmem:[#allocation2 + $0x68] sm:$0xff] %vm13842_vm1, %v430_v7  ;;  %v1224_v15 = vpack.c.bf16 %v1192_v12, %v1192_v12  ;;  %v434_v30 = vld [vmem:[%s9757_s27 + $0x70] sm:$0xff]  ;;  %v437_v39 = vld [vmem:[%s9757_s27 + $0x88] sm:$0xff]  ;;  %v435_v47 = vld [vmem:[%s9757_s27 + $0x78] sm:$0xff] }
  0x19   : > { %455 = vst.msk [vmem:[#allocation2 + $0x28] sm:$0xff] %vm13842_vm1, %v422_v9  ;;  %v442_v37 = vld [vmem:[%s9757_s27 + $0xb0] sm:$0xff]  ;;  %v445_v46 = vld [vmem:[%s9757_s27 + $0xc8] sm:$0xff]  ;;  %v440_v48 = vld [vmem:[%s9757_s27 + $0xa0] sm:$0xff] }
  0x1a   : > { %458 = vst.msk [vmem:[#allocation2 + $0x40] sm:$0xff] %vm13842_vm1, %v425_v10  ;;  %v448_v55 = vld [vmem:[%s9757_s27 + $0xe0] sm:$0xff]  ;;  %v438_v56 = vld [vmem:[%s9757_s27 + $0x90] sm:$0xff]  ;;  %v443_v57 = vld [vmem:[%s9757_s27 + $0xb8] sm:$0xff] }
  0x1b   : > { %466 = vst.msk [vmem:[#allocation2 + $0x80] sm:$0xff] %vm13842_vm1, %v433_v11  ;;  %v1197_v23 = vld [vmem:[#allocation2 + $0x38] sm:$0xff]  ;;  %v441_v0 = vld [vmem:[%s9757_s27 + $0xa8] sm:$0xff]  ;;  %v446_v1 = vld [vmem:[%s9757_s27 + $0xd0] sm:$0xff] }
  0x1c   : > { %v1193_v16 = vld [vmem:[#allocation2 + $0x18] sm:$0xff]  ;;  %456 = vst.msk [vmem:[#allocation2 + $0x30] sm:$0xff] %vm13842_vm1, %v423_v13  ;;  %v1229_v26 = vpack.c.bf16 %v1197_v23, %v1197_v23  ;;  %v444_v8 = vld [vmem:[%s9757_s27 + $0xc0] sm:$0xff]  ;;  %v449_v9 = vld [vmem:[%s9757_s27 + $0xe8] sm:$0xff] }
  0x1d   : > { %v1225_v17 = vpack.c.bf16 %v1193_v16, %v1193_v16  ;;  %461 = vst.msk [vmem:[#allocation2 + $0x58] sm:$0xff] %vm13842_vm1, %v428_v14  ;;  %v1200_v33 = vld [vmem:[#allocation2 + $0x50] sm:$0xff]  ;;  %v447_v16 = vld [vmem:[%s9757_s27 + $0xd8] sm:$0xff] }
  0x1e   : > { %469 = vst.msk [vmem:[#allocation2 + $0x98] sm:$0xff] %vm13842_vm1, %v436_v18  ;;  %v1194_v21 = vld [vmem:[#allocation2 + $0x20] sm:$0xff]  ;;  %v1232_v35 = vpack.c.bf16 %v1200_v33, %v1200_v33  ;;  %v485_v18 = vlaneseq }
  0x1f   : > { %1291 = vrot.lane.b32.xlu1 %v1225_v17, %s9658_s28  ;;  %459 = vst.msk [vmem:[#allocation2 + $0x48] sm:$0xff] %vm13842_vm1, %v426_v19  ;;  %v1226_v25 = vpack.c.bf16 %v1194_v21, %v1194_v21  ;;  %v1203_v42 = vld [vmem:[#allocation2 + $0x68] sm:$0xff] }
  0x20   : > { %1289 = vrot.lane.b32.xlu0 %v1224_v15, %s9658_s28  ;;  %v1195_v22 = vld [vmem:[#allocation2 + $0x28] sm:$0xff]  ;;  %464 = vst.msk [vmem:[#allocation2 + $0x70] sm:$0xff] %vm13842_vm1, %v431_v20  ;;  %v1235_v44 = vpack.c.bf16 %v1203_v42, %v1203_v42 }
  0x21   : > { %v1227_v24 = vpack.c.bf16 %v1195_v22, %v1195_v22  ;;  %472 = vst.msk [vmem:[#allocation2 + $0xb0] sm:$0xff] %vm13842_vm1, %v439_v28  ;;  %v1198_v32 = vld [vmem:[#allocation2 + $0x40] sm:$0xff]  ;;  %v9845_v22 = vshrl.u32 %v485_v18, 7  ;;  %v14042_v18 = vmov 0 }
  0x22   : > { %462 = vst.msk [vmem:[#allocation2 + $0x60] sm:$0xff] %vm13842_vm1, %v429_v29  ;;  %v1230_v34 = vpack.c.bf16 %v1198_v32, %v1198_v32  ;;  %v1206_v51 = vld [vmem:[#allocation2 + $0x80] sm:$0xff] }
  0x23   : > { %1295 = vrot.lane.b32.xlu2 %v1227_v24, %s9658_s28  ;;  %v1196_v27 = vld [vmem:[#allocation2 + $0x30] sm:$0xff]  ;;  %467 = vst.msk [vmem:[#allocation2 + $0x88] sm:$0xff] %vm13842_vm1, %v434_v30  ;;  %v1238_v53 = vpack.c.bf16 %v1206_v51, %v1206_v51  ;;  %v522_v33 = vand.u32 15, %v9845_v22 }
  0x24   : > { %v1228_v31 = vpack.c.bf16 %v1196_v27, %v1196_v27  ;;  %475 = vst.msk [vmem:[#allocation2 + $0xc8] sm:$0xff] %vm13842_vm1, %v442_v37  ;;  %v1201_v41 = vld [vmem:[#allocation2 + $0x58] sm:$0xff] }
  0x25   : > { %465 = vst.msk [vmem:[#allocation2 + $0x78] sm:$0xff] %vm13842_vm1, %v432_v38  ;;  %v1233_v43 = vpack.c.bf16 %v1201_v41, %v1201_v41  ;;  %v1209_v60 = vld [vmem:[#allocation2 + $0x98] sm:$0xff]  ;;  %vm902_vm3 = vcmp.ne.s32.totalorder %v522_v33, 0  ;;  %v1416_v41 = vld [vmem:[#allocation2 + $0x9] sm:$0xff] }
  0x26   : > { %v1199_v36 = vld [vmem:[#allocation2 + $0x48] sm:$0xff]  ;;  %470 = vst.msk [vmem:[#allocation2 + $0xa0] sm:$0xff] %vm13842_vm1, %v437_v39  ;;  %v1241_v62 = vpack.c.bf16 %v1209_v60, %v1209_v60  ;;  %vm9854_vm4 = vmpackc.low %vm902_vm3, %vm902_vm3  ;;  %v14030_v39 = vmov 0 }
  0x27   : > { %1293 = vrot.lane.b32.xlu1 %v1226_v25, %s9658_s28  ;;  %v1231_v40 = vpack.c.bf16 %v1199_v36, %v1199_v36  ;;  %478 = vst.msk [vmem:[#allocation2 + $0xe0] sm:$0xff] %vm13842_vm1, %v445_v46  ;;  %v1204_v50 = vld [vmem:[#allocation2 + $0x70] sm:$0xff]  ;;  %v487_v25 = vadd.s32 8, %v9845_v22  ;;  %v14031_v39 = vsel %vm9854_vm4, 4294967295, %v14030_v39  ;;  %v490_v46 = vadd.s32 32, %v9845_v22 }
  0x28   : > { %1299 = vrot.lane.b32.xlu0 %v1229_v26, %s9658_s28  ;;  %468 = vst.msk [vmem:[#allocation2 + $0x90] sm:$0xff] %vm13842_vm1, %v435_v47  ;;  %v1236_v52 = vpack.c.bf16 %v1204_v50, %v1204_v50  ;;  %v1212_v4 = vld [vmem:[#allocation2 + $0xb0] sm:$0xff]  ;;  %v1448_v47 = vpack.c.bf16 %v1416_v41, %v1416_v41  ;;  %v1418_v50 = vld [vmem:[#allocation2 + $0x19] sm:$0xff] }
  0x29   : > { %v1202_v45 = vld [vmem:[#allocation2 + $0x60] sm:$0xff]  ;;  %473 = vst.msk [vmem:[#allocation2 + $0xb8] sm:$0xff] %vm13842_vm1, %v440_v48  ;;  %v1244_v6 = vpack.c.bf16 %v1212_v4, %v1212_v4  ;;  %v529_v29 = vand.u32 15, %v487_v25  ;;  %v491_v48 = vadd.s32 40, %v9845_v22  ;;  %v550_v51 = vand.u32 15, %v490_v46  ;;  %v1424_v41 = vld [vmem:[#allocation2 + $0x49] sm:$0xff] }
  0x2a   : > { %v1234_v49 = vpack.c.bf16 %v1202_v45, %v1202_v45  ;;  %481 = vst.msk [vmem:[#allocation2 + $0xf8] sm:$0xff] %vm13842_vm1, %v448_v55  ;;  %v1207_v59 = vld [vmem:[#allocation2 + $0x88] sm:$0xff]  ;;  %v1576_v60 = vsel %vm9871_vm8, %v1448_v47, 0  ;;  %v14045_v25 = vmov 0 }
  0x2b   : > { %1297 = vrot.lane.b32.xlu2 %v1228_v31, %s9658_s28  ;;  %471 = vst.msk [vmem:[#allocation2 + $0xa8] sm:$0xff] %vm13842_vm1, %v438_v56  ;;  %v1239_v61 = vpack.c.bf16 %v1207_v59, %v1207_v59  ;;  %v1215_v12 = vld [vmem:[#allocation2 + $0xc8] sm:$0xff]  ;;  %vm935_vm2 = vcmp.ne.s32.totalorder %v529_v29, 15  ;;  %vm906_vm9 = vcmp.ne.s32.totalorder %v550_v51, 0  ;;  %v1450_v59 = vpack.c.bf16 %v1418_v50, %v1418_v50  ;;  %v8921_v56 = vld [vmem:[%s13838_s10 + $0x70] sm:$0xff] }
  0x2c   : > { %v1205_v54 = vld [vmem:[#allocation2 + $0x78] sm:$0xff]  ;;  %476 = vst.msk [vmem:[#allocation2 + $0xd0] sm:$0xff] %vm13842_vm1, %v443_v57  ;;  %v1247_v14 = vpack.c.bf16 %v1215_v12, %v1215_v12  ;;  %vm9860_vm6 = vmpackc.low %vm935_vm2, %vm935_vm2  ;;  %v970_v55 = vld [vmem:[#allocation2 + $0x27] sm:$0xff]  ;;  %v493_v57 = vadd.s32 56, %v9845_v22 }
  0x2d   : > { %v1237_v58 = vpack.c.bf16 %v1205_v54, %v1205_v54  ;;  %474 = vst.msk [vmem:[#allocation2 + $0xc0] sm:$0xff] %vm13842_vm1, %v441_v0  ;;  %v1210_v3 = vld [vmem:[#allocation2 + $0xa0] sm:$0xff]  ;;  %v967_v54 = vld [vmem:[#allocation2 + $0xf] sm:$0xff]  ;;  %vm9880_vm10 = vmpackc.low %vm906_vm9, %vm906_vm9 }
  0x2e   : > { %479 = vst.msk [vmem:[#allocation2 + $0xe8] sm:$0xff] %vm13842_vm1, %v446_v1  ;;  %v1242_v5 = vpack.c.bf16 %v1210_v3, %v1210_v3  ;;  %v1218_v20 = vld [vmem:[#allocation2 + $0xe0] sm:$0xff]  ;;  %v571_v4 = vand.u32 15, %v493_v57  ;;  %v975_v46 = vld [vmem:[#allocation2 + $0x4f] sm:$0xff] }
  0x2f   : > { %1301 = vrot.lane.b32.xlu1 %v1230_v34, %s9658_s28  ;;  %v1208_v63 = vld [vmem:[#allocation2 + $0x90] sm:$0xff]  ;;  %477 = vst.msk [vmem:[#allocation2 + $0xd8] sm:$0xff] %vm13842_vm1, %v444_v8  ;;  %v1250_v23 = vpack.c.bf16 %v1218_v20, %v1218_v20  ;;  %v1419_v1 = vld [vmem:[#allocation2 + $0x21] sm:$0xff]  ;;  %v488_v8 = vadd.s32 16, %v9845_v22  ;;  %v1007_v50 = vpack.c.bf16 %v975_v46, %v975_v46 }
  0x30   : > { %1305 = vrot.lane.b32.xlu0 %v1232_v35, %s9658_s28  ;;  %v1240_v2 = vpack.c.bf16 %v1208_v63, %v1208_v63  ;;  %482 = vst.msk [vmem:[#allocation2 + $0x100] sm:$0xff] %vm13842_vm1, %v449_v9  ;;  %v1213_v11 = vld [vmem:[#allocation2 + $0xb8] sm:$0xff]  ;;  %v966_v35 = vld [vmem:[#allocation2 + $0x7] sm:$0xff]  ;;  %v9884_v63 = vpack.c.bf16 %v970_v55, %v970_v55  ;;  %vm9904_vm14 = vcmp.ne.s32.totalorder %v571_v4, 15 }
  0x31   : > { %v1245_v13 = vpack.c.bf16 %v1213_v11, %v1213_v11  ;;  %480 = vst.msk [vmem:[#allocation2 + $0xf0] sm:$0xff] %vm13842_vm1, %v447_v16  ;;  %v1221_v28 = vld [vmem:[#allocation2 + $0xf8] sm:$0xff]  ;;  %v998_v37 = vpack.c.bf16 %v966_v35, %v966_v35  ;;  %v14038_v11 = vmov 0  ;;  %v536_v16 = vand.u32 15, %v488_v8 }
  0x32   : > { %v1211_v7 = vld [vmem:[#allocation2 + $0xa8] sm:$0xff]  ;;  %v1253_v31 = vpack.c.bf16 %v1221_v28, %v1221_v28  ;;  %v1417_v34 = vld [vmem:[#allocation2 + $0x11] sm:$0xff]  ;;  %v1130_v3 = vsel %vm9880_vm10, %v9884_v63, 0  ;;  %v1422_v28 = vld [vmem:[#allocation2 + $0x39] sm:$0xff] }
  0x33   : > { %1303 = vrot.lane.b32.xlu2 %v1231_v40, %s9658_s28  ;;  %v1243_v10 = vpack.c.bf16 %v1211_v7, %v1211_v7  ;;  %v1216_v19 = vld [vmem:[#allocation2 + $0xd0] sm:$0xff]  ;;  %v1449_v40 = vpack.c.bf16 %v1417_v34, %v1417_v34  ;;  %v1126_v42 = vsel %vm9854_vm4, %v998_v37, 0  ;;  %1163 = vst.msk [vmem:[#allocation3 + $0x20] sm:$0xf] %vm13844_vm5, %v1130_v3  ;;  %v1451_v7 = vpack.c.bf16 %v1419_v1, %v1419_v1 }
  0x34   : > { %v1214_v15 = vld [vmem:[#allocation2 + $0xc0] sm:$0xff]  ;;  %v1248_v21 = vpack.c.bf16 %v1216_v19, %v1216_v19  ;;  %1159 = vst.msk [vmem:[#allocation3] sm:$0xf] %vm13844_vm5, %v1126_v42  ;;  %vm904_vm7 = vcmp.ne.s32.totalorder %v536_v16, 0  ;;  %v495_v34 = vadd.s32 72, %v9845_v22  ;;  %v494_v37 = vadd.s32 64, %v9845_v22 }
  0x35   : > { %v1246_v17 = vpack.c.bf16 %v1214_v15, %v1214_v15  ;;  %v1219_v27 = vld [vmem:[#allocation2 + $0xe8] sm:$0xff]  ;;  %vm9931_vm9 = vmpackc.low %vm904_vm7, %vm904_vm7  ;;  %v498_v3 = vadd.s32 96, %v9845_v22 }
  0x36   : > { %v1217_v24 = vld [vmem:[#allocation2 + $0xd8] sm:$0xff]  ;;  %v1251_v30 = vpack.c.bf16 %v1219_v27, %v1219_v27  ;;  %v971_v15 = vld [vmem:[#allocation2 + $0x2f] sm:$0xff]  ;;  %v578_v47 = vand.u32 15, %v494_v37  ;;  %v501_v37 = vadd.s32 120, %v9845_v22 }
  0x37   : > { %1307 = vrot.lane.b32.xlu1 %v1233_v43, %s9658_s28  ;;  %v1249_v26 = vpack.c.bf16 %v1217_v24, %v1217_v24  ;;  %v1222_v38 = vld [vmem:[#allocation2 + $0x100] sm:$0xff]  ;;  %v14032_v43 = vmov 0  ;;  %v1003_v20 = vpack.c.bf16 %v971_v15, %v971_v15 }
  0x38   : > { %1311 = vrot.lane.b32.xlu0 %v1235_v44, %s9658_s28  ;;  %v1220_v32 = vld [vmem:[#allocation2 + $0xf0] sm:$0xff]  ;;  %v14033_v43 = vsel %vm9860_vm6, 4294967295, %v14032_v43  ;;  %v489_v44 = vadd.s32 24, %v9845_v22  ;;  %v1254_v45 = vpack.c.bf16 %v1222_v38, %v1222_v38  ;;  %v977_v15 = vld [vmem:[#allocation2 + $0x5f] sm:$0xff] }
  0x39   : > { %v1252_v36 = vpack.c.bf16 %v1220_v32, %v1220_v32  ;;  %v14050_v32 = vmov 0 }
  0x3b   : > { %1309 = vrot.lane.b32.xlu2 %v1234_v49, %s9658_s28  ;;  %v1577_v49 = vsel %vm9860_vm6, %v1449_v40, 0  ;;  %v1426_v40 = vld [vmem:[#allocation2 + $0x59] sm:$0xff] }
  0x3c   : > { %v1458_v57 = vpack.c.bf16 %v1426_v40, %v1426_v40  ;;  %v14069_v40 = vmov 0 }
  0x3f   : > { %1313 = vrot.lane.b32.xlu1 %v1236_v52, %s9658_s28  ;;  %v1420_v52 = vld [vmem:[#allocation2 + $0x29] sm:$0xff] }
  0x40   : > { %1317 = vrot.lane.b32.xlu0 %v1238_v53, %s9658_s28  ;;  %v543_v53 = vand.u32 15, %v489_v44  ;;  %v1452_v0 = vpack.c.bf16 %v1420_v52, %v1420_v52  ;;  %v497_v44 = vadd.s32 88, %v9845_v22  ;;  %v969_v52 = vld [vmem:[#allocation2 + $0x1f] sm:$0xff] }
  0x41   : > { %v1001_v55 = vpack.c.bf16 %v969_v52, %v969_v52 }
  0x42   : > { %vm937_vm11 = vcmp.ne.s32.totalorder %v543_v53, 15  ;;  %v1580_v9 = vsel %vm9871_vm8, %v1452_v0, 0  ;;  %v1456_v53 = vpack.c.bf16 %v1424_v41, %v1424_v41 }
  0x43   : > { %1315 = vrot.lane.b32.xlu2 %v1237_v58, %s9658_s28  ;;  %v999_v58 = vpack.c.bf16 %v967_v54, %v967_v54  ;;  %vm9900_vm13 = vmpackc.low %vm937_vm11, %vm937_vm11  ;;  %v9980_v1 = vsel %vm9871_vm8, %v1001_v55, 0  ;;  %v981_v55 = vld [vmem:[#allocation2 + $0x7f] sm:$0xff] }
  0x44   : > { %v14039_v11 = vsel %vm9900_vm13, 4294967295, %v14038_v11  ;;  %v1579_v24 = vsel %vm9900_vm13, %v1451_v7, 0  ;;  %vm9938_vm11 = vmpackc.low %vm9904_vm14, %vm9904_vm14  ;;  %vm910_vm14 = vcmp.ne.s32.totalorder %v578_v47, 0  ;;  %v1584_v4 = vsel %vm9871_vm8, %v1456_v53, 0  ;;  %1162 = vst.msk [vmem:[#allocation3 + $0x18] sm:$0xf] %vm13844_vm5, %v9980_v1 }
  0x45   : > { %v14051_v32 = vsel %vm9938_vm11, 4294967295, %v14050_v32  ;;  %v1427_v7 = vld [vmem:[#allocation2 + $0x61] sm:$0xff]  ;;  %v500_v47 = vadd.s32 112, %v9845_v22  ;;  %v503_v53 = vadd.s32 136, %v9845_v22  ;;  %vm14094_vm13 = vcmask 126016  }
  0x46   : > { %14052 = vst [vmem:[#allocation7_spill] sm:$0xff] %v14051_v32 }
  0x47   : > { %1319 = vrot.lane.b32.xlu1 %v1239_v61, %s9658_s28  ;;  %v557_v61 = vand.u32 15, %v491_v48  ;;  %v974_v48 = vld [vmem:[#allocation2 + $0x47] sm:$0xff] }
  0x48   : > { %1323 = vrot.lane.b32.xlu0 %v1241_v62, %s9658_s28  ;;  %v14036_v62 = vmov 0  ;;  %v9960_v51 = vpack.c.bf16 %v974_v48, %v974_v48  ;;  %v496_v48 = vadd.s32 80, %v9845_v22 }
  0x49   : > { %v14037_v62 = vsel %vm9880_vm10, 4294967295, %v14036_v62  ;;  %vm939_vm12 = vcmp.ne.s32.totalorder %v557_v61, 15  ;;  %v599_v61 = vand.u32 15, %v497_v44 }
  0x4a   : > { %vm9909_vm15 = vmpackc.low %vm939_vm12, %vm939_vm12  ;;  %vm13843_vm12 = vcmask 126016  }
  0x4b   : > { %1321 = vrot.lane.b32.xlu2 %v1240_v2, %s9658_s28  ;;  %v1127_v2 = vsel %vm9871_vm8, %v999_v58, 0  ;;  %v14043_v18 = vsel %vm9909_vm15, 4294967295, %v14042_v18  ;;  %v1425_v58 = vld [vmem:[#allocation2 + $0x51] sm:$0xff]  ;;  %vm9995_vm0 = vcmp.ne.s32.totalorder %v599_v61, 15  ;;  %v592_v61 = vand.u32 15, %v496_v48 }
  0x4c   : > { %1160 = vst.msk [vmem:[#allocation3 + $0x8] sm:$0xf] %vm13844_vm5, %v1127_v2 }
  0x4d   : > { %14044 = vst [vmem:[#allocation5_spill] sm:$0xff] %v14043_v18 }
  0x4f   : > { %1325 = vrot.lane.b32.xlu1 %v1242_v5, %s9658_s28  ;;  %v492_v5 = vadd.s32 48, %v9845_v22 }
  0x50   : > { %1329 = vrot.lane.b32.xlu0 %v1244_v6, %s9658_s28  ;;  %v1578_v6 = vsel %vm9871_vm8, %v1450_v59, 0  ;;  %v9967_v59 = vsel %vm9871_vm8, %v1007_v50, 0  ;;  %v1432_v50 = vld [vmem:[#allocation2 + $0x89] sm:$0xff] }
  0x51   : > { %v564_v12 = vand.u32 15, %v492_v5  ;;  %1168 = vst.msk [vmem:[#allocation3 + $0x48] sm:$0xf] %vm13844_vm5, %v9967_v59  ;;  %v1457_v5 = vpack.c.bf16 %v1425_v58, %v1425_v58  ;;  %v980_v58 = vld [vmem:[#allocation2 + $0x77] sm:$0xff] }
  0x53   : > { %1327 = vrot.lane.b32.xlu2 %v1243_v10, %s9658_s28  ;;  %v1421_v10 = vld [vmem:[#allocation2 + $0x31] sm:$0xff]  ;;  %vm908_vm2 = vcmp.ne.s32.totalorder %v564_v12, 0 }
  0x54   : > { %vm9918_vm3 = vmpackc.low %vm908_vm2, %vm908_vm2  ;;  %v1429_v12 = vld [vmem:[#allocation2 + $0x71] sm:$0xff] }
  0x55   : > { %v14046_v25 = vsel %vm9918_vm3, 4294967295, %v14045_v25  ;;  %vm9969_vm2 = vmpackc.low %vm910_vm14, %vm910_vm14 }
  0x56   : > { %14047 = vst [vmem:[#allocation6_spill] sm:$0xff] %v14046_v25  ;;  %v1134_v0 = vsel %vm9969_vm2, %v9960_v51, 0 }
  0x57   : > { %1331 = vrot.lane.b32.xlu1 %v1245_v13, %s9658_s28  ;;  %v1423_v13 = vld [vmem:[#allocation2 + $0x41] sm:$0xff]  ;;  %1167 = vst.msk [vmem:[#allocation3 + $0x40] sm:$0xf] %vm13844_vm5, %v1134_v0 }
  0x58   : > { %1335 = vrot.lane.b32.xlu0 %v1247_v14, %s9658_s28  ;;  %v972_v14 = vld [vmem:[#allocation2 + $0x37] sm:$0xff]  ;;  %v1455_v27 = vpack.c.bf16 %v1423_v13, %v1423_v13  ;;  %v1431_v13 = vld [vmem:[#allocation2 + $0x81] sm:$0xff] }
  0x59   : > { %v9913_v19 = vpack.c.bf16 %v972_v14, %v972_v14  ;;  %v978_v14 = vld [vmem:[#allocation2 + $0x67] sm:$0xff] }
  0x5a   : > { %v1583_v38 = vsel %vm9938_vm11, %v1455_v27, 0  ;;  %v14063_v27 = vmov 0 }
  0x5b   : > { %1333 = vrot.lane.b32.xlu2 %v1246_v17, %s9658_s28  ;;  %v1132_v29 = vsel %vm9918_vm3, %v9913_v19, 0  ;;  %v10005_v17 = vpack.c.bf16 %v978_v14, %v978_v14 }
  0x5c   : > { %1165 = vst.msk [vmem:[#allocation3 + $0x30] sm:$0xf] %vm13844_vm5, %v1132_v29  ;;  %v1461_v29 = vpack.c.bf16 %v1429_v12, %v1429_v12  ;;  %v641_v12 = vand.u32 15, %v503_v53 }
  0x5f   : > { %1337 = vrot.lane.b32.xlu1 %v1248_v21, %s9658_s28  ;;  %v968_v21 = vld [vmem:[#allocation2 + $0x17] sm:$0xff] }
  0x60   : > { %1341 = vrot.lane.b32.xlu0 %v1250_v23, %s9658_s28  ;;  %v1453_v23 = vpack.c.bf16 %v1421_v10, %v1421_v10  ;;  %v606_v10 = vand.u32 15, %v498_v3  ;;  %v1013_v3 = vpack.c.bf16 %v981_v55, %v981_v55  ;;  %v983_v55 = vld [vmem:[#allocation2 + $0x8f] sm:$0xff] }
  0x62   : > { %v1581_v35 = vsel %vm9909_vm15, %v1453_v23, 0  ;;  %v1459_v23 = vpack.c.bf16 %v1427_v7, %v1427_v7  ;;  %v10066_v14 = vsel %vm9871_vm8, %v1013_v3, 0 }
  0x63   : > { %1339 = vrot.lane.b32.xlu2 %v1249_v26, %s9658_s28  ;;  %v9922_v26 = vpack.c.bf16 %v968_v21, %v968_v21  ;;  %v973_v21 = vld [vmem:[#allocation2 + $0x3f] sm:$0xff] }
  0x65   : > { %v1128_v33 = vsel %vm9931_vm9, %v9922_v26, 0 }
  0x66   : > { %1161 = vst.msk [vmem:[#allocation3 + $0x10] sm:$0xf] %vm13844_vm5, %v1128_v33  ;;  %v14066_v33 = vmov 0 }
  0x67   : > { %1343 = vrot.lane.b32.xlu1 %v1251_v30, %s9658_s28  ;;  %v9929_v30 = vsel %vm9871_vm8, %v1003_v20, 0  ;;  %v1009_v20 = vpack.c.bf16 %v977_v15, %v977_v15  ;;  %v14077_v15 = vmov 0 }
  0x68   : > { %1347 = vrot.lane.b32.xlu0 %v1253_v31, %s9658_s28  ;;  %v14048_v31 = vmov 0  ;;  %1164 = vst.msk [vmem:[#allocation3 + $0x28] sm:$0xf] %vm13844_vm5, %v9929_v30  ;;  %vm10017_vm5 = vmpackc.low %vm9995_vm0, %vm9995_vm0  ;;  %vm14072_vm0 = vcmask 60416  }
  0x69   : > { %v14049_v31 = vsel %vm9931_vm9, 4294967295, %v14048_v31  ;;  %v14067_v33 = vsel %vm10017_vm5, 4294967295, %v14066_v33  ;;  %v1587_v44 = vsel %vm10017_vm5, %v1459_v23, 0  ;;  %v14083_v23 = vmov 0 }
  0x6a   : > { %14068 = vst [vmem:[#allocation11_spill] sm:$0xff] %v14067_v33  ;;  %v991_v33 = vld [vmem:[#allocation2 + $0xcf] sm:$0xff] }
  0x6b   : > { %1345 = vrot.lane.b32.xlu2 %v1252_v36, %s9658_s28  ;;  %v1454_v36 = vpack.c.bf16 %v1422_v28, %v1422_v28  ;;  %v1005_v28 = vpack.c.bf16 %v973_v21, %v973_v21 }
  0x6d   : > { %v1582_v54 = vsel %vm9871_vm8, %v1454_v36, 0  ;;  %v10026_v36 = vsel %vm9871_vm8, %v1009_v20, 0  ;;  %v10039_v41 = vsel %vm9871_vm8, %v1005_v28, 0  ;;  %v1435_v28 = vld [vmem:[#allocation2 + $0xa1] sm:$0xff]  ;;  %v506_v20 = vadd.s32 160, %v9845_v22 }
  0x6f   : > { %1349 = vrot.lane.b32.xlu1 %v1254_v45, %s9658_s28  ;;  %v585_v45 = vand.u32 15, %v495_v34  ;;  %v1428_v34 = vld [vmem:[#allocation2 + $0x69] sm:$0xff] }
  0x70   : > { %1642 = vrot.lane.b32.xlu0 %v1577_v49, %s9660_s29  ;;  %v499_v49 = vadd.s32 104, %v9845_v22  ;;  %v1460_v46 = vpack.c.bf16 %v1428_v34, %v1428_v34  ;;  %v1433_v34 = vld [vmem:[#allocation2 + $0x91] sm:$0xff] }
  0x71   : > { %vm943_vm7 = vcmp.ne.s32.totalorder %v585_v45, 15  ;;  %v1430_v45 = vld [vmem:[#allocation2 + $0x79] sm:$0xff]  ;;  %v1465_v53 = vpack.c.bf16 %v1433_v34, %v1433_v34 }
  0x72   : > { %v613_v2 = vand.u32 15, %v499_v49  ;;  %vm9991_vm14 = vmpackc.low %vm943_vm7, %vm943_vm7  ;;  %vm914_vm7 = vcmp.ne.s32.totalorder %v606_v10, 0  ;;  %v1438_v34 = vld [vmem:[#allocation2 + $0xb9] sm:$0xff] }
  0x73   : > { %1640 = vrot.lane.b32.xlu2 %v1576_v60, %s9660_s29  ;;  %v14053_v60 = vmov 0 }
  0x74   : > { %v14054_v60 = vsel %vm9969_vm2, 4294967295, %v14053_v60  ;;  %vm10000_vm1 = vcmp.ne.s32.totalorder %v613_v2, 15  ;;  %v1462_v2 = vpack.c.bf16 %v1430_v45, %v1430_v45 }
  0x75   : > { %14055 = vst [vmem:[#allocation8_spill] sm:$0xff] %v14054_v60 }
  0x77   : > { %1644 = vrot.lane.b32.xlu1 %v1578_v6, %s9660_s29  ;;  %v1586_v6 = vsel %vm9871_vm8, %v1458_v57, 0  ;;  %v620_v57 = vand.u32 15, %v500_v47  ;;  %v450_v47 = vld [vmem:[%s9757_s27 + $0xf0] sm:$0xff] }
  0x78   : > { %1648 = vrot.lane.b32.xlu0 %v1580_v9, %s9660_s29  ;;  %v14056_v9 = vmov 0 }
  0x79   : > { %v14057_v9 = vsel %vm9991_vm14, 4294967295, %v14056_v9 }
  0x7a   : > { %14058 = vst [vmem:[#allocation9_spill] sm:$0xff] %v14057_v9  ;;  %v14161_v9 = vmov 0 }
  0x7b   : > { %1646 = vrot.lane.b32.xlu2 %v1579_v24, %s9660_s29  ;;  %v1585_v24 = vsel %vm9991_vm14, %v1457_v5, 0  ;;  %vm14073_vm14 = vcmask 126016   ;;  %v976_v5 = vld [vmem:[#allocation2 + $0x57] sm:$0xff] }
  0x7c   : > { %v10062_v7 = vpack.c.bf16 %v976_v5, %v976_v5  ;;  %v1434_v5 = vld [vmem:[#allocation2 + $0x99] sm:$0xff] }
  0x7d   : > { %v1296_v42 = vpop.permute.xlu2 %1295 }
  0x7e   : > { %1388 = vst.msk [vmem:[#allocation3 + $0x20] sm:$0xf] %vm13843_vm12, %v1296_v42  ;;  %v505_v42 = vadd.s32 152, %v9845_v22 }
  0x7f   : > { %1650 = vrot.lane.b32.xlu1 %v1581_v35, %s9660_s29 }
  0x80   : > { %1654 = vrot.lane.b32.xlu0 %v1583_v38, %s9660_s29  ;;  %v655_v0 = vand.u32 15, %v505_v42 }
  0x83   : > { %1652 = vrot.lane.b32.xlu2 %v1582_v54, %s9660_s29  ;;  %v627_v54 = vand.u32 15, %v501_v37 }
  0x85   : > { %v1298_v8 = vpop.permute.xlu2 %1297  ;;  %vm10073_vm5 = vcmp.ne.s32.totalorder %v627_v54, 15 }
  0x86   : > { %1389 = vst.msk [vmem:[#allocation3 + $0x28] sm:$0xf] %vm13843_vm12, %v1298_v8  ;;  %vm10010_vm12 = vmpackc.low %vm914_vm7, %vm914_vm7  ;;  %v1464_v8 = vpack.c.bf16 %v1432_v50, %v1432_v50  ;;  %v1467_v50 = vpack.c.bf16 %v1435_v28, %v1435_v28 }
  0x87   : > { %1656 = vrot.lane.b32.xlu1 %v1584_v4, %s9660_s29  ;;  %v14064_v27 = vsel %vm10010_vm12, 4294967295, %v14063_v27  ;;  %v1138_v35 = vsel %vm10010_vm12, %v10005_v17, 0  ;;  %vm10032_vm7 = vmpackc.low %vm10000_vm1, %vm10000_vm1  ;;  %v10057_v4 = vpack.c.bf16 %v980_v58, %v980_v58  ;;  %v14099_v58 = vmov 0 }
  0x88   : > { %1660 = vrot.lane.b32.xlu0 %v1586_v6, %s9660_s29  ;;  %14065 = vst [vmem:[#allocation10_spill] sm:$0xff] %v14064_v27  ;;  %v14070_v40 = vsel %vm10032_vm7, 4294967295, %v14069_v40  ;;  %vm14074_vm1 = vmmov %vm14072_vm0  ;;  %v1589_v49 = vsel %vm10032_vm7, %v1461_v29, 0  ;;  %v1588_v6 = vsel %vm9871_vm8, %v1460_v46, 0  ;;  %vm14080_vm7 = vcmask 126016  }
  0x89   : > { %14071 = vst [vmem:[#allocation12_spill] sm:$0xff] %v14070_v40  ;;  %vm14085_vm15 = vmmov %vm14080_vm7  ;;  %v1590_v29 = vsel %vm9871_vm8, %v1462_v2, 0  ;;  %v1592_v42 = vsel %vm9871_vm8, %v1464_v8, 0  ;;  %v14091_v46 = vmov 0  ;;  %v995_v40 = vld [vmem:[#allocation2 + $0xef] sm:$0xff] }
  0x8a   : > { %v1288_v38 = vpop.permute.xlu0 %1287  ;;  %1171 = vst.msk [vmem:[#allocation3 + $0x60] sm:$0xf] %vm14072_vm0, %v1138_v35  ;;  %v1463_v35 = vpack.c.bf16 %v1431_v13, %v1431_v13  ;;  %v507_v13 = vadd.s32 168, %v9845_v22 }
  0x8b   : > { %1384 = vst.msk [vmem:[#allocation3] sm:$0xf] %vm14073_vm14, %v1288_v38  ;;  %1658 = vrot.lane.b32.xlu2 %v1585_v24, %s9660_s29  ;;  %vm14075_vm14 = vmmov %vm14072_vm0  ;;  %vm14076_vm0 = vcmask 126016   ;;  %v504_v38 = vadd.s32 144, %v9845_v22  ;;  %v1466_v24 = vpack.c.bf16 %v1434_v5, %v1434_v5 }
  0x8c   : > { %1170 = vst.msk [vmem:[#allocation3 + $0x58] sm:$0xf] %vm14074_vm1, %v10026_v36  ;;  %vm916_vm1 = vcmp.ne.s32.totalorder %v620_v57, 0  ;;  %v979_v57 = vld [vmem:[#allocation2 + $0x6f] sm:$0xff] }
  0x8d   : > { %v1304_v52 = vpop.permute.xlu2 %1303  ;;  %1166 = vst.msk [vmem:[#allocation3 + $0x38] sm:$0xf] %vm14075_vm14, %v10039_v41  ;;  %vm912_vm14 = vcmp.ne.s32.totalorder %v592_v61, 0  ;;  %v648_v48 = vand.u32 15, %v504_v38  ;;  %v1011_v2 = vpack.c.bf16 %v979_v57, %v979_v57  ;;  %v509_v38 = vadd.s32 184, %v9845_v22 }
  0x8e   : > { %1392 = vst.msk [vmem:[#allocation3 + $0x40] sm:$0xf] %vm14076_vm0, %v1304_v52  ;;  %vm10068_vm0 = vmpackc.low %vm916_vm1, %vm916_vm1  ;;  %vm10085_vm1 = vcmp.ne.s32.totalorder %v655_v0, 15  ;;  %v14095_v52 = vmov 0  ;;  %v1015_v0 = vpack.c.bf16 %v983_v55, %v983_v55  ;;  %v1594_v55 = vsel %vm9871_vm8, %v1466_v24, 0 }
  0x8f   : > { %1662 = vrot.lane.b32.xlu1 %v1587_v44, %s9660_s29  ;;  %v14078_v15 = vsel %vm10068_vm0, 4294967295, %v14077_v15  ;;  %v1140_v21 = vsel %vm10068_vm0, %v10057_v4, 0  ;;  %vm10080_vm11 = vmpackc.low %vm912_vm14, %vm912_vm14  ;;  %vm14106_vm0 = vcmask 126016   ;;  %v10159_v28 = vsel %vm9871_vm8, %v1011_v2, 0 }
  0x90   : > { %1666 = vrot.lane.b32.xlu0 %v1589_v49, %s9660_s29  ;;  %14079 = vst [vmem:[#allocation13_spill] sm:$0xff] %v14078_v15  ;;  %v14084_v23 = vsel %vm10080_vm11, 4294967295, %v14083_v23  ;;  %v1136_v37 = vsel %vm10080_vm11, %v10062_v7, 0  ;;  %vm10107_vm14 = vmpackc.low %vm10073_vm5, %vm10073_vm5  ;;  %v984_v49 = vld [vmem:[#allocation2 + $0x97] sm:$0xff]  ;;  %v669_v44 = vand.u32 15, %v507_v13  ;;  %v1470_v2 = vpack.c.bf16 %v1438_v34, %v1438_v34 }
  0x91   : > { %v1292_v10 = vpop.permute.xlu1 %1291  ;;  %v14092_v46 = vsel %vm10107_vm14, 4294967295, %v14091_v46  ;;  %vm10117_vm6 = vmpackc.low %vm10085_vm1, %vm10085_vm1  ;;  %v10123_v54 = vpack.c.bf16 %v984_v49, %v984_v49  ;;  %v1591_v61 = vsel %vm10107_vm14, %v1463_v35, 0  ;;  %vm920_vm1 = vcmp.ne.s32.totalorder %v648_v48, 0  ;;  %v1436_v35 = vld [vmem:[#allocation2 + $0xa9] sm:$0xff] }
  0x92   : > { %v1290_v16 = vpop.permute.xlu0 %1289  ;;  %1386 = vst.msk [vmem:[#allocation3 + $0x10] sm:$0xf] %vm14080_vm7, %v1292_v10  ;;  %vm14088_vm7 = vcmask 60416   ;;  %v14096_v52 = vsel %vm10117_vm6, 4294967295, %v14095_v52  ;;  %v511_v49 = vadd.s32 200, %v9845_v22  ;;  %v683_v5 = vand.u32 15, %v509_v38 }
  0x93   : > { %1385 = vst.msk [vmem:[#allocation3 + $0x8] sm:$0xf] %vm14085_vm15, %v1290_v16  ;;  %1664 = vrot.lane.b32.xlu2 %v1588_v6, %s9660_s29  ;;  %vm10100_vm15 = vcmp.ne.s32.totalorder %v641_v12, 15  ;;  %vm14098_vm5 = vmmov %vm14088_vm7  ;;  %v14103_v6 = vmov 0  ;;  %v10146_v12 = vsel %vm9871_vm8, %v1015_v0, 0  ;;  %v1595_v16 = vsel %vm10117_vm6, %v1467_v50, 0 }
  0x94   : > { %1174 = vst.msk [vmem:[#allocation3 + $0x78] sm:$0xf] %vm14088_vm7, %v10066_v14  ;;  %v982_v0 = vld [vmem:[#allocation2 + $0x87] sm:$0xff]  ;;  %vm955_vm6 = vcmp.ne.s32.totalorder %v669_v44, 15  ;;  %v697_v24 = vand.u32 15, %v511_v49  ;;  %v1598_v38 = vsel %vm9871_vm8, %v1470_v2, 0 }
  0x95   : > { %v1310_v45 = vpop.permute.xlu2 %1309  ;;  %14093 = vst [vmem:[#allocation14_spill] sm:$0xff] %v14092_v46  ;;  %v10183_v13 = vpack.c.bf16 %v982_v0, %v982_v0  ;;  %v1439_v44 = vld [vmem:[#allocation2 + $0xc1] sm:$0xff]  ;;  %vm14126_vm14 = vcmask 126016   ;;  %v996_v46 = vld [vmem:[#allocation2 + $0xf7] sm:$0xff] }
  0x96   : > { %1173 = vst.msk [vmem:[#allocation3 + $0x70] sm:$0xf] %vm14088_vm7, %v1140_v21  ;;  %vm14102_vm7 = vcmask 64512  }
  0x97   : > { %1395 = vst.msk [vmem:[#allocation3 + $0x58] sm:$0xf] %vm14094_vm13, %v1310_v45  ;;  %1668 = vrot.lane.b32.xlu1 %v1590_v29, %s9660_s29  ;;  %vm10129_vm13 = vmpackc.low %vm10100_vm15, %vm10100_vm15  ;;  %v502_v29 = vadd.s32 128, %v9845_v22  ;;  %v987_v45 = vld [vmem:[#allocation2 + $0xaf] sm:$0xff] }
  0x98   : > { %14097 = vst [vmem:[#allocation15_spill] sm:$0xff] %v14096_v52  ;;  %1672 = vrot.lane.b32.xlu0 %v1592_v42, %s9660_s29  ;;  %v14100_v58 = vsel %vm10129_vm13, 4294967295, %v14099_v58  ;;  %vm14107_vm15 = vmmov %vm14106_vm0  ;;  %v1593_v21 = vsel %vm10129_vm13, %v1465_v53, 0  ;;  %v662_v42 = vand.u32 15, %v506_v20  ;;  %v1019_v50 = vpack.c.bf16 %v987_v45, %v987_v45  ;;  %v988_v52 = vld [vmem:[#allocation2 + $0xb7] sm:$0xff] }
  0x99   : > { %1169 = vst.msk [vmem:[#allocation3 + $0x50] sm:$0xf] %vm14098_vm5, %v1136_v37  ;;  %v1294_v3 = vpop.permute.xlu1 %1293  ;;  %vm10136_vm5 = vmpackc.low %vm920_vm1, %vm920_vm1  ;;  %v634_v48 = vand.u32 15, %v502_v29  ;;  %v1468_v53 = vpack.c.bf16 %v1436_v35, %v1436_v35 }
  0x9a   : > { %14101 = vst [vmem:[#allocation16_spill] sm:$0xff] %v14100_v58  ;;  %v14104_v6 = vsel %vm10136_vm5, 4294967295, %v14103_v6  ;;  %v1300_v8 = vpop.permute.xlu0 %1299  ;;  %v1144_v10 = vsel %vm10136_vm5, %v10123_v54, 0  ;;  %v1443_v58 = vld [vmem:[#allocation2 + $0xe1] sm:$0xff] }
  0x9b   : > { %483 = vst.msk [vmem:[#allocation2 + $0x108] sm:$0xff] %vm14102_vm7, %v450_v47  ;;  %1670 = vrot.lane.b32.xlu2 %v1591_v61, %s9660_s29  ;;  %vm14110_vm7 = vmmov %vm14107_vm15  ;;  %v986_v47 = vld [vmem:[#allocation2 + $0xa7] sm:$0xff]  ;;  %v14112_v61 = vmov 0  ;;  %v1596_v29 = vsel %vm9871_vm8, %v1468_v53, 0  ;;  %v989_v53 = vld [vmem:[#allocation2 + $0xbf] sm:$0xff] }
  0x9c   : > { %14105 = vst [vmem:[#allocation17_spill] sm:$0xff] %v14104_v6  ;;  %v10173_v57 = vpack.c.bf16 %v986_v47, %v986_v47  ;;  %v14123_v47 = vmov 0  ;;  %v1021_v2 = vpack.c.bf16 %v989_v53, %v989_v53  ;;  %v1442_v53 = vld [vmem:[#allocation2 + $0xd9] sm:$0xff] }
  0x9d   : > { %1387 = vst.msk [vmem:[#allocation3 + $0x18] sm:$0xf] %vm14106_vm0, %v1294_v3  ;;  %vm14108_vm0 = vcmask 60416   ;;  %v1316_v37 = vpop.permute.xlu2 %1315 }
  0x9e   : > { %1390 = vst.msk [vmem:[#allocation3 + $0x30] sm:$0xf] %vm14107_vm15, %v1300_v8  ;;  %vm14109_vm1 = vmmov %vm14108_vm0  ;;  %v1437_v8 = vld [vmem:[#allocation2 + $0xb1] sm:$0xff] }
  0x9f   : > { %1177 = vst.msk [vmem:[#allocation3 + $0x90] sm:$0xf] %vm14108_vm0, %v1144_v10  ;;  %1674 = vrot.lane.b32.xlu1 %v1593_v21, %s9660_s29  ;;  %vm14111_vm15 = vmmov %vm14108_vm0  ;;  %vm922_vm0 = vcmp.ne.s32.totalorder %v662_v42, 0  ;;  %v10181_v10 = vsel %vm9871_vm8, %v1019_v50, 0  ;;  %v1469_v34 = vpack.c.bf16 %v1437_v8, %v1437_v8  ;;  %v990_v50 = vld [vmem:[#allocation2 + $0xc7] sm:$0xff]  ;;  %v14130_v8 = vmov 0 }
  0xa0   : > { %1176 = vst.msk [vmem:[#allocation3 + $0x88] sm:$0xf] %vm14109_vm1, %v10146_v12  ;;  %1678 = vrot.lane.b32.xlu0 %v1595_v16, %s9660_s29  ;;  %vm10175_vm1 = vmpackc.low %vm922_vm0, %vm922_vm0  ;;  %v14115_v16 = vmov 0  ;;  %vm14118_vm0 = vcmask 126016   ;;  %v10221_v0 = vpack.c.bf16 %v990_v50, %v990_v50  ;;  %v14136_v42 = vmov 0 }
  0xa1   : > { %1398 = vst.msk [vmem:[#allocation3 + $0x70] sm:$0xf] %vm14110_vm7, %v1316_v37  ;;  %v14113_v61 = vsel %vm10175_vm1, 4294967295, %v14112_v61  ;;  %vm918_vm7 = vcmp.ne.s32.totalorder %v634_v48, 0  ;;  %v1302_v3 = vpop.permute.xlu1 %1301  ;;  %v1146_v21 = vsel %vm10175_vm1, %v10173_v57, 0  ;;  %vm14119_vm13 = vmmov %vm14118_vm0  ;;  %v510_v37 = vadd.s32 192, %v9845_v22 }
  0xa2   : > { %1172 = vst.msk [vmem:[#allocation3 + $0x68] sm:$0xf] %vm14111_vm15, %v10159_v28  ;;  %vm10185_vm15 = vmpackc.low %vm918_vm7, %vm918_vm7  ;;  %v1306_v20 = vpop.permute.xlu0 %1305  ;;  %vm14120_vm7 = vcmask 60416   ;;  %v1441_v48 = vld [vmem:[#allocation2 + $0xd1] sm:$0xff]  ;;  %vm10215_vm1 = vcmp.ne.s32.totalorder %v697_v24, 15 }
  0xa3   : > { %14114 = vst [vmem:[#allocation18_spill] sm:$0xff] %v14113_v61  ;;  %v14116_v16 = vsel %vm10185_vm15, 4294967295, %v14115_v16  ;;  %1676 = vrot.lane.b32.xlu2 %v1594_v55, %s9660_s29  ;;  %v1142_v35 = vsel %vm10185_vm15, %v10183_v13, 0  ;;  %v690_v49 = vand.u32 15, %v510_v37  ;;  %vm14129_vm5 = vmmov %vm14120_vm7  ;;  %v1473_v24 = vpack.c.bf16 %v1441_v48, %v1441_v48 }
  0xa4   : > { %14117 = vst [vmem:[#allocation19_spill] sm:$0xff] %v14116_v16  ;;  %v14133_v37 = vmov 0  ;;  %v512_v48 = vadd.s32 208, %v9845_v22 }
  0xa5   : > { %1391 = vst.msk [vmem:[#allocation3 + $0x38] sm:$0xf] %vm14118_vm0, %v1302_v3  ;;  %v1322_v45 = vpop.permute.xlu2 %1321  ;;  %vm10209_vm0 = vmpackc.low %vm955_vm6, %vm955_vm6  ;;  %v985_v3 = vld [vmem:[#allocation2 + $0x9f] sm:$0xff] }
  0xa6   : > { %1393 = vst.msk [vmem:[#allocation3 + $0x48] sm:$0xf] %vm14119_vm13, %v1306_v20  ;;  %vm10205_vm13 = vcmp.ne.s32.totalorder %v683_v5, 15  ;;  %v14124_v47 = vsel %vm10209_vm0, 4294967295, %v14123_v47  ;;  %v1471_v5 = vpack.c.bf16 %v1439_v44, %v1439_v44  ;;  %v1597_v20 = vsel %vm10209_vm0, %v1469_v34, 0 }
  0xa7   : > { %1180 = vst.msk [vmem:[#allocation3 + $0xa8] sm:$0xf] %vm14120_vm7, %v10181_v10  ;;  %1680 = vrot.lane.b32.xlu1 %v1596_v29, %s9660_s29  ;;  %vm10227_vm6 = vmpackc.low %vm10205_vm13, %vm10205_vm13  ;;  %v10250_v44 = vsel %vm9871_vm8, %v1021_v2, 0 }
  0xa8   : > { %14125 = vst [vmem:[#allocation20_spill] sm:$0xff] %v14124_v47  ;;  %1684 = vrot.lane.b32.xlu0 %v1598_v38, %s9660_s29  ;;  %v14131_v8 = vsel %vm10227_vm6, 4294967295, %v14130_v8  ;;  %vm10240_vm13 = vmpackc.low %vm10215_vm1, %vm10215_vm1  ;;  %v1599_v50 = vsel %vm10227_vm6, %v1471_v5, 0  ;;  %vm14141_vm1 = vcmask 60416   ;;  %v515_v5 = vadd.s32 232, %v9845_v22 }
  0xa9   : > { %1179 = vst.msk [vmem:[#allocation3 + $0xa0] sm:$0xf] %vm14120_vm7, %v1146_v21  ;;  %v1017_v21 = vpack.c.bf16 %v985_v3, %v985_v3  ;;  %v1308_v29 = vpop.permute.xlu1 %1307  ;;  %v14137_v42 = vsel %vm10240_vm13, 4294967295, %v14136_v42  ;;  %vm14139_vm7 = vcmask 126016   ;;  %v1601_v3 = vsel %vm10240_vm13, %v1473_v24, 0 }
  0xaa   : > { %1401 = vst.msk [vmem:[#allocation3 + $0x88] sm:$0xf] %vm14126_vm14, %v1322_v45  ;;  %vm926_vm14 = vcmp.ne.s32.totalorder %v690_v49, 0  ;;  %v1312_v38 = vpop.permute.xlu0 %1311  ;;  %v513_v45 = vadd.s32 216, %v9845_v22  ;;  %v508_v49 = vadd.s32 176, %v9845_v22  ;;  %vm14149_vm6 = vcmask 126016  }
  0xab   : > { %1175 = vst.msk [vmem:[#allocation3 + $0x80] sm:$0xf] %vm14129_vm5, %v1142_v35  ;;  %v1440_v35 = vld [vmem:[#allocation2 + $0xc9] sm:$0xff]  ;;  %vm10233_vm5 = vmpackc.low %vm926_vm14, %vm926_vm14  ;;  %1682 = vrot.lane.b32.xlu2 %v1597_v20, %s9660_s29  ;;  %v10262_v2 = vsel %vm9871_vm8, %v1017_v21, 0  ;;  %v517_v21 = vadd.s32 248, %v9845_v22 }
  0xac   : > { %14132 = vst [vmem:[#allocation21_spill] sm:$0xff] %v14131_v8  ;;  %v14134_v37 = vsel %vm10233_vm5, 4294967295, %v14133_v37  ;;  %v1150_v34 = vsel %vm10233_vm5, %v10221_v0, 0  ;;  %vm14140_vm14 = vmmov %vm14139_vm7  ;;  %v1472_v55 = vpack.c.bf16 %v1440_v35, %v1440_v35  ;;  %v676_v47 = vand.u32 15, %v508_v49  ;;  %v992_v8 = vld [vmem:[#allocation2 + $0xd7] sm:$0xff] }
  0xad   : > { %14135 = vst [vmem:[#allocation22_spill] sm:$0xff] %v14134_v37  ;;  %v1328_v20 = vpop.permute.xlu2 %1327  ;;  %v711_v35 = vand.u32 15, %v513_v45  ;;  %v10277_v49 = vpack.c.bf16 %v992_v8, %v992_v8  ;;  %v14143_v45 = vmov 0  ;;  %vm14150_vm0 = vmmov %vm14149_vm6 }
  0xae   : > { %14138 = vst [vmem:[#allocation23_spill] sm:$0xff] %v14137_v42  ;;  %v1474_v42 = vpack.c.bf16 %v1442_v53, %v1442_v53 }
  0xaf   : > { %1394 = vst.msk [vmem:[#allocation3 + $0x50] sm:$0xf] %vm14139_vm7, %v1308_v29  ;;  %v1444_v29 = vld [vmem:[#allocation2 + $0xe9] sm:$0xff]  ;;  %vm14142_vm7 = vmmov %vm14141_vm1  ;;  %1686 = vrot.lane.b32.xlu1 %v1599_v50, %s9660_s29  ;;  %v10283_v50 = vpack.c.bf16 %v988_v52, %v988_v52 }
  0xb0   : > { %1396 = vst.msk [vmem:[#allocation3 + $0x60] sm:$0xf] %vm14140_vm14, %v1312_v38  ;;  %v704_v38 = vand.u32 15, %v512_v48  ;;  %1690 = vrot.lane.b32.xlu0 %v1601_v3, %s9660_s29  ;;  %v1600_v48 = vsel %vm9871_vm8, %v1472_v55, 0  ;;  %v1476_v53 = vpack.c.bf16 %v1444_v29, %v1444_v29  ;;  %v14146_v3 = vmov 0 }
  0xb1   : > { %1183 = vst.msk [vmem:[#allocation3 + $0xc0] sm:$0xf] %vm14141_vm1, %v1150_v34  ;;  %v993_v34 = vld [vmem:[#allocation2 + $0xdf] sm:$0xff]  ;;  %v725_v55 = vand.u32 15, %v515_v5  ;;  %v516_v29 = vadd.s32 240, %v9845_v22 }
  0xb2   : > { %1182 = vst.msk [vmem:[#allocation3 + $0xb8] sm:$0xf] %vm14142_vm7, %v10250_v44  ;;  %v1025_v24 = vpack.c.bf16 %v993_v34, %v993_v34  ;;  %vm928_vm13 = vcmp.ne.s32.totalorder %v704_v38, 0  ;;  %v1318_v8 = vpop.permute.xlu0 %1317  ;;  %v1602_v34 = vsel %vm9871_vm8, %v1474_v42, 0 }
  0xb3   : > { %1404 = vst.msk [vmem:[#allocation3 + $0xa0] sm:$0xf] %vm14140_vm14, %v1328_v20  ;;  %vm10279_vm7 = vmpackc.low %vm928_vm13, %vm928_vm13  ;;  %vm924_vm14 = vcmp.ne.s32.totalorder %v676_v47, 0  ;;  %v1314_v20 = vpop.permute.xlu1 %1313  ;;  %vm961_vm13 = vcmp.ne.s32.totalorder %v711_v35, 15  ;;  %v739_v47 = vand.u32 15, %v517_v21  ;;  %1688 = vrot.lane.b32.xlu2 %v1600_v48, %s9660_s29  ;;  %v1604_v35 = vsel %vm9871_vm8, %v1476_v53, 0 }
  0xb4   : > { %1178 = vst.msk [vmem:[#allocation3 + $0x98] sm:$0xf] %vm14141_vm1, %v10262_v2  ;;  %v14144_v45 = vsel %vm10279_vm7, 4294967295, %v14143_v45  ;;  %v10287_v38 = vsel %vm9871_vm8, %v1025_v24, 0  ;;  %vm10289_vm1 = vmpackc.low %vm924_vm14, %vm924_vm14  ;;  %v1152_v52 = vsel %vm10279_vm7, %v10277_v49, 0  ;;  %v1475_v24 = vpack.c.bf16 %v1443_v58, %v1443_v58  ;;  %v1445_v21 = vld [vmem:[#allocation2 + $0xf1] sm:$0xff] }
  0xb5   : > { %14145 = vst [vmem:[#allocation24_spill] sm:$0xff] %v14144_v45  ;;  %v14147_v3 = vsel %vm10289_vm1, 4294967295, %v14146_v3  ;;  %vm14151_vm14 = vcmask 60416   ;;  %v1148_v5 = vsel %vm10289_vm1, %v10283_v50, 0  ;;  %v14152_v48 = vmov 0 }
  0xb6   : > { %14148 = vst [vmem:[#allocation25_spill] sm:$0xff] %v14147_v3  ;;  %v732_v58 = vand.u32 15, %v516_v29  ;;  %vm10314_vm7 = vcmp.ne.s32.totalorder %v725_v55, 15  ;;  %vm10319_vm5 = vcmp.ne.s32.totalorder %v739_v47, 15  ;;  %v1027_v55 = vpack.c.bf16 %v995_v40, %v995_v40  ;;  %v1446_v40 = vld [vmem:[#allocation2 + $0xf9] sm:$0xff] }
  0xb7   : > { %1397 = vst.msk [vmem:[#allocation3 + $0x68] sm:$0xf] %vm14149_vm6, %v1314_v20  ;;  %v1447_v20 = vld [vmem:[#allocation2 + $0x101] sm:$0xff]  ;;  %vm14154_vm6 = vmmov %vm14151_vm14  ;;  %1692 = vrot.lane.b32.xlu1 %v1602_v34, %s9660_s29  ;;  %v1477_v29 = vpack.c.bf16 %v1445_v21, %v1445_v21  ;;  %v1023_v47 = vpack.c.bf16 %v991_v33, %v991_v33  ;;  %v14166_v33 = vmov 0  ;;  %v1478_v21 = vpack.c.bf16 %v1446_v40, %v1446_v40 }
  0xb8   : > { %1399 = vst.msk [vmem:[#allocation3 + $0x78] sm:$0xf] %vm14150_vm0, %v1318_v8  ;;  %v1334_v8 = vpop.permute.xlu2 %1333  ;;  %vm10309_vm0 = vmpackc.low %vm961_vm13, %vm961_vm13  ;;  %vm932_vm1 = vcmp.ne.s32.totalorder %v732_v58, 0  ;;  %1696 = vrot.lane.b32.xlu0 %v1604_v35, %s9660_s29  ;;  %v1479_v32 = vpack.c.bf16 %v1447_v20, %v1447_v20  ;;  %v514_v35 = vadd.s32 224, %v9845_v22  ;;  %v994_v22 = vld [vmem:[#allocation2 + $0xe7] sm:$0xff] }
  0xb9   : > { %1186 = vst.msk [vmem:[#allocation3 + $0xd8] sm:$0xf] %vm14151_vm14, %v10287_v38  ;;  %v14153_v48 = vsel %vm10309_vm0, 4294967295, %v14152_v48  ;;  %vm14157_vm14 = vcmask 126016   ;;  %vm14160_vm13 = vmmov %vm14154_vm6  ;;  %v10364_v58 = vsel %vm9871_vm8, %v1023_v47, 0 }
  0xba   : > { %1185 = vst.msk [vmem:[#allocation3 + $0xd0] sm:$0xf] %vm14154_vm6, %v1152_v52  ;;  %v10325_v52 = vpack.c.bf16 %v996_v46, %v996_v46  ;;  %vm10330_vm6 = vmpackc.low %vm932_vm1, %vm932_vm1  ;;  %v14164_v46 = vmov 0  ;;  %v718_v53 = vand.u32 15, %v514_v35 }
  0xbb   : > { %1407 = vst.msk [vmem:[#allocation3 + $0xb8] sm:$0xf] %vm14157_vm14, %v1334_v8  ;;  %v1603_v8 = vsel %vm10309_vm0, %v1475_v24, 0  ;;  %v14162_v9 = vsel %vm10330_vm6, 4294967295, %v14161_v9  ;;  %v1320_v18 = vpop.permute.xlu1 %1319  ;;  %vm10337_vm14 = vmpackc.low %vm10314_vm7, %vm10314_vm7  ;;  %v1324_v24 = vpop.permute.xlu0 %1323 }
  0xbc   : > { %1181 = vst.msk [vmem:[#allocation3 + $0xb0] sm:$0xf] %vm14160_vm13, %v1148_v5  ;;  %v14165_v46 = vsel %vm10337_vm14, 4294967295, %v14164_v46  ;;  %v1156_v34 = vsel %vm10330_vm6, %v10325_v52, 0  ;;  %vm10347_vm1 = vmpackc.low %vm10319_vm5, %vm10319_vm5  ;;  %vm14168_vm13 = vcmask 126016   ;;  %v10354_v5 = vsel %vm9871_vm8, %v1027_v55, 0  ;;  %1694 = vrot.lane.b32.xlu2 %v1603_v8, %s9660_s29 }
  0xbd   : > { %14163 = vst [vmem:[#allocation26_spill] sm:$0xff] %v14162_v9  ;;  %v14167_v33 = vsel %vm10347_vm1, 4294967295, %v14166_v33  ;;  %vm14169_vm7 = vmmov %vm14168_vm13  ;;  %v1605_v20 = vsel %vm10337_vm14, %v1477_v29, 0  ;;  %vm14170_vm5 = vcmask 60416   ;;  %v10374_v55 = vpack.c.bf16 %v994_v22, %v994_v22 }
  0xbe   : > { %1400 = vst.msk [vmem:[#allocation3 + $0x80] sm:$0xf] %vm14168_vm13, %v1320_v18  ;;  %v1607_v18 = vsel %vm10347_vm1, %v1479_v32, 0  ;;  %vm14171_vm13 = vmmov %vm14170_vm5  ;;  %v10379_v32 = vsel %vm9871_vm8, %v1478_v21, 0  ;;  %v14173_v29 = vmov 0 }
  0xbf   : > { %1402 = vst.msk [vmem:[#allocation3 + $0x90] sm:$0xf] %vm14169_vm7, %v1324_v24  ;;  %1698 = vrot.lane.b32.xlu1 %v1605_v20, %s9660_s29  ;;  %vm14172_vm14 = vmmov %vm14170_vm5  ;;  %v1835_v24 = vsel %vm9931_vm9, %v9884_v63, 0  ;;  %v997_v20 = vld [vmem:[#allocation2 + $0xff] sm:$0xff] }
  0xc0   : > { %1189 = vst.msk [vmem:[#allocation3 + $0xf0] sm:$0xf] %vm14170_vm5, %v1156_v34  ;;  %v1340_v42 = vpop.permute.xlu2 %1339  ;;  %vm930_vm5 = vcmp.ne.s32.totalorder %v718_v53, 0  ;;  %1702 = vrot.lane.b32.xlu0 %v1607_v18, %s9660_s29  ;;  %v1833_v34 = vsel %vm9854_vm4, %v9922_v26, 0  ;;  %v1029_v21 = vpack.c.bf16 %v997_v20, %v997_v20  ;;  %v1837_v53 = vsel %vm9880_vm10, %v9913_v19, 0 }
  0xc1   : > { %1188 = vst.msk [vmem:[#allocation3 + $0xe8] sm:$0xf] %vm14171_vm13, %v10354_v5  ;;  %vm10381_vm1 = vmpackc.low %vm930_vm5, %vm930_vm5 }
  0xc2   : > { %1410 = vst.msk [vmem:[#allocation3 + $0xd0] sm:$0xf] %vm14169_vm7, %v1340_v42  ;;  %v14174_v29 = vsel %vm10381_vm1, 4294967295, %v14173_v29  ;;  %v1154_v47 = vsel %vm10381_vm1, %v10374_v55, 0  ;;  %vm14177_vm13 = vmmov %vm14169_vm7  ;;  %v10404_v26 = vsel %vm9871_vm8, %v1029_v21, 0 }
  0xc3   : > { %1184 = vst.msk [vmem:[#allocation3 + $0xc8] sm:$0xf] %vm14172_vm14, %v10364_v58  ;;  %v1326_v8 = vpop.permute.xlu1 %1325  ;;  %v1330_v40 = vpop.permute.xlu0 %1329  ;;  %vm14176_vm14 = vmmov %vm14169_vm7  ;;  %vm14178_vm7 = vcmask 60416  }
  0xc4   : > { %14175 = vst [vmem:[#allocation27_spill] sm:$0xff] %v14174_v29  ;;  %1700 = vrot.lane.b32.xlu2 %v10379_v32, %s9660_s29  ;;  %vm14179_vm5 = vmmov %vm14177_vm13 }
  0xc5   : > { %1403 = vst.msk [vmem:[#allocation3 + $0x98] sm:$0xf] %vm14176_vm14, %v1326_v8  ;;  %vm14180_vm14 = vmmov %vm14179_vm5 }
  0xc6   : > { %1405 = vst.msk [vmem:[#allocation3 + $0xa8] sm:$0xf] %vm14177_vm13, %v1330_v40  ;;  %vm14181_vm13 = vmmov %vm14179_vm5 }
  0xc7   : > { %1187 = vst.msk [vmem:[#allocation3 + $0xe0] sm:$0xf] %vm14178_vm7, %v1154_v47  ;;  %1897 = vrot.lane.b32.xlu1 %v1833_v34, %s9661_s30  ;;  %vm13911_vm7 = vcmask 191616  }
  0xc8   : > { %v1346_v35 = vpop.permute.xlu2 %1345  ;;  %1901 = vrot.lane.b32.xlu0 %v1835_v24, %s9661_s30 }
  0xc9   : > { %1413 = vst.msk [vmem:[#allocation3 + $0xe8] sm:$0xf] %vm14179_vm5, %v1346_v35  ;;  %vm14182_vm5 = vcmask 60416  }
  0xca   : > { %1190 = vst.msk [vmem:[#allocation3 + $0xf8] sm:$0xf] %vm14182_vm5, %v10404_v26  ;;  %vm14184_vm5 = vmmov %vm14181_vm13 }
  0xcb   : > { %v1332_v18 = vpop.permute.xlu1 %1331  ;;  %v1336_v42 = vpop.permute.xlu0 %1335 }
  0xcc   : > { %1406 = vst.msk [vmem:[#allocation3 + $0xb0] sm:$0xf] %vm14180_vm14, %v1332_v18  ;;  %1899 = vrot.lane.b32.xlu2 %v9980_v1, %s9661_s30  ;;  %vm14183_vm14 = vmmov %vm14181_vm13  ;;  %v1839_v1 = vsel %vm9918_vm3, %v9960_v51, 0 }
  0xcd   : > { %1408 = vst.msk [vmem:[#allocation3 + $0xc0] sm:$0xf] %vm14181_vm13, %v1336_v42 }
  0xcf   : > { %1903 = vrot.lane.b32.xlu1 %v9929_v30, %s9661_s30  ;;  %v1841_v30 = vsel %vm9969_vm2, %v10062_v7, 0  ;;  %v1843_v7 = vsel %vm10080_vm11, %v10005_v17, 0 }
  0xd0   : > { %v1641_v63 = vpop.permute.xlu2 %1640  ;;  %1907 = vrot.lane.b32.xlu0 %v10039_v41, %s9661_s30 }
  0xd1   : > { %1737 = vst.msk [vmem:[#allocation3] sm:$0xf] %vm13911_vm7, %v1641_v63 }
  0xd3   : > { %v1338_v22 = vpop.permute.xlu1 %1337  ;;  %v1342_v8 = vpop.permute.xlu0 %1341 }
  0xd4   : > { %1409 = vst.msk [vmem:[#allocation3 + $0xc8] sm:$0xf] %vm14183_vm14, %v1338_v22  ;;  %1905 = vrot.lane.b32.xlu2 %v1837_v53, %s9661_s30  ;;  %vm14185_vm14 = vmmov %vm14184_vm5 }
  0xd5   : > { %1411 = vst.msk [vmem:[#allocation3 + $0xd8] sm:$0xf] %vm14181_vm13, %v1342_v8  ;;  %vm14186_vm13 = vmmov %vm14184_vm5  ;;  %v1861_v8 = vsel %vm10381_vm1, %v10325_v52, 0  ;;  %v2027_v52 = vld [vmem:[#allocation2 + $0x20] sm:$0xff] }
  0xd7   : > { %1909 = vrot.lane.b32.xlu1 %v1839_v1, %s9661_s30  ;;  %v2026_v1 = vld [vmem:[#allocation2 + $0x18] sm:$0xff] }
  0xd8   : > { %v1647_v41 = vpop.permute.xlu2 %1646  ;;  %1913 = vrot.lane.b32.xlu0 %v1841_v30, %s9661_s30 }
  0xd9   : > { %1740 = vst.msk [vmem:[#allocation3 + $0x18] sm:$0xf] %vm13911_vm7, %v1647_v41 }
  0xdb   : > { %v1344_v19 = vpop.permute.xlu1 %1343  ;;  %v1348_v47 = vpop.permute.xlu0 %1347 }
  0xdc   : > { %1412 = vst.msk [vmem:[#allocation3 + $0xe0] sm:$0xf] %vm14184_vm5, %v1344_v19  ;;  %1911 = vrot.lane.b32.xlu2 %v9967_v59, %s9661_s30  ;;  %v1845_v59 = vsel %vm10010_vm12, %v10057_v4, 0  ;;  %vm14187_vm5 = vnez %v14078_v15 }
  0xdd   : > { %1414 = vst.msk [vmem:[#allocation3 + $0xf0] sm:$0xf] %vm14185_vm14, %v1348_v47  ;;  %vm14188_vm14 = vnez %v14104_v6 }
  0xdf   : > { %1915 = vrot.lane.b32.xlu1 %v10026_v36, %s9661_s30  ;;  %v1847_v36 = vsel %vm14187_vm5, %v10183_v13, 0  ;;  %v1849_v13 = vsel %vm10185_vm15, %v10123_v54, 0  ;;  %vm14192_vm15 = vnez %v14144_v45  ;;  %vm14193_vm5 = vcmask 64512  }
  0xe0   : > { %v1653_v51 = vpop.permute.xlu2 %1652  ;;  %1919 = vrot.lane.b32.xlu0 %v10159_v28, %s9661_s30 }
  0xe1   : > { %1743 = vst.msk [vmem:[#allocation3 + $0x30] sm:$0xf] %vm13911_vm7, %v1653_v51 }
  0xe3   : > { %v1350_v40 = vpop.permute.xlu1 %1349  ;;  %v1643_v34 = vpop.permute.xlu0 %1642 }
  0xe4   : > { %1415 = vst.msk [vmem:[#allocation3 + $0xf8] sm:$0xf] %vm14186_vm13, %v1350_v40  ;;  %1917 = vrot.lane.b32.xlu2 %v1843_v7, %s9661_s30  ;;  %vm14189_vm13 = vnez %v14113_v61  ;;  %v2029_v7 = vld [vmem:[#allocation2 + $0x30] sm:$0xff] }
  0xe5   : > { %1738 = vst.msk [vmem:[#allocation3 + $0x8] sm:$0xf] %vm13911_vm7, %v1643_v34 }
  0xe7   : > { %1921 = vrot.lane.b32.xlu1 %v1845_v59, %s9661_s30  ;;  %v2059_v59 = vpack.c.bf16 %v2027_v52, %v2027_v52 }
  0xe8   : > { %v1659_v28 = vpop.permute.xlu2 %1658  ;;  %1925 = vrot.lane.b32.xlu0 %v1847_v36, %s9661_s30  ;;  %v2061_v36 = vpack.c.bf16 %v2029_v7, %v2029_v7 }
  0xe9   : > { %1746 = vst.msk [vmem:[#allocation3 + $0x48] sm:$0xf] %vm13911_vm7, %v1659_v28  ;;  %v2028_v28 = vld [vmem:[#allocation2 + $0x28] sm:$0xff] }
  0xeb   : > { %v1645_v17 = vpop.permute.xlu1 %1644  ;;  %v1649_v24 = vpop.permute.xlu0 %1648 }
  0xec   : > { %1739 = vst.msk [vmem:[#allocation3 + $0x10] sm:$0xf] %vm13911_vm7, %v1645_v17  ;;  %1923 = vrot.lane.b32.xlu2 %v10066_v14, %s9661_s30  ;;  %v1851_v14 = vsel %vm14188_vm14, %v10173_v57, 0  ;;  %vm14191_vm14 = vnez %v14134_v37 }
  0xed   : > { %1741 = vst.msk [vmem:[#allocation3 + $0x20] sm:$0xf] %vm13911_vm7, %v1649_v24  ;;  %v10536_v24 = vpack.c.bf16 %v2028_v28, %v2028_v28  ;;  %v2044_v28 = vld [vmem:[#allocation2 + $0xa8] sm:$0xff] }
  0xef   : > { %1927 = vrot.lane.b32.xlu1 %v10146_v12, %s9661_s30  ;;  %v1853_v12 = vsel %vm14189_vm13, %v10283_v50, 0  ;;  %vm14190_vm13 = vnez %v14147_v3 }
  0xf0   : > { %v1665_v4 = vpop.permute.xlu2 %1664  ;;  %1931 = vrot.lane.b32.xlu0 %v10262_v2, %s9661_s30  ;;  %v1855_v50 = vsel %vm14190_vm13, %v10221_v0, 0 }
  0xf1   : > { %1749 = vst.msk [vmem:[#allocation3 + $0x60] sm:$0xf] %vm13911_vm7, %v1665_v4  ;;  %v2030_v4 = vld [vmem:[#allocation2 + $0x38] sm:$0xff] }
  0xf3   : > { %v1651_v35 = vpop.permute.xlu1 %1650  ;;  %v1655_v20 = vpop.permute.xlu0 %1654 }
  0xf4   : > { %1742 = vst.msk [vmem:[#allocation3 + $0x28] sm:$0xf] %vm13911_vm7, %v1651_v35  ;;  %1929 = vrot.lane.b32.xlu2 %v1849_v13, %s9661_s30  ;;  %v2032_v13 = vld [vmem:[#allocation2 + $0x48] sm:$0xff] }
  0xf5   : > { %1744 = vst.msk [vmem:[#allocation3 + $0x38] sm:$0xf] %vm13911_vm7, %v1655_v20 }
  0xf7   : > { %1933 = vrot.lane.b32.xlu1 %v1851_v14, %s9661_s30  ;;  %v2062_v14 = vpack.c.bf16 %v2030_v4, %v2030_v4 }
  0xf8   : > { %v1671_v2 = vpop.permute.xlu2 %1670  ;;  %1937 = vrot.lane.b32.xlu0 %v1853_v12, %s9661_s30  ;;  %v2064_v12 = vpack.c.bf16 %v2032_v13, %v2032_v13 }
  0xf9   : > { %1752 = vst.msk [vmem:[#allocation3 + $0x78] sm:$0xf] %vm13911_vm7, %v1671_v2  ;;  %v2031_v2 = vld [vmem:[#allocation2 + $0x40] sm:$0xff] }
  0xfb   : > { %v1657_v54 = vpop.permute.xlu1 %1656  ;;  %v1661_v21 = vpop.permute.xlu0 %1660 }
  0xfc   : > { %1745 = vst.msk [vmem:[#allocation3 + $0x40] sm:$0xf] %vm13911_vm7, %v1657_v54  ;;  %1935 = vrot.lane.b32.xlu2 %v10181_v10, %s9661_s30  ;;  %v1857_v10 = vsel %vm14191_vm14, %v10277_v49, 0  ;;  %v1799_v49 = vld [vmem:[#allocation2 + $0x107] sm:$0xff] }
  0xfd   : > { %1747 = vst.msk [vmem:[#allocation3 + $0x50] sm:$0xf] %vm13911_vm7, %v1661_v21  ;;  %v1831_v22 = vpack.c.bf16 %v1799_v49, %v1799_v49  ;;  %v10545_v21 = vpack.c.bf16 %v2031_v2, %v2031_v2  ;;  %v2038_v49 = vld [vmem:[#allocation2 + $0x78] sm:$0xff]  ;;  %v2045_v2 = vld [vmem:[#allocation2 + $0xb0] sm:$0xff] }
  0xff   : > { %1939 = vrot.lane.b32.xlu1 %v10250_v44, %s9661_s30  ;;  %v451_v44 = vld [vmem:[%s9757_s27 + $0xf8] sm:$0xff] }
 0x100   : > { %v1677_v57 = vpop.permute.xlu2 %1676  ;;  %1943 = vrot.lane.b32.xlu0 %v10364_v58, %s9661_s30  ;;  %v1859_v58 = vsel %vm14192_vm15, %v10374_v55, 0  ;;  %484 = vst.msk [vmem:[#allocation2 + $0x110] sm:$0xff] %vm14193_vm5, %v451_v44  ;;  %vm13916_vm5 = vcmask 257216   ;;  %vm13921_vm15 = vcmask 322816  }
 0x101   : > { %1755 = vst.msk [vmem:[#allocation3 + $0x90] sm:$0xf] %vm13911_vm7, %v1677_v57  ;;  %v2033_v57 = vld [vmem:[#allocation2 + $0x50] sm:$0xff] }
 0x103   : > { %v1663_v18 = vpop.permute.xlu1 %1662  ;;  %v1667_v42 = vpop.permute.xlu0 %1666 }
 0x104   : > { %1748 = vst.msk [vmem:[#allocation3 + $0x58] sm:$0xf] %vm13911_vm7, %v1663_v18  ;;  %1941 = vrot.lane.b32.xlu2 %v1855_v50, %s9661_s30  ;;  %v2035_v50 = vld [vmem:[#allocation2 + $0x60] sm:$0xff] }
 0x105   : > { %1750 = vst.msk [vmem:[#allocation3 + $0x68] sm:$0xf] %vm13911_vm7, %v1667_v42  ;;  %v2067_v44 = vpack.c.bf16 %v2035_v50, %v2035_v50 }
 0x107   : > { %1945 = vrot.lane.b32.xlu1 %v1857_v10, %s9661_s30  ;;  %v1800_v41 = vld [vmem:[#allocation2 + $0x10f] sm:$0xff]  ;;  %v2065_v10 = vpack.c.bf16 %v2033_v57, %v2033_v57 }
 0x108   : > { %v1683_v63 = vpop.permute.xlu2 %1682  ;;  %1949 = vrot.lane.b32.xlu0 %v1859_v58, %s9661_s30  ;;  %v2034_v58 = vld [vmem:[#allocation2 + $0x58] sm:$0xff] }
 0x109   : > { %1758 = vst.msk [vmem:[#allocation3 + $0xa8] sm:$0xf] %vm13911_vm7, %v1683_v63 }
 0x10b   : > { %v1669_v0 = vpop.permute.xlu1 %1668  ;;  %v1673_v53 = vpop.permute.xlu0 %1672 }
 0x10c   : > { %1751 = vst.msk [vmem:[#allocation3 + $0x70] sm:$0xf] %vm13911_vm7, %v1669_v0  ;;  %1947 = vrot.lane.b32.xlu2 %v10287_v38, %s9661_s30  ;;  %v2058_v38 = vpack.c.bf16 %v2026_v1, %v2026_v1  ;;  %v10554_v0 = vpack.c.bf16 %v2034_v58, %v2034_v58  ;;  %v2070_v1 = vpack.c.bf16 %v2038_v49, %v2038_v49 }
 0x10d   : > { %1753 = vst.msk [vmem:[#allocation3 + $0x80] sm:$0xf] %vm13911_vm7, %v1673_v53  ;;  %v2036_v53 = vld [vmem:[#allocation2 + $0x68] sm:$0xff] }
 0x10f   : > { %1951 = vrot.lane.b32.xlu1 %v10354_v5, %s9661_s30  ;;  %v1863_v5 = vsel %vm10330_vm6, %v1831_v22, 0 }
 0x110   : > { %v1689_v55 = vpop.permute.xlu2 %1688  ;;  %1955 = vrot.lane.b32.xlu0 %v10404_v26, %s9661_s30  ;;  %v1832_v26 = vpack.c.bf16 %v1800_v41, %v1800_v41 }
 0x111   : > { %1761 = vst.msk [vmem:[#allocation3 + $0xc0] sm:$0xf] %vm13911_vm7, %v1689_v55 }
 0x112   : > { %v10528_v51 = vsel %vm9871_vm8, %v1832_v26, 0 }
 0x113   : > { %v1675_v30 = vpop.permute.xlu1 %1674  ;;  %v1679_v19 = vpop.permute.xlu0 %1678 }
 0x114   : > { %1754 = vst.msk [vmem:[#allocation3 + $0x88] sm:$0xf] %vm13911_vm7, %v1675_v30  ;;  %1953 = vrot.lane.b32.xlu2 %v1861_v8, %s9661_s30  ;;  %v2068_v8 = vpack.c.bf16 %v2036_v53, %v2036_v53  ;;  %v2037_v30 = vld [vmem:[#allocation2 + $0x70] sm:$0xff]  ;;  %v2050_v53 = vld [vmem:[#allocation2 + $0xd8] sm:$0xff] }
 0x115   : > { %1756 = vst.msk [vmem:[#allocation3 + $0x98] sm:$0xf] %vm13911_vm7, %v1679_v19  ;;  %v10563_v19 = vpack.c.bf16 %v2037_v30, %v2037_v30 }
 0x117   : > { %1957 = vrot.lane.b32.xlu1 %v1863_v5, %s9661_s30  ;;  %v2041_v5 = vld [vmem:[#allocation2 + $0x90] sm:$0xff] }
 0x118   : > { %v1695_v47 = vpop.permute.xlu2 %1694  ;;  %2122 = vrot.lane.b32.xlu0 %v2058_v38, %s9662_s13  ;;  %v2039_v38 = vld [vmem:[#allocation2 + $0x80] sm:$0xff]  ;;  %v2073_v7 = vpack.c.bf16 %v2041_v5, %v2041_v5  ;;  %v2053_v5 = vld [vmem:[#allocation2 + $0xf0] sm:$0xff] }
 0x119   : > { %1764 = vst.msk [vmem:[#allocation3 + $0xd8] sm:$0xf] %vm13911_vm7, %v1695_v47  ;;  %v2071_v52 = vpack.c.bf16 %v2039_v38, %v2039_v38  ;;  %v2051_v38 = vld [vmem:[#allocation2 + $0xe0] sm:$0xff] }
 0x11b   : > { %v1681_v40 = vpop.permute.xlu1 %1680  ;;  %v1685_v34 = vpop.permute.xlu0 %1684 }
 0x11c   : > { %1757 = vst.msk [vmem:[#allocation3 + $0xa0] sm:$0xf] %vm13911_vm7, %v1681_v40  ;;  %1959 = vrot.lane.b32.xlu2 %v10528_v51, %s9661_s30  ;;  %v2040_v40 = vld [vmem:[#allocation2 + $0x88] sm:$0xff] }
 0x11d   : > { %1759 = vst.msk [vmem:[#allocation3 + $0xb0] sm:$0xf] %vm13911_vm7, %v1685_v34 }
 0x11f   : > { %2124 = vrot.lane.b32.xlu1 %v2059_v59, %s9662_s13  ;;  %v10572_v59 = vpack.c.bf16 %v2040_v40, %v2040_v40  ;;  %v2052_v40 = vld [vmem:[#allocation2 + $0xe8] sm:$0xff] }
 0x120   : > { %v1701_v17 = vpop.permute.xlu2 %1700  ;;  %2128 = vrot.lane.b32.xlu0 %v2061_v36, %s9662_s13  ;;  %v2042_v36 = vld [vmem:[#allocation2 + $0x98] sm:$0xff] }
 0x121   : > { %1767 = vst.msk [vmem:[#allocation3 + $0xf0] sm:$0xf] %vm13911_vm7, %v1701_v17  ;;  %v2074_v13 = vpack.c.bf16 %v2042_v36, %v2042_v36  ;;  %v10608_v36 = vpack.c.bf16 %v2052_v40, %v2052_v40 }
 0x123   : > { %v1687_v35 = vpop.permute.xlu1 %1686  ;;  %v1691_v20 = vpop.permute.xlu0 %1690 }
 0x124   : > { %1760 = vst.msk [vmem:[#allocation3 + $0xb8] sm:$0xf] %vm13911_vm7, %v1687_v35  ;;  %2126 = vrot.lane.b32.xlu2 %v10536_v24, %s9662_s13  ;;  %v2076_v35 = vpack.c.bf16 %v2044_v28, %v2044_v28  ;;  %v2054_v28 = vld [vmem:[#allocation2 + $0xf8] sm:$0xff] }
 0x125   : > { %1762 = vst.msk [vmem:[#allocation3 + $0xc8] sm:$0xf] %vm13911_vm7, %v1691_v20  ;;  %v2043_v20 = vld [vmem:[#allocation2 + $0xa0] sm:$0xff] }
 0x127   : > { %2130 = vrot.lane.b32.xlu1 %v2062_v14, %s9662_s13 }
 0x128   : > { %v1900_v54 = vpop.permute.xlu2 %1899  ;;  %2134 = vrot.lane.b32.xlu0 %v2064_v12, %s9662_s13  ;;  %v10581_v12 = vpack.c.bf16 %v2043_v20, %v2043_v20 }
 0x129   : > { %1995 = vst.msk [vmem:[#allocation3 + $0x8] sm:$0xf] %vm13916_vm5, %v1900_v54  ;;  %v2047_v54 = vld [vmem:[#allocation2 + $0xc0] sm:$0xff] }
 0x12b   : > { %v1693_v18 = vpop.permute.xlu1 %1692  ;;  %v1697_v42 = vpop.permute.xlu0 %1696 }
 0x12c   : > { %1763 = vst.msk [vmem:[#allocation3 + $0xd0] sm:$0xf] %vm13911_vm7, %v1693_v18  ;;  %2132 = vrot.lane.b32.xlu2 %v10545_v21, %s9662_s13  ;;  %v2077_v18 = vpack.c.bf16 %v2045_v2, %v2045_v2 }
 0x12d   : > { %1765 = vst.msk [vmem:[#allocation3 + $0xe0] sm:$0xf] %vm13911_vm7, %v1697_v42  ;;  %v2079_v42 = vpack.c.bf16 %v2047_v54, %v2047_v54  ;;  %v2252_v54 = vld [vmem:[#allocation2 + $0x21] sm:$0xff] }
 0x12f   : > { %2136 = vrot.lane.b32.xlu1 %v2065_v10, %s9662_s13  ;;  %v2046_v10 = vld [vmem:[#allocation2 + $0xb8] sm:$0xff] }
 0x130   : > { %v1906_v63 = vpop.permute.xlu2 %1905  ;;  %2140 = vrot.lane.b32.xlu0 %v2067_v44, %s9662_s13  ;;  %v10590_v58 = vpack.c.bf16 %v2046_v10, %v2046_v10  ;;  %v2251_v10 = vld [vmem:[#allocation2 + $0x19] sm:$0xff] }
 0x131   : > { %1998 = vst.msk [vmem:[#allocation3 + $0x20] sm:$0xf] %vm13916_vm5, %v1906_v63  ;;  %v2048_v63 = vld [vmem:[#allocation2 + $0xc8] sm:$0xff] }
 0x133   : > { %v1699_v55 = vpop.permute.xlu1 %1698  ;;  %v1703_v22 = vpop.permute.xlu0 %1702 }
 0x134   : > { %1766 = vst.msk [vmem:[#allocation3 + $0xe8] sm:$0xf] %vm13911_vm7, %v1699_v55  ;;  %2138 = vrot.lane.b32.xlu2 %v10554_v0, %s9662_s13 }
 0x135   : > { %1768 = vst.msk [vmem:[#allocation3 + $0xf8] sm:$0xf] %vm13911_vm7, %v1703_v22  ;;  %v2080_v22 = vpack.c.bf16 %v2048_v63, %v2048_v63  ;;  %vm14194_vm7 = vnez %v14033_v43 }
 0x137   : > { %2142 = vrot.lane.b32.xlu1 %v2068_v8, %s9662_s13  ;;  %v2082_v8 = vpack.c.bf16 %v2050_v53, %v2050_v53  ;;  %v2283_v53 = vpack.c.bf16 %v2251_v10, %v2251_v10 }
 0x138   : > { %v1912_v41 = vpop.permute.xlu2 %1911  ;;  %2146 = vrot.lane.b32.xlu0 %v2070_v1, %s9662_s13  ;;  %v2049_v1 = vld [vmem:[#allocation2 + $0xd0] sm:$0xff] }
 0x139   : > { %2001 = vst.msk [vmem:[#allocation3 + $0x38] sm:$0xf] %vm13916_vm5, %v1912_v41  ;;  %v10599_v41 = vpack.c.bf16 %v2049_v1, %v2049_v1 }
 0x13b   : > { %v1898_v26 = vpop.permute.xlu1 %1897  ;;  %v1902_v47 = vpop.permute.xlu0 %1901 }
 0x13c   : > { %1994 = vst.msk [vmem:[#allocation3] sm:$0xf] %vm13916_vm5, %v1898_v26  ;;  %2144 = vrot.lane.b32.xlu2 %v10563_v19, %s9662_s13 }
 0x13d   : > { %1996 = vst.msk [vmem:[#allocation3 + $0x10] sm:$0xf] %vm13916_vm5, %v1902_v47 }
 0x13f   : > { %2148 = vrot.lane.b32.xlu1 %v2071_v52, %s9662_s13  ;;  %v2083_v52 = vpack.c.bf16 %v2051_v38, %v2051_v38 }
 0x140   : > { %v1918_v34 = vpop.permute.xlu2 %1917  ;;  %2152 = vrot.lane.b32.xlu0 %v2073_v7, %s9662_s13  ;;  %v2085_v7 = vpack.c.bf16 %v2053_v5, %v2053_v5 }
 0x141   : > { %2004 = vst.msk [vmem:[#allocation3 + $0x50] sm:$0xf] %vm13916_vm5, %v1918_v34 }
 0x143   : > { %v1904_v17 = vpop.permute.xlu1 %1903  ;;  %v1908_v4 = vpop.permute.xlu0 %1907 }
 0x144   : > { %1997 = vst.msk [vmem:[#allocation3 + $0x18] sm:$0xf] %vm13916_vm5, %v1904_v17  ;;  %2150 = vrot.lane.b32.xlu2 %v10572_v59, %s9662_s13  ;;  %v2056_v17 = vld [vmem:[#allocation2 + $0x108] sm:$0xff] }
 0x145   : > { %1999 = vst.msk [vmem:[#allocation3 + $0x28] sm:$0xf] %vm13916_vm5, %v1908_v4  ;;  %v2088_v20 = vpack.c.bf16 %v2056_v17, %v2056_v17  ;;  %v2258_v17 = vld [vmem:[#allocation2 + $0x51] sm:$0xff] }
 0x147   : > { %2154 = vrot.lane.b32.xlu1 %v2074_v13, %s9662_s13 }
 0x148   : > { %v1924_v14 = vpop.permute.xlu2 %1923  ;;  %2158 = vrot.lane.b32.xlu0 %v2076_v35, %s9662_s13  ;;  %v2086_v35 = vpack.c.bf16 %v2054_v28, %v2054_v28 }
 0x149   : > { %2007 = vst.msk [vmem:[#allocation3 + $0x68] sm:$0xf] %vm13916_vm5, %v1924_v14  ;;  %v2055_v14 = vld [vmem:[#allocation2 + $0x100] sm:$0xff] }
 0x14b   : > { %v1910_v57 = vpop.permute.xlu1 %1909  ;;  %v1914_v50 = vpop.permute.xlu0 %1913 }
 0x14c   : > { %2000 = vst.msk [vmem:[#allocation3 + $0x30] sm:$0xf] %vm13916_vm5, %v1910_v57  ;;  %2156 = vrot.lane.b32.xlu2 %v10581_v12, %s9662_s13  ;;  %v10617_v57 = vpack.c.bf16 %v2055_v14, %v2055_v14  ;;  %v2257_v14 = vld [vmem:[#allocation2 + $0x49] sm:$0xff] }
 0x14d   : > { %2002 = vst.msk [vmem:[#allocation3 + $0x40] sm:$0xf] %vm13916_vm5, %v1914_v50  ;;  %v2057_v50 = vld [vmem:[#allocation2 + $0x110] sm:$0xff] }
 0x14e   : > { %v2089_v63 = vpack.c.bf16 %v2057_v50, %v2057_v50 }
 0x14f   : > { %2160 = vrot.lane.b32.xlu1 %v2077_v18, %s9662_s13  ;;  %v2284_v18 = vpack.c.bf16 %v2252_v54, %v2252_v54  ;;  %v14196_v54 = vld [vmem:[#allocation5_spill] sm:$0xff] }
 0x150   : > { %v1930_v44 = vpop.permute.xlu2 %1929  ;;  %2164 = vrot.lane.b32.xlu0 %v2079_v42, %s9662_s13  ;;  %vm14197_vm6 = vnez %v14196_v54 }
 0x151   : > { %2010 = vst.msk [vmem:[#allocation3 + $0x80] sm:$0xf] %vm13916_vm5, %v1930_v44 }
 0x153   : > { %v1916_v49 = vpop.permute.xlu1 %1915  ;;  %v1920_v55 = vpop.permute.xlu0 %1919 }
 0x154   : > { %2003 = vst.msk [vmem:[#allocation3 + $0x48] sm:$0xf] %vm13916_vm5, %v1916_v49  ;;  %2162 = vrot.lane.b32.xlu2 %v10590_v58, %s9662_s13  ;;  %v2316_v49 = vsel %vm14194_vm7, %v2284_v18, 0  ;;  %vm14195_vm7 = vnez %v14039_v11  ;;  %v2289_v18 = vpack.c.bf16 %v2257_v14, %v2257_v14  ;;  %v14203_v14 = vld [vmem:[#allocation11_spill] sm:$0xff] }
 0x155   : > { %2005 = vst.msk [vmem:[#allocation3 + $0x58] sm:$0xf] %vm13916_vm5, %v1920_v55  ;;  %v2253_v55 = vld [vmem:[#allocation2 + $0x29] sm:$0xff] }
 0x156   : > { %v2285_v1 = vpack.c.bf16 %v2253_v55, %v2253_v55  ;;  %v2321_v55 = vsel %vm9871_vm8, %v2289_v18, 0  ;;  %v14205_v18 = vld [vmem:[#allocation12_spill] sm:$0xff] }
 0x157   : > { %2166 = vrot.lane.b32.xlu1 %v2080_v22, %s9662_s13 }
 0x158   : > { %v1936_v30 = vpop.permute.xlu2 %1935  ;;  %2170 = vrot.lane.b32.xlu0 %v2082_v8, %s9662_s13  ;;  %v2255_v8 = vld [vmem:[#allocation2 + $0x39] sm:$0xff] }
 0x159   : > { %2013 = vst.msk [vmem:[#allocation3 + $0x98] sm:$0xf] %vm13916_vm5, %v1936_v30  ;;  %v2315_v30 = vsel %vm9871_vm8, %v2283_v53, 0  ;;  %v2287_v38 = vpack.c.bf16 %v2255_v8, %v2255_v8  ;;  %v2261_v53 = vld [vmem:[#allocation2 + $0x69] sm:$0xff] }
 0x15b   : > { %v1922_v26 = vpop.permute.xlu1 %1921  ;;  %v1926_v47 = vpop.permute.xlu0 %1925  ;;  %v2319_v40 = vsel %vm9871_vm8, %v2287_v38, 0 }
 0x15c   : > { %2006 = vst.msk [vmem:[#allocation3 + $0x60] sm:$0xf] %vm13916_vm5, %v1922_v26  ;;  %2168 = vrot.lane.b32.xlu2 %v10599_v41, %s9662_s13  ;;  %v2254_v26 = vld [vmem:[#allocation2 + $0x31] sm:$0xff] }
 0x15d   : > { %2008 = vst.msk [vmem:[#allocation3 + $0x70] sm:$0xf] %vm13916_vm5, %v1926_v47 }
 0x15f   : > { %2172 = vrot.lane.b32.xlu1 %v2083_v52, %s9662_s13  ;;  %v2317_v52 = vsel %vm9871_vm8, %v2285_v1, 0  ;;  %v2260_v1 = vld [vmem:[#allocation2 + $0x61] sm:$0xff] }
 0x160   : > { %v1942_v34 = vpop.permute.xlu2 %1941  ;;  %2176 = vrot.lane.b32.xlu0 %v2085_v7, %s9662_s13  ;;  %v10636_v7 = vpack.c.bf16 %v2254_v26, %v2254_v26 }
 0x161   : > { %2016 = vst.msk [vmem:[#allocation3 + $0xb0] sm:$0xf] %vm13916_vm5, %v1942_v34  ;;  %v2256_v34 = vld [vmem:[#allocation2 + $0x41] sm:$0xff] }
 0x163   : > { %v1928_v4 = vpop.permute.xlu1 %1927  ;;  %v1932_v13 = vpop.permute.xlu0 %1931 }
 0x164   : > { %2009 = vst.msk [vmem:[#allocation3 + $0x78] sm:$0xf] %vm13916_vm5, %v1928_v4  ;;  %2174 = vrot.lane.b32.xlu2 %v10608_v36, %s9662_s13  ;;  %v2288_v4 = vpack.c.bf16 %v2256_v34, %v2256_v34 }
 0x165   : > { %2011 = vst.msk [vmem:[#allocation3 + $0x88] sm:$0xf] %vm13916_vm5, %v1932_v13  ;;  %v2318_v13 = vsel %vm14195_vm7, %v10636_v7, 0  ;;  %vm14206_vm7 = vnez %v14205_v18 }
 0x166   : > { %v2320_v50 = vsel %vm14197_vm6, %v2288_v4, 0  ;;  %vm14204_vm6 = vnez %v14203_v14 }
 0x167   : > { %2178 = vrot.lane.b32.xlu1 %v2086_v35, %s9662_s13  ;;  %v2290_v35 = vpack.c.bf16 %v2258_v17, %v2258_v17 }
 0x168   : > { %v1948_v2 = vpop.permute.xlu2 %1947  ;;  %2182 = vrot.lane.b32.xlu0 %v2088_v20, %s9662_s13 }
 0x169   : > { %2019 = vst.msk [vmem:[#allocation3 + $0xc8] sm:$0xf] %vm13916_vm5, %v1948_v2 }
 0x16b   : > { %v1934_v42 = vpop.permute.xlu1 %1933  ;;  %v1938_v44 = vpop.permute.xlu0 %1937 }
 0x16c   : > { %2012 = vst.msk [vmem:[#allocation3 + $0x90] sm:$0xf] %vm13916_vm5, %v1934_v42  ;;  %2180 = vrot.lane.b32.xlu2 %v10617_v57, %s9662_s13  ;;  %v14198_v42 = vld [vmem:[#allocation7_spill] sm:$0xff] }
 0x16d   : > { %2014 = vst.msk [vmem:[#allocation3 + $0xa0] sm:$0xf] %vm13916_vm5, %v1938_v44  ;;  %vm14199_vm1 = vnez %v14198_v42  ;;  %v2259_v44 = vld [vmem:[#allocation2 + $0x59] sm:$0xff] }
 0x16e   : > { %v2322_v10 = vsel %vm14199_vm1, %v2290_v35, 0  ;;  %v2263_v35 = vld [vmem:[#allocation2 + $0x79] sm:$0xff]  ;;  %vm14202_vm1 = vcmask 257216  }
 0x16f   : > { %2184 = vrot.lane.b32.xlu1 %v2089_v63, %s9662_s13 }
 0x170   : > { %v1954_v22 = vpop.permute.xlu2 %1953  ;;  %2381 = vrot.lane.b32.xlu0 %v2316_v49, %s9663_s14  ;;  %v2291_v49 = vpack.c.bf16 %v2259_v44, %v2259_v44  ;;  %v2265_v44 = vld [vmem:[#allocation2 + $0x89] sm:$0xff] }
 0x171   : > { %2022 = vst.msk [vmem:[#allocation3 + $0xe0] sm:$0xf] %vm13916_vm5, %v1954_v22  ;;  %v2293_v22 = vpack.c.bf16 %v2261_v53, %v2261_v53  ;;  %v2267_v53 = vld [vmem:[#allocation2 + $0x99] sm:$0xff] }
 0x172   : > { %v2323_v38 = vsel %vm9871_vm8, %v2291_v49, 0  ;;  %v2297_v49 = vpack.c.bf16 %v2265_v44, %v2265_v44 }
 0x173   : > { %v1940_v5 = vpop.permute.xlu1 %1939  ;;  %v1944_v47 = vpop.permute.xlu0 %1943  ;;  %v2325_v26 = vsel %vm9871_vm8, %v2293_v22, 0  ;;  %v2299_v22 = vpack.c.bf16 %v2267_v53, %v2267_v53 }
 0x174   : > { %2015 = vst.msk [vmem:[#allocation3 + $0xa8] sm:$0xf] %vm13916_vm5, %v1940_v5  ;;  %2379 = vrot.lane.b32.xlu2 %v2315_v30, %s9663_s14  ;;  %v2292_v5 = vpack.c.bf16 %v2260_v1, %v2260_v1  ;;  %v2266_v1 = vld [vmem:[#allocation2 + $0x91] sm:$0xff] }
 0x175   : > { %2017 = vst.msk [vmem:[#allocation3 + $0xb8] sm:$0xf] %vm13916_vm5, %v1944_v47  ;;  %v2262_v47 = vld [vmem:[#allocation2 + $0x71] sm:$0xff] }
 0x176   : > { %v2294_v34 = vpack.c.bf16 %v2262_v47, %v2262_v47  ;;  %v2268_v47 = vld [vmem:[#allocation2 + $0xa1] sm:$0xff] }
 0x177   : > { %2383 = vrot.lane.b32.xlu1 %v2317_v52, %s9663_s14 }
 0x178   : > { %v1960_v28 = vpop.permute.xlu2 %1959  ;;  %2387 = vrot.lane.b32.xlu0 %v2319_v40, %s9663_s14  ;;  %v2264_v40 = vld [vmem:[#allocation2 + $0x81] sm:$0xff] }
 0x179   : > { %2025 = vst.msk [vmem:[#allocation3 + $0xf8] sm:$0xf] %vm13916_vm5, %v1960_v28  ;;  %v14200_v28 = vld [vmem:[#allocation9_spill] sm:$0xff]  ;;  %v2296_v4 = vpack.c.bf16 %v2264_v40, %v2264_v40 }
 0x17a   : > { %v2270_v40 = vld [vmem:[#allocation2 + $0xb1] sm:$0xff] }
 0x17b   : > { %v1946_v20 = vpop.permute.xlu1 %1945  ;;  %v1950_v2 = vpop.permute.xlu0 %1949 }
 0x17c   : > { %2018 = vst.msk [vmem:[#allocation3 + $0xc0] sm:$0xf] %vm13916_vm5, %v1946_v20  ;;  %2385 = vrot.lane.b32.xlu2 %v2318_v13, %s9663_s14 }
 0x17d   : > { %2020 = vst.msk [vmem:[#allocation3 + $0xd0] sm:$0xf] %vm13916_vm5, %v1950_v2  ;;  %v2326_v2 = vsel %vm14204_vm6, %v2294_v34, 0  ;;  %v2300_v34 = vpack.c.bf16 %v2268_v47, %v2268_v47 }
 0x17f   : > { %2389 = vrot.lane.b32.xlu1 %v2320_v50, %s9663_s14  ;;  %v2295_v50 = vpack.c.bf16 %v2263_v35, %v2263_v35 }
 0x180   : > { %v2127_v63 = vpop.permute.xlu2 %2126  ;;  %2393 = vrot.lane.b32.xlu0 %v2322_v10, %s9663_s14  ;;  %v2328_v10 = vsel %vm14206_vm7, %v2296_v4, 0 }
 0x181   : > { %2221 = vst.msk [vmem:[#allocation3 + $0x10] sm:$0xf] %vm13921_vm15, %v2127_v63 }
 0x183   : > { %v1952_v8 = vpop.permute.xlu1 %1951  ;;  %v1956_v30 = vpop.permute.xlu0 %1955 }
 0x184   : > { %2021 = vst.msk [vmem:[#allocation3 + $0xd8] sm:$0xf] %vm13916_vm5, %v1952_v8  ;;  %2391 = vrot.lane.b32.xlu2 %v2321_v55, %s9663_s14  ;;  %v2327_v55 = vsel %vm9871_vm8, %v2295_v50, 0  ;;  %v14209_v50 = vld [vmem:[#allocation16_spill] sm:$0xff] }
 0x185   : > { %2023 = vst.msk [vmem:[#allocation3 + $0xe8] sm:$0xf] %vm13916_vm5, %v1956_v30  ;;  %vm14201_vm5 = vnez %v14200_v28  ;;  %vm14210_vm7 = vnez %v14209_v50 }
 0x186   : > { %v2324_v17 = vsel %vm14201_vm5, %v2292_v5, 0  ;;  %v2298_v5 = vpack.c.bf16 %v2266_v1, %v2266_v1 }
 0x187   : > { %2395 = vrot.lane.b32.xlu1 %v2323_v38, %s9663_s14  ;;  %v2329_v38 = vsel %vm9871_vm8, %v2297_v49, 0  ;;  %v2271_v49 = vld [vmem:[#allocation2 + $0xb9] sm:$0xff] }
 0x188   : > { %v2133_v52 = vpop.permute.xlu2 %2132  ;;  %2399 = vrot.lane.b32.xlu0 %v2325_v26, %s9663_s14  ;;  %v2331_v26 = vsel %vm9871_vm8, %v2299_v22, 0  ;;  %v2273_v22 = vld [vmem:[#allocation2 + $0xc9] sm:$0xff] }
 0x189   : > { %2224 = vst.msk [vmem:[#allocation3 + $0x28] sm:$0xf] %vm13921_vm15, %v2133_v52 }
 0x18b   : > { %v1958_v13 = vpop.permute.xlu1 %1957  ;;  %v2123_v20 = vpop.permute.xlu0 %2122 }
 0x18c   : > { %2024 = vst.msk [vmem:[#allocation3 + $0xf0] sm:$0xf] %vm14202_vm1, %v1958_v13  ;;  %2397 = vrot.lane.b32.xlu2 %v2324_v17, %s9663_s14  ;;  %v14207_v17 = vld [vmem:[#allocation14_spill] sm:$0xff]  ;;  %v2302_v13 = vpack.c.bf16 %v2270_v40, %v2270_v40 }
 0x18d   : > { %2219 = vst.msk [vmem:[#allocation3] sm:$0xf] %vm13921_vm15, %v2123_v20  ;;  %vm14208_vm1 = vnez %v14207_v17  ;;  %v2269_v20 = vld [vmem:[#allocation2 + $0xa9] sm:$0xff] }
 0x18e   : > { %v2330_v4 = vsel %vm14208_vm1, %v2298_v5, 0  ;;  %v2301_v44 = vpack.c.bf16 %v2269_v20, %v2269_v20  ;;  %v2272_v5 = vld [vmem:[#allocation2 + $0xc1] sm:$0xff]  ;;  %v14213_v20 = vld [vmem:[#allocation20_spill] sm:$0xff] }
 0x18f   : > { %2401 = vrot.lane.b32.xlu1 %v2326_v2, %s9663_s14 }
 0x190   : > { %v2139_v63 = vpop.permute.xlu2 %2138  ;;  %2405 = vrot.lane.b32.xlu0 %v2328_v10, %s9663_s14  ;;  %v2332_v10 = vsel %vm14210_vm7, %v2300_v34, 0  ;;  %v2333_v1 = vsel %vm9871_vm8, %v2301_v44, 0  ;;  %v2274_v34 = vld [vmem:[#allocation2 + $0xd1] sm:$0xff] }
 0x191   : > { %2227 = vst.msk [vmem:[#allocation3 + $0x40] sm:$0xf] %vm13921_vm15, %v2139_v63  ;;  %v14211_v63 = vld [vmem:[#allocation15_spill] sm:$0xff] }
 0x192   : > { %vm14212_vm5 = vnez %v14211_v63 }
 0x193   : > { %v2125_v8 = vpop.permute.xlu1 %2124  ;;  %v2129_v30 = vpop.permute.xlu0 %2128  ;;  %v2334_v53 = vsel %vm14212_vm5, %v2302_v13, 0  ;;  %v2276_v13 = vld [vmem:[#allocation2 + $0xe1] sm:$0xff]  ;;  %vm14214_vm5 = vnez %v14213_v20 }
 0x194   : > { %2220 = vst.msk [vmem:[#allocation3 + $0x8] sm:$0xf] %vm13921_vm15, %v2125_v8  ;;  %2403 = vrot.lane.b32.xlu2 %v2327_v55, %s9663_s14  ;;  %v2303_v8 = vpack.c.bf16 %v2271_v49, %v2271_v49 }
 0x195   : > { %2222 = vst.msk [vmem:[#allocation3 + $0x18] sm:$0xf] %vm13921_vm15, %v2129_v30  ;;  %v2305_v30 = vpack.c.bf16 %v2273_v22, %v2273_v22 }
 0x196   : > { %v2335_v47 = vsel %vm9871_vm8, %v2303_v8, 0 }
 0x197   : > { %2407 = vrot.lane.b32.xlu1 %v2329_v38, %s9663_s14  ;;  %v2337_v40 = vsel %vm9871_vm8, %v2305_v30, 0 }
 0x198   : > { %v2145_v52 = vpop.permute.xlu2 %2144  ;;  %2411 = vrot.lane.b32.xlu0 %v2331_v26, %s9663_s14 }
 0x199   : > { %2230 = vst.msk [vmem:[#allocation3 + $0x58] sm:$0xf] %vm13921_vm15, %v2145_v52  ;;  %v2304_v52 = vpack.c.bf16 %v2272_v5, %v2272_v5 }
 0x19b   : > { %v2131_v35 = vpop.permute.xlu1 %2130  ;;  %v2135_v2 = vpop.permute.xlu0 %2134 }
 0x19c   : > { %2223 = vst.msk [vmem:[#allocation3 + $0x20] sm:$0xf] %vm13921_vm15, %v2131_v35  ;;  %2409 = vrot.lane.b32.xlu2 %v2330_v4, %s9663_s14  ;;  %v2306_v35 = vpack.c.bf16 %v2274_v34, %v2274_v34 }
 0x19d   : > { %2225 = vst.msk [vmem:[#allocation3 + $0x30] sm:$0xf] %vm13921_vm15, %v2135_v2  ;;  %v2336_v2 = vsel %vm14214_vm5, %v2304_v52, 0  ;;  %vm14220_vm5 = vnez %v14167_v33 }
 0x19f   : > { %2413 = vrot.lane.b32.xlu1 %v2332_v10, %s9663_s14  ;;  %v2308_v10 = vpack.c.bf16 %v2276_v13, %v2276_v13 }
 0x1a0   : > { %v2151_v55 = vpop.permute.xlu2 %2150  ;;  %2417 = vrot.lane.b32.xlu0 %v2334_v53, %s9663_s14  ;;  %v2275_v53 = vld [vmem:[#allocation2 + $0xd9] sm:$0xff] }
 0x1a1   : > { %2233 = vst.msk [vmem:[#allocation3 + $0x70] sm:$0xf] %vm13921_vm15, %v2151_v55  ;;  %v14215_v55 = vld [vmem:[#allocation21_spill] sm:$0xff]  ;;  %v2307_v8 = vpack.c.bf16 %v2275_v53, %v2275_v53 }
 0x1a2   : > { %vm14216_vm1 = vnez %v14215_v55 }
 0x1a3   : > { %v2137_v38 = vpop.permute.xlu1 %2136  ;;  %v2141_v26 = vpop.permute.xlu0 %2140  ;;  %v2338_v22 = vsel %vm14216_vm1, %v2306_v35, 0  ;;  %v2280_v35 = vld [vmem:[#allocation2 + $0x101] sm:$0xff] }
 0x1a4   : > { %2226 = vst.msk [vmem:[#allocation3 + $0x38] sm:$0xf] %vm13921_vm15, %v2137_v38  ;;  %2415 = vrot.lane.b32.xlu2 %v2333_v1, %s9663_s14  ;;  %v14217_v1 = vld [vmem:[#allocation23_spill] sm:$0xff]  ;;  %v2277_v38 = vld [vmem:[#allocation2 + $0xe9] sm:$0xff] }
 0x1a5   : > { %2228 = vst.msk [vmem:[#allocation3 + $0x48] sm:$0xf] %vm13921_vm15, %v2141_v26  ;;  %vm14218_vm7 = vnez %v14217_v1  ;;  %v2309_v26 = vpack.c.bf16 %v2277_v38, %v2277_v38 }
 0x1a6   : > { %v2340_v30 = vsel %vm14218_vm7, %v2308_v10, 0  ;;  %v2282_v10 = vld [vmem:[#allocation2 + $0x111] sm:$0xff]  ;;  %vm14219_vm7 = vnez %v14165_v46 }
 0x1a7   : > { %2419 = vrot.lane.b32.xlu1 %v2335_v47, %s9663_s14  ;;  %v2339_v47 = vsel %vm9871_vm8, %v2307_v8, 0  ;;  %v2281_v8 = vld [vmem:[#allocation2 + $0x109] sm:$0xff] }
 0x1a8   : > { %v2157_v4 = vpop.permute.xlu2 %2156  ;;  %2423 = vrot.lane.b32.xlu0 %v2337_v40, %s9663_s14  ;;  %v2278_v40 = vld [vmem:[#allocation2 + $0xf1] sm:$0xff] }
 0x1a9   : > { %2236 = vst.msk [vmem:[#allocation3 + $0x88] sm:$0xf] %vm13921_vm15, %v2157_v4  ;;  %v2341_v4 = vsel %vm9871_vm8, %v2309_v26, 0  ;;  %v2310_v13 = vpack.c.bf16 %v2278_v40, %v2278_v40  ;;  %v2508_v26 = vld [vmem:[#allocation2 + $0x27] sm:$0xff] }
 0x1aa   : > { %v2540_v40 = vpack.c.bf16 %v2508_v26, %v2508_v26  ;;  %v2512_v26 = vld [vmem:[#allocation2 + $0x47] sm:$0xff] }
 0x1ab   : > { %v2143_v44 = vpop.permute.xlu1 %2142  ;;  %v2147_v49 = vpop.permute.xlu0 %2146  ;;  %v2342_v53 = vsel %vm10309_vm0, %v2310_v13, 0 }
 0x1ac   : > { %2229 = vst.msk [vmem:[#allocation3 + $0x50] sm:$0xf] %vm13921_vm15, %v2143_v44  ;;  %2421 = vrot.lane.b32.xlu2 %v2336_v2, %s9663_s14  ;;  %v2312_v44 = vpack.c.bf16 %v2280_v35, %v2280_v35  ;;  %v2509_v35 = vld [vmem:[#allocation2 + $0x2f] sm:$0xff] }
 0x1ad   : > { %2231 = vst.msk [vmem:[#allocation3 + $0x60] sm:$0xf] %vm13921_vm15, %v2147_v49  ;;  %v2314_v49 = vpack.c.bf16 %v2282_v10, %v2282_v10  ;;  %v2572_v10 = vsel %vm9854_vm4, %v2540_v40, 0  ;;  %v2544_v40 = vpack.c.bf16 %v2512_v26, %v2512_v26  ;;  %v2519_v26 = vld [vmem:[#allocation2 + $0x7f] sm:$0xff] }
 0x1ae   : > { %v2344_v38 = vsel %vm14219_vm7, %v2312_v44, 0  ;;  %v2541_v44 = vpack.c.bf16 %v2509_v35, %v2509_v35  ;;  %v2516_v35 = vld [vmem:[#allocation2 + $0x67] sm:$0xff] }
 0x1af   : > { %2425 = vrot.lane.b32.xlu1 %v2338_v22, %s9663_s14 }
 0x1b0   : > { %v2163_v5 = vpop.permute.xlu2 %2162  ;;  %2429 = vrot.lane.b32.xlu0 %v2340_v30, %s9663_s14 }
 0x1b1   : > { %2239 = vst.msk [vmem:[#allocation3 + $0xa0] sm:$0xf] %vm13921_vm15, %v2163_v5  ;;  %v2313_v5 = vpack.c.bf16 %v2281_v8, %v2281_v8  ;;  %v2513_v8 = vld [vmem:[#allocation2 + $0x4f] sm:$0xff] }
 0x1b3   : > { %v2149_v52 = vpop.permute.xlu1 %2148  ;;  %v2153_v34 = vpop.permute.xlu0 %2152 }
 0x1b4   : > { %2232 = vst.msk [vmem:[#allocation3 + $0x68] sm:$0xf] %vm13921_vm15, %v2149_v52  ;;  %2427 = vrot.lane.b32.xlu2 %v2339_v47, %s9663_s14  ;;  %v2510_v52 = vld [vmem:[#allocation2 + $0x37] sm:$0xff] }
 0x1b5   : > { %2234 = vst.msk [vmem:[#allocation3 + $0x78] sm:$0xf] %vm13921_vm15, %v2153_v34  ;;  %v2345_v34 = vsel %vm9871_vm8, %v2313_v5, 0  ;;  %v2545_v5 = vpack.c.bf16 %v2513_v8, %v2513_v8 }
 0x1b7   : > { %2431 = vrot.lane.b32.xlu1 %v2341_v4, %s9663_s14  ;;  %v2542_v4 = vpack.c.bf16 %v2510_v52, %v2510_v52 }
 0x1b8   : > { %v2169_v2 = vpop.permute.xlu2 %2168  ;;  %2435 = vrot.lane.b32.xlu0 %v10379_v32, %s9663_s14  ;;  %v2346_v32 = vsel %vm14220_vm5, %v2314_v49, 0  ;;  %v2511_v49 = vld [vmem:[#allocation2 + $0x3f] sm:$0xff] }
 0x1b9   : > { %2242 = vst.msk [vmem:[#allocation3 + $0xb8] sm:$0xf] %vm13921_vm15, %v2169_v2 }
 0x1bb   : > { %v2155_v22 = vpop.permute.xlu1 %2154  ;;  %v2159_v30 = vpop.permute.xlu0 %2158 }
 0x1bc   : > { %2235 = vst.msk [vmem:[#allocation3 + $0x80] sm:$0xf] %vm13921_vm15, %v2155_v22  ;;  %2433 = vrot.lane.b32.xlu2 %v2342_v53, %s9663_s14  ;;  %v2574_v53 = vsel %vm9931_vm9, %v2542_v4, 0  ;;  %vm13925_vm9 = vcmask 388416   ;;  %v2514_v4 = vld [vmem:[#allocation2 + $0x57] sm:$0xff] }
 0x1bd   : > { %2237 = vst.msk [vmem:[#allocation3 + $0x90] sm:$0xf] %vm13921_vm15, %v2159_v30  ;;  %v2543_v30 = vpack.c.bf16 %v2511_v49, %v2511_v49  ;;  %v2515_v49 = vld [vmem:[#allocation2 + $0x5f] sm:$0xff] }
 0x1bf   : > { %2437 = vrot.lane.b32.xlu1 %v2344_v38, %s9663_s14  ;;  %v2573_v38 = vsel %vm9871_vm8, %v2541_v44, 0  ;;  %v2575_v52 = vsel %vm9871_vm8, %v2543_v30, 0  ;;  %v2548_v44 = vpack.c.bf16 %v2516_v35, %v2516_v35  ;;  %v2547_v30 = vpack.c.bf16 %v2515_v49, %v2515_v49  ;;  %v2522_v49 = vld [vmem:[#allocation2 + $0x97] sm:$0xff] }
 0x1c0   : > { %v2175_v47 = vpop.permute.xlu2 %2174  ;;  %2441 = vrot.lane.b32.xlu0 %v2346_v32, %s9663_s14 }
 0x1c1   : > { %2245 = vst.msk [vmem:[#allocation3 + $0xd0] sm:$0xf] %vm13921_vm15, %v2175_v47 }
 0x1c3   : > { %v2161_v13 = vpop.permute.xlu1 %2160  ;;  %v2165_v2 = vpop.permute.xlu0 %2164 }
 0x1c4   : > { %2238 = vst.msk [vmem:[#allocation3 + $0x98] sm:$0xf] %vm13921_vm15, %v2161_v13  ;;  %2439 = vrot.lane.b32.xlu2 %v2345_v34, %s9663_s14  ;;  %v2577_v34 = vsel %vm9871_vm8, %v2545_v5, 0  ;;  %v2517_v5 = vld [vmem:[#allocation2 + $0x6f] sm:$0xff] }
 0x1c5   : > { %2240 = vst.msk [vmem:[#allocation3 + $0xa8] sm:$0xf] %vm13921_vm15, %v2165_v2  ;;  %v2546_v2 = vpack.c.bf16 %v2514_v4, %v2514_v4  ;;  %v2518_v4 = vld [vmem:[#allocation2 + $0x77] sm:$0xff] }
 0x1c7   : > { %2636 = vrot.lane.b32.xlu1 %v2572_v10, %s9664_s15  ;;  %v2576_v10 = vsel %vm9880_vm10, %v2544_v40, 0  ;;  %v2578_v8 = vsel %vm9918_vm3, %v2546_v2, 0  ;;  %v2551_v40 = vpack.c.bf16 %v2519_v26, %v2519_v26  ;;  %v2550_v2 = vpack.c.bf16 %v2518_v4, %v2518_v4  ;;  %v2525_v4 = vld [vmem:[#allocation2 + $0xaf] sm:$0xff] }
 0x1c8   : > { %v2181_v22 = vpop.permute.xlu2 %2180  ;;  %2640 = vrot.lane.b32.xlu0 %v2574_v53, %s9664_s15 }
 0x1c9   : > { %2248 = vst.msk [vmem:[#allocation3 + $0xe8] sm:$0xf] %vm13921_vm15, %v2181_v22 }
 0x1cb   : > { %v2167_v32 = vpop.permute.xlu1 %2166  ;;  %v2171_v47 = vpop.permute.xlu0 %2170 }
 0x1cc   : > { %2241 = vst.msk [vmem:[#allocation3 + $0xb0] sm:$0xf] %vm13921_vm15, %v2167_v32  ;;  %2638 = vrot.lane.b32.xlu2 %v2573_v38, %s9664_s15  ;;  %v2580_v38 = vsel %vm9969_vm2, %v2548_v44, 0  ;;  %v2520_v44 = vld [vmem:[#allocation2 + $0x87] sm:$0xff]  ;;  %vm14221_vm2 = vnez %v14078_v15 }
 0x1cd   : > { %2243 = vst.msk [vmem:[#allocation3 + $0xc0] sm:$0xf] %vm13921_vm15, %v2171_v47  ;;  %v2549_v47 = vpack.c.bf16 %v2517_v5, %v2517_v5  ;;  %v2521_v5 = vld [vmem:[#allocation2 + $0x8f] sm:$0xff] }
 0x1cf   : > { %2642 = vrot.lane.b32.xlu1 %v2575_v52, %s9664_s15  ;;  %v2579_v52 = vsel %vm9871_vm8, %v2547_v30, 0  ;;  %v2581_v35 = vsel %vm9871_vm8, %v2549_v47, 0  ;;  %v2554_v30 = vpack.c.bf16 %v2522_v49, %v2522_v49  ;;  %v2553_v47 = vpack.c.bf16 %v2521_v5, %v2521_v5  ;;  %v2528_v5 = vld [vmem:[#allocation2 + $0xc7] sm:$0xff] }
 0x1d0   : > { %v2380_v13 = vpop.permute.xlu2 %2379  ;;  %2646 = vrot.lane.b32.xlu0 %v2577_v34, %s9664_s15 }
 0x1d1   : > { %2476 = vst.msk [vmem:[#allocation3] sm:$0xf] %vm13925_vm9, %v2380_v13 }
 0x1d3   : > { %v2173_v53 = vpop.permute.xlu1 %2172  ;;  %v2177_v22 = vpop.permute.xlu0 %2176 }
 0x1d4   : > { %2244 = vst.msk [vmem:[#allocation3 + $0xc8] sm:$0xf] %vm13921_vm15, %v2173_v53  ;;  %2644 = vrot.lane.b32.xlu2 %v2576_v10, %s9664_s15  ;;  %v2583_v10 = vsel %vm9871_vm8, %v2551_v40, 0  ;;  %v2523_v40 = vld [vmem:[#allocation2 + $0x9f] sm:$0xff] }
 0x1d5   : > { %2246 = vst.msk [vmem:[#allocation3 + $0xd8] sm:$0xf] %vm13921_vm15, %v2177_v22  ;;  %v2552_v22 = vpack.c.bf16 %v2520_v44, %v2520_v44  ;;  %v2524_v44 = vld [vmem:[#allocation2 + $0xa7] sm:$0xff] }
 0x1d7   : > { %2648 = vrot.lane.b32.xlu1 %v2578_v8, %s9664_s15  ;;  %v2582_v8 = vsel %vm10080_vm11, %v2550_v2, 0  ;;  %v2584_v26 = vsel %vm10010_vm12, %v2552_v22, 0  ;;  %v2557_v2 = vpack.c.bf16 %v2525_v4, %v2525_v4  ;;  %v2556_v22 = vpack.c.bf16 %v2524_v44, %v2524_v44  ;;  %v2531_v44 = vld [vmem:[#allocation2 + $0xdf] sm:$0xff] }
 0x1d8   : > { %v2386_v32 = vpop.permute.xlu2 %2385  ;;  %2652 = vrot.lane.b32.xlu0 %v2580_v38, %s9664_s15  ;;  %vm14224_vm12 = vnez %v14113_v61 }
 0x1d9   : > { %2479 = vst.msk [vmem:[#allocation3 + $0x18] sm:$0xf] %vm13925_vm9, %v2386_v32 }
 0x1db   : > { %v2179_v34 = vpop.permute.xlu1 %2178  ;;  %v2183_v13 = vpop.permute.xlu0 %2182 }
 0x1dc   : > { %2247 = vst.msk [vmem:[#allocation3 + $0xe0] sm:$0xf] %vm13921_vm15, %v2179_v34  ;;  %2650 = vrot.lane.b32.xlu2 %v2579_v52, %s9664_s15  ;;  %v2586_v52 = vsel %vm14221_vm2, %v2554_v30, 0  ;;  %v2526_v30 = vld [vmem:[#allocation2 + $0xb7] sm:$0xff]  ;;  %vm14223_vm2 = vnez %v14104_v6 }
 0x1dd   : > { %2249 = vst.msk [vmem:[#allocation3 + $0xf0] sm:$0xf] %vm13921_vm15, %v2183_v13  ;;  %v2555_v13 = vpack.c.bf16 %v2523_v40, %v2523_v40  ;;  %v2527_v40 = vld [vmem:[#allocation2 + $0xbf] sm:$0xff] }
 0x1df   : > { %2654 = vrot.lane.b32.xlu1 %v2581_v35, %s9664_s15  ;;  %v2585_v35 = vsel %vm9871_vm8, %v2553_v47, 0  ;;  %v2587_v49 = vsel %vm9871_vm8, %v2555_v13, 0  ;;  %v2560_v47 = vpack.c.bf16 %v2528_v5, %v2528_v5  ;;  %v2559_v13 = vpack.c.bf16 %v2527_v40, %v2527_v40  ;;  %v2534_v40 = vld [vmem:[#allocation2 + $0xf7] sm:$0xff] }
 0x1e0   : > { %v2392_v53 = vpop.permute.xlu2 %2391  ;;  %2658 = vrot.lane.b32.xlu0 %v2583_v10, %s9664_s15 }
 0x1e1   : > { %2482 = vst.msk [vmem:[#allocation3 + $0x30] sm:$0xf] %vm13925_vm9, %v2392_v53 }
 0x1e3   : > { %v2185_v38 = vpop.permute.xlu1 %2184  ;;  %v2382_v32 = vpop.permute.xlu0 %2381 }
 0x1e4   : > { %2250 = vst.msk [vmem:[#allocation3 + $0xf8] sm:$0xf] %vm13921_vm15, %v2185_v38  ;;  %2656 = vrot.lane.b32.xlu2 %v2582_v8, %s9664_s15  ;;  %v2589_v8 = vsel %vm9871_vm8, %v2557_v2, 0  ;;  %vm14222_vm15 = vnez %v14116_v16  ;;  %v2529_v2 = vld [vmem:[#allocation2 + $0xcf] sm:$0xff] }
 0x1e5   : > { %2477 = vst.msk [vmem:[#allocation3 + $0x8] sm:$0xf] %vm13925_vm9, %v2382_v32  ;;  %v2558_v32 = vpack.c.bf16 %v2526_v30, %v2526_v30  ;;  %v2530_v30 = vld [vmem:[#allocation2 + $0xd7] sm:$0xff] }
 0x1e7   : > { %2660 = vrot.lane.b32.xlu1 %v2584_v26, %s9664_s15  ;;  %v2588_v26 = vsel %vm14222_vm15, %v2556_v22, 0  ;;  %v2590_v4 = vsel %vm14223_vm2, %v2558_v32, 0  ;;  %v2563_v22 = vpack.c.bf16 %v2531_v44, %v2531_v44  ;;  %v2562_v32 = vpack.c.bf16 %v2530_v30, %v2530_v30 }
 0x1e8   : > { %v2398_v34 = vpop.permute.xlu2 %2397  ;;  %2664 = vrot.lane.b32.xlu0 %v2586_v52, %s9664_s15  ;;  %vm14231_vm2 = vnez %v14198_v42 }
 0x1e9   : > { %2485 = vst.msk [vmem:[#allocation3 + $0x48] sm:$0xf] %vm13925_vm9, %v2398_v34 }
 0x1eb   : > { %v2384_v10 = vpop.permute.xlu1 %2383  ;;  %v2388_v53 = vpop.permute.xlu0 %2387 }
 0x1ec   : > { %2478 = vst.msk [vmem:[#allocation3 + $0x10] sm:$0xf] %vm13925_vm9, %v2384_v10  ;;  %2662 = vrot.lane.b32.xlu2 %v2585_v35, %s9664_s15  ;;  %v2592_v35 = vsel %vm14224_vm12, %v2560_v47, 0  ;;  %v2532_v47 = vld [vmem:[#allocation2 + $0xe7] sm:$0xff]  ;;  %vm14225_vm12 = vnez %v14144_v45 }
 0x1ed   : > { %2480 = vst.msk [vmem:[#allocation3 + $0x20] sm:$0xf] %vm13925_vm9, %v2388_v53  ;;  %v2561_v53 = vpack.c.bf16 %v2529_v2, %v2529_v2  ;;  %v2533_v2 = vld [vmem:[#allocation2 + $0xef] sm:$0xff] }
 0x1ef   : > { %2666 = vrot.lane.b32.xlu1 %v2587_v49, %s9664_s15  ;;  %v2591_v49 = vsel %vm9871_vm8, %v2559_v13, 0  ;;  %v2593_v5 = vsel %vm9871_vm8, %v2561_v53, 0  ;;  %v2566_v13 = vpack.c.bf16 %v2534_v40, %v2534_v40  ;;  %v2565_v53 = vpack.c.bf16 %v2533_v2, %v2533_v2  ;;  %v2538_v40 = vld [vmem:[#allocation2 + $0x117] sm:$0xff]  ;;  %v2539_v2 = vld [vmem:[#allocation2 + $0x11f] sm:$0xff] }
 0x1f0   : > { %v2404_v38 = vpop.permute.xlu2 %2403  ;;  %2670 = vrot.lane.b32.xlu0 %v2589_v8, %s9664_s15 }
 0x1f1   : > { %2488 = vst.msk [vmem:[#allocation3 + $0x60] sm:$0xf] %vm13925_vm9, %v2404_v38 }
 0x1f3   : > { %v2390_v52 = vpop.permute.xlu1 %2389  ;;  %v2394_v34 = vpop.permute.xlu0 %2393 }
 0x1f4   : > { %2481 = vst.msk [vmem:[#allocation3 + $0x28] sm:$0xf] %vm13925_vm9, %v2390_v52  ;;  %2668 = vrot.lane.b32.xlu2 %v2588_v26, %s9664_s15  ;;  %v2595_v26 = vsel %vm9871_vm8, %v2563_v22, 0  ;;  %v2535_v22 = vld [vmem:[#allocation2 + $0xff] sm:$0xff] }
 0x1f5   : > { %2483 = vst.msk [vmem:[#allocation3 + $0x38] sm:$0xf] %vm13925_vm9, %v2394_v34  ;;  %v2564_v34 = vpack.c.bf16 %v2532_v47, %v2532_v47  ;;  %v2567_v30 = vpack.c.bf16 %v2535_v22, %v2535_v22 }
 0x1f7   : > { %2672 = vrot.lane.b32.xlu1 %v2590_v4, %s9664_s15  ;;  %v2594_v4 = vsel %vm14190_vm13, %v2562_v32, 0  ;;  %v2596_v44 = vsel %vm14191_vm14, %v2564_v34, 0  ;;  %v2536_v32 = vld [vmem:[#allocation2 + $0x107] sm:$0xff]  ;;  %v2599_v47 = vsel %vm9871_vm8, %v2567_v30, 0  ;;  %vm14227_vm14 = vnez %v14162_v9 }
 0x1f8   : > { %v2410_v10 = vpop.permute.xlu2 %2409  ;;  %2676 = vrot.lane.b32.xlu0 %v2592_v35, %s9664_s15  ;;  %vm13933_vm13 = vcmask 519616  }
 0x1f9   : > { %2491 = vst.msk [vmem:[#allocation3 + $0x78] sm:$0xf] %vm13925_vm9, %v2410_v10 }
 0x1fb   : > { %v2396_v8 = vpop.permute.xlu1 %2395  ;;  %v2400_v38 = vpop.permute.xlu0 %2399 }
 0x1fc   : > { %2484 = vst.msk [vmem:[#allocation3 + $0x40] sm:$0xf] %vm13925_vm9, %v2396_v8  ;;  %2674 = vrot.lane.b32.xlu2 %v2591_v49, %s9664_s15  ;;  %v2598_v49 = vsel %vm14225_vm12, %v2566_v13, 0  ;;  %vm14226_vm12 = vnez %v14174_v29 }
 0x1fd   : > { %2486 = vst.msk [vmem:[#allocation3 + $0x50] sm:$0xf] %vm13925_vm9, %v2400_v38  ;;  %v2597_v38 = vsel %vm9871_vm8, %v2565_v53, 0  ;;  %v2571_v53 = vpack.c.bf16 %v2539_v2, %v2539_v2 }
 0x1ff   : > { %2678 = vrot.lane.b32.xlu1 %v2593_v5, %s9664_s15  ;;  %v2603_v22 = vsel %vm9871_vm8, %v2571_v53, 0 }
 0x200   : > { %v2416_v52 = vpop.permute.xlu2 %2415  ;;  %2682 = vrot.lane.b32.xlu0 %v2595_v26, %s9664_s15 }
 0x201   : > { %2494 = vst.msk [vmem:[#allocation3 + $0x90] sm:$0xf] %vm13925_vm9, %v2416_v52  ;;  %v2568_v52 = vpack.c.bf16 %v2536_v32, %v2536_v32 }
 0x203   : > { %v2402_v35 = vpop.permute.xlu1 %2401  ;;  %v2406_v10 = vpop.permute.xlu0 %2405  ;;  %v2600_v13 = vsel %vm14226_vm12, %v2568_v52, 0  ;;  %vm14230_vm12 = vnez %v14196_v54 }
 0x204   : > { %2487 = vst.msk [vmem:[#allocation3 + $0x58] sm:$0xf] %vm13925_vm9, %v2402_v35  ;;  %2680 = vrot.lane.b32.xlu2 %v2594_v4, %s9664_s15  ;;  %v2570_v4 = vpack.c.bf16 %v2538_v40, %v2538_v40 }
 0x205   : > { %2489 = vst.msk [vmem:[#allocation3 + $0x68] sm:$0xf] %vm13925_vm9, %v2406_v10 }
 0x207   : > { %2684 = vrot.lane.b32.xlu1 %v2596_v44, %s9664_s15  ;;  %v2602_v44 = vsel %vm14227_vm14, %v2570_v4, 0  ;;  %vm13927_vm14 = vcmask 454016  }
 0x208   : > { %v2422_v8 = vpop.permute.xlu2 %2421  ;;  %2688 = vrot.lane.b32.xlu0 %v2598_v49, %s9664_s15 }
 0x209   : > { %2497 = vst.msk [vmem:[#allocation3 + $0xa8] sm:$0xf] %vm13925_vm9, %v2422_v8 }
 0x20b   : > { %v2408_v5 = vpop.permute.xlu1 %2407  ;;  %v2412_v26 = vpop.permute.xlu0 %2411 }
 0x20c   : > { %2490 = vst.msk [vmem:[#allocation3 + $0x70] sm:$0xf] %vm13925_vm9, %v2408_v5  ;;  %2686 = vrot.lane.b32.xlu2 %v2597_v38, %s9664_s15  ;;  %v2767_v5 = vld [vmem:[#allocation2 + $0x38] sm:$0xff] }
 0x20d   : > { %2492 = vst.msk [vmem:[#allocation3 + $0x80] sm:$0xf] %vm13925_vm9, %v2412_v26  ;;  %v2769_v26 = vld [vmem:[#allocation2 + $0x48] sm:$0xff] }
 0x20e   : > { %v2801_v40 = vpack.c.bf16 %v2769_v26, %v2769_v26 }
 0x20f   : > { %2690 = vrot.lane.b32.xlu1 %v2599_v47, %s9664_s15 }
 0x210   : > { %v2428_v34 = vpop.permute.xlu2 %2427  ;;  %2694 = vrot.lane.b32.xlu0 %v10528_v51, %s9664_s15  ;;  %v2766_v51 = vld [vmem:[#allocation2 + $0x30] sm:$0xff] }
 0x211   : > { %2500 = vst.msk [vmem:[#allocation3 + $0xc0] sm:$0xf] %vm13925_vm9, %v2428_v34  ;;  %v2798_v38 = vpack.c.bf16 %v2766_v51, %v2766_v51  ;;  %v2770_v34 = vld [vmem:[#allocation2 + $0x50] sm:$0xff] }
 0x213   : > { %v2414_v35 = vpop.permute.xlu1 %2413  ;;  %v2418_v10 = vpop.permute.xlu0 %2417 }
 0x214   : > { %2493 = vst.msk [vmem:[#allocation3 + $0x88] sm:$0xf] %vm13925_vm9, %v2414_v35  ;;  %2692 = vrot.lane.b32.xlu2 %v2600_v13, %s9664_s15  ;;  %v2802_v13 = vpack.c.bf16 %v2770_v34, %v2770_v34 }
 0x215   : > { %2495 = vst.msk [vmem:[#allocation3 + $0x98] sm:$0xf] %vm13925_vm9, %v2418_v10 }
 0x217   : > { %2696 = vrot.lane.b32.xlu1 %v2602_v44, %s9664_s15  ;;  %v2773_v44 = vld [vmem:[#allocation2 + $0x68] sm:$0xff] }
 0x218   : > { %v2434_v49 = vpop.permute.xlu2 %2433  ;;  %2861 = vrot.lane.b32.xlu0 %v10536_v24, %s9665_s16  ;;  %v2799_v24 = vpack.c.bf16 %v2767_v5, %v2767_v5 }
 0x219   : > { %2503 = vst.msk [vmem:[#allocation3 + $0xd8] sm:$0xf] %vm13925_vm9, %v2434_v49  ;;  %v2805_v49 = vpack.c.bf16 %v2773_v44, %v2773_v44 }
 0x21b   : > { %v2420_v8 = vpop.permute.xlu1 %2419  ;;  %v2424_v30 = vpop.permute.xlu0 %2423 }
 0x21c   : > { %2496 = vst.msk [vmem:[#allocation3 + $0xa0] sm:$0xf] %vm13925_vm9, %v2420_v8  ;;  %2698 = vrot.lane.b32.xlu2 %v2603_v22, %s9664_s15 }
 0x21d   : > { %2498 = vst.msk [vmem:[#allocation3 + $0xb0] sm:$0xf] %vm13925_vm9, %v2424_v30  ;;  %v2776_v30 = vld [vmem:[#allocation2 + $0x80] sm:$0xff] }
 0x21e   : > { %v2808_v5 = vpack.c.bf16 %v2776_v30, %v2776_v30 }
 0x21f   : > { %2863 = vrot.lane.b32.xlu1 %v2798_v38, %s9665_s16 }
 0x220   : > { %v2440_v32 = vpop.permute.xlu2 %2439  ;;  %2867 = vrot.lane.b32.xlu0 %v10545_v21, %s9665_s16  ;;  %v2772_v21 = vld [vmem:[#allocation2 + $0x60] sm:$0xff] }
 0x221   : > { %2506 = vst.msk [vmem:[#allocation3 + $0xf0] sm:$0xf] %vm13925_vm9, %v2440_v32  ;;  %v2804_v10 = vpack.c.bf16 %v2772_v21, %v2772_v21  ;;  %v2782_v21 = vld [vmem:[#allocation2 + $0xb0] sm:$0xff] }
 0x223   : > { %v2426_v47 = vpop.permute.xlu1 %2425  ;;  %v2430_v52 = vpop.permute.xlu0 %2429 }
 0x224   : > { %2499 = vst.msk [vmem:[#allocation3 + $0xb8] sm:$0xf] %vm13925_vm9, %v2426_v47  ;;  %2865 = vrot.lane.b32.xlu2 %v2799_v24, %s9665_s16  ;;  %v2779_v47 = vld [vmem:[#allocation2 + $0x98] sm:$0xff] }
 0x225   : > { %2501 = vst.msk [vmem:[#allocation3 + $0xc8] sm:$0xf] %vm13925_vm9, %v2430_v52 }
 0x227   : > { %2869 = vrot.lane.b32.xlu1 %v2801_v40, %s9665_s16  ;;  %v2811_v40 = vpack.c.bf16 %v2779_v47, %v2779_v47  ;;  %v2791_v47 = vld [vmem:[#allocation2 + $0xf8] sm:$0xff] }
 0x228   : > { %v2639_v4 = vpop.permute.xlu2 %2638  ;;  %2873 = vrot.lane.b32.xlu0 %v10554_v0, %s9665_s16  ;;  %v2775_v0 = vld [vmem:[#allocation2 + $0x78] sm:$0xff] }
 0x229   : > { %2734 = vst.msk [vmem:[#allocation3 + $0x8] sm:$0xf] %vm13927_vm14, %v2639_v4  ;;  %v2807_v8 = vpack.c.bf16 %v2775_v0, %v2775_v0 }
 0x22b   : > { %v2432_v35 = vpop.permute.xlu1 %2431  ;;  %v2436_v2 = vpop.permute.xlu0 %2435 }
 0x22c   : > { %2502 = vst.msk [vmem:[#allocation3 + $0xd0] sm:$0xf] %vm13925_vm9, %v2432_v35  ;;  %2871 = vrot.lane.b32.xlu2 %v2802_v13, %s9665_s16 }
 0x22d   : > { %2504 = vst.msk [vmem:[#allocation3 + $0xe0] sm:$0xf] %vm13925_vm9, %v2436_v2  ;;  %v2814_v2 = vpack.c.bf16 %v2782_v21, %v2782_v21 }
 0x22f   : > { %2875 = vrot.lane.b32.xlu1 %v2804_v10, %s9665_s16 }
 0x230   : > { %v2645_v53 = vpop.permute.xlu2 %2644  ;;  %2879 = vrot.lane.b32.xlu0 %v10563_v19, %s9665_s16  ;;  %v2778_v19 = vld [vmem:[#allocation2 + $0x90] sm:$0xff] }
 0x231   : > { %2737 = vst.msk [vmem:[#allocation3 + $0x20] sm:$0xf] %vm13927_vm14, %v2645_v53  ;;  %v2810_v26 = vpack.c.bf16 %v2778_v19, %v2778_v19 }
 0x233   : > { %v2438_v51 = vpop.permute.xlu1 %2437  ;;  %v2442_v22 = vpop.permute.xlu0 %2441 }
 0x234   : > { %2505 = vst.msk [vmem:[#allocation3 + $0xe8] sm:$0xf] %vm13925_vm9, %v2438_v51  ;;  %2877 = vrot.lane.b32.xlu2 %v2805_v49, %s9665_s16  ;;  %v2785_v49 = vld [vmem:[#allocation2 + $0xc8] sm:$0xff] }
 0x235   : > { %2507 = vst.msk [vmem:[#allocation3 + $0xf8] sm:$0xf] %vm13925_vm9, %v2442_v22  ;;  %v2817_v51 = vpack.c.bf16 %v2785_v49, %v2785_v49  ;;  %vm14228_vm9 = vnez %v14033_v43 }
 0x237   : > { %2881 = vrot.lane.b32.xlu1 %v2807_v8, %s9665_s16 }
 0x238   : > { %v2651_v38 = vpop.permute.xlu2 %2650  ;;  %2885 = vrot.lane.b32.xlu0 %v10572_v59, %s9665_s16  ;;  %v2781_v59 = vld [vmem:[#allocation2 + $0xa8] sm:$0xff] }
 0x239   : > { %2740 = vst.msk [vmem:[#allocation3 + $0x38] sm:$0xf] %vm13927_vm14, %v2651_v38  ;;  %v2813_v13 = vpack.c.bf16 %v2781_v59, %v2781_v59  ;;  %v2788_v38 = vld [vmem:[#allocation2 + $0xe0] sm:$0xff]  ;;  %v2795_v59 = vld [vmem:[#allocation2 + $0x118] sm:$0xff] }
 0x23a   : > { %v2820_v19 = vpack.c.bf16 %v2788_v38, %v2788_v38  ;;  %v2827_v21 = vpack.c.bf16 %v2795_v59, %v2795_v59 }
 0x23b   : > { %v2637_v32 = vpop.permute.xlu1 %2636  ;;  %v2641_v24 = vpop.permute.xlu0 %2640 }
 0x23c   : > { %2733 = vst.msk [vmem:[#allocation3] sm:$0xf] %vm13927_vm14, %v2637_v32  ;;  %2883 = vrot.lane.b32.xlu2 %v2808_v5, %s9665_s16 }
 0x23d   : > { %2735 = vst.msk [vmem:[#allocation3 + $0x10] sm:$0xf] %vm13927_vm14, %v2641_v24 }
 0x23f   : > { %2887 = vrot.lane.b32.xlu1 %v2810_v26, %s9665_s16 }
 0x240   : > { %v2657_v52 = vpop.permute.xlu2 %2656  ;;  %2891 = vrot.lane.b32.xlu0 %v10581_v12, %s9665_s16  ;;  %v2784_v12 = vld [vmem:[#allocation2 + $0xc0] sm:$0xff] }
 0x241   : > { %2743 = vst.msk [vmem:[#allocation3 + $0x50] sm:$0xf] %vm13927_vm14, %v2657_v52  ;;  %v2816_v53 = vpack.c.bf16 %v2784_v12, %v2784_v12 }
 0x243   : > { %v2643_v34 = vpop.permute.xlu1 %2642  ;;  %v2647_v4 = vpop.permute.xlu0 %2646 }
 0x244   : > { %2736 = vst.msk [vmem:[#allocation3 + $0x18] sm:$0xf] %vm13927_vm14, %v2643_v34  ;;  %2889 = vrot.lane.b32.xlu2 %v2811_v40, %s9665_s16  ;;  %v2823_v40 = vpack.c.bf16 %v2791_v47, %v2791_v47 }
 0x245   : > { %2738 = vst.msk [vmem:[#allocation3 + $0x28] sm:$0xf] %vm13927_vm14, %v2647_v4 }
 0x247   : > { %2893 = vrot.lane.b32.xlu1 %v2813_v13, %s9665_s16 }
 0x248   : > { %v2663_v35 = vpop.permute.xlu2 %2662  ;;  %2897 = vrot.lane.b32.xlu0 %v10590_v58, %s9665_s16  ;;  %v2787_v58 = vld [vmem:[#allocation2 + $0xd8] sm:$0xff] }
 0x249   : > { %2746 = vst.msk [vmem:[#allocation3 + $0x68] sm:$0xf] %vm13927_vm14, %v2663_v35  ;;  %v2819_v30 = vpack.c.bf16 %v2787_v58, %v2787_v58  ;;  %v2794_v35 = vld [vmem:[#allocation2 + $0x110] sm:$0xff]  ;;  %v2992_v58 = vld [vmem:[#allocation2 + $0x39] sm:$0xff] }
 0x24a   : > { %v2826_v12 = vpack.c.bf16 %v2794_v35, %v2794_v35 }
 0x24b   : > { %v2649_v10 = vpop.permute.xlu1 %2648  ;;  %v2653_v44 = vpop.permute.xlu0 %2652 }
 0x24c   : > { %2739 = vst.msk [vmem:[#allocation3 + $0x30] sm:$0xf] %vm13927_vm14, %v2649_v10  ;;  %2895 = vrot.lane.b32.xlu2 %v2814_v2, %s9665_s16 }
 0x24d   : > { %2741 = vst.msk [vmem:[#allocation3 + $0x40] sm:$0xf] %vm13927_vm14, %v2653_v44  ;;  %v2990_v44 = vld [vmem:[#allocation2 + $0x29] sm:$0xff] }
 0x24f   : > { %2899 = vrot.lane.b32.xlu1 %v2816_v53, %s9665_s16 }
 0x250   : > { %v2669_v0 = vpop.permute.xlu2 %2668  ;;  %2903 = vrot.lane.b32.xlu0 %v10599_v41, %s9665_s16  ;;  %v2790_v41 = vld [vmem:[#allocation2 + $0xf0] sm:$0xff] }
 0x251   : > { %2749 = vst.msk [vmem:[#allocation3 + $0x80] sm:$0xf] %vm13927_vm14, %v2669_v0  ;;  %v2822_v26 = vpack.c.bf16 %v2790_v41, %v2790_v41  ;;  %v3022_v0 = vpack.c.bf16 %v2990_v44, %v2990_v44 }
 0x253   : > { %v2655_v22 = vpop.permute.xlu1 %2654  ;;  %v2659_v8 = vpop.permute.xlu0 %2658  ;;  %v3054_v38 = vsel %vm9871_vm8, %v3022_v0, 0 }
 0x254   : > { %2742 = vst.msk [vmem:[#allocation3 + $0x48] sm:$0xf] %vm13927_vm14, %v2655_v22  ;;  %2901 = vrot.lane.b32.xlu2 %v2817_v51, %s9665_s16  ;;  %v3055_v51 = vsel %vm14228_vm9, %v10636_v7, 0  ;;  %v2993_v7 = vld [vmem:[#allocation2 + $0x41] sm:$0xff]  ;;  %vm14229_vm9 = vnez %v14039_v11 }
 0x255   : > { %2744 = vst.msk [vmem:[#allocation3 + $0x58] sm:$0xf] %vm13927_vm14, %v2659_v8  ;;  %v2994_v8 = vld [vmem:[#allocation2 + $0x49] sm:$0xff] }
 0x257   : > { %2905 = vrot.lane.b32.xlu1 %v2819_v30, %s9665_s16  ;;  %v3024_v30 = vpack.c.bf16 %v2992_v58, %v2992_v58 }
 0x258   : > { %v2675_v5 = vpop.permute.xlu2 %2674  ;;  %2909 = vrot.lane.b32.xlu0 %v10608_v36, %s9665_s16  ;;  %v2793_v36 = vld [vmem:[#allocation2 + $0x108] sm:$0xff] }
 0x259   : > { %2752 = vst.msk [vmem:[#allocation3 + $0x98] sm:$0xf] %vm13927_vm14, %v2675_v5  ;;  %v2825_v13 = vpack.c.bf16 %v2793_v36, %v2793_v36 }
 0x25b   : > { %v2661_v32 = vpop.permute.xlu1 %2660  ;;  %v2665_v24 = vpop.permute.xlu0 %2664 }
 0x25c   : > { %2745 = vst.msk [vmem:[#allocation3 + $0x60] sm:$0xf] %vm13927_vm14, %v2661_v32  ;;  %2907 = vrot.lane.b32.xlu2 %v2820_v19, %s9665_s16  ;;  %v3026_v19 = vpack.c.bf16 %v2994_v8, %v2994_v8  ;;  %v3056_v32 = vsel %vm9871_vm8, %v3024_v30, 0  ;;  %v2996_v30 = vld [vmem:[#allocation2 + $0x59] sm:$0xff] }
 0x25d   : > { %2747 = vst.msk [vmem:[#allocation3 + $0x70] sm:$0xf] %vm13927_vm14, %v2665_v24  ;;  %v3025_v24 = vpack.c.bf16 %v2993_v7, %v2993_v7 }
 0x25e   : > { %v3058_v47 = vsel %vm9871_vm8, %v3026_v19, 0 }
 0x25f   : > { %2911 = vrot.lane.b32.xlu1 %v2822_v26, %s9665_s16  ;;  %v3057_v36 = vsel %vm14229_vm9, %v3025_v24, 0  ;;  %v3001_v24 = vld [vmem:[#allocation2 + $0x81] sm:$0xff] }
 0x260   : > { %v2681_v52 = vpop.permute.xlu2 %2680  ;;  %2915 = vrot.lane.b32.xlu0 %v10617_v57, %s9665_s16  ;;  %v2796_v57 = vld [vmem:[#allocation2 + $0x120] sm:$0xff] }
 0x261   : > { %2755 = vst.msk [vmem:[#allocation3 + $0xb0] sm:$0xf] %vm13927_vm14, %v2681_v52  ;;  %v2828_v49 = vpack.c.bf16 %v2796_v57, %v2796_v57  ;;  %v2995_v52 = vld [vmem:[#allocation2 + $0x51] sm:$0xff] }
 0x263   : > { %v2667_v34 = vpop.permute.xlu1 %2666  ;;  %v2671_v4 = vpop.permute.xlu0 %2670 }
 0x264   : > { %2748 = vst.msk [vmem:[#allocation3 + $0x78] sm:$0xf] %vm13927_vm14, %v2667_v34  ;;  %2913 = vrot.lane.b32.xlu2 %v2823_v40, %s9665_s16  ;;  %v3027_v40 = vpack.c.bf16 %v2995_v52, %v2995_v52 }
 0x265   : > { %2750 = vst.msk [vmem:[#allocation3 + $0x88] sm:$0xf] %vm13927_vm14, %v2671_v4  ;;  %v2997_v4 = vld [vmem:[#allocation2 + $0x61] sm:$0xff] }
 0x267   : > { %2917 = vrot.lane.b32.xlu1 %v2825_v13, %s9665_s16  ;;  %v3059_v13 = vsel %vm14230_vm12, %v3027_v40, 0  ;;  %vm13929_vm12 = vcmask 1043456  }
 0x268   : > { %v2687_v2 = vpop.permute.xlu2 %2686  ;;  %2921 = vrot.lane.b32.xlu0 %v2827_v21, %s9665_s16  ;;  %v3029_v21 = vpack.c.bf16 %v2997_v4, %v2997_v4  ;;  %v2999_v4 = vld [vmem:[#allocation2 + $0x71] sm:$0xff] }
 0x269   : > { %2758 = vst.msk [vmem:[#allocation3 + $0xc8] sm:$0xf] %vm13927_vm14, %v2687_v2 }
 0x26a   : > { %v3061_v2 = vsel %vm14231_vm2, %v3029_v21, 0  ;;  %vm14237_vm2 = vcmask 585216  }
 0x26b   : > { %v2673_v10 = vpop.permute.xlu1 %2672  ;;  %v2677_v53 = vpop.permute.xlu0 %2676 }
 0x26c   : > { %2751 = vst.msk [vmem:[#allocation3 + $0x90] sm:$0xf] %vm13927_vm14, %v2673_v10  ;;  %2919 = vrot.lane.b32.xlu2 %v2826_v12, %s9665_s16 }
 0x26d   : > { %2753 = vst.msk [vmem:[#allocation3 + $0xa0] sm:$0xf] %vm13927_vm14, %v2677_v53 }
 0x26f   : > { %2923 = vrot.lane.b32.xlu1 %v2828_v49, %s9665_s16  ;;  %v2998_v49 = vld [vmem:[#allocation2 + $0x69] sm:$0xff] }
 0x270   : > { %v2693_v22 = vpop.permute.xlu2 %2692  ;;  %3120 = vrot.lane.b32.xlu0 %v3055_v51, %s9666_s17  ;;  %v3030_v0 = vpack.c.bf16 %v2998_v49, %v2998_v49 }
 0x271   : > { %2761 = vst.msk [vmem:[#allocation3 + $0xe0] sm:$0xf] %vm13927_vm14, %v2693_v22 }
 0x272   : > { %v3062_v58 = vsel %vm9871_vm8, %v3030_v0, 0 }
 0x273   : > { %v2679_v5 = vpop.permute.xlu1 %2678  ;;  %v2683_v41 = vpop.permute.xlu0 %2682 }
 0x274   : > { %2754 = vst.msk [vmem:[#allocation3 + $0xa8] sm:$0xf] %vm13927_vm14, %v2679_v5  ;;  %3118 = vrot.lane.b32.xlu2 %v3054_v38, %s9666_s17  ;;  %v3028_v38 = vpack.c.bf16 %v2996_v30, %v2996_v30 }
 0x275   : > { %2756 = vst.msk [vmem:[#allocation3 + $0xb8] sm:$0xf] %vm13927_vm14, %v2683_v41 }
 0x276   : > { %v3060_v19 = vsel %vm9871_vm8, %v3028_v38, 0 }
 0x277   : > { %3122 = vrot.lane.b32.xlu1 %v3056_v32, %s9666_s17  ;;  %v3000_v32 = vld [vmem:[#allocation2 + $0x79] sm:$0xff] }
 0x278   : > { %v2699_v26 = vpop.permute.xlu2 %2698  ;;  %3126 = vrot.lane.b32.xlu0 %v3058_v47, %s9666_s17  ;;  %v3033_v47 = vpack.c.bf16 %v3001_v24, %v3001_v24  ;;  %v9555_v24 = vld [vmem:[%s13829_s1 + $0x10] sm:$0xff] }
 0x279   : > { %2764 = vst.msk [vmem:[#allocation3 + $0xf8] sm:$0xf] %vm13927_vm14, %v2699_v26  ;;  %v3032_v26 = vpack.c.bf16 %v3000_v32, %v3000_v32 }
 0x27b   : > { %v2685_v59 = vpop.permute.xlu1 %2684  ;;  %v2689_v34 = vpop.permute.xlu0 %2688  ;;  %v3064_v40 = vsel %vm9871_vm8, %v3032_v26, 0 }
 0x27c   : > { %2757 = vst.msk [vmem:[#allocation3 + $0xc0] sm:$0xf] %vm13927_vm14, %v2685_v59  ;;  %3124 = vrot.lane.b32.xlu2 %v3057_v36, %s9666_s17  ;;  %v3065_v36 = vsel %vm14204_vm6, %v3033_v47, 0  ;;  %vm14233_vm6 = vnez %v14205_v18 }
 0x27d   : > { %2759 = vst.msk [vmem:[#allocation3 + $0xd0] sm:$0xf] %vm13927_vm14, %v2689_v34 }
 0x27f   : > { %3128 = vrot.lane.b32.xlu1 %v3059_v13, %s9666_s17  ;;  %v3031_v13 = vpack.c.bf16 %v2999_v4, %v2999_v4 }
 0x280   : > { %v2866_v35 = vpop.permute.xlu2 %2865  ;;  %3132 = vrot.lane.b32.xlu0 %v3061_v2, %s9666_s17 }
 0x281   : > { %2960 = vst.msk [vmem:[#allocation3 + $0x10] sm:$0xf] %vm13933_vm13, %v2866_v35 }
 0x283   : > { %v2691_v12 = vpop.permute.xlu1 %2690  ;;  %v2695_v57 = vpop.permute.xlu0 %2694 }
 0x284   : > { %2760 = vst.msk [vmem:[#allocation3 + $0xd8] sm:$0xf] %vm13927_vm14, %v2691_v12  ;;  %3130 = vrot.lane.b32.xlu2 %v3060_v19, %s9666_s17  ;;  %v9556_v19 = vld [vmem:[%s13829_s1 + $0x18] sm:$0xff] }
 0x285   : > { %2762 = vst.msk [vmem:[#allocation3 + $0xe8] sm:$0xf] %vm13927_vm14, %v2695_v57  ;;  %v3003_v57 = vld [vmem:[#allocation2 + $0x91] sm:$0xff] }
 0x287   : > { %3134 = vrot.lane.b32.xlu1 %v3062_v58, %s9666_s17 }
 0x288   : > { %v2872_v10 = vpop.permute.xlu2 %2871  ;;  %3138 = vrot.lane.b32.xlu0 %v3064_v40, %s9666_s17  ;;  %v9554_v40 = vld [vmem:[%s13829_s1 + $0x8] sm:$0xff] }
 0x289   : > { %2963 = vst.msk [vmem:[#allocation3 + $0x28] sm:$0xf] %vm13933_vm13, %v2872_v10  ;;  %v3035_v10 = vpack.c.bf16 %v3003_v57, %v3003_v57  ;;  %v3007_v57 = vld [vmem:[#allocation2 + $0xb1] sm:$0xff] }
 0x28b   : > { %v2697_v44 = vpop.permute.xlu1 %2696  ;;  %v2862_v53 = vpop.permute.xlu0 %2861 }
 0x28c   : > { %2763 = vst.msk [vmem:[#allocation3 + $0xf0] sm:$0xf] %vm13927_vm14, %v2697_v44  ;;  %vm14232_vm14 = vnez %v14200_v28 }
 0x28d   : > { %2958 = vst.msk [vmem:[#allocation3] sm:$0xf] %vm13933_vm13, %v2862_v53  ;;  %v3063_v35 = vsel %vm14232_vm14, %v3031_v13, 0  ;;  %v3067_v53 = vsel %vm14233_vm6, %v3035_v10, 0  ;;  %v9553_v13 = vld [vmem:[%s13829_s1] sm:$0xff]  ;;  %vm14234_vm6 = vnez %v14209_v50 }
 0x28e   : > { %3136 = vrot.lane.b32.xlu2 %v3063_v35, %s9666_s17 }
 0x28f   : > { %3140 = vrot.lane.b32.xlu1 %v3065_v36, %s9666_s17  ;;  %v3002_v36 = vld [vmem:[#allocation2 + $0x89] sm:$0xff] }
 0x290   : > { %v2878_v51 = vpop.permute.xlu2 %2877  ;;  %3144 = vrot.lane.b32.xlu0 %v3067_v53, %s9666_s17  ;;  %v3039_v53 = vpack.c.bf16 %v3007_v57, %v3007_v57  ;;  %v3008_v57 = vld [vmem:[#allocation2 + $0xb9] sm:$0xff] }
 0x291   : > { %2966 = vst.msk [vmem:[#allocation3 + $0x40] sm:$0xf] %vm13933_vm13, %v2878_v51  ;;  %v3287_v51 = vld [vmem:[%s13829_s1 + $0x20] sm:$0xf] }
 0x292   : > { %v3385_v58 = vunpack.c.l.b16 %v3287_v51  ;;  %v3071_v51 = vsel %vm14234_vm6, %v3039_v53, 0  ;;  %vm14236_vm6 = vcmask 60416  }
 0x293   : > { %v2864_v22 = vpop.permute.xlu1 %2863  ;;  %v2868_v8 = vpop.permute.xlu0 %2867 }
 0x294   : > { %2959 = vst.msk [vmem:[#allocation3 + $0x8] sm:$0xf] %vm13933_vm13, %v2864_v22 }
 0x295   : > { %2961 = vst.msk [vmem:[#allocation3 + $0x18] sm:$0xf] %vm13933_vm13, %v2868_v8  ;;  %v3390_v8 = vpack.c.b16 %v3385_v58, %v3385_v58 }
 0x297   : > { %v3446_v30 = vsel %vm13929_vm12, %v3390_v8, 0  ;;  %vm13930_vm12 = vcmask 585216  }
 0x298   : > { %v2884_v5 = vpop.permute.xlu2 %2883  ;;  %3451 = vmatpush.bf16.msra.mxu0 %v3446_v30 }
 0x299   : > { %2969 = vst.msk [vmem:[#allocation3 + $0x58] sm:$0xf] %vm13933_vm13, %v2884_v5 }
 0x29b   : > { %v2870_v41 = vpop.permute.xlu1 %2869  ;;  %v2874_v7 = vpop.permute.xlu0 %2873 }
 0x29c   : > { %2962 = vst.msk [vmem:[#allocation3 + $0x20] sm:$0xf] %vm13933_vm13, %v2870_v41  ;;  %v3004_v41 = vld [vmem:[#allocation2 + $0x99] sm:$0xff]  ;;  %3452 = vmatpush.bf16.msra.mxu0 %v9556_v19 }
 0x29d   : > { %2964 = vst.msk [vmem:[#allocation3 + $0x30] sm:$0xf] %vm13933_vm13, %v2874_v7  ;;  %v3036_v7 = vpack.c.bf16 %v3004_v41, %v3004_v41 }
 0x29f   : > { %v3068_v26 = vsel %vm9871_vm8, %v3036_v7, 0 }
 0x2a0   : > { %v2890_v52 = vpop.permute.xlu2 %2889  ;;  %3146 = vrot.lane.b32.xlu1 %v3068_v26, %s9666_s17  ;;  %3453 = vmatpush.bf16.msra.mxu0 %v9555_v24  ;;  %v3009_v24 = vld [vmem:[#allocation2 + $0xc1] sm:$0xff] }
 0x2a1   : > { %2972 = vst.msk [vmem:[#allocation3 + $0x70] sm:$0xf] %vm13933_vm13, %v2890_v52  ;;  %v3041_v26 = vpack.c.bf16 %v3009_v24, %v3009_v24 }
 0x2a3   : > { %v2876_v59 = vpop.permute.xlu1 %2875  ;;  %v2880_v34 = vpop.permute.xlu0 %2879 }
 0x2a4   : > { %2965 = vst.msk [vmem:[#allocation3 + $0x38] sm:$0xf] %vm13933_vm13, %v2876_v59  ;;  %3454 = vmatpush.bf16.msra.mxu0 %v9554_v40 }
 0x2a5   : > { %2967 = vst.msk [vmem:[#allocation3 + $0x48] sm:$0xf] %vm13933_vm13, %v2880_v34  ;;  %v3034_v34 = vpack.c.bf16 %v3002_v36, %v3002_v36 }
 0x2a7   : > { %v3066_v4 = vsel %vm9871_vm8, %v3034_v34, 0 }
 0x2a8   : > { %v2896_v21 = vpop.permute.xlu2 %2895  ;;  %3142 = vrot.lane.b32.xlu2 %v3066_v4, %s9666_s17  ;;  %3455 = vmatpush.bf16.msra.mxu0 %v9553_v13 }
 0x2a9   : > { %2975 = vst.msk [vmem:[#allocation3 + $0x88] sm:$0xf] %vm13933_vm13, %v2896_v21  ;;  %3152 = vrot.lane.b32.xlu1 %v3071_v51, %s9666_s17 }
 0x2ab   : > { %v2882_v2 = vpop.permute.xlu1 %2881  ;;  %v2886_v12 = vpop.permute.xlu0 %2885 }
 0x2ac   : > { %2968 = vst.msk [vmem:[#allocation3 + $0x50] sm:$0xf] %vm13933_vm13, %v2882_v2  ;;  %v3737_v2 = vld [vmem:[#allocation2 + $0x7] sm:$0xff] }
 0x2ad   : > { %2970 = vst.msk [vmem:[#allocation3 + $0x60] sm:$0xf] %vm13933_vm13, %v2886_v12  ;;  %v3006_v12 = vld [vmem:[#allocation2 + $0xa9] sm:$0xff] }
 0x2b0   : > { %v2902_v44 = vpop.permute.xlu2 %2901 }
 0x2b1   : > { %2978 = vst.msk [vmem:[#allocation3 + $0xa0] sm:$0xf] %vm13933_vm13, %v2902_v44  ;;  %v3038_v44 = vpack.c.bf16 %v3006_v12, %v3006_v12 }
 0x2b3   : > { %v2888_v49 = vpop.permute.xlu1 %2887  ;;  %v2892_v0 = vpop.permute.xlu0 %2891 }
 0x2b4   : > { %2971 = vst.msk [vmem:[#allocation3 + $0x68] sm:$0xf] %vm13933_vm13, %v2888_v49  ;;  %v3769_v49 = vpack.c.bf16 %v3737_v2, %v3737_v2  ;;  %v3010_v2 = vld [vmem:[#allocation2 + $0xc9] sm:$0xff] }
 0x2b5   : > { %2973 = vst.msk [vmem:[#allocation3 + $0x78] sm:$0xf] %vm13933_vm13, %v2892_v0  ;;  %v3070_v0 = vsel %vm9871_vm8, %v3038_v44, 0  ;;  %v3042_v12 = vpack.c.bf16 %v3010_v2, %v3010_v2 }
 0x2b6   : > { %3150 = vrot.lane.b32.xlu0 %v3070_v0, %s9666_s17 }
 0x2b7   : > { %v3074_v44 = vsel %vm9871_vm8, %v3042_v12, 0 }
 0x2b8   : > { %v2908_v22 = vpop.permute.xlu2 %2907  ;;  %3158 = vrot.lane.b32.xlu1 %v3074_v44, %s9666_s17 }
 0x2b9   : > { %2981 = vst.msk [vmem:[#allocation3 + $0xb8] sm:$0xf] %vm13933_vm13, %v2908_v22  ;;  %v3005_v22 = vld [vmem:[#allocation2 + $0xa1] sm:$0xff] }
 0x2ba   : > { %v3037_v30 = vpack.c.bf16 %v3005_v22, %v3005_v22 }
 0x2bb   : > { %v2894_v38 = vpop.permute.xlu1 %2893  ;;  %v2898_v5 = vpop.permute.xlu0 %2897 }
 0x2bc   : > { %2974 = vst.msk [vmem:[#allocation3 + $0x80] sm:$0xf] %vm13933_vm13, %v2894_v38  ;;  %v3801_v38 = vsel %vm9854_vm4, %v3769_v49, 0  ;;  %vm14238_vm4 = vnez %v14211_v63 }
 0x2bd   : > { %2976 = vst.msk [vmem:[#allocation3 + $0x90] sm:$0xf] %vm13933_vm13, %v2898_v5 }
 0x2c0   : > { %v2914_v32 = vpop.permute.xlu2 %2913 }
 0x2c1   : > { %2984 = vst.msk [vmem:[#allocation3 + $0xd0] sm:$0xf] %vm13933_vm13, %v2914_v32 }
 0x2c3   : > { %v2900_v47 = vpop.permute.xlu1 %2899  ;;  %v2904_v52 = vpop.permute.xlu0 %2903 }
 0x2c4   : > { %2977 = vst.msk [vmem:[#allocation3 + $0x98] sm:$0xf] %vm13933_vm13, %v2900_v47  ;;  %v3073_v47 = vsel %vm14238_vm4, %v3041_v26, 0  ;;  %vm14241_vm4 = vcmask 60416  }
 0x2c5   : > { %2979 = vst.msk [vmem:[#allocation3 + $0xa8] sm:$0xf] %vm13933_vm13, %v2904_v52  ;;  %3156 = vrot.lane.b32.xlu0 %v3073_v47, %s9666_s17  ;;  %v3738_v52 = vld [vmem:[#allocation2 + $0xf] sm:$0xff] }
 0x2c8   : > { %v2920_v59 = vpop.permute.xlu2 %2919 }
 0x2c9   : > { %2987 = vst.msk [vmem:[#allocation3 + $0xe8] sm:$0xf] %vm13933_vm13, %v2920_v59  ;;  %v3770_v59 = vpack.c.bf16 %v3738_v52, %v3738_v52 }
 0x2cb   : > { %v2906_v21 = vpop.permute.xlu1 %2905  ;;  %v2910_v35 = vpop.permute.xlu0 %2909  ;;  %v3802_v34 = vsel %vm9871_vm8, %v3770_v59, 0 }
 0x2cc   : > { %2980 = vst.msk [vmem:[#allocation3 + $0xb0] sm:$0xf] %vm13933_vm13, %v2906_v21 }
 0x2cd   : > { %2982 = vst.msk [vmem:[#allocation3 + $0xc0] sm:$0xf] %vm13933_vm13, %v2910_v35 }
 0x2d0   : > { %v3119_v10 = vpop.permute.xlu2 %3118 }
 0x2d1   : > { %3215 = vst.msk [vmem:[#allocation3] sm:$0xf] %vm13930_vm12, %v3119_v10  ;;  %vm14235_vm12 = vnez %v14207_v17  ;;  %v3040_v10 = vpack.c.bf16 %v3008_v57, %v3008_v57 }
 0x2d2   : > { %v3069_v5 = vsel %vm14235_vm12, %v3037_v30, 0  ;;  %v3012_v30 = vld [vmem:[#allocation2 + $0xd9] sm:$0xff] }
 0x2d3   : > { %v2912_v58 = vpop.permute.xlu1 %2911  ;;  %v2916_v8 = vpop.permute.xlu0 %2915  ;;  %3148 = vrot.lane.b32.xlu2 %v3069_v5, %s9666_s17  ;;  %v3072_v53 = vsel %vm9871_vm8, %v3040_v10, 0  ;;  %v3044_v5 = vpack.c.bf16 %v3012_v30, %v3012_v30  ;;  %v3016_v10 = vld [vmem:[#allocation2 + $0xf9] sm:$0xff] }
 0x2d4   : > { %2983 = vst.msk [vmem:[#allocation3 + $0xc8] sm:$0xf] %vm13933_vm13, %v2912_v58  ;;  %v3048_v44 = vpack.c.bf16 %v3016_v10, %v3016_v10 }
 0x2d5   : > { %2985 = vst.msk [vmem:[#allocation3 + $0xd8] sm:$0xf] %vm13933_vm13, %v2916_v8 }
 0x2d8   : > { %v9164_v19 = vld [vmem:[#allocation3] sm:$0xf]  ;;  %v3125_v41 = vpop.permute.xlu2 %3124 }
 0x2d9   : > { %3833 = vst.msk [vmem:[#allocation3] sm:$0xf] %vm14236_vm6, %v3801_v38  ;;  %vm14239_vm6 = vmmov %vm14237_vm2  ;;  %v3013_v38 = vld [vmem:[#allocation2 + $0xe1] sm:$0xff] }
 0x2da   : > { %3218 = vst.msk [vmem:[#allocation3 + $0x18] sm:$0xf] %vm14237_vm2, %v3125_v41  ;;  %vm13936_vm2 = vcmask 588800   ;;  %vm14240_vm12 = vmmov %vm14239_vm6  ;;  %v3011_v41 = vld [vmem:[#allocation2 + $0xd1] sm:$0xff] }
 0x2db   : > { %v2918_v7 = vpop.permute.xlu1 %2917  ;;  %v2922_v32 = vpop.permute.xlu0 %2921  ;;  %vm14242_vm14 = vmmov %vm14239_vm6  ;;  %3154 = vrot.lane.b32.xlu2 %v3072_v53, %s9666_s17  ;;  %v3014_v53 = vld [vmem:[#allocation2 + $0xe9] sm:$0xff] }
 0x2dc   : > { %2986 = vst.msk [vmem:[#allocation3 + $0xe0] sm:$0xf] %vm13933_vm13, %v2918_v7  ;;  %v3043_v7 = vpack.c.bf16 %v3011_v41, %v3011_v41 }
 0x2dd   : > { %2988 = vst.msk [vmem:[#allocation3 + $0xf0] sm:$0xf] %vm13933_vm13, %v2922_v32  ;;  %v3076_v32 = vsel %vm9871_vm8, %v3044_v5, 0  ;;  %v3018_v5 = vld [vmem:[#allocation2 + $0x109] sm:$0xff] }
 0x2de   : > { %3162 = vrot.lane.b32.xlu0 %v3076_v32, %s9666_s17  ;;  %v3050_v41 = vpack.c.bf16 %v3018_v5, %v3018_v5  ;;  %v3017_v32 = vld [vmem:[#allocation2 + $0x101] sm:$0xff] }
 0x2e0   : > { %v3131_v0 = vpop.permute.xlu2 %3130 }
 0x2e1   : > { %v9538_v58 = vld [vmem:[#allocation3 + $0x14] sm:$0xf0] }
 0x2e3   : > { %v2924_v40 = vpop.permute.xlu1 %2923  ;;  %v3121_v36 = vpop.permute.xlu0 %3120 }
 0x2e4   : > { %2989 = vst.msk [vmem:[#allocation3 + $0xf8] sm:$0xf] %vm13933_vm13, %v2924_v40 }
 0x2e5   : > { %3216 = vst.msk [vmem:[#allocation3 + $0x8] sm:$0xf] %vm14239_vm6, %v3121_v36 }
 0x2e8   : > { %v3137_v47 = vpop.permute.xlu2 %3136 }
 0x2eb   : > { %v3123_v4 = vpop.permute.xlu1 %3122  ;;  %v3127_v21 = vpop.permute.xlu0 %3126 }
 0x2ec   : > { %v9537_v13 = vld [vmem:[#allocation3 + $0x4] sm:$0xf0]  ;;  %3217 = vst.msk [vmem:[#allocation3 + $0x10] sm:$0xf] %vm14240_vm12, %v3123_v4 }
 0x2ed   : > { %3834 = vst.msk [vmem:[#allocation3 + $0x8] sm:$0xf] %vm14241_vm4, %v3802_v34  ;;  %v9165_v35 = vor.u32 %v9537_v13, %v9164_v19  ;;  %vm14243_vm4 = vmmov %vm14239_vm6  ;;  %v3045_v19 = vpack.c.bf16 %v3013_v38, %v3013_v38  ;;  %vm14246_vm6 = vnez %v14213_v20  ;;  %v3015_v34 = vld [vmem:[#allocation2 + $0xf1] sm:$0xff] }
 0x2ee   : > { %3219 = vst.msk [vmem:[#allocation3 + $0x20] sm:$0xf] %vm14242_vm14, %v3127_v21  ;;  %vm14244_vm12 = vmmov %vm14243_vm4  ;;  %v3075_v26 = vsel %vm14246_vm6, %v3043_v7, 0  ;;  %v3047_v4 = vpack.c.bf16 %v3015_v34, %v3015_v34 }
 0x2ef   : > { %9242 = vmatmul.msk.bf16.vlgmr.msra.gmra.mxu0 %vm13936_vm2, %v9165_v35  ;;  %3221 = vst.msk [vmem:[#allocation3 + $0x30] sm:$0xf] %vm14244_vm12, %v3131_v0  ;;  %vm14245_vm14 = vmmov %vm14243_vm4  ;;  %v3077_v24 = vsel %vm14216_vm1, %v3045_v19, 0  ;;  %3160 = vrot.lane.b32.xlu2 %v3075_v26, %s9666_s17  ;;  %v3080_v0 = vsel %vm9871_vm8, %v3048_v44, 0  ;;  %v3019_v19 = vld [vmem:[#allocation2 + $0x111] sm:$0xff]  ;;  %v3082_v26 = vsel %vm9871_vm8, %v3050_v41, 0 }
 0x2f0   : > { %3164 = vrot.lane.b32.xlu1 %v3077_v24, %s9666_s17  ;;  %3224 = vst.msk [vmem:[#allocation3 + $0x48] sm:$0xf] %vm14243_vm4, %v3137_v47  ;;  %vm14247_vm12 = vmmov %vm14243_vm4  ;;  %v3051_v7 = vpack.c.bf16 %v3019_v19, %v3019_v19  ;;  %v3049_v24 = vpack.c.bf16 %v3017_v32, %v3017_v32  ;;  %v3866_v19 = vld [vmem:[#allocation2 + $0x10] sm:$0xff] }
 0x2f1   : > { %vm14249_vm13 = vmmov %vm14243_vm4  ;;  %v3898_v32 = vpack.c.bf16 %v3866_v19, %v3866_v19 }
 0x2f2   : > { %vm14250_vm1 = vmmov %vm14243_vm4  ;;  %v3083_v47 = vsel %vm14219_vm7, %v3051_v7, 0 }
 0x2f3   : > { %v3129_v49 = vpop.permute.xlu1 %3128  ;;  %v3133_v51 = vpop.permute.xlu0 %3132  ;;  %v9168_v22 = vld [vmem:[#allocation3 + $0x10] sm:$0xf] }
 0x2f4   : > { %3220 = vst.msk [vmem:[#allocation3 + $0x28] sm:$0xf] %vm14243_vm4, %v3129_v49  ;;  %v9169_v8 = vor.u32 %v9538_v58, %v9168_v22  ;;  %v3046_v49 = vpack.c.bf16 %v3014_v53, %v3014_v53  ;;  %vm14252_vm4 = vmmov %vm14250_vm1 }
 0x2f5   : > { %3222 = vst.msk [vmem:[#allocation3 + $0x38] sm:$0xf] %vm14245_vm14, %v3133_v51  ;;  %v9172_v40 = vld [vmem:[#allocation3 + $0x20] sm:$0xf]  ;;  %vm14248_vm14 = vnez %v14217_v1 }
 0x2f6   : > { %v3079_v13 = vsel %vm14248_vm14, %v3047_v4, 0  ;;  %v9176_v2 = vld [vmem:[#allocation3 + $0x30] sm:$0xf]  ;;  %v3078_v51 = vsel %vm9871_vm8, %v3046_v49, 0 }
 0x2f7   : > { %3168 = vrot.lane.b32.xlu0 %v3079_v13, %s9666_s17  ;;  %3166 = vrot.lane.b32.xlu2 %v3078_v51, %s9666_s17  ;;  %v3021_v13 = vld [vmem:[#allocation2 + $0x121] sm:$0xff] }
 0x2f8   : > { %3170 = vrot.lane.b32.xlu1 %v3080_v0, %s9666_s17  ;;  %v3020_v0 = vld [vmem:[#allocation2 + $0x119] sm:$0xff] }
 0x2f9   : > { %v3052_v51 = vpack.c.bf16 %v3020_v0, %v3020_v0 }
 0x2fb   : > { %v3135_v52 = vpop.permute.xlu1 %3134  ;;  %v9539_v36 = vld [vmem:[#allocation3 + $0x24] sm:$0xf0]  ;;  %v3139_v21 = vpop.permute.xlu0 %3138 }
 0x2fc   : > { %3223 = vst.msk [vmem:[#allocation3 + $0x40] sm:$0xf] %vm14247_vm12, %v3135_v52  ;;  %v9173_v59 = vor.u32 %v9539_v36, %v9172_v40  ;;  %v9540_v12 = vld [vmem:[#allocation3 + $0x34] sm:$0xf0]  ;;  %v3081_v40 = vsel %vm10309_vm0, %v3049_v24, 0  ;;  %vm14253_vm12 = vmmov %vm14250_vm1 }
 0x2fd   : > { %3225 = vst.msk [vmem:[#allocation3 + $0x50] sm:$0xf] %vm14249_vm13, %v3139_v21  ;;  %v9177_v57 = vor.u32 %v9540_v12, %v9176_v2  ;;  %vm14251_vm13 = vmmov %vm14250_vm1  ;;  %v3053_v21 = vpack.c.bf16 %v3021_v13, %v3021_v13 }
 0x2ff   : > { %9243 = vmatmul.msk.bf16.gmra.mxu0 %vm13936_vm2, %v9169_v8  ;;  %v9541_v8 = vld [vmem:[#allocation3 + $0x44] sm:$0xf0]  ;;  %3174 = vrot.lane.b32.xlu0 %v3082_v26, %s9666_s17 }
 0x300   : > { %3176 = vrot.lane.b32.xlu1 %v3083_v47, %s9666_s17  ;;  %3172 = vrot.lane.b32.xlu2 %v3081_v40, %s9666_s17  ;;  %v11151_v47 = vld [vmem:[%s13830_s2] ss:$0 sm:$0xff] }
 0x302   : > { %v3143_v22 = vpop.permute.xlu2 %3142 }
 0x303   : > { %v3141_v35 = vpop.permute.xlu1 %3140  ;;  %v3145_v58 = vpop.permute.xlu0 %3144  ;;  %3227 = vst.msk [vmem:[#allocation3 + $0x60] sm:$0xf] %vm14250_vm1, %v3143_v22  ;;  %v9180_v30 = vld [vmem:[#allocation3 + $0x40] sm:$0xf] }
 0x304   : > { %3226 = vst.msk [vmem:[#allocation3 + $0x58] sm:$0xf] %vm14250_vm1, %v3141_v35  ;;  %v9181_v38 = vor.u32 %v9541_v8, %v9180_v30  ;;  %v3085_v35 = vsel %vm14220_vm5, %v3053_v21, 0  ;;  %v3084_v8 = vsel %vm9871_vm8, %v3052_v51, 0 }
 0x305   : > { %3228 = vst.msk [vmem:[#allocation3 + $0x68] sm:$0xf] %vm14251_vm13, %v3145_v58  ;;  %vm14254_vm13 = vmmov %vm14250_vm1 }
 0x307   : > { %3180 = vrot.lane.b32.xlu0 %v3085_v35, %s9666_s17 }
 0x308   : > { %3178 = vrot.lane.b32.xlu2 %v3084_v8, %s9666_s17 }
 0x30b   : > { %v9542_v34 = vld [vmem:[#allocation3 + $0x54] sm:$0xf0] }
 0x30c   : > { %v9543_v10 = vld [vmem:[#allocation3 + $0x64] sm:$0xf0] }
 0x30f   : > { %9244 = vmatmul.msk.bf16.gmra.mxu0 %vm13936_vm2, %v9173_v59  ;;  %v9184_v59 = vld [vmem:[#allocation3 + $0x50] sm:$0xf] }
 0x310   : > { %v9185_v4 = vor.u32 %v9542_v34, %v9184_v59  ;;  %3963 = vrot.lane.b32.xlu2 %v3898_v32, %s9658_s28 }
 0x312   : > { %v3147_v36 = vpop.permute.xlu1 %3146 }
 0x313   : > { %3229 = vst.msk [vmem:[#allocation3 + $0x70] sm:$0xf] %vm14253_vm12, %v3147_v36  ;;  %vm14256_vm12 = vmmov %vm14250_vm1 }
 0x31a   : > { %v9192_v22 = vld [vmem:[#allocation3 + $0x70] sm:$0xf] }
 0x31b   : > { %v3153_v12 = vpop.permute.xlu1 %3152 }
 0x31c   : > { %3232 = vst.msk [vmem:[#allocation3 + $0x88] sm:$0xf] %vm14250_vm1, %v3153_v12 }
 0x31f   : > { %9245 = vmatmul.msk.bf16.gmra.mxu0 %vm13936_vm2, %v9177_v57  ;;  %v9188_v57 = vld [vmem:[#allocation3 + $0x60] sm:$0xf] }
 0x320   : > { %v9189_v44 = vor.u32 %v9543_v10, %v9188_v57 }
 0x323   : > { %v9545_v26 = vld [vmem:[#allocation3 + $0x84] sm:$0xf0] }
 0x328   : > { %v3151_v2 = vpop.permute.xlu0 %3150 }
 0x329   : > { %3231 = vst.msk [vmem:[#allocation3 + $0x80] sm:$0xf] %vm14254_vm13, %v3151_v2  ;;  %vm14257_vm13 = vmmov %vm14250_vm1 }
 0x32a   : > { %v3159_v7 = vpop.permute.xlu1 %3158 }
 0x32b   : > { %3235 = vst.msk [vmem:[#allocation3 + $0xa0] sm:$0xf] %vm14250_vm1, %v3159_v7 }
 0x32d   : > { %v3149_v52 = vpop.permute.xlu2 %3148 }
 0x32e   : > { %3230 = vst.msk [vmem:[#allocation3 + $0x78] sm:$0xf] %vm14252_vm4, %v3149_v52  ;;  %vm14255_vm4 = vmmov %vm14250_vm1  ;;  %v11156_v52 = vld [vmem:[%s13831_s3] ss:$0 sm:$0xff] }
 0x32f   : > { %9246 = vmatmul.msk.bf16.gmra.mxu0 %vm13936_vm2, %v9181_v38  ;;  %v3865_v38 = vld [vmem:[#allocation2 + $0x8] sm:$0xff] }
 0x330   : > { %v3897_v5 = vpack.c.bf16 %v3865_v38, %v3865_v38  ;;  %v9196_v24 = vld [vmem:[#allocation3 + $0x80] sm:$0xf] }
 0x331   : > { %v9197_v40 = vor.u32 %v9545_v26, %v9196_v24 }
 0x332   : > { %3961 = vrot.lane.b32.xlu1 %v3897_v5, %s9658_s28 }
 0x335   : > { %v3155_v53 = vpop.permute.xlu2 %3154  ;;  %v9544_v58 = vld [vmem:[#allocation3 + $0x74] sm:$0xf0] }
 0x336   : > { %3233 = vst.msk [vmem:[#allocation3 + $0x90] sm:$0xf] %vm14255_vm4, %v3155_v53  ;;  %v9193_v30 = vor.u32 %v9544_v58, %v9192_v22 }
 0x337   : > { %v3157_v49 = vpop.permute.xlu0 %3156 }
 0x338   : > { %3234 = vst.msk [vmem:[#allocation3 + $0x98] sm:$0xf] %vm14256_vm12, %v3157_v49  ;;  %vm14258_vm12 = vcmask 64512  }
 0x33d   : > { %v9200_v10 = vld [vmem:[#allocation3 + $0x90] sm:$0xf] }
 0x33f   : > { %9247 = vmatmul.msk.bf16.gmra.mxu0 %vm13936_vm2, %v9185_v4 }
 0x349   : > { %v3161_v41 = vpop.permute.xlu2 %3160 }
 0x34a   : > { %3236 = vst.msk [vmem:[#allocation3 + $0xa8] sm:$0xf] %vm14257_vm13, %v3161_v41  ;;  %vm14259_vm13 = vmmov %vm14250_vm1 }
 0x34f   : > { %9248 = vmatmul.msk.bf16.gmra.mxu0 %vm13936_vm2, %v9189_v44  ;;  %v9546_v44 = vld [vmem:[#allocation3 + $0x94] sm:$0xf0] }
 0x350   : > { %v3163_v35 = vpop.permute.xlu0 %3162  ;;  %v9201_v51 = vor.u32 %v9546_v44, %v9200_v10 }
 0x351   : > { %3237 = vst.msk [vmem:[#allocation3 + $0xb0] sm:$0xf] %vm14259_vm13, %v3163_v35  ;;  %v9547_v35 = vld [vmem:[#allocation3 + $0xa4] sm:$0xf0] }
 0x35f   : > { %9249 = vmatmul.msk.bf16.gmra.mxu0 %vm13936_vm2, %v9193_v30 }
 0x362   : > { %v3165_v12 = vpop.permute.xlu1 %3164 }
 0x363   : > { %3238 = vst.msk [vmem:[#allocation3 + $0xb8] sm:$0xf] %vm14250_vm1, %v3165_v12 }
 0x36c   : > { %v3457_v36 = vpop.f32.mrf.mxu0 }
 0x36d   : > { %v3541_v59 = vmul.f32 %v11151_v47, %v3457_v36  ;;  %v3167_v36 = vpop.permute.xlu2 %3166 }
 0x36f   : > { %v3577_v34 = vadd.f32 %v11156_v52, %v3541_v59  ;;  %9250 = vmatmul.msk.bf16.gmra.mxu0 %vm13936_vm2, %v9197_v40 }
 0x371   : > { %vm3609_vm4 = vcmp.ge.f32.partialorder %v3577_v34, 0.0  ;;  %v3641_v4 = vmul.f32 0.2, %v3577_v34 }
 0x373   : > { %v3673_v13 = vsel %vm3609_vm4, %v3577_v34, %v3641_v4  ;;  %vm14260_vm4 = vmmov %vm14258_vm12  ;;  %v3169_v4 = vpop.permute.xlu0 %3168 }
 0x374   : > { %3705 = vst.msk [vmem:[#allocation2 + $0x18] sm:$0xff] %vm14258_vm12, %v3673_v13  ;;  %v3459_v21 = vpop.f32.mrf.mxu0  ;;  %vm14261_vm12 = vnez %v14049_v31  ;;  %vm14263_vm1 = vmmov %vm14260_vm4 }
 0x375   : > { %v3542_v2 = vmul.f32 %v11151_v47, %v3459_v21 }
 0x377   : > { %v3578_v57 = vadd.f32 %v11156_v52, %v3542_v2  ;;  %v9204_v2 = vld [vmem:[#allocation3 + $0xa0] sm:$0xf] }
 0x378   : > { %v9205_v44 = vor.u32 %v9547_v35, %v9204_v2 }
 0x379   : > { %vm3610_vm7 = vcmp.ge.f32.partialorder %v3578_v57, 0.0  ;;  %v3642_v53 = vmul.f32 0.2, %v3578_v57 }
 0x37b   : > { %v3674_v49 = vsel %vm3610_vm7, %v3578_v57, %v3642_v53  ;;  %v3867_v0 = vld [vmem:[#allocation2 + $0x18] sm:$0xff]  ;;  %vm14262_vm7 = vcmask 60416  }
 0x37c   : > { %v3739_v58 = vld [vmem:[#allocation2 + $0x17] sm:$0xff]  ;;  %3706 = vst.msk [vmem:[#allocation2 + $0x20] sm:$0xff] %vm14260_vm4, %v3674_v49  ;;  %v3462_v22 = vpop.f32.mrf.mxu0  ;;  %v3899_v8 = vpack.c.bf16 %v3867_v0, %v3867_v0  ;;  %vm14264_vm4 = vcmask 585216  }
 0x37d   : > { %v11167_v30 = vpack.c.bf16 %v3739_v58, %v3739_v58  ;;  %v3543_v38 = vmul.f32 %v11151_v47, %v3462_v22  ;;  %3239 = vst.msk [vmem:[#allocation3 + $0xc0] sm:$0xf] %vm14264_vm4, %v3167_v36  ;;  %v3171_v36 = vpop.permute.xlu1 %3170 }
 0x37e   : > { %3965 = vrot.lane.b32.xlu0 %v3899_v8, %s9658_s28 }
 0x37f   : > { %v3803_v5 = vsel %vm14261_vm12, %v11167_v30, 0  ;;  %v3579_v19 = vadd.f32 %v11156_v52, %v3543_v38  ;;  %9251 = vmatmul.msk.bf16.gmra.mxu0 %vm13936_vm2, %v9201_v51  ;;  %vm14265_vm2 = vmmov %vm14264_vm4 }
 0x380   : > { %3835 = vst.msk [vmem:[#allocation3 + $0x10] sm:$0xf] %vm14262_vm7, %v3803_v5  ;;  %vm14267_vm4 = vmmov %vm14262_vm7 }
 0x381   : > { %vm3611_vm13 = vcmp.ge.f32.partialorder %v3579_v19, 0.0  ;;  %v3643_v41 = vmul.f32 0.2, %v3579_v19  ;;  %3240 = vst.msk [vmem:[#allocation3 + $0xc8] sm:$0xf] %vm14265_vm2, %v3169_v4  ;;  %vm14266_vm2 = vcmask 588800  }
 0x382   : > { %v9208_v4 = vld [vmem:[#allocation3 + $0xb0] sm:$0xf] }
 0x383   : > { %v3675_v7 = vsel %vm3611_vm13, %v3579_v19, %v3643_v41  ;;  %v3868_v32 = vld [vmem:[#allocation2 + $0x20] sm:$0xff] }
 0x384   : > { %v3740_v24 = vld [vmem:[#allocation2 + $0x1f] sm:$0xff]  ;;  %3707 = vst.msk [vmem:[#allocation2 + $0x28] sm:$0xff] %vm14263_vm1, %v3675_v7  ;;  %v3464_v26 = vpop.f32.mrf.mxu0  ;;  %v3900_v40 = vpack.c.bf16 %v3868_v32, %v3868_v32 }
 0x385   : > { %v3772_v59 = vpack.c.bf16 %v3740_v24, %v3740_v24  ;;  %v3544_v34 = vmul.f32 %v11151_v47, %v3464_v26  ;;  %v3173_v24 = vpop.permute.xlu2 %3172 }
 0x386   : > { %3967 = vrot.lane.b32.xlu1 %v3900_v40, %s9658_s28 }
 0x387   : > { %v11184_v13 = vsel %vm9871_vm8, %v3772_v59, 0  ;;  %v3580_v21 = vadd.f32 %v11156_v52, %v3544_v34 }
 0x388   : > { %3836 = vst.msk [vmem:[#allocation3 + $0x18] sm:$0xf] %vm14262_vm7, %v11184_v13 }
 0x389   : > { %vm3612_vm13 = vcmp.ge.f32.partialorder %v3580_v21, 0.0  ;;  %v3644_v12 = vmul.f32 0.2, %v3580_v21 }
 0x38b   : > { %v3676_v57 = vsel %vm3612_vm13, %v3580_v21, %v3644_v12  ;;  %v3869_v10 = vld [vmem:[#allocation2 + $0x28] sm:$0xff]  ;;  %vm14268_vm13 = vmmov %vm14263_vm1 }
 0x38c   : > { %v3741_v53 = vld [vmem:[#allocation2 + $0x27] sm:$0xff]  ;;  %3708 = vst.msk [vmem:[#allocation2 + $0x30] sm:$0xff] %vm14263_vm1, %v3676_v57  ;;  %v3467_v49 = vpop.f32.mrf.mxu0  ;;  %v3901_v0 = vpack.c.bf16 %v3869_v10, %v3869_v10  ;;  %vm14269_vm1 = vcmask 585216  }
 0x38d   : > { %v11190_v51 = vpack.c.bf16 %v3741_v53, %v3741_v53  ;;  %v3545_v58 = vmul.f32 %v11151_v47, %v3467_v49  ;;  %3242 = vst.msk [vmem:[#allocation3 + $0xd8] sm:$0xf] %vm14269_vm1, %v3173_v24  ;;  %v9548_v21 = vld [vmem:[#allocation3 + $0xb4] sm:$0xf0] }
 0x38e   : > { %3969 = vrot.lane.b32.xlu2 %v3901_v0, %s9658_s28  ;;  %v9209_v57 = vor.u32 %v9548_v21, %v9208_v4  ;;  %v9212_v4 = vld [vmem:[#allocation3 + $0xc0] sm:$0xf]  ;;  %v9549_v21 = vld [vmem:[#allocation3 + $0xc4] sm:$0xf0] }
 0x38f   : > { %v3805_v22 = vsel %vm9880_vm10, %v11190_v51, 0  ;;  %v3581_v8 = vadd.f32 %v11156_v52, %v3545_v58  ;;  %9252 = vmatmul.msk.bf16.gmra.mxu0 %vm14266_vm2, %v9205_v44  ;;  %vm14270_vm2 = vmmov %vm14269_vm1  ;;  %vm14271_vm1 = vcmask 588800  }
 0x390   : > { %3837 = vst.msk [vmem:[#allocation3 + $0x20] sm:$0xf] %vm14267_vm4, %v3805_v22 }
 0x391   : > { %vm3613_vm7 = vcmp.ge.f32.partialorder %v3581_v8, 0.0  ;;  %v3645_v38 = vmul.f32 0.2, %v3581_v8  ;;  %3241 = vst.msk [vmem:[#allocation3 + $0xd0] sm:$0xf] %vm14270_vm2, %v3171_v36  ;;  %vm14272_vm2 = vmmov %vm14267_vm4 }
 0x393   : > { %v3677_v5 = vsel %vm3613_vm7, %v3581_v8, %v3645_v38  ;;  %v3870_v19 = vld [vmem:[#allocation2 + $0x30] sm:$0xff] }
 0x394   : > { %v3742_v41 = vld [vmem:[#allocation2 + $0x2f] sm:$0xff]  ;;  %3709 = vst.msk [vmem:[#allocation2 + $0x38] sm:$0xff] %vm14268_vm13, %v3677_v5  ;;  %v3469_v7 = vpop.f32.mrf.mxu0  ;;  %v3902_v32 = vpack.c.bf16 %v3870_v19, %v3870_v19 }
 0x395   : > { %v3774_v26 = vpack.c.bf16 %v3742_v41, %v3742_v41  ;;  %v3546_v40 = vmul.f32 %v11151_v47, %v3469_v7 }
 0x396   : > { %3971 = vrot.lane.b32.xlu0 %v3902_v32, %s9658_s28  ;;  %v3175_v32 = vpop.permute.xlu0 %3174 }
 0x397   : > { %v11207_v59 = vsel %vm9871_vm8, %v3774_v26, 0  ;;  %v3582_v34 = vadd.f32 %v11156_v52, %v3546_v40  ;;  %v3177_v40 = vpop.permute.xlu1 %3176 }
 0x398   : > { %3838 = vst.msk [vmem:[#allocation3 + $0x28] sm:$0xf] %vm14267_vm4, %v11207_v59 }
 0x399   : > { %vm3614_vm7 = vcmp.ge.f32.partialorder %v3582_v34, 0.0  ;;  %v3646_v35 = vmul.f32 0.2, %v3582_v34 }
 0x39b   : > { %v3678_v2 = vsel %vm3614_vm7, %v3582_v34, %v3646_v35  ;;  %v3871_v12 = vld [vmem:[#allocation2 + $0x38] sm:$0xff]  ;;  %vm14273_vm7 = vmmov %vm14268_vm13 }
 0x39c   : > { %v3743_v10 = vld [vmem:[#allocation2 + $0x37] sm:$0xff]  ;;  %3710 = vst.msk [vmem:[#allocation2 + $0x40] sm:$0xff] %vm14268_vm13, %v3678_v2  ;;  %v3472_v44 = vpop.f32.mrf.mxu0  ;;  %v3903_v53 = vpack.c.bf16 %v3871_v12, %v3871_v12  ;;  %vm14274_vm13 = vcmask 585216  }
 0x39d   : > { %v11213_v49 = vpack.c.bf16 %v3743_v10, %v3743_v10  ;;  %v3547_v0 = vmul.f32 %v11151_v47, %v3472_v44  ;;  %3243 = vst.msk [vmem:[#allocation3 + $0xe0] sm:$0xf] %vm14274_vm13, %v3175_v32 }
 0x39e   : > { %3973 = vrot.lane.b32.xlu1 %v3903_v53, %s9658_s28 }
 0x39f   : > { %v3807_v58 = vsel %vm9918_vm3, %v11213_v49, 0  ;;  %v3583_v22 = vadd.f32 %v11156_v52, %v3547_v0  ;;  %9253 = vmatmul.msk.bf16.gmra.mxu0 %vm14271_vm1, %v9209_v57  ;;  %vm14275_vm1 = vmmov %vm14274_vm13  ;;  %v9213_v57 = vor.u32 %v9549_v21, %v9212_v4  ;;  %vm14276_vm13 = vnez %v14054_v60 }
 0x3a0   : > { %3839 = vst.msk [vmem:[#allocation3 + $0x30] sm:$0xf] %vm14272_vm2, %v3807_v58  ;;  %vm14278_vm3 = vcmask 585216  }
 0x3a1   : > { %vm3615_vm4 = vcmp.ge.f32.partialorder %v3583_v22, 0.0  ;;  %v3647_v8 = vmul.f32 0.2, %v3583_v22  ;;  %3244 = vst.msk [vmem:[#allocation3 + $0xe8] sm:$0xf] %vm14275_vm1, %v3177_v40  ;;  %vm14277_vm1 = vcmask 588800  }
 0x3a3   : > { %v3679_v38 = vsel %vm3615_vm4, %v3583_v22, %v3647_v8  ;;  %v3872_v5 = vld [vmem:[#allocation2 + $0x40] sm:$0xff] }
 0x3a4   : > { %v3744_v19 = vld [vmem:[#allocation2 + $0x3f] sm:$0xff]  ;;  %3711 = vst.msk [vmem:[#allocation2 + $0x48] sm:$0xff] %vm14273_vm7, %v3679_v38  ;;  %v3474_v41 = vpop.f32.mrf.mxu0  ;;  %v3904_v7 = vpack.c.bf16 %v3872_v5, %v3872_v5 }
 0x3a5   : > { %v3776_v24 = vpack.c.bf16 %v3744_v19, %v3744_v19  ;;  %v3548_v26 = vmul.f32 %v11151_v47, %v3474_v41 }
 0x3a6   : > { %3975 = vrot.lane.b32.xlu2 %v3904_v7, %s9658_s28 }
 0x3a7   : > { %v11230_v36 = vsel %vm9871_vm8, %v3776_v24, 0  ;;  %v3584_v34 = vadd.f32 %v11156_v52, %v3548_v26  ;;  %v3179_v24 = vpop.permute.xlu2 %3178 }
 0x3a8   : > { %3840 = vst.msk [vmem:[#allocation3 + $0x38] sm:$0xf] %vm14272_vm2, %v11230_v36 }
 0x3a9   : > { %vm3616_vm4 = vcmp.ge.f32.partialorder %v3584_v34, 0.0  ;;  %v3648_v35 = vmul.f32 0.2, %v3584_v34  ;;  %3245 = vst.msk [vmem:[#allocation3 + $0xf0] sm:$0xf] %vm14278_vm3, %v3179_v24 }
 0x3ab   : > { %v3680_v2 = vsel %vm3616_vm4, %v3584_v34, %v3648_v35  ;;  %v3873_v12 = vld [vmem:[#allocation2 + $0x48] sm:$0xff]  ;;  %v3181_v34 = vpop.permute.xlu0 %3180 }
 0x3ac   : > { %v3745_v10 = vld [vmem:[#allocation2 + $0x47] sm:$0xff]  ;;  %3712 = vst.msk [vmem:[#allocation2 + $0x50] sm:$0xff] %vm14273_vm7, %v3680_v2  ;;  %v3477_v44 = vpop.f32.mrf.mxu0  ;;  %v3905_v53 = vpack.c.bf16 %v3873_v12, %v3873_v12  ;;  %v9216_v2 = vld [vmem:[#allocation3 + $0xd0] sm:$0xf] }
 0x3ad   : > { %v11236_v0 = vpack.c.bf16 %v3745_v10, %v3745_v10  ;;  %v3549_v58 = vmul.f32 %v11151_v47, %v3477_v44  ;;  %v9550_v35 = vld [vmem:[#allocation3 + $0xd4] sm:$0xf0] }
 0x3ae   : > { %3977 = vrot.lane.b32.xlu0 %v3905_v53, %s9658_s28  ;;  %v9217_v44 = vor.u32 %v9550_v35, %v9216_v2 }
 0x3af   : > { %v3809_v22 = vsel %vm14276_vm13, %v11236_v0, 0  ;;  %v3585_v8 = vadd.f32 %v11156_v52, %v3549_v58  ;;  %9254 = vmatmul.msk.bf16.gmra.mxu0 %vm14277_vm1, %v9213_v57  ;;  %vm14279_vm1 = vmmov %vm14278_vm3  ;;  %vm14289_vm13 = vcmask 64512  }
 0x3b0   : > { %3841 = vst.msk [vmem:[#allocation3 + $0x40] sm:$0xf] %vm14272_vm2, %v3809_v22  ;;  %vm14280_vm3 = vmmov %vm14273_vm7 }
 0x3b1   : > { %vm3617_vm4 = vcmp.ge.f32.partialorder %v3585_v8, 0.0  ;;  %v3649_v38 = vmul.f32 0.2, %v3585_v8  ;;  %3246 = vst.msk [vmem:[#allocation3 + $0xf8] sm:$0xf] %vm14279_vm1, %v3181_v34  ;;  %vm14282_vm1 = vmmov %vm14272_vm2 }
 0x3b3   : > { %v3681_v5 = vsel %vm3617_vm4, %v3585_v8, %v3649_v38  ;;  %v3874_v19 = vld [vmem:[#allocation2 + $0x50] sm:$0xff] }
 0x3b4   : > { %v3746_v41 = vld [vmem:[#allocation2 + $0x4f] sm:$0xff]  ;;  %3713 = vst.msk [vmem:[#allocation2 + $0x58] sm:$0xff] %vm14273_vm7, %v3681_v5  ;;  %v3479_v7 = vpop.f32.mrf.mxu0  ;;  %v3906_v32 = vpack.c.bf16 %v3874_v19, %v3874_v19  ;;  %vm14281_vm7 = vcmask 588800  }
 0x3b5   : > { %v3778_v26 = vpack.c.bf16 %v3746_v41, %v3746_v41  ;;  %v3550_v40 = vmul.f32 %v11151_v47, %v3479_v7  ;;  %v3964_v41 = vpop.permute.xlu2 %3963 }
 0x3b6   : > { %3979 = vrot.lane.b32.xlu1 %v3906_v32, %s9658_s28 }
 0x3b7   : > { %v11253_v4 = vsel %vm9871_vm8, %v3778_v26, 0  ;;  %v3586_v21 = vadd.f32 %v11156_v52, %v3550_v40 }
 0x3b8   : > { %3842 = vst.msk [vmem:[#allocation3 + $0x48] sm:$0xf] %vm14272_vm2, %v11253_v4 }
 0x3b9   : > { %vm3618_vm4 = vcmp.ge.f32.partialorder %v3586_v21, 0.0  ;;  %v3650_v12 = vmul.f32 0.2, %v3586_v21 }
 0x3bb   : > { %v3682_v57 = vsel %vm3618_vm4, %v3586_v21, %v3650_v12  ;;  %v3875_v10 = vld [vmem:[#allocation2 + $0x58] sm:$0xff]  ;;  %vm14283_vm4 = vcmask 126016  }
 0x3bc   : > { %v3747_v53 = vld [vmem:[#allocation2 + $0x57] sm:$0xff]  ;;  %3714 = vst.msk [vmem:[#allocation2 + $0x60] sm:$0xff] %vm14280_vm3, %v3682_v57  ;;  %v3482_v58 = vpop.f32.mrf.mxu0  ;;  %v3907_v22 = vpack.c.bf16 %v3875_v10, %v3875_v10  ;;  %v9220_v57 = vld [vmem:[#allocation3 + $0xe0] sm:$0xf] }
 0x3bd   : > { %v11259_v8 = vpack.c.bf16 %v3747_v53, %v3747_v53  ;;  %v3551_v38 = vmul.f32 %v11151_v47, %v3482_v58  ;;  %4058 = vst.msk [vmem:[#allocation3 + $0x8] sm:$0xf] %vm14283_vm4, %v3964_v41  ;;  %v9551_v10 = vld [vmem:[#allocation3 + $0xe4] sm:$0xf0]  ;;  %vm14286_vm4 = vnez %v14064_v27 }
 0x3be   : > { %3981 = vrot.lane.b32.xlu2 %v3907_v22, %s9658_s28  ;;  %v9221_v22 = vor.u32 %v9551_v10, %v9220_v57 }
 0x3bf   : > { %v3811_v5 = vsel %vm10080_vm11, %v11259_v8, 0  ;;  %v3587_v19 = vadd.f32 %v11156_v52, %v3551_v38  ;;  %9255 = vmatmul.msk.bf16.gmra.mxu0 %vm14281_vm7, %v9217_v44  ;;  %vm14284_vm7 = vmmov %vm14282_vm1 }
 0x3c0   : > { %3843 = vst.msk [vmem:[#allocation3 + $0x50] sm:$0xf] %vm14282_vm1, %v3811_v5 }
 0x3c1   : > { %vm3619_vm2 = vcmp.ge.f32.partialorder %v3587_v19, 0.0  ;;  %v3651_v7 = vmul.f32 0.2, %v3587_v19 }
 0x3c3   : > { %v3683_v32 = vsel %vm3619_vm2, %v3587_v19, %v3651_v7  ;;  %v3876_v24 = vld [vmem:[#allocation2 + $0x60] sm:$0xff]  ;;  %vm14285_vm2 = vmmov %vm14280_vm3 }
 0x3c4   : > { %v3748_v26 = vld [vmem:[#allocation2 + $0x5f] sm:$0xff]  ;;  %3715 = vst.msk [vmem:[#allocation2 + $0x68] sm:$0xff] %vm14280_vm3, %v3683_v32  ;;  %v3484_v40 = vpop.f32.mrf.mxu0  ;;  %v3908_v34 = vpack.c.bf16 %v3876_v24, %v3876_v24  ;;  %vm14287_vm3 = vcmask 588800  }
 0x3c5   : > { %v3780_v21 = vpack.c.bf16 %v3748_v26, %v3748_v26  ;;  %v3552_v35 = vmul.f32 %v11151_v47, %v3484_v40  ;;  %v3962_v26 = vpop.permute.xlu1 %3961 }
 0x3c6   : > { %3983 = vrot.lane.b32.xlu0 %v3908_v34, %s9658_s28 }
 0x3c7   : > { %v11275_v2 = vsel %vm9871_vm8, %v3780_v21, 0  ;;  %v3588_v12 = vadd.f32 %v11156_v52, %v3552_v35 }
 0x3c8   : > { %3844 = vst.msk [vmem:[#allocation3 + $0x58] sm:$0xf] %vm14284_vm7, %v11275_v2 }
 0x3c9   : > { %vm3620_vm1 = vcmp.ge.f32.partialorder %v3588_v12, 0.0  ;;  %v3652_v44 = vmul.f32 0.2, %v3588_v12 }
 0x3cb   : > { %v3684_v53 = vsel %vm3620_vm1, %v3588_v12, %v3652_v44  ;;  %v3877_v58 = vld [vmem:[#allocation2 + $0x68] sm:$0xff] }
 0x3cc   : > { %v3749_v38 = vld [vmem:[#allocation2 + $0x67] sm:$0xff]  ;;  %3716 = vst.msk [vmem:[#allocation2 + $0x70] sm:$0xff] %vm14285_vm2, %v3684_v53  ;;  %v3487_v5 = vpop.f32.mrf.mxu0  ;;  %v3909_v19 = vpack.c.bf16 %v3877_v58, %v3877_v58  ;;  %vm14288_vm2 = vcmask 126016  }
 0x3cd   : > { %v11281_v41 = vpack.c.bf16 %v3749_v38, %v3749_v38  ;;  %v3553_v7 = vmul.f32 %v11151_v47, %v3487_v5  ;;  %4057 = vst.msk [vmem:[#allocation3] sm:$0xf] %vm14288_vm2, %v3962_v26  ;;  %v9552_v38 = vld [vmem:[#allocation3 + $0xf4] sm:$0xf0]  ;;  %vm14292_vm2 = vcmask 588800  }
 0x3ce   : > { %3985 = vrot.lane.b32.xlu1 %v3909_v19, %s9658_s28 }
 0x3cf   : > { %v3813_v32 = vsel %vm14286_vm4, %v11281_v41, 0  ;;  %v3589_v24 = vadd.f32 %v11156_v52, %v3553_v7  ;;  %9256 = vmatmul.msk.bf16.gmra.mxu0 %vm14287_vm3, %v9221_v22  ;;  %vm14290_vm3 = vmmov %vm14284_vm7  ;;  %v9224_v22 = vld [vmem:[#allocation3 + $0xf0] sm:$0xf]  ;;  %vm14298_vm4 = vcmask 64512  }
 0x3d0   : > { %3845 = vst.msk [vmem:[#allocation3 + $0x60] sm:$0xf] %vm14284_vm7, %v3813_v32  ;;  %v9225_v32 = vor.u32 %v9552_v38, %v9224_v22 }
 0x3d1   : > { %vm3621_vm1 = vcmp.ge.f32.partialorder %v3589_v24, 0.0  ;;  %v3653_v40 = vmul.f32 0.2, %v3589_v24 }
 0x3d3   : > { %v3685_v34 = vsel %vm3621_vm1, %v3589_v24, %v3653_v40  ;;  %v3878_v21 = vld [vmem:[#allocation2 + $0x70] sm:$0xff]  ;;  %vm14291_vm1 = vnez %v14078_v15 }
 0x3d4   : > { %v3750_v35 = vld [vmem:[#allocation2 + $0x6f] sm:$0xff]  ;;  %3717 = vst.msk [vmem:[#allocation2 + $0x78] sm:$0xff] %vm14289_vm13, %v3685_v34  ;;  %v3489_v12 = vpop.f32.mrf.mxu0  ;;  %v3910_v57 = vpack.c.bf16 %v3878_v21, %v3878_v21 }
 0x3d5   : > { %v3782_v10 = vpack.c.bf16 %v3750_v35, %v3750_v35  ;;  %v3554_v44 = vmul.f32 %v11151_v47, %v3489_v12 }
 0x3d6   : > { %3987 = vrot.lane.b32.xlu2 %v3910_v57, %s9658_s28 }
 0x3d7   : > { %v11297_v53 = vsel %vm9871_vm8, %v3782_v10, 0  ;;  %v3590_v58 = vadd.f32 %v11156_v52, %v3554_v44 }
 0x3d8   : > { %3846 = vst.msk [vmem:[#allocation3 + $0x68] sm:$0xf] %vm14290_vm3, %v11297_v53 }
 0x3d9   : > { %vm3622_vm7 = vcmp.ge.f32.partialorder %v3590_v58, 0.0  ;;  %v3654_v5 = vmul.f32 0.2, %v3590_v58 }
 0x3db   : > { %v3686_v19 = vsel %vm3622_vm7, %v3590_v58, %v3654_v5  ;;  %v3879_v7 = vld [vmem:[#allocation2 + $0x78] sm:$0xff] }
 0x3dc   : > { %v3751_v24 = vld [vmem:[#allocation2 + $0x77] sm:$0xff]  ;;  %3718 = vst.msk [vmem:[#allocation2 + $0x80] sm:$0xff] %vm14289_vm13, %v3686_v19  ;;  %v3492_v26 = vpop.f32.mrf.mxu0  ;;  %v3911_v40 = vpack.c.bf16 %v3879_v7, %v3879_v7 }
 0x3dd   : > { %v11303_v34 = vpack.c.bf16 %v3751_v24, %v3751_v24  ;;  %v3555_v21 = vmul.f32 %v11151_v47, %v3492_v26 }
 0x3de   : > { %3989 = vrot.lane.b32.xlu0 %v3911_v40, %s9658_s28 }
 0x3df   : > { %v3815_v35 = vsel %vm14291_vm1, %v11303_v34, 0  ;;  %v3591_v12 = vadd.f32 %v11156_v52, %v3555_v21  ;;  %9257 = vmatmul.msk.bf16.gmra.mxu0 %vm14292_vm2, %v9225_v32  ;;  %vm14293_vm2 = vmmov %vm14290_vm3 }
 0x3e0   : > { %3847 = vst.msk [vmem:[#allocation3 + $0x70] sm:$0xf] %vm14290_vm3, %v3815_v35 }
 0x3e1   : > { %vm3623_vm7 = vcmp.ge.f32.partialorder %v3591_v12, 0.0  ;;  %v3655_v57 = vmul.f32 0.2, %v3591_v12 }
 0x3e3   : > { %v3687_v10 = vsel %vm3623_vm7, %v3591_v12, %v3655_v57  ;;  %v3880_v44 = vld [vmem:[#allocation2 + $0x80] sm:$0xff]  ;;  %vm14294_vm7 = vcmask 126016  }
 0x3e4   : > { %v3752_v58 = vld [vmem:[#allocation2 + $0x7f] sm:$0xff]  ;;  %3719 = vst.msk [vmem:[#allocation2 + $0x88] sm:$0xff] %vm14289_vm13, %v3687_v10  ;;  %v3494_v22 = vpop.f32.mrf.mxu0  ;;  %v3912_v38 = vpack.c.bf16 %v3880_v44, %v3880_v44 }
 0x3e5   : > { %v3784_v5 = vpack.c.bf16 %v3752_v58, %v3752_v58  ;;  %v3556_v19 = vmul.f32 %v11151_v47, %v3494_v22 }
 0x3e6   : > { %3991 = vrot.lane.b32.xlu1 %v3912_v38, %s9658_s28 }
 0x3e7   : > { %v11318_v7 = vsel %vm9871_vm8, %v3784_v5, 0  ;;  %v3592_v32 = vadd.f32 %v11156_v52, %v3556_v19 }
 0x3e8   : > { %3848 = vst.msk [vmem:[#allocation3 + $0x78] sm:$0xf] %vm14293_vm2, %v11318_v7  ;;  %v3970_v24 = vpop.permute.xlu2 %3969 }
 0x3e9   : > { %vm3624_vm3 = vcmp.ge.f32.partialorder %v3592_v32, 0.0  ;;  %v3656_v26 = vmul.f32 0.2, %v3592_v32  ;;  %4061 = vst.msk [vmem:[#allocation3 + $0x20] sm:$0xf] %vm14294_vm7, %v3970_v24 }
 0x3eb   : > { %v3688_v40 = vsel %vm3624_vm3, %v3592_v32, %v3656_v26  ;;  %v3881_v21 = vld [vmem:[#allocation2 + $0x88] sm:$0xff] }
 0x3ec   : > { %v3753_v35 = vld [vmem:[#allocation2 + $0x87] sm:$0xff]  ;;  %3720 = vst.msk [vmem:[#allocation2 + $0x90] sm:$0xff] %vm14289_vm13, %v3688_v40  ;;  %v3497_v12 = vpop.f32.mrf.mxu0  ;;  %v3913_v57 = vpack.c.bf16 %v3881_v21, %v3881_v21 }
 0x3ed   : > { %v11325_v10 = vpack.c.bf16 %v3753_v35, %v3753_v35  ;;  %v3557_v44 = vmul.f32 %v11151_v47, %v3497_v12 }
 0x3ee   : > { %3993 = vrot.lane.b32.xlu2 %v3913_v57, %s9658_s28 }
 0x3ef   : > { %v3817_v58 = vsel %vm14222_vm15, %v11325_v10, 0  ;;  %v3593_v22 = vadd.f32 %v11156_v52, %v3557_v44 }
 0x3f0   : > { %3849 = vst.msk [vmem:[#allocation3 + $0x80] sm:$0xf] %vm14293_vm2, %v3817_v58  ;;  %v3966_v38 = vpop.permute.xlu0 %3965 }
 0x3f1   : > { %vm3625_vm3 = vcmp.ge.f32.partialorder %v3593_v22, 0.0  ;;  %v3657_v5 = vmul.f32 0.2, %v3593_v22  ;;  %4059 = vst.msk [vmem:[#allocation3 + $0x10] sm:$0xf] %vm14294_vm7, %v3966_v38 }
 0x3f3   : > { %v3689_v19 = vsel %vm3625_vm3, %v3593_v22, %v3657_v5  ;;  %v3882_v32 = vld [vmem:[#allocation2 + $0x90] sm:$0xff] }
 0x3f4   : > { %v3754_v24 = vld [vmem:[#allocation2 + $0x8f] sm:$0xff]  ;;  %3721 = vst.msk [vmem:[#allocation2 + $0x98] sm:$0xff] %vm14289_vm13, %v3689_v19  ;;  %v3499_v26 = vpop.f32.mrf.mxu0  ;;  %v3914_v40 = vpack.c.bf16 %v3882_v32, %v3882_v32 }
 0x3f5   : > { %v3786_v21 = vpack.c.bf16 %v3754_v24, %v3754_v24  ;;  %v3558_v35 = vmul.f32 %v11151_v47, %v3499_v26 }
 0x3f6   : > { %3995 = vrot.lane.b32.xlu0 %v3914_v40, %s9658_s28 }
 0x3f7   : > { %v11340_v12 = vsel %vm9871_vm8, %v3786_v21, 0  ;;  %v3594_v57 = vadd.f32 %v11156_v52, %v3558_v35 }
 0x3f8   : > { %3850 = vst.msk [vmem:[#allocation3 + $0x88] sm:$0xf] %vm14293_vm2, %v11340_v12  ;;  %v3968_v44 = vpop.permute.xlu1 %3967  ;;  %vm14295_vm2 = vnez %v14104_v6 }
 0x3f9   : > { %vm3626_vm3 = vcmp.ge.f32.partialorder %v3594_v57, 0.0  ;;  %v3658_v58 = vmul.f32 0.2, %v3594_v57  ;;  %4060 = vst.msk [vmem:[#allocation3 + $0x18] sm:$0xf] %vm14294_vm7, %v3968_v44  ;;  %vm14296_vm7 = vcmask 60416  }
 0x3fb   : > { %v3690_v22 = vsel %vm3626_vm3, %v3594_v57, %v3658_v58  ;;  %v3883_v38 = vld [vmem:[#allocation2 + $0x98] sm:$0xff] }
 0x3fc   : > { %v3755_v5 = vld [vmem:[#allocation2 + $0x97] sm:$0xff]  ;;  %3722 = vst.msk [vmem:[#allocation2 + $0xa0] sm:$0xff] %vm14289_vm13, %v3690_v22  ;;  %v3502_v19 = vpop.f32.mrf.mxu0  ;;  %v3915_v32 = vpack.c.bf16 %v3883_v38, %v3883_v38  ;;  %vm14297_vm13 = vcmask 126016  }
 0x3fd   : > { %v11347_v24 = vpack.c.bf16 %v3755_v5, %v3755_v5  ;;  %v3559_v26 = vmul.f32 %v11151_v47, %v3502_v19 }
 0x3fe   : > { %3997 = vrot.lane.b32.xlu1 %v3915_v32, %s9658_s28 }
 0x3ff   : > { %v3819_v40 = vsel %vm14295_vm2, %v11347_v24, 0  ;;  %v3595_v21 = vadd.f32 %v11156_v52, %v3559_v26  ;;  %vm14305_vm2 = vcmask 64512  }
 0x400   : > { %3851 = vst.msk [vmem:[#allocation3 + $0x90] sm:$0xf] %vm14296_vm7, %v3819_v40  ;;  %v3976_v35 = vpop.permute.xlu2 %3975 }
 0x401   : > { %vm3627_vm3 = vcmp.ge.f32.partialorder %v3595_v21, 0.0  ;;  %v3659_v57 = vmul.f32 0.2, %v3595_v21  ;;  %4064 = vst.msk [vmem:[#allocation3 + $0x38] sm:$0xf] %vm14297_vm13, %v3976_v35 }
 0x403   : > { %v3691_v44 = vsel %vm3627_vm3, %v3595_v21, %v3659_v57  ;;  %v3884_v58 = vld [vmem:[#allocation2 + $0xa0] sm:$0xff] }
 0x404   : > { %v3756_v22 = vld [vmem:[#allocation2 + $0x9f] sm:$0xff]  ;;  %3723 = vst.msk [vmem:[#allocation2 + $0xa8] sm:$0xff] %vm14298_vm4, %v3691_v44  ;;  %v3504_v38 = vpop.f32.mrf.mxu0  ;;  %v3916_v5 = vpack.c.bf16 %v3884_v58, %v3884_v58  ;;  %vm14299_vm4 = vmmov %vm14297_vm13  ;;  %vm14300_vm13 = vcmask 64512  }
 0x405   : > { %v3788_v19 = vpack.c.bf16 %v3756_v22, %v3756_v22  ;;  %v3560_v32 = vmul.f32 %v11151_v47, %v3504_v38 }
 0x406   : > { %3999 = vrot.lane.b32.xlu2 %v3916_v5, %s9658_s28 }
 0x407   : > { %v11362_v26 = vsel %vm9871_vm8, %v3788_v19, 0  ;;  %v3596_v40 = vadd.f32 %v11156_v52, %v3560_v32 }
 0x408   : > { %3852 = vst.msk [vmem:[#allocation3 + $0x98] sm:$0xf] %vm14296_vm7, %v11362_v26  ;;  %v3972_v21 = vpop.permute.xlu0 %3971  ;;  %vm14302_vm7 = vnez %v14113_v61 }
 0x409   : > { %vm3628_vm3 = vcmp.ge.f32.partialorder %v3596_v40, 0.0  ;;  %v3660_v35 = vmul.f32 0.2, %v3596_v40  ;;  %4062 = vst.msk [vmem:[#allocation3 + $0x28] sm:$0xf] %vm14299_vm4, %v3972_v21  ;;  %vm14303_vm4 = vcmask 60416  }
 0x40b   : > { %v3692_v57 = vsel %vm3628_vm3, %v3596_v40, %v3660_v35  ;;  %v3885_v44 = vld [vmem:[#allocation2 + $0xa8] sm:$0xff] }
 0x40c   : > { %v3757_v58 = vld [vmem:[#allocation2 + $0xa7] sm:$0xff]  ;;  %3724 = vst.msk [vmem:[#allocation2 + $0xb0] sm:$0xff] %vm14300_vm13, %v3692_v57  ;;  %v3507_v22 = vpop.f32.mrf.mxu0  ;;  %v3917_v38 = vpack.c.bf16 %v3885_v44, %v3885_v44  ;;  %vm14304_vm13 = vcmask 126016  }
 0x40d   : > { %v11369_v5 = vpack.c.bf16 %v3757_v58, %v3757_v58  ;;  %v3561_v19 = vmul.f32 %v11151_v47, %v3507_v22 }
 0x40e   : > { %4001 = vrot.lane.b32.xlu0 %v3917_v38, %s9658_s28 }
 0x40f   : > { %14301 = vst [vmem:[#allocation5_spill] sm:$0xff] %v11369_v5  ;;  %v3821_v32 = vsel %vm14302_vm7, %v11369_v5, 0  ;;  %v3597_v6 = vadd.f32 %v11156_v52, %v3561_v19  ;;  %vm14311_vm7 = vcmask 64512  }
 0x410   : > { %3853 = vst.msk [vmem:[#allocation3 + $0xa0] sm:$0xf] %vm14303_vm4, %v3821_v32  ;;  %v3974_v40 = vpop.permute.xlu1 %3973 }
 0x411   : > { %vm3629_vm3 = vcmp.ge.f32.partialorder %v3597_v6, 0.0  ;;  %v3661_v21 = vmul.f32 0.2, %v3597_v6  ;;  %4063 = vst.msk [vmem:[#allocation3 + $0x30] sm:$0xf] %vm14304_vm13, %v3974_v40 }
 0x413   : > { %v3693_v35 = vsel %vm3629_vm3, %v3597_v6, %v3661_v21  ;;  %v3886_v57 = vld [vmem:[#allocation2 + $0xb0] sm:$0xff] }
 0x414   : > { %v3758_v44 = vld [vmem:[#allocation2 + $0xaf] sm:$0xff]  ;;  %3725 = vst.msk [vmem:[#allocation2 + $0xb8] sm:$0xff] %vm14305_vm2, %v3693_v35  ;;  %v3509_v58 = vpop.f32.mrf.mxu0  ;;  %v3918_v22 = vpack.c.bf16 %v3886_v57, %v3886_v57  ;;  %vm14306_vm2 = vmmov %vm14304_vm13  ;;  %vm14307_vm13 = vcmask 64512  }
 0x415   : > { %v3790_v38 = vpack.c.bf16 %v3758_v44, %v3758_v44  ;;  %v3562_v61 = vmul.f32 %v11151_v47, %v3509_v58 }
 0x416   : > { %4003 = vrot.lane.b32.xlu1 %v3918_v22, %s9658_s28 }
 0x417   : > { %v11384_v19 = vsel %vm9871_vm8, %v3790_v38, 0  ;;  %v3598_v32 = vadd.f32 %v11156_v52, %v3562_v61 }
 0x418   : > { %3854 = vst.msk [vmem:[#allocation3 + $0xa8] sm:$0xf] %vm14303_vm4, %v11384_v19  ;;  %v3982_v6 = vpop.permute.xlu2 %3981  ;;  %vm14308_vm4 = vnez %v14147_v3 }
 0x419   : > { %vm3630_vm3 = vcmp.ge.f32.partialorder %v3598_v32, 0.0  ;;  %v3662_v40 = vmul.f32 0.2, %v3598_v32  ;;  %4067 = vst.msk [vmem:[#allocation3 + $0x50] sm:$0xf] %vm14306_vm2, %v3982_v6  ;;  %vm14309_vm2 = vcmask 60416  }
 0x41b   : > { %v3694_v21 = vsel %vm3630_vm3, %v3598_v32, %v3662_v40  ;;  %v3887_v35 = vld [vmem:[#allocation2 + $0xb8] sm:$0xff] }
 0x41c   : > { %v3759_v57 = vld [vmem:[#allocation2 + $0xb7] sm:$0xff]  ;;  %3726 = vst.msk [vmem:[#allocation2 + $0xc0] sm:$0xff] %vm14307_vm13, %v3694_v21  ;;  %v3512_v44 = vpop.f32.mrf.mxu0  ;;  %v3919_v58 = vpack.c.bf16 %v3887_v35, %v3887_v35  ;;  %vm14310_vm13 = vcmask 126016  }
 0x41d   : > { %v11391_v22 = vpack.c.bf16 %v3759_v57, %v3759_v57  ;;  %v3563_v38 = vmul.f32 %v11151_v47, %v3512_v44 }
 0x41e   : > { %4005 = vrot.lane.b32.xlu2 %v3919_v58, %s9658_s28 }
 0x41f   : > { %v3823_v61 = vsel %vm14308_vm4, %v11391_v22, 0  ;;  %v3599_v5 = vadd.f32 %v11156_v52, %v3563_v38  ;;  %vm14318_vm4 = vcmask 64512  }
 0x420   : > { %3855 = vst.msk [vmem:[#allocation3 + $0xb0] sm:$0xf] %vm14309_vm2, %v3823_v61  ;;  %v3978_v32 = vpop.permute.xlu0 %3977 }
 0x421   : > { %vm3631_vm3 = vcmp.ge.f32.partialorder %v3599_v5, 0.0  ;;  %v3663_v6 = vmul.f32 0.2, %v3599_v5  ;;  %4065 = vst.msk [vmem:[#allocation3 + $0x40] sm:$0xf] %vm14310_vm13, %v3978_v32 }
 0x423   : > { %v3695_v40 = vsel %vm3631_vm3, %v3599_v5, %v3663_v6  ;;  %v3888_v21 = vld [vmem:[#allocation2 + $0xc0] sm:$0xff] }
 0x424   : > { %v3760_v35 = vld [vmem:[#allocation2 + $0xbf] sm:$0xff]  ;;  %3727 = vst.msk [vmem:[#allocation2 + $0xc8] sm:$0xff] %vm14311_vm7, %v3695_v40  ;;  %v3514_v57 = vpop.f32.mrf.mxu0  ;;  %v3920_v44 = vpack.c.bf16 %v3888_v21, %v3888_v21  ;;  %vm14313_vm7 = vmmov %vm14310_vm13  ;;  %vm14314_vm13 = vcmask 64512  }
 0x425   : > { %v3792_v58 = vpack.c.bf16 %v3760_v35, %v3760_v35  ;;  %v3564_v3 = vmul.f32 %v11151_v47, %v3514_v57 }
 0x426   : > { %4007 = vrot.lane.b32.xlu0 %v3920_v44, %s9658_s28 }
 0x427   : > { %v11406_v38 = vsel %vm9871_vm8, %v3792_v58, 0  ;;  %v3600_v61 = vadd.f32 %v11156_v52, %v3564_v3 }
 0x428   : > { %14312 = vst [vmem:[#allocation7_spill] sm:$0xff] %v11406_v38  ;;  %v3980_v5 = vpop.permute.xlu1 %3979 }
 0x429   : > { %3856 = vst.msk [vmem:[#allocation3 + $0xb8] sm:$0xf] %vm14309_vm2, %v11406_v38  ;;  %vm3632_vm3 = vcmp.ge.f32.partialorder %v3600_v61, 0.0  ;;  %v3664_v32 = vmul.f32 0.2, %v3600_v61  ;;  %vm14315_vm2 = vnez %v14134_v37 }
 0x42a   : > { %4066 = vst.msk [vmem:[#allocation3 + $0x48] sm:$0xf] %vm14313_vm7, %v3980_v5  ;;  %vm14316_vm7 = vcmask 60416  }
 0x42b   : > { %v3696_v6 = vsel %vm3632_vm3, %v3600_v61, %v3664_v32  ;;  %v3889_v40 = vld [vmem:[#allocation2 + $0xc8] sm:$0xff] }
 0x42c   : > { %v3761_v21 = vld [vmem:[#allocation2 + $0xc7] sm:$0xff]  ;;  %3728 = vst.msk [vmem:[#allocation2 + $0xd0] sm:$0xff] %vm14314_vm13, %v3696_v6  ;;  %v3517_v35 = vpop.f32.mrf.mxu0  ;;  %v3921_v57 = vpack.c.bf16 %v3889_v40, %v3889_v40  ;;  %vm14317_vm13 = vcmask 126016  }
 0x42d   : > { %v11413_v44 = vpack.c.bf16 %v3761_v21, %v3761_v21  ;;  %v3565_v58 = vmul.f32 %v11151_v47, %v3517_v35 }
 0x42e   : > { %4009 = vrot.lane.b32.xlu1 %v3921_v57, %s9658_s28 }
 0x42f   : > { %v3825_v3 = vsel %vm14315_vm2, %v11413_v44, 0  ;;  %v3601_v38 = vadd.f32 %v11156_v52, %v3565_v58  ;;  %vm14326_vm2 = vcmask 64512  }
 0x430   : > { %3857 = vst.msk [vmem:[#allocation3 + $0xc0] sm:$0xf] %vm14316_vm7, %v3825_v3  ;;  %v3988_v61 = vpop.permute.xlu2 %3987 }
 0x431   : > { %vm3633_vm3 = vcmp.ge.f32.partialorder %v3601_v38, 0.0  ;;  %v3665_v5 = vmul.f32 0.2, %v3601_v38  ;;  %4070 = vst.msk [vmem:[#allocation3 + $0x68] sm:$0xf] %vm14317_vm13, %v3988_v61 }
 0x433   : > { %v3697_v32 = vsel %vm3633_vm3, %v3601_v38, %v3665_v5  ;;  %v3890_v6 = vld [vmem:[#allocation2 + $0xd0] sm:$0xff] }
 0x434   : > { %v3762_v40 = vld [vmem:[#allocation2 + $0xcf] sm:$0xff]  ;;  %3729 = vst.msk [vmem:[#allocation2 + $0xd8] sm:$0xff] %vm14318_vm4, %v3697_v32  ;;  %v3519_v21 = vpop.f32.mrf.mxu0  ;;  %v3922_v35 = vpack.c.bf16 %v3890_v6, %v3890_v6  ;;  %vm14320_vm4 = vmmov %vm14317_vm13  ;;  %vm14321_vm13 = vcmask 64512  }
 0x435   : > { %v3794_v57 = vpack.c.bf16 %v3762_v40, %v3762_v40  ;;  %v3566_v37 = vmul.f32 %v11151_v47, %v3519_v21 }
 0x436   : > { %4011 = vrot.lane.b32.xlu2 %v3922_v35, %s9658_s28 }
 0x437   : > { %v11428_v58 = vsel %vm9871_vm8, %v3794_v57, 0  ;;  %v3602_v3 = vadd.f32 %v11156_v52, %v3566_v37 }
 0x438   : > { %14319 = vst [vmem:[#allocation9_spill] sm:$0xff] %v11428_v58  ;;  %v3984_v38 = vpop.permute.xlu0 %3983 }
 0x439   : > { %3858 = vst.msk [vmem:[#allocation3 + $0xc8] sm:$0xf] %vm14316_vm7, %v11428_v58  ;;  %vm3634_vm3 = vcmp.ge.f32.partialorder %v3602_v3, 0.0  ;;  %v3666_v61 = vmul.f32 0.2, %v3602_v3  ;;  %vm14323_vm7 = vnez %v14144_v45 }
 0x43a   : > { %4068 = vst.msk [vmem:[#allocation3 + $0x58] sm:$0xf] %vm14320_vm4, %v3984_v38  ;;  %vm14324_vm4 = vcmask 60416  }
 0x43b   : > { %v3698_v5 = vsel %vm3634_vm3, %v3602_v3, %v3666_v61  ;;  %v3891_v32 = vld [vmem:[#allocation2 + $0xd8] sm:$0xff] }
 0x43c   : > { %v3763_v6 = vld [vmem:[#allocation2 + $0xd7] sm:$0xff]  ;;  %3730 = vst.msk [vmem:[#allocation2 + $0xe0] sm:$0xff] %vm14321_vm13, %v3698_v5  ;;  %v3522_v40 = vpop.f32.mrf.mxu0  ;;  %v3923_v21 = vpack.c.bf16 %v3891_v32, %v3891_v32  ;;  %vm14325_vm13 = vcmask 126016  }
 0x43d   : > { %v11435_v35 = vpack.c.bf16 %v3763_v6, %v3763_v6  ;;  %v3567_v57 = vmul.f32 %v11151_v47, %v3522_v40 }
 0x43e   : > { %4013 = vrot.lane.b32.xlu0 %v3923_v21, %s9658_s28 }
 0x43f   : > { %14322 = vst [vmem:[#allocation11_spill] sm:$0xff] %v11435_v35  ;;  %v3827_v37 = vsel %vm14323_vm7, %v11435_v35, 0  ;;  %v3603_v58 = vadd.f32 %v11156_v52, %v3567_v57  ;;  %vm14334_vm7 = vcmask 64512  }
 0x440   : > { %3859 = vst.msk [vmem:[#allocation3 + $0xd0] sm:$0xf] %vm14324_vm4, %v3827_v37  ;;  %v3986_v3 = vpop.permute.xlu1 %3985 }
 0x441   : > { %vm3635_vm3 = vcmp.ge.f32.partialorder %v3603_v58, 0.0  ;;  %v3667_v38 = vmul.f32 0.2, %v3603_v58  ;;  %4069 = vst.msk [vmem:[#allocation3 + $0x60] sm:$0xf] %vm14325_vm13, %v3986_v3 }
 0x443   : > { %v3699_v61 = vsel %vm3635_vm3, %v3603_v58, %v3667_v38  ;;  %v3892_v5 = vld [vmem:[#allocation2 + $0xe0] sm:$0xff] }
 0x444   : > { %v3764_v32 = vld [vmem:[#allocation2 + $0xdf] sm:$0xff]  ;;  %3731 = vst.msk [vmem:[#allocation2 + $0xe8] sm:$0xff] %vm14326_vm2, %v3699_v61  ;;  %v3524_v6 = vpop.f32.mrf.mxu0  ;;  %v3924_v40 = vpack.c.bf16 %v3892_v5, %v3892_v5  ;;  %vm14328_vm2 = vmmov %vm14325_vm13  ;;  %vm14329_vm13 = vcmask 64512  }
 0x445   : > { %v3796_v21 = vpack.c.bf16 %v3764_v32, %v3764_v32  ;;  %v3568_v45 = vmul.f32 %v11151_v47, %v3524_v6 }
 0x446   : > { %4015 = vrot.lane.b32.xlu1 %v3924_v40, %s9658_s28 }
 0x447   : > { %v11450_v57 = vsel %vm9871_vm8, %v3796_v21, 0  ;;  %v3604_v37 = vadd.f32 %v11156_v52, %v3568_v45 }
 0x448   : > { %14327 = vst [vmem:[#allocation12_spill] sm:$0xff] %v11450_v57  ;;  %v3994_v58 = vpop.permute.xlu2 %3993 }
 0x449   : > { %3860 = vst.msk [vmem:[#allocation3 + $0xd8] sm:$0xf] %vm14324_vm4, %v11450_v57  ;;  %vm3636_vm3 = vcmp.ge.f32.partialorder %v3604_v37, 0.0  ;;  %v3668_v3 = vmul.f32 0.2, %v3604_v37  ;;  %vm14331_vm4 = vnez %v14174_v29 }
 0x44a   : > { %4073 = vst.msk [vmem:[#allocation3 + $0x80] sm:$0xf] %vm14328_vm2, %v3994_v58  ;;  %vm14332_vm2 = vcmask 60416  }
 0x44b   : > { %v3700_v38 = vsel %vm3636_vm3, %v3604_v37, %v3668_v3  ;;  %v3893_v61 = vld [vmem:[#allocation2 + $0xe8] sm:$0xff] }
 0x44c   : > { %v3765_v5 = vld [vmem:[#allocation2 + $0xe7] sm:$0xff]  ;;  %3732 = vst.msk [vmem:[#allocation2 + $0xf0] sm:$0xff] %vm14329_vm13, %v3700_v38  ;;  %v3527_v32 = vpop.f32.mrf.mxu0  ;;  %v3925_v6 = vpack.c.bf16 %v3893_v61, %v3893_v61  ;;  %vm14333_vm13 = vcmask 126016  }
 0x44d   : > { %v11457_v40 = vpack.c.bf16 %v3765_v5, %v3765_v5  ;;  %v3569_v21 = vmul.f32 %v11151_v47, %v3527_v32 }
 0x44e   : > { %4017 = vrot.lane.b32.xlu2 %v3925_v6, %s9658_s28  ;;  %v4089_v6 = vld [vmem:[#allocation2 + $0x9] sm:$0xff] }
 0x44f   : > { %14330 = vst [vmem:[#allocation14_spill] sm:$0xff] %v11457_v40  ;;  %v3829_v45 = vsel %vm14331_vm4, %v11457_v40, 0  ;;  %v3605_v35 = vadd.f32 %v11156_v52, %v3569_v21  ;;  %vm14341_vm4 = vcmask 64512  }
 0x450   : > { %3861 = vst.msk [vmem:[#allocation3 + $0xe0] sm:$0xf] %vm14332_vm2, %v3829_v45  ;;  %v3990_v37 = vpop.permute.xlu0 %3989 }
 0x451   : > { %vm3637_vm3 = vcmp.ge.f32.partialorder %v3605_v35, 0.0  ;;  %v3669_v58 = vmul.f32 0.2, %v3605_v35  ;;  %4071 = vst.msk [vmem:[#allocation3 + $0x70] sm:$0xf] %vm14333_vm13, %v3990_v37  ;;  %v4121_v37 = vpack.c.bf16 %v4089_v6, %v4089_v6 }
 0x453   : > { %v3701_v3 = vsel %vm3637_vm3, %v3605_v35, %v3669_v58  ;;  %v3894_v38 = vld [vmem:[#allocation2 + $0xf0] sm:$0xff]  ;;  %vm14336_vm3 = vmmov %vm14333_vm13  ;;  %vm14337_vm13 = vcmask 64512  }
 0x454   : > { %v3766_v61 = vld [vmem:[#allocation2 + $0xef] sm:$0xff]  ;;  %3733 = vst.msk [vmem:[#allocation2 + $0xf8] sm:$0xff] %vm14334_vm7, %v3701_v3  ;;  %v3529_v5 = vpop.f32.mrf.mxu0  ;;  %v3926_v32 = vpack.c.bf16 %v3894_v38, %v3894_v38  ;;  %v4153_v38 = vsel %vm9871_vm8, %v4121_v37, 0 }
 0x455   : > { %v3798_v57 = vpack.c.bf16 %v3766_v61, %v3766_v61  ;;  %v3570_v40 = vmul.f32 %v11151_v47, %v3529_v5 }
 0x456   : > { %4019 = vrot.lane.b32.xlu0 %v3926_v32, %s9658_s28 }
 0x457   : > { %v11472_v21 = vsel %vm9871_vm8, %v3798_v57, 0  ;;  %v3606_v45 = vadd.f32 %v11156_v52, %v3570_v40 }
 0x458   : > { %14335 = vst [vmem:[#allocation16_spill] sm:$0xff] %v11472_v21  ;;  %v3992_v35 = vpop.permute.xlu1 %3991 }
 0x459   : > { %3862 = vst.msk [vmem:[#allocation3 + $0xe8] sm:$0xf] %vm14332_vm2, %v11472_v21  ;;  %vm3638_vm7 = vcmp.ge.f32.partialorder %v3606_v45, 0.0  ;;  %v3670_v58 = vmul.f32 0.2, %v3606_v45  ;;  %v4092_v21 = vld [vmem:[#allocation2 + $0x21] sm:$0xff]  ;;  %vm14338_vm2 = vnez %v14162_v9 }
 0x45a   : > { %4072 = vst.msk [vmem:[#allocation3 + $0x78] sm:$0xf] %vm14336_vm3, %v3992_v35  ;;  %v4090_v35 = vld [vmem:[#allocation2 + $0x11] sm:$0xff] }
 0x45b   : > { %v3702_v3 = vsel %vm3638_vm7, %v3606_v45, %v3670_v58  ;;  %v3895_v61 = vld [vmem:[#allocation2 + $0xf8] sm:$0xff]  ;;  %vm14339_vm7 = vcmask 60416  }
 0x45c   : > { %v3767_v5 = vld [vmem:[#allocation2 + $0xf7] sm:$0xff]  ;;  %3734 = vst.msk [vmem:[#allocation2 + $0x100] sm:$0xff] %vm14337_vm13, %v3702_v3  ;;  %v3532_v57 = vpop.f32.mrf.mxu0  ;;  %v3927_v32 = vpack.c.bf16 %v3895_v61, %v3895_v61  ;;  %vm14340_vm13 = vcmask 126016   ;;  %v4122_v61 = vpack.c.bf16 %v4090_v35, %v4090_v35 }
 0x45d   : > { %v11481_v40 = vpack.c.bf16 %v3767_v5, %v3767_v5  ;;  %v3571_v6 = vmul.f32 %v11151_v47, %v3532_v57  ;;  %v4124_v47 = vpack.c.bf16 %v4092_v21, %v4092_v21  ;;  %v4093_v21 = vld [vmem:[#allocation2 + $0x29] sm:$0xff] }
 0x45e   : > { %4217 = vrot.lane.b32.xlu0 %v4153_v38, %s9660_s29  ;;  %4021 = vrot.lane.b32.xlu1 %v3927_v32, %s9658_s28 }
 0x45f   : > { %v3831_v45 = vsel %vm14338_vm2, %v11481_v40, 0  ;;  %v3607_v37 = vadd.f32 %v11156_v52, %v3571_v6  ;;  %v4156_v9 = vsel %vm14229_vm9, %v4124_v47, 0  ;;  %vm14342_vm2 = vnez %v14033_v43  ;;  %v4095_v6 = vld [vmem:[#allocation2 + $0x39] sm:$0xff] }
 0x460   : > { %3863 = vst.msk [vmem:[#allocation3 + $0xf0] sm:$0xf] %vm14339_vm7, %v3831_v45  ;;  %v4000_v58 = vpop.permute.xlu2 %3999  ;;  %v4154_v52 = vsel %vm14342_vm2, %v4122_v61, 0  ;;  %v4091_v45 = vld [vmem:[#allocation2 + $0x19] sm:$0xff] }
 0x461   : > { %vm3639_vm3 = vcmp.ge.f32.partialorder %v3607_v37, 0.0  ;;  %v3671_v3 = vmul.f32 0.2, %v3607_v37  ;;  %4076 = vst.msk [vmem:[#allocation3 + $0x98] sm:$0xf] %vm14340_vm13, %v4000_v58  ;;  %v4127_v58 = vpack.c.bf16 %v4095_v6, %v4095_v6 }
 0x463   : > { %v3703_v38 = vsel %vm3639_vm3, %v3607_v37, %v3671_v3  ;;  %v3896_v5 = vld [vmem:[#allocation2 + $0x100] sm:$0xff]  ;;  %v4125_v3 = vpack.c.bf16 %v4093_v21, %v4093_v21  ;;  %v4159_v47 = vsel %vm9871_vm8, %v4127_v58, 0 }
 0x464   : > { %v3768_v57 = vld [vmem:[#allocation2 + $0xff] sm:$0xff]  ;;  %3735 = vst.msk [vmem:[#allocation2 + $0x108] sm:$0xff] %vm14341_vm4, %v3703_v38  ;;  %v3928_v32 = vpack.c.bf16 %v3896_v5, %v3896_v5  ;;  %vm14343_vm4 = vmmov %vm14339_vm7  ;;  %v4098_v38 = vld [vmem:[#allocation2 + $0x51] sm:$0xff] }
 0x465   : > { %v3800_v29 = vpack.c.bf16 %v3768_v57, %v3768_v57  ;;  %vm14344_vm7 = vmmov %vm14340_vm13  ;;  %v4157_v61 = vsel %vm9871_vm8, %v4125_v3, 0  ;;  %v4096_v5 = vld [vmem:[#allocation2 + $0x41] sm:$0xff]  ;;  %v4094_v57 = vld [vmem:[#allocation2 + $0x31] sm:$0xff]  ;;  %vm14346_vm13 = vnez %v14200_v28 }
 0x466   : > { %4223 = vrot.lane.b32.xlu0 %v4156_v9, %s9660_s29  ;;  %4219 = vrot.lane.b32.xlu1 %v4154_v52, %s9660_s29  ;;  %v4123_v9 = vpack.c.bf16 %v4091_v45, %v4091_v45  ;;  %vm14345_vm3 = vmmov %vm14344_vm7  ;;  %v4130_v52 = vpack.c.bf16 %v4098_v38, %v4098_v38  ;;  %v4128_v6 = vpack.c.bf16 %v4096_v5, %v4096_v5  ;;  %v4101_v3 = vld [vmem:[#allocation2 + $0x69] sm:$0xff] }
 0x467   : > { %v11501_v35 = vsel %vm9871_vm8, %v3800_v29, 0  ;;  %4023 = vrot.lane.b32.xlu2 %v3928_v32, %s9658_s28  ;;  %v4126_v21 = vpack.c.bf16 %v4094_v57, %v4094_v57 }
 0x468   : > { %3864 = vst.msk [vmem:[#allocation3 + $0xf8] sm:$0xf] %vm14343_vm4, %v11501_v35  ;;  %v3996_v37 = vpop.permute.xlu0 %3995  ;;  %v4155_v29 = vsel %vm9871_vm8, %v4123_v9, 0  ;;  %v4162_v45 = vsel %vm14346_vm13, %v4130_v52, 0  ;;  %vm14347_vm4 = vnez %v14198_v42  ;;  %v4099_v9 = vld [vmem:[#allocation2 + $0x59] sm:$0xff]  ;;  %vm14350_vm13 = vnez %v14205_v18 }
 0x469   : > { %4074 = vst.msk [vmem:[#allocation3 + $0x88] sm:$0xf] %vm14344_vm7, %v3996_v37  ;;  %v4160_v37 = vsel %vm14347_vm4, %v4128_v6, 0  ;;  %vm14348_vm7 = vnez %v14196_v54  ;;  %v4131_v38 = vpack.c.bf16 %v4099_v9, %v4099_v9  ;;  %v4104_v6 = vld [vmem:[#allocation2 + $0x81] sm:$0xff]  ;;  %v3534_v9 = vpop.f32.mrf.mxu0 }
 0x46a   : > { %v4158_v58 = vsel %vm14348_vm7, %v4126_v21, 0  ;;  %v4102_v21 = vld [vmem:[#allocation2 + $0x71] sm:$0xff]  ;;  %vm14349_vm7 = vnez %v14207_v17 }
 0x46e   : > { %4229 = vrot.lane.b32.xlu0 %v4159_v47, %s9660_s29  ;;  %4225 = vrot.lane.b32.xlu1 %v4157_v61, %s9660_s29  ;;  %v4097_v47 = vld [vmem:[#allocation2 + $0x49] sm:$0xff] }
 0x46f   : > { %4221 = vrot.lane.b32.xlu2 %v4155_v29, %s9660_s29  ;;  %v4133_v29 = vpack.c.bf16 %v4101_v3, %v4101_v3  ;;  %v4129_v5 = vpack.c.bf16 %v4097_v47, %v4097_v47  ;;  %v4134_v3 = vpack.c.bf16 %v4102_v21, %v4102_v21  ;;  %v4105_v21 = vld [vmem:[#allocation2 + $0x89] sm:$0xff] }
 0x470   : > { %v3998_v32 = vpop.permute.xlu1 %3997 }
 0x471   : > { %4075 = vst.msk [vmem:[#allocation3 + $0x90] sm:$0xf] %vm14345_vm3, %v3998_v32  ;;  %v4165_v57 = vsel %vm9871_vm8, %v4133_v29, 0  ;;  %v4163_v32 = vsel %vm9871_vm8, %v4131_v38, 0  ;;  %v4161_v52 = vsel %vm9871_vm8, %v4129_v5, 0 }
 0x472   : > { %v9646_v38 = vld [vmem:[%s13831_s3] ss:$0 sm:$0xff] }
 0x476   : > { %4235 = vrot.lane.b32.xlu0 %v4162_v45, %s9660_s29  ;;  %4231 = vrot.lane.b32.xlu1 %v4160_v37, %s9660_s29  ;;  %v4100_v45 = vld [vmem:[#allocation2 + $0x61] sm:$0xff] }
 0x477   : > { %4227 = vrot.lane.b32.xlu2 %v4158_v58, %s9660_s29  ;;  %v4136_v58 = vpack.c.bf16 %v4104_v6, %v4104_v6  ;;  %v4132_v47 = vpack.c.bf16 %v4100_v45, %v4100_v45  ;;  %v4107_v6 = vld [vmem:[#allocation2 + $0x99] sm:$0xff] }
 0x478   : > { %v4006_v61 = vpop.permute.xlu2 %4005 }
 0x479   : > { %4079 = vst.msk [vmem:[#allocation3 + $0xb0] sm:$0xf] %vm14345_vm3, %v4006_v61  ;;  %v9645_v61 = vld [vmem:[%s13830_s2] ss:$0 sm:$0xff] }
 0x47a   : > { %v3572_v29 = vmul.f32 %v9645_v61, %v3534_v9 }
 0x47c   : > { %v3608_v5 = vadd.f32 %v9646_v38, %v3572_v29 }
 0x47e   : > { %4241 = vrot.lane.b32.xlu0 %v4165_v57, %s9660_s29  ;;  %4237 = vrot.lane.b32.xlu1 %v4163_v32, %s9660_s29  ;;  %v4168_v57 = vsel %vm14349_vm7, %v4136_v58, 0  ;;  %v4166_v32 = vsel %vm14350_vm13, %v4134_v3, 0  ;;  %vm3640_vm4 = vcmp.ge.f32.partialorder %v3608_v5, 0.0  ;;  %v3672_v45 = vmul.f32 0.2, %v3608_v5 }
 0x47f   : > { %4233 = vrot.lane.b32.xlu2 %v4161_v52, %s9660_s29  ;;  %vm14352_vm7 = vcmask 126016   ;;  %v4139_v58 = vpack.c.bf16 %v4107_v6, %v4107_v6  ;;  %v4137_v3 = vpack.c.bf16 %v4105_v21, %v4105_v21  ;;  %vm14353_vm13 = vcmask 64512  }
 0x480   : > { %v4002_v37 = vpop.permute.xlu0 %4001  ;;  %v3704_v61 = vsel %vm3640_vm4, %v3608_v5, %v3672_v45  ;;  %vm14355_vm4 = vnez %v14211_v63 }
 0x481   : > { %4077 = vst.msk [vmem:[#allocation3 + $0xa0] sm:$0xf] %vm14345_vm3, %v4002_v37  ;;  %vm14351_vm3 = vnez %v14203_v14  ;;  %v4103_v37 = vld [vmem:[#allocation2 + $0x79] sm:$0xff]  ;;  %v4171_v38 = vsel %vm9871_vm8, %v4139_v58, 0 }
 0x482   : > { %v4164_v52 = vsel %vm14351_vm3, %v4132_v47, 0  ;;  %v4135_v29 = vpack.c.bf16 %v4103_v37, %v4103_v37  ;;  %3736 = vst.msk [vmem:[#allocation2 + $0x110] sm:$0xff] %vm14353_vm13, %v3704_v61  ;;  %v4169_v47 = vsel %vm9871_vm8, %v4137_v3, 0  ;;  %vm14354_vm13 = vmmov %vm14352_vm7  ;;  %v4113_v3 = vld [vmem:[#allocation2 + $0xc9] sm:$0xff] }
 0x484   : > { %v4167_v5 = vsel %vm9871_vm8, %v4135_v29, 0  ;;  %v4111_v29 = vld [vmem:[#allocation2 + $0xb9] sm:$0xff] }
 0x486   : > { %4247 = vrot.lane.b32.xlu0 %v4168_v57, %s9660_s29  ;;  %4243 = vrot.lane.b32.xlu1 %v4166_v32, %s9660_s29  ;;  %v4110_v57 = vld [vmem:[#allocation2 + $0xb1] sm:$0xff]  ;;  %v4108_v32 = vld [vmem:[#allocation2 + $0xa1] sm:$0xff] }
 0x487   : > { %4239 = vrot.lane.b32.xlu2 %v4164_v52, %s9660_s29  ;;  %v4106_v52 = vld [vmem:[#allocation2 + $0x91] sm:$0xff]  ;;  %v4142_v21 = vpack.c.bf16 %v4110_v57, %v4110_v57  ;;  %v4140_v45 = vpack.c.bf16 %v4108_v32, %v4108_v32  ;;  %v4143_v57 = vpack.c.bf16 %v4111_v29, %v4111_v29 }
 0x488   : > { %v4004_v9 = vpop.permute.xlu1 %4003  ;;  %v4138_v37 = vpack.c.bf16 %v4106_v52, %v4106_v52 }
 0x489   : > { %4078 = vst.msk [vmem:[#allocation3 + $0xa8] sm:$0xf] %vm14352_vm7, %v4004_v9  ;;  %v4174_v9 = vsel %vm14246_vm6, %v4142_v21, 0  ;;  %v4172_v61 = vsel %vm14355_vm4, %v4140_v45, 0  ;;  %vm14356_vm7 = vnez %v14209_v50  ;;  %v4116_v45 = vld [vmem:[#allocation2 + $0xe1] sm:$0xff] }
 0x48a   : > { %v4170_v58 = vsel %vm14356_vm7, %v4138_v37, 0  ;;  %v4114_v37 = vld [vmem:[#allocation2 + $0xd1] sm:$0xff]  ;;  %vm14357_vm7 = vnez %v14215_v55 }
 0x48e   : > { %4253 = vrot.lane.b32.xlu0 %v4171_v38, %s9660_s29  ;;  %4249 = vrot.lane.b32.xlu1 %v4169_v47, %s9660_s29  ;;  %v4109_v38 = vld [vmem:[#allocation2 + $0xa9] sm:$0xff] }
 0x48f   : > { %4245 = vrot.lane.b32.xlu2 %v4167_v5, %s9660_s29  ;;  %v4145_v5 = vpack.c.bf16 %v4113_v3, %v4113_v3  ;;  %v4141_v32 = vpack.c.bf16 %v4109_v38, %v4109_v38  ;;  %v4146_v3 = vpack.c.bf16 %v4114_v37, %v4114_v37 }
 0x490   : > { %v4012_v6 = vpop.permute.xlu2 %4011 }
 0x491   : > { %4082 = vst.msk [vmem:[#allocation3 + $0xc8] sm:$0xf] %vm14354_vm13, %v4012_v6  ;;  %v4177_v52 = vsel %vm9871_vm8, %v4145_v5, 0  ;;  %v4175_v6 = vsel %vm9871_vm8, %v4143_v57, 0  ;;  %v4173_v21 = vsel %vm9871_vm8, %v4141_v32, 0  ;;  %v4117_v57 = vld [vmem:[#allocation2 + $0xe9] sm:$0xff] }
 0x492   : > { %v4119_v32 = vld [vmem:[#allocation2 + $0xf9] sm:$0xff] }
 0x496   : > { %4259 = vrot.lane.b32.xlu0 %v4174_v9, %s9660_s29  ;;  %4255 = vrot.lane.b32.xlu1 %v4172_v61, %s9660_s29  ;;  %v4112_v9 = vld [vmem:[#allocation2 + $0xc1] sm:$0xff] }
 0x497   : > { %4251 = vrot.lane.b32.xlu2 %v4170_v58, %s9660_s29  ;;  %v4148_v58 = vpack.c.bf16 %v4116_v45, %v4116_v45  ;;  %v4144_v29 = vpack.c.bf16 %v4112_v9, %v4112_v9  ;;  %v4151_v45 = vpack.c.bf16 %v4119_v32, %v4119_v32 }
 0x498   : > { %v4008_v47 = vpop.permute.xlu0 %4007 }
 0x499   : > { %4080 = vst.msk [vmem:[#allocation3 + $0xb8] sm:$0xf] %vm14354_vm13, %v4008_v47  ;;  %v4180_v38 = vsel %vm10309_vm0, %v4148_v58, 0  ;;  %v4178_v47 = vsel %vm14248_vm14, %v4146_v3, 0  ;;  %v4176_v5 = vsel %vm14357_vm7, %v4144_v29, 0  ;;  %v4120_v3 = vld [vmem:[#allocation2 + $0x101] sm:$0xff]  ;;  %vm14358_vm7 = vnez %v14165_v46  ;;  %vm14359_vm0 = vmmov %vm14354_vm13 }
 0x49a   : > { %v4118_v29 = vld [vmem:[#allocation2 + $0xf1] sm:$0xff] }
 0x49e   : > { %4265 = vrot.lane.b32.xlu0 %v4177_v52, %s9660_s29  ;;  %4261 = vrot.lane.b32.xlu1 %v4175_v6, %s9660_s29  ;;  %v4115_v52 = vld [vmem:[#allocation2 + $0xd9] sm:$0xff] }
 0x49f   : > { %4257 = vrot.lane.b32.xlu2 %v4173_v21, %s9660_s29  ;;  %v4149_v21 = vpack.c.bf16 %v4117_v57, %v4117_v57  ;;  %v4147_v37 = vpack.c.bf16 %v4115_v52, %v4115_v52 }
 0x4a0   : > { %v4010_v61 = vpop.permute.xlu1 %4009 }
 0x4a1   : > { %4081 = vst.msk [vmem:[#allocation3 + $0xc0] sm:$0xf] %vm14354_vm13, %v4010_v61  ;;  %v4181_v9 = vsel %vm9871_vm8, %v4149_v21, 0  ;;  %v4183_v61 = vsel %vm9871_vm8, %v4151_v45, 0  ;;  %v4179_v58 = vsel %vm9871_vm8, %v4147_v37, 0  ;;  %v4411_v21 = vsel %vm14261_vm12, %v11190_v51, 0 }
 0x4a2   : > { %vm14364_vm12 = vnez %v14046_v25 }
 0x4a6   : > { %4271 = vrot.lane.b32.xlu0 %v4180_v38, %s9660_s29  ;;  %4267 = vrot.lane.b32.xlu1 %v4178_v47, %s9660_s29  ;;  %v4152_v47 = vpack.c.bf16 %v4120_v3, %v4120_v3 }
 0x4a7   : > { %4263 = vrot.lane.b32.xlu2 %v4176_v5, %s9660_s29  ;;  %v4150_v5 = vpack.c.bf16 %v4118_v29, %v4118_v29  ;;  %v14376_v29 = vld [vmem:[#allocation25_spill] sm:$0xff] }
 0x4a8   : > { %v4018_v6 = vpop.permute.xlu2 %4017  ;;  %v4184_v57 = vsel %vm14220_vm5, %v4152_v47, 0  ;;  %v14381_v47 = vld [vmem:[#allocation17_spill] sm:$0xff] }
 0x4a9   : > { %4085 = vst.msk [vmem:[#allocation3 + $0xe0] sm:$0xf] %vm14354_vm13, %v4018_v6  ;;  %v4182_v32 = vsel %vm14358_vm7, %v4150_v5, 0  ;;  %v4413_v6 = vsel %vm9880_vm10, %v11213_v49, 0  ;;  %vm14361_vm10 = vmmov %vm14359_vm0  ;;  %v4419_v49 = vsel %vm10080_vm11, %v11281_v41, 0 }
 0x4ae   : > { %4273 = vrot.lane.b32.xlu1 %v4181_v9, %s9660_s29  ;;  %4277 = vrot.lane.b32.xlu0 %v4183_v61, %s9660_s29  ;;  %v4425_v61 = vsel %vm14222_vm15, %v11347_v24, 0  ;;  %vm14382_vm15 = vnez %v14381_v47 }
 0x4af   : > { %4269 = vrot.lane.b32.xlu2 %v4179_v58, %s9660_s29 }
 0x4b0   : > { %v4014_v38 = vpop.permute.xlu0 %4013 }
 0x4b1   : > { %4083 = vst.msk [vmem:[#allocation3 + $0xd0] sm:$0xf] %vm14354_vm13, %v4014_v38  ;;  %vm14360_vm13 = vnez %v14031_v39 }
 0x4b6   : > { %4475 = vrot.lane.b32.xlu0 %v11184_v13, %s9661_s30  ;;  %4279 = vrot.lane.b32.xlu1 %v4184_v57, %s9660_s29  ;;  %v4409_v13 = vsel %vm14360_vm13, %v11167_v30, 0  ;;  %vm14362_vm13 = vcmask 191616  }
 0x4b7   : > { %4275 = vrot.lane.b32.xlu2 %v4182_v32, %s9660_s29 }
 0x4b8   : > { %v4016_v52 = vpop.permute.xlu1 %4015 }
 0x4b9   : > { %4084 = vst.msk [vmem:[#allocation3 + $0xd8] sm:$0xf] %vm14359_vm0, %v4016_v52 }
 0x4be   : > { %4481 = vrot.lane.b32.xlu0 %v4413_v6, %s9661_s30  ;;  %4477 = vrot.lane.b32.xlu1 %v4411_v21, %s9661_s30  ;;  %v14387_v6 = vld [vmem:[#allocation7_spill] sm:$0xff] }
 0x4bf   : > { %4473 = vrot.lane.b32.xlu2 %v4409_v13, %s9661_s30 }
 0x4c1   : > { %v4024_v45 = vpop.permute.xlu2 %4023 }
 0x4c2   : > { %4088 = vst.msk [vmem:[#allocation3 + $0xf8] sm:$0xf] %vm14359_vm0, %v4024_v45  ;;  %vm14363_vm0 = vnez %v14054_v60 }
 0x4c6   : > { %4487 = vrot.lane.b32.xlu0 %v11253_v4, %s9661_s30  ;;  %4483 = vrot.lane.b32.xlu1 %v11230_v36, %s9661_s30  ;;  %v4417_v4 = vsel %vm14363_vm0, %v11259_v8, 0 }
 0x4c7   : > { %4479 = vrot.lane.b32.xlu2 %v11207_v59, %s9661_s30  ;;  %v4415_v59 = vsel %vm14364_vm12, %v11236_v0, 0 }
 0x4c8   : > { %v4020_v51 = vpop.permute.xlu0 %4019 }
 0x4c9   : > { %4086 = vst.msk [vmem:[#allocation3 + $0xe8] sm:$0xf] %vm14361_vm10, %v4020_v51  ;;  %v4222_v30 = vpop.permute.xlu2 %4221  ;;  %vm14365_vm10 = vmmov %vm14362_vm13  ;;  %v14391_v51 = vld [vmem:[#allocation27_spill] sm:$0xff] }
 0x4ca   : > { %4315 = vst.msk [vmem:[#allocation3 + $0x10] sm:$0xf] %vm14362_vm13, %v4222_v30  ;;  %vm14366_vm13 = vcmask 126016   ;;  %vm14367_vm11 = vmmov %vm14365_vm10 }
 0x4cb   : > { %vm14368_vm12 = vmmov %vm14365_vm10 }
 0x4cc   : > { %vm14369_vm0 = vmmov %vm14365_vm10 }
 0x4ce   : > { %4493 = vrot.lane.b32.xlu0 %v4419_v49, %s9661_s30  ;;  %4489 = vrot.lane.b32.xlu1 %v4417_v4, %s9661_s30  ;;  %v14393_v49 = vld [vmem:[#allocation14_spill] sm:$0xff]  ;;  %v14394_v4 = vld [vmem:[#allocation24_spill] sm:$0xff] }
 0x4cf   : > { %4485 = vrot.lane.b32.xlu2 %v4415_v59, %s9661_s30 }
 0x4d0   : > { %v4218_v36 = vpop.permute.xlu0 %4217  ;;  %v4022_v37 = vpop.permute.xlu1 %4021 }
 0x4d1   : > { %4313 = vst.msk [vmem:[#allocation3] sm:$0xf] %vm14365_vm10, %v4218_v36  ;;  %v4228_v9 = vpop.permute.xlu2 %4227  ;;  %v14396_v36 = vld [vmem:[#allocation11_spill] sm:$0xff] }
 0x4d2   : > { %4087 = vst.msk [vmem:[#allocation3 + $0xf0] sm:$0xf] %vm14366_vm13, %v4022_v37  ;;  %vm14372_vm13 = vmmov %vm14369_vm0  ;;  %v14397_v37 = vld [vmem:[#allocation22_spill] sm:$0xff] }
 0x4d3   : > { %4318 = vst.msk [vmem:[#allocation3 + $0x28] sm:$0xf] %vm14367_vm11, %v4228_v9  ;;  %vm14370_vm11 = vnez %v14064_v27 }
 0x4d6   : > { %4499 = vrot.lane.b32.xlu0 %v11318_v7, %s9661_s30  ;;  %4495 = vrot.lane.b32.xlu1 %v11297_v53, %s9661_s30  ;;  %v4423_v53 = vsel %vm14291_vm1, %v11325_v10, 0 }
 0x4d7   : > { %4491 = vrot.lane.b32.xlu2 %v11275_v2, %s9661_s30  ;;  %v4421_v2 = vsel %vm14370_vm11, %v11303_v34, 0  ;;  %vm14375_vm11 = vmmov %vm14369_vm0 }
 0x4d8   : > { %v4224_v0 = vpop.permute.xlu0 %4223  ;;  %v4220_v8 = vpop.permute.xlu1 %4219 }
 0x4d9   : > { %4316 = vst.msk [vmem:[#allocation3 + $0x18] sm:$0xf] %vm14368_vm12, %v4224_v0  ;;  %v4234_v41 = vpop.permute.xlu2 %4233  ;;  %vm14371_vm12 = vmmov %vm14369_vm0  ;;  %v4376_v0 = vld [vmem:[#allocation2 + $0x10f] sm:$0xff] }
 0x4da   : > { %4314 = vst.msk [vmem:[#allocation3 + $0x8] sm:$0xf] %vm14365_vm10, %v4220_v8  ;;  %vm14373_vm10 = vmmov %vm14369_vm0 }
 0x4db   : > { %4321 = vst.msk [vmem:[#allocation3 + $0x40] sm:$0xf] %vm14369_vm0, %v4234_v41 }
 0x4de   : > { %4505 = vrot.lane.b32.xlu0 %v4425_v61, %s9661_s30  ;;  %4501 = vrot.lane.b32.xlu1 %v4423_v53, %s9661_s30  ;;  %v4408_v61 = vpack.c.bf16 %v4376_v0, %v4376_v0  ;;  %v4605_v0 = vld [vmem:[#allocation2 + $0x38] sm:$0xff] }
 0x4df   : > { %4497 = vrot.lane.b32.xlu2 %v4421_v2, %s9661_s30  ;;  %v14401_v2 = vld [vmem:[#allocation16_spill] sm:$0xff] }
 0x4e0   : > { %v4230_v7 = vpop.permute.xlu0 %4229  ;;  %v4226_v58 = vpop.permute.xlu1 %4225  ;;  %v4440_v53 = vsel %vm9871_vm8, %v4408_v61, 0 }
 0x4e1   : > { %4319 = vst.msk [vmem:[#allocation3 + $0x30] sm:$0xf] %vm14371_vm12, %v4230_v7  ;;  %v4240_v3 = vpop.permute.xlu2 %4239  ;;  %vm14374_vm12 = vmmov %vm14369_vm0  ;;  %v4375_v7 = vld [vmem:[#allocation2 + $0x107] sm:$0xff] }
 0x4e2   : > { %4317 = vst.msk [vmem:[#allocation3 + $0x20] sm:$0xf] %vm14369_vm0, %v4226_v58  ;;  %vm14377_vm0 = vnez %v14376_v29 }
 0x4e3   : > { %4324 = vst.msk [vmem:[#allocation3 + $0x58] sm:$0xf] %vm14372_vm13, %v4240_v3  ;;  %v4431_v38 = vsel %vm14377_vm0, %v11413_v44, 0  ;;  %v14386_v44 = vld [vmem:[#allocation9_spill] sm:$0xff]  ;;  %vm14390_vm0 = vmmov %vm14373_vm10 }
 0x4e6   : > { %4511 = vrot.lane.b32.xlu0 %v11384_v19, %s9661_s30  ;;  %4507 = vrot.lane.b32.xlu1 %v11362_v26, %s9661_s30  ;;  %v14378_v19 = vld [vmem:[#allocation18_spill] sm:$0xff] }
 0x4e7   : > { %4503 = vrot.lane.b32.xlu2 %v11340_v12, %s9661_s30  ;;  %vm14379_vm13 = vnez %v14378_v19  ;;  %v14380_v12 = vld [vmem:[#allocation5_spill] sm:$0xff] }
 0x4e8   : > { %v4236_v34 = vpop.permute.xlu0 %4235  ;;  %v4232_v10 = vpop.permute.xlu1 %4231  ;;  %v4429_v26 = vsel %vm14379_vm13, %v11391_v22, 0  ;;  %v4427_v5 = vsel %vm14382_vm15, %v14380_v12, 0  ;;  %v14385_v22 = vld [vmem:[#allocation12_spill] sm:$0xff]  ;;  %vm14388_vm15 = vmmov %vm14373_vm10  ;;  %vm14398_vm13 = vnez %v14397_v37  ;;  %v14404_v12 = vld [vmem:[#allocation26_spill] sm:$0xff] }
 0x4e9   : > { %4322 = vst.msk [vmem:[#allocation3 + $0x48] sm:$0xf] %vm14373_vm10, %v4236_v34  ;;  %v4246_v24 = vpop.permute.xlu2 %4245  ;;  %v4433_v9 = vsel %vm14398_vm13, %v14396_v36, 0  ;;  %vm14405_vm13 = vnez %v14404_v12  ;;  %v4607_v36 = vld [vmem:[#allocation2 + $0x48] sm:$0xff] }
 0x4ea   : > { %4320 = vst.msk [vmem:[#allocation3 + $0x38] sm:$0xf] %vm14374_vm12, %v4232_v10  ;;  %vm14384_vm12 = vmmov %vm14373_vm10  ;;  %v4601_v10 = vld [vmem:[#allocation2 + $0x18] sm:$0xff] }
 0x4eb   : > { %4327 = vst.msk [vmem:[#allocation3 + $0x70] sm:$0xf] %vm14375_vm11, %v4246_v24  ;;  %vm14383_vm11 = vmmov %vm14373_vm10  ;;  %v4603_v24 = vld [vmem:[#allocation2 + $0x28] sm:$0xff] }
 0x4ee   : > { %4517 = vrot.lane.b32.xlu0 %v4431_v38, %s9661_s30  ;;  %4513 = vrot.lane.b32.xlu1 %v4429_v26, %s9661_s30  ;;  %v4407_v38 = vpack.c.bf16 %v4375_v7, %v4375_v7  ;;  %v4633_v26 = vpack.c.bf16 %v4601_v10, %v4601_v10  ;;  %v4610_v7 = vld [vmem:[#allocation2 + $0x60] sm:$0xff] }
 0x4ef   : > { %4509 = vrot.lane.b32.xlu2 %v4427_v5, %s9661_s30 }
 0x4f0   : > { %v4242_v57 = vpop.permute.xlu0 %4241  ;;  %v4238_v32 = vpop.permute.xlu1 %4237  ;;  %v4439_v5 = vsel %vm14405_vm13, %v4407_v38, 0 }
 0x4f1   : > { %4325 = vst.msk [vmem:[#allocation3 + $0x60] sm:$0xf] %vm14383_vm11, %v4242_v57  ;;  %v4252_v52 = vpop.permute.xlu2 %4251  ;;  %vm14389_vm11 = vmmov %vm14373_vm10 }
 0x4f2   : > { %4323 = vst.msk [vmem:[#allocation3 + $0x50] sm:$0xf] %vm14373_vm10, %v4238_v32  ;;  %vm14392_vm10 = vnez %v14391_v51 }
 0x4f3   : > { %4330 = vst.msk [vmem:[#allocation3 + $0x88] sm:$0xf] %vm14384_vm12, %v4252_v52  ;;  %v4437_v30 = vsel %vm14392_vm10, %v11481_v40, 0  ;;  %vm14395_vm12 = vnez %v14394_v4 }
 0x4f4   : > { %v4435_v59 = vsel %vm14395_vm12, %v14393_v49, 0 }
 0x4f6   : > { %4523 = vrot.lane.b32.xlu0 %v14385_v22, %s9661_s30  ;;  %4519 = vrot.lane.b32.xlu1 %v14386_v44, %s9661_s30  ;;  %v4604_v22 = vld [vmem:[#allocation2 + $0x30] sm:$0xff]  ;;  %v4606_v44 = vld [vmem:[#allocation2 + $0x40] sm:$0xff] }
 0x4f7   : > { %4515 = vrot.lane.b32.xlu2 %v14387_v6, %s9661_s30  ;;  %v4602_v6 = vld [vmem:[#allocation2 + $0x20] sm:$0xff] }
 0x4f8   : > { %v4248_v21 = vpop.permute.xlu0 %4247  ;;  %v4244_v13 = vpop.permute.xlu1 %4243 }
 0x4f9   : > { %4328 = vst.msk [vmem:[#allocation3 + $0x78] sm:$0xf] %vm14388_vm15, %v4248_v21  ;;  %v4258_v45 = vpop.permute.xlu2 %4257  ;;  %vm14399_vm15 = vmmov %vm14390_vm0  ;;  %v4636_v21 = vpack.c.bf16 %v4604_v22, %v4604_v22 }
 0x4fa   : > { %4326 = vst.msk [vmem:[#allocation3 + $0x68] sm:$0xf] %vm14389_vm11, %v4244_v13  ;;  %vm14400_vm11 = vmmov %vm14390_vm0  ;;  %v4638_v13 = vpack.c.bf16 %v4606_v44, %v4606_v44 }
 0x4fb   : > { %4333 = vst.msk [vmem:[#allocation3 + $0xa0] sm:$0xf] %vm14390_vm0, %v4258_v45  ;;  %v4634_v45 = vpack.c.bf16 %v4602_v6, %v4602_v6 }
 0x4fe   : > { %4529 = vrot.lane.b32.xlu0 %v4437_v30, %s9661_s30  ;;  %4525 = vrot.lane.b32.xlu1 %v4435_v59, %s9661_s30 }
 0x4ff   : > { %4521 = vrot.lane.b32.xlu2 %v4433_v9, %s9661_s30  ;;  %v4609_v9 = vld [vmem:[#allocation2 + $0x58] sm:$0xff] }
 0x500   : > { %v4254_v8 = vpop.permute.xlu0 %4253  ;;  %v4250_v41 = vpop.permute.xlu1 %4249 }
 0x501   : > { %4331 = vst.msk [vmem:[#allocation3 + $0x90] sm:$0xf] %vm14399_vm15, %v4254_v8  ;;  %v4264_v40 = vpop.permute.xlu2 %4263  ;;  %vm14402_vm15 = vmmov %vm14390_vm0  ;;  %v4639_v8 = vpack.c.bf16 %v4607_v36, %v4607_v36 }
 0x502   : > { %4329 = vst.msk [vmem:[#allocation3 + $0x80] sm:$0xf] %vm14390_vm0, %v4250_v41  ;;  %v4641_v41 = vpack.c.bf16 %v4609_v9, %v4609_v9 }
 0x503   : > { %4336 = vst.msk [vmem:[#allocation3 + $0xb8] sm:$0xf] %vm14400_vm11, %v4264_v40  ;;  %vm14403_vm11 = vmmov %vm14390_vm0  ;;  %v4637_v40 = vpack.c.bf16 %v4605_v0, %v4605_v0 }
 0x506   : > { %4531 = vrot.lane.b32.xlu1 %v11501_v35, %s9661_s30  ;;  %4535 = vrot.lane.b32.xlu0 %v4440_v53, %s9661_s30  ;;  %v4635_v35 = vpack.c.bf16 %v4603_v24, %v4603_v24 }
 0x507   : > { %4527 = vrot.lane.b32.xlu2 %v14401_v2, %s9661_s30 }
 0x508   : > { %v4260_v58 = vpop.permute.xlu0 %4259  ;;  %v4256_v3 = vpop.permute.xlu1 %4255 }
 0x509   : > { %4334 = vst.msk [vmem:[#allocation3 + $0xa8] sm:$0xf] %vm14402_vm15, %v4260_v58  ;;  %v4270_v34 = vpop.permute.xlu2 %4269  ;;  %vm14406_vm15 = vmmov %vm14390_vm0  ;;  %v4612_v58 = vld [vmem:[#allocation2 + $0x70] sm:$0xff] }
 0x50a   : > { %4332 = vst.msk [vmem:[#allocation3 + $0x98] sm:$0xf] %vm14390_vm0, %v4256_v3  ;;  %v4608_v3 = vld [vmem:[#allocation2 + $0x50] sm:$0xff]  ;;  %v4644_v10 = vpack.c.bf16 %v4612_v58, %v4612_v58 }
 0x50b   : > { %4339 = vst.msk [vmem:[#allocation3 + $0xd0] sm:$0xf] %vm14403_vm11, %v4270_v34  ;;  %vm14407_vm11 = vmmov %vm14390_vm0  ;;  %v4642_v34 = vpack.c.bf16 %v4610_v7, %v4610_v7  ;;  %v4640_v24 = vpack.c.bf16 %v4608_v3, %v4608_v3 }
 0x50e   : > { %4697 = vrot.lane.b32.xlu1 %v4633_v26, %s9662_s13  ;;  %4701 = vrot.lane.b32.xlu0 %v4635_v35, %s9662_s13 }
 0x50f   : > { %4533 = vrot.lane.b32.xlu2 %v4439_v5, %s9661_s30  ;;  %v4613_v5 = vld [vmem:[#allocation2 + $0x78] sm:$0xff] }
 0x510   : > { %v4266_v57 = vpop.permute.xlu0 %4265  ;;  %v4262_v32 = vpop.permute.xlu1 %4261 }
 0x511   : > { %4337 = vst.msk [vmem:[#allocation3 + $0xc0] sm:$0xf] %vm14406_vm15, %v4266_v57  ;;  %v4276_v52 = vpop.permute.xlu2 %4275  ;;  %vm14408_vm15 = vmmov %vm14390_vm0  ;;  %v4615_v57 = vld [vmem:[#allocation2 + $0x88] sm:$0xff] }
 0x512   : > { %4335 = vst.msk [vmem:[#allocation3 + $0xb0] sm:$0xf] %vm14390_vm0, %v4262_v32  ;;  %v4611_v32 = vld [vmem:[#allocation2 + $0x68] sm:$0xff]  ;;  %v4647_v22 = vpack.c.bf16 %v4615_v57, %v4615_v57 }
 0x513   : > { %4342 = vst.msk [vmem:[#allocation3 + $0xe8] sm:$0xf] %vm14407_vm11, %v4276_v52  ;;  %vm14409_vm11 = vcmask 257216   ;;  %v4645_v52 = vpack.c.bf16 %v4613_v5, %v4613_v5  ;;  %v4643_v44 = vpack.c.bf16 %v4611_v32, %v4611_v32 }
 0x516   : > { %4703 = vrot.lane.b32.xlu1 %v4636_v21, %s9662_s13  ;;  %4707 = vrot.lane.b32.xlu0 %v4638_v13, %s9662_s13 }
 0x517   : > { %4699 = vrot.lane.b32.xlu2 %v4634_v45, %s9662_s13  ;;  %v4616_v45 = vld [vmem:[#allocation2 + $0x90] sm:$0xff] }
 0x518   : > { %v4272_v30 = vpop.permute.xlu0 %4271  ;;  %v4268_v49 = vpop.permute.xlu1 %4267 }
 0x519   : > { %4340 = vst.msk [vmem:[#allocation3 + $0xd8] sm:$0xf] %vm14408_vm15, %v4272_v30  ;;  %v4474_v59 = vpop.permute.xlu2 %4473  ;;  %vm14410_vm15 = vmmov %vm14390_vm0  ;;  %v4618_v30 = vld [vmem:[#allocation2 + $0xa0] sm:$0xff] }
 0x51a   : > { %4338 = vst.msk [vmem:[#allocation3 + $0xc8] sm:$0xf] %vm14390_vm0, %v4268_v49  ;;  %v4614_v49 = vld [vmem:[#allocation2 + $0x80] sm:$0xff]  ;;  %v4650_v36 = vpack.c.bf16 %v4618_v30, %v4618_v30 }
 0x51b   : > { %4569 = vst.msk [vmem:[#allocation3] sm:$0xf] %vm14409_vm11, %v4474_v59  ;;  %v4648_v59 = vpack.c.bf16 %v4616_v45, %v4616_v45  ;;  %v4646_v9 = vpack.c.bf16 %v4614_v49, %v4614_v49 }
 0x51e   : > { %4709 = vrot.lane.b32.xlu1 %v4639_v8, %s9662_s13  ;;  %4713 = vrot.lane.b32.xlu0 %v4641_v41, %s9662_s13 }
 0x51f   : > { %4705 = vrot.lane.b32.xlu2 %v4637_v40, %s9662_s13  ;;  %v4619_v40 = vld [vmem:[#allocation2 + $0xa8] sm:$0xff] }
 0x520   : > { %v4274_v61 = vpop.permute.xlu1 %4273  ;;  %v4278_v53 = vpop.permute.xlu0 %4277 }
 0x521   : > { %4341 = vst.msk [vmem:[#allocation3 + $0xe0] sm:$0xf] %vm14410_vm15, %v4274_v61  ;;  %v4480_v2 = vpop.permute.xlu2 %4479  ;;  %vm14411_vm15 = vmmov %vm14409_vm11  ;;  %v4621_v61 = vld [vmem:[#allocation2 + $0xb8] sm:$0xff] }
 0x522   : > { %4343 = vst.msk [vmem:[#allocation3 + $0xf0] sm:$0xf] %vm14390_vm0, %v4278_v53  ;;  %vm14412_vm0 = vmmov %vm14409_vm11  ;;  %v4617_v53 = vld [vmem:[#allocation2 + $0x98] sm:$0xff]  ;;  %v4653_v7 = vpack.c.bf16 %v4621_v61, %v4621_v61 }
 0x523   : > { %4572 = vst.msk [vmem:[#allocation3 + $0x18] sm:$0xf] %vm14409_vm11, %v4480_v2  ;;  %vm14413_vm11 = vcmask 191616   ;;  %v4651_v2 = vpack.c.bf16 %v4619_v40, %v4619_v40  ;;  %v4649_v58 = vpack.c.bf16 %v4617_v53, %v4617_v53  ;;  %v4825_v53 = vld [vmem:[#allocation2 + $0x19] sm:$0xff] }
 0x526   : > { %4715 = vrot.lane.b32.xlu1 %v4642_v34, %s9662_s13  ;;  %4719 = vrot.lane.b32.xlu0 %v4644_v10, %s9662_s13 }
 0x527   : > { %4711 = vrot.lane.b32.xlu2 %v4640_v24, %s9662_s13  ;;  %v4622_v24 = vld [vmem:[#allocation2 + $0xc0] sm:$0xff] }
 0x528   : > { %v4476_v38 = vpop.permute.xlu0 %4475  ;;  %v4280_v26 = vpop.permute.xlu1 %4279 }
 0x529   : > { %4570 = vst.msk [vmem:[#allocation3 + $0x8] sm:$0xf] %vm14411_vm15, %v4476_v38  ;;  %v4486_v35 = vpop.permute.xlu2 %4485  ;;  %vm14414_vm15 = vmmov %vm14412_vm0  ;;  %v4624_v38 = vld [vmem:[#allocation2 + $0xd0] sm:$0xff] }
 0x52a   : > { %4575 = vst.msk [vmem:[#allocation3 + $0x30] sm:$0xf] %vm14412_vm0, %v4486_v35  ;;  %v4654_v35 = vpack.c.bf16 %v4622_v24, %v4622_v24  ;;  %v4656_v5 = vpack.c.bf16 %v4624_v38, %v4624_v38 }
 0x52b   : > { %4344 = vst.msk [vmem:[#allocation3 + $0xf8] sm:$0xf] %vm14413_vm11, %v4280_v26  ;;  %vm14415_vm11 = vmmov %vm14412_vm0  ;;  %v4620_v26 = vld [vmem:[#allocation2 + $0xb0] sm:$0xff] }
 0x52c   : > { %v4652_v57 = vpack.c.bf16 %v4620_v26, %v4620_v26 }
 0x52e   : > { %4721 = vrot.lane.b32.xlu1 %v4645_v52, %s9662_s13  ;;  %4725 = vrot.lane.b32.xlu0 %v4647_v22, %s9662_s13 }
 0x52f   : > { %4717 = vrot.lane.b32.xlu2 %v4643_v44, %s9662_s13  ;;  %v4625_v44 = vld [vmem:[#allocation2 + $0xd8] sm:$0xff] }
 0x530   : > { %v4482_v6 = vpop.permute.xlu0 %4481  ;;  %v4478_v21 = vpop.permute.xlu1 %4477 }
 0x531   : > { %4573 = vst.msk [vmem:[#allocation3 + $0x20] sm:$0xf] %vm14414_vm15, %v4482_v6  ;;  %v4492_v13 = vpop.permute.xlu2 %4491  ;;  %vm14416_vm15 = vmmov %vm14412_vm0  ;;  %v4627_v6 = vld [vmem:[#allocation2 + $0xe8] sm:$0xff] }
 0x532   : > { %4578 = vst.msk [vmem:[#allocation3 + $0x48] sm:$0xf] %vm14412_vm0, %v4492_v13  ;;  %v4657_v13 = vpack.c.bf16 %v4625_v44, %v4625_v44  ;;  %v4659_v45 = vpack.c.bf16 %v4627_v6, %v4627_v6  ;;  %v4632_v6 = vld [vmem:[#allocation2 + $0x110] sm:$0xff] }
 0x533   : > { %4571 = vst.msk [vmem:[#allocation3 + $0x10] sm:$0xf] %vm14415_vm11, %v4478_v21  ;;  %vm14417_vm11 = vmmov %vm14412_vm0  ;;  %v4623_v21 = vld [vmem:[#allocation2 + $0xc8] sm:$0xff] }
 0x534   : > { %v4655_v30 = vpack.c.bf16 %v4623_v21, %v4623_v21 }
 0x536   : > { %4727 = vrot.lane.b32.xlu1 %v4648_v59, %s9662_s13  ;;  %4731 = vrot.lane.b32.xlu0 %v4650_v36, %s9662_s13 }
 0x537   : > { %4723 = vrot.lane.b32.xlu2 %v4646_v9, %s9662_s13  ;;  %v4628_v9 = vld [vmem:[#allocation2 + $0xf0] sm:$0xff] }
 0x538   : > { %v4488_v0 = vpop.permute.xlu0 %4487  ;;  %v4484_v8 = vpop.permute.xlu1 %4483 }
 0x539   : > { %4576 = vst.msk [vmem:[#allocation3 + $0x38] sm:$0xf] %vm14416_vm15, %v4488_v0  ;;  %v4498_v41 = vpop.permute.xlu2 %4497  ;;  %vm14418_vm15 = vmmov %vm14412_vm0  ;;  %v4630_v0 = vld [vmem:[#allocation2 + $0x100] sm:$0xff] }
 0x53a   : > { %4581 = vst.msk [vmem:[#allocation3 + $0x60] sm:$0xf] %vm14412_vm0, %v4498_v41  ;;  %v4660_v41 = vpack.c.bf16 %v4628_v9, %v4628_v9  ;;  %v4662_v40 = vpack.c.bf16 %v4630_v0, %v4630_v0 }
 0x53b   : > { %4574 = vst.msk [vmem:[#allocation3 + $0x28] sm:$0xf] %vm14417_vm11, %v4484_v8  ;;  %vm14419_vm11 = vmmov %vm14412_vm0  ;;  %v4626_v8 = vld [vmem:[#allocation2 + $0xe0] sm:$0xff] }
 0x53c   : > { %v4658_v61 = vpack.c.bf16 %v4626_v8, %v4626_v8 }
 0x53e   : > { %4733 = vrot.lane.b32.xlu1 %v4651_v2, %s9662_s13  ;;  %4737 = vrot.lane.b32.xlu0 %v4653_v7, %s9662_s13 }
 0x53f   : > { %4729 = vrot.lane.b32.xlu2 %v4649_v58, %s9662_s13 }
 0x540   : > { %v4494_v3 = vpop.permute.xlu0 %4493  ;;  %v4490_v34 = vpop.permute.xlu1 %4489 }
 0x541   : > { %4579 = vst.msk [vmem:[#allocation3 + $0x50] sm:$0xf] %vm14418_vm15, %v4494_v3  ;;  %v4504_v10 = vpop.permute.xlu2 %4503  ;;  %vm14420_vm15 = vmmov %vm14412_vm0  ;;  %v4631_v3 = vld [vmem:[#allocation2 + $0x108] sm:$0xff] }
 0x542   : > { %4584 = vst.msk [vmem:[#allocation3 + $0x78] sm:$0xf] %vm14412_vm0, %v4504_v10  ;;  %v4629_v10 = vld [vmem:[#allocation2 + $0xf8] sm:$0xff]  ;;  %v4663_v24 = vpack.c.bf16 %v4631_v3, %v4631_v3  ;;  %v4830_v3 = vld [vmem:[#allocation2 + $0x41] sm:$0xff] }
 0x543   : > { %4577 = vst.msk [vmem:[#allocation3 + $0x40] sm:$0xf] %vm14419_vm11, %v4490_v34  ;;  %vm14421_vm11 = vmmov %vm14412_vm0  ;;  %v4857_v34 = vpack.c.bf16 %v4825_v53, %v4825_v53  ;;  %v4661_v38 = vpack.c.bf16 %v4629_v10, %v4629_v10 }
 0x545   : > { %v4889_v26 = vsel %vm9871_vm8, %v4857_v34, 0 }
 0x546   : > { %4739 = vrot.lane.b32.xlu1 %v4654_v35, %s9662_s13  ;;  %4743 = vrot.lane.b32.xlu0 %v4656_v5, %s9662_s13  ;;  %v4826_v35 = vld [vmem:[#allocation2 + $0x21] sm:$0xff]  ;;  %v4828_v5 = vld [vmem:[#allocation2 + $0x31] sm:$0xff] }
 0x547   : > { %4735 = vrot.lane.b32.xlu2 %v4652_v57, %s9662_s13  ;;  %v4860_v44 = vpack.c.bf16 %v4828_v5, %v4828_v5 }
 0x548   : > { %v4500_v32 = vpop.permute.xlu0 %4499  ;;  %v4496_v52 = vpop.permute.xlu1 %4495 }
 0x549   : > { %4582 = vst.msk [vmem:[#allocation3 + $0x68] sm:$0xf] %vm14420_vm15, %v4500_v32  ;;  %v4510_v22 = vpop.permute.xlu2 %4509  ;;  %vm14422_vm15 = vmmov %vm14412_vm0 }
 0x54a   : > { %4587 = vst.msk [vmem:[#allocation3 + $0x90] sm:$0xf] %vm14412_vm0, %v4510_v22  ;;  %v4858_v22 = vpack.c.bf16 %v4826_v35, %v4826_v35  ;;  %v11822_v35 = vpack.c.bf16 %v4830_v3, %v4830_v3 }
 0x54b   : > { %4580 = vst.msk [vmem:[#allocation3 + $0x58] sm:$0xf] %vm14421_vm11, %v4496_v52  ;;  %vm14423_vm11 = vmmov %vm14412_vm0 }
 0x54c   : > { %v4890_v21 = vsel %vm14342_vm2, %v4858_v22, 0  ;;  %vm14433_vm2 = vnez %v14200_v28  ;;  %v4837_v22 = vld [vmem:[#allocation2 + $0x79] sm:$0xff] }
 0x54e   : > { %4745 = vrot.lane.b32.xlu1 %v4657_v13, %s9662_s13  ;;  %4749 = vrot.lane.b32.xlu0 %v4659_v45, %s9662_s13  ;;  %v4664_v13 = vpack.c.bf16 %v4632_v6, %v4632_v6  ;;  %v4892_v45 = vsel %vm14229_vm9, %v4860_v44, 0  ;;  %vm14432_vm9 = vnez %v14198_v42  ;;  %v4833_v44 = vld [vmem:[#allocation2 + $0x59] sm:$0xff] }
 0x54f   : > { %4741 = vrot.lane.b32.xlu2 %v4655_v30, %s9662_s13  ;;  %v4829_v30 = vld [vmem:[#allocation2 + $0x39] sm:$0xff] }
 0x550   : > { %v4506_v49 = vpop.permute.xlu0 %4505  ;;  %v4502_v59 = vpop.permute.xlu1 %4501  ;;  %v4861_v8 = vpack.c.bf16 %v4829_v30, %v4829_v30  ;;  %v4869_v30 = vpack.c.bf16 %v4837_v22, %v4837_v22 }
 0x551   : > { %4585 = vst.msk [vmem:[#allocation3 + $0x80] sm:$0xf] %vm14422_vm15, %v4506_v49  ;;  %v4516_v36 = vpop.permute.xlu2 %4515  ;;  %vm14424_vm15 = vmmov %vm14412_vm0  ;;  %v4831_v49 = vld [vmem:[#allocation2 + $0x49] sm:$0xff] }
 0x552   : > { %4590 = vst.msk [vmem:[#allocation3 + $0xa8] sm:$0xf] %vm14412_vm0, %v4516_v36 }
 0x553   : > { %4583 = vst.msk [vmem:[#allocation3 + $0x70] sm:$0xf] %vm14423_vm11, %v4502_v59  ;;  %vm14425_vm11 = vmmov %vm14412_vm0  ;;  %v4827_v59 = vld [vmem:[#allocation2 + $0x29] sm:$0xff] }
 0x556   : > { %4751 = vrot.lane.b32.xlu1 %v4660_v41, %s9662_s13  ;;  %4755 = vrot.lane.b32.xlu0 %v4662_v40, %s9662_s13  ;;  %v4863_v41 = vpack.c.bf16 %v4831_v49, %v4831_v49  ;;  %v4859_v40 = vpack.c.bf16 %v4827_v59, %v4827_v59  ;;  %v4865_v49 = vpack.c.bf16 %v4833_v44, %v4833_v44 }
 0x557   : > { %4747 = vrot.lane.b32.xlu2 %v4658_v61, %s9662_s13  ;;  %v4893_v61 = vsel %vm9871_vm8, %v4861_v8, 0  ;;  %v4840_v8 = vld [vmem:[#allocation2 + $0x91] sm:$0xff] }
 0x558   : > { %v4512_v2 = vpop.permute.xlu0 %4511  ;;  %v4508_v7 = vpop.permute.xlu1 %4507  ;;  %v4895_v53 = vsel %vm9871_vm8, %v4863_v41, 0  ;;  %v4836_v41 = vld [vmem:[#allocation2 + $0x71] sm:$0xff] }
 0x559   : > { %4588 = vst.msk [vmem:[#allocation3 + $0x98] sm:$0xf] %vm14424_vm15, %v4512_v2  ;;  %v4522_v58 = vpop.permute.xlu2 %4521  ;;  %vm14426_vm15 = vmmov %vm14412_vm0  ;;  %v4891_v2 = vsel %vm9871_vm8, %v4859_v40, 0 }
 0x55a   : > { %4593 = vst.msk [vmem:[#allocation3 + $0xc0] sm:$0xf] %vm14412_vm0, %v4522_v58  ;;  %v4834_v58 = vld [vmem:[#allocation2 + $0x61] sm:$0xff] }
 0x55b   : > { %4586 = vst.msk [vmem:[#allocation3 + $0x88] sm:$0xf] %vm14425_vm11, %v4508_v7  ;;  %vm14427_vm11 = vmmov %vm14412_vm0  ;;  %v4832_v7 = vld [vmem:[#allocation2 + $0x51] sm:$0xff] }
 0x55e   : > { %4757 = vrot.lane.b32.xlu1 %v4663_v24, %s9662_s13  ;;  %4953 = vrot.lane.b32.xlu0 %v4889_v26, %s9663_s14  ;;  %v4866_v26 = vpack.c.bf16 %v4834_v58, %v4834_v58  ;;  %v11852_v58 = vpack.c.bf16 %v4836_v41, %v4836_v41 }
 0x55f   : > { %4753 = vrot.lane.b32.xlu2 %v4661_v38, %s9662_s13  ;;  %v4864_v38 = vpack.c.bf16 %v4832_v7, %v4832_v7  ;;  %v4872_v7 = vpack.c.bf16 %v4840_v8, %v4840_v8 }
 0x560   : > { %v4518_v57 = vpop.permute.xlu0 %4517  ;;  %v4514_v32 = vpop.permute.xlu1 %4513 }
 0x561   : > { %4591 = vst.msk [vmem:[#allocation3 + $0xb0] sm:$0xf] %vm14426_vm15, %v4518_v57  ;;  %v4528_v52 = vpop.permute.xlu2 %4527  ;;  %vm14428_vm15 = vmmov %vm14412_vm0  ;;  %v4896_v5 = vsel %vm14432_vm9, %v4864_v38, 0  ;;  %v4898_v57 = vsel %vm14433_vm2, %v4866_v26, 0  ;;  %vm14442_vm9 = vnez %v14207_v17  ;;  %v4843_v38 = vld [vmem:[#allocation2 + $0xa9] sm:$0xff] }
 0x562   : > { %4596 = vst.msk [vmem:[#allocation3 + $0xd8] sm:$0xf] %vm14412_vm0, %v4528_v52  ;;  %v4835_v52 = vld [vmem:[#allocation2 + $0x69] sm:$0xff]  ;;  %v4875_v22 = vpack.c.bf16 %v4843_v38, %v4843_v38 }
 0x563   : > { %4589 = vst.msk [vmem:[#allocation3 + $0xa0] sm:$0xf] %vm14427_vm11, %v4514_v32  ;;  %vm14429_vm11 = vmmov %vm14412_vm0  ;;  %v4839_v26 = vld [vmem:[#allocation2 + $0x89] sm:$0xff] }
 0x564   : > { %v4871_v44 = vpack.c.bf16 %v4839_v26, %v4839_v26 }
 0x566   : > { %4955 = vrot.lane.b32.xlu1 %v4890_v21, %s9663_s14  ;;  %4959 = vrot.lane.b32.xlu0 %v4892_v45, %s9663_s14  ;;  %v4867_v45 = vpack.c.bf16 %v4835_v52, %v4835_v52 }
 0x567   : > { %4759 = vrot.lane.b32.xlu2 %v4664_v13, %s9662_s13 }
 0x568   : > { %v4524_v36 = vpop.permute.xlu0 %4523  ;;  %v4520_v9 = vpop.permute.xlu1 %4519  ;;  %v4899_v59 = vsel %vm9871_vm8, %v4867_v45, 0  ;;  %v4844_v45 = vld [vmem:[#allocation2 + $0xb1] sm:$0xff] }
 0x569   : > { %4594 = vst.msk [vmem:[#allocation3 + $0xc8] sm:$0xf] %vm14428_vm15, %v4524_v36  ;;  %v4534_v0 = vpop.permute.xlu2 %4533  ;;  %vm14430_vm15 = vmmov %vm14412_vm0  ;;  %v4901_v36 = vsel %vm9871_vm8, %v4869_v30, 0  ;;  %v4846_v30 = vld [vmem:[#allocation2 + $0xc1] sm:$0xff]  ;;  %v4876_v8 = vpack.c.bf16 %v4844_v45, %v4844_v45 }
 0x56a   : > { %4599 = vst.msk [vmem:[#allocation3 + $0xf0] sm:$0xf] %vm14412_vm0, %v4534_v0  ;;  %vm14431_vm0 = vcmask 322816   ;;  %v4838_v0 = vld [vmem:[#allocation2 + $0x81] sm:$0xff]  ;;  %v4878_v41 = vpack.c.bf16 %v4846_v30, %v4846_v30 }
 0x56b   : > { %4592 = vst.msk [vmem:[#allocation3 + $0xb8] sm:$0xf] %vm14429_vm11, %v4520_v9  ;;  %v11845_v9 = vsel %vm9871_vm8, %v4865_v49, 0  ;;  %v4842_v49 = vld [vmem:[#allocation2 + $0xa1] sm:$0xff] }
 0x56e   : > { %4961 = vrot.lane.b32.xlu1 %v4893_v61, %s9663_s14  ;;  %4965 = vrot.lane.b32.xlu0 %v4895_v53, %s9663_s14 }
 0x56f   : > { %4957 = vrot.lane.b32.xlu2 %v4891_v2, %s9663_s14  ;;  %v4870_v2 = vpack.c.bf16 %v4838_v0, %v4838_v0 }
 0x570   : > { %v4530_v34 = vpop.permute.xlu0 %4529  ;;  %v4526_v10 = vpop.permute.xlu1 %4525 }
 0x571   : > { %4597 = vst.msk [vmem:[#allocation3 + $0xe0] sm:$0xf] %vm14430_vm15, %v4530_v34  ;;  %v4700_v24 = vpop.permute.xlu2 %4699  ;;  %vm14434_vm15 = vnez %v14196_v54  ;;  %v4904_v34 = vsel %vm14442_vm9, %v4872_v7, 0  ;;  %v4847_v7 = vld [vmem:[#allocation2 + $0xc9] sm:$0xff] }
 0x572   : > { %4794 = vst.msk [vmem:[#allocation3 + $0x8] sm:$0xf] %vm14431_vm0, %v4700_v24  ;;  %v4894_v32 = vsel %vm14434_vm15, %v11822_v35, 0  ;;  %vm14435_vm0 = vmmov %vm14429_vm11  ;;  %vm14441_vm15 = vnez %v14205_v18  ;;  %v4841_v24 = vld [vmem:[#allocation2 + $0x99] sm:$0xff]  ;;  %v4879_v26 = vpack.c.bf16 %v4847_v7, %v4847_v7  ;;  %v4851_v7 = vld [vmem:[#allocation2 + $0xe9] sm:$0xff] }
 0x573   : > { %4595 = vst.msk [vmem:[#allocation3 + $0xd0] sm:$0xf] %vm14429_vm11, %v4526_v10  ;;  %vm14436_vm11 = vcmask 322816   ;;  %vm14437_vm2 = vmmov %vm14435_vm0  ;;  %v4902_v3 = vsel %vm14441_vm15, %v4870_v2, 0  ;;  %v4900_v10 = vsel %vm14351_vm3, %v11852_v58, 0  ;;  %v4873_v52 = vpack.c.bf16 %v4841_v24, %v4841_v24 }
 0x574   : > { %vm14447_vm3 = vnez %v14209_v50 }
 0x576   : > { %4967 = vrot.lane.b32.xlu1 %v4896_v5, %s9663_s14  ;;  %4971 = vrot.lane.b32.xlu0 %v4898_v57, %s9663_s14 }
 0x577   : > { %4963 = vrot.lane.b32.xlu2 %v4894_v32, %s9663_s14 }
 0x578   : > { %v4532_v6 = vpop.permute.xlu1 %4531  ;;  %v4536_v21 = vpop.permute.xlu0 %4535 }
 0x579   : > { %v4706_v13 = vpop.permute.xlu2 %4705  ;;  %4598 = vst.msk [vmem:[#allocation3 + $0xe8] sm:$0xf] %vm14435_vm0, %v4532_v6  ;;  %v4905_v6 = vsel %vm9871_vm8, %v4873_v52, 0 }
 0x57a   : > { %4797 = vst.msk [vmem:[#allocation3 + $0x20] sm:$0xf] %vm14436_vm11, %v4706_v13  ;;  %v11875_v13 = vsel %vm9871_vm8, %v4871_v44, 0  ;;  %v4850_v44 = vld [vmem:[#allocation2 + $0xe1] sm:$0xff] }
 0x57b   : > { %4600 = vst.msk [vmem:[#allocation3 + $0xf8] sm:$0xf] %vm14437_vm2, %v4536_v21  ;;  %vm14438_vm2 = vmmov %vm14436_vm11  ;;  %v4907_v21 = vsel %vm9871_vm8, %v4875_v22, 0 }
 0x57c   : > { %vm14439_vm0 = vmmov %vm14438_vm2 }
 0x57d   : > { %vm14440_vm11 = vmmov %vm14439_vm0 }
 0x57e   : > { %4973 = vrot.lane.b32.xlu1 %v4899_v59, %s9663_s14  ;;  %4977 = vrot.lane.b32.xlu0 %v4901_v36, %s9663_s14 }
 0x57f   : > { %4969 = vrot.lane.b32.xlu2 %v11845_v9, %s9663_s14 }
 0x580   : > { %v4698_v40 = vpop.permute.xlu1 %4697  ;;  %v4702_v61 = vpop.permute.xlu0 %4701 }
 0x581   : > { %v4712_v53 = vpop.permute.xlu2 %4711  ;;  %4793 = vst.msk [vmem:[#allocation3] sm:$0xf] %vm14438_vm2, %v4698_v40  ;;  %vm14443_vm2 = vmmov %vm14439_vm0  ;;  %v11882_v40 = vpack.c.bf16 %v4842_v49, %v4842_v49 }
 0x582   : > { %4800 = vst.msk [vmem:[#allocation3 + $0x38] sm:$0xf] %vm14439_vm0, %v4712_v53  ;;  %v4910_v53 = vsel %vm14246_vm6, %v4878_v41, 0  ;;  %vm14453_vm6 = vnez %v14215_v55 }
 0x583   : > { %4795 = vst.msk [vmem:[#allocation3 + $0x10] sm:$0xf] %vm14440_vm11, %v4702_v61  ;;  %vm14444_vm11 = vmmov %vm14439_vm0  ;;  %v4908_v61 = vsel %vm14355_vm4, %v4876_v8, 0  ;;  %v4906_v2 = vsel %vm14447_vm3, %v11882_v40, 0  ;;  %vm14452_vm3 = vnez %v14153_v48 }
 0x586   : > { %4979 = vrot.lane.b32.xlu1 %v4902_v3, %s9663_s14  ;;  %4983 = vrot.lane.b32.xlu0 %v4904_v34, %s9663_s14  ;;  %v4849_v3 = vld [vmem:[#allocation2 + $0xd9] sm:$0xff] }
 0x587   : > { %4975 = vrot.lane.b32.xlu2 %v4900_v10, %s9663_s14  ;;  %v4845_v34 = vld [vmem:[#allocation2 + $0xb9] sm:$0xff] }
 0x588   : > { %v4704_v5 = vpop.permute.xlu1 %4703  ;;  %v4708_v57 = vpop.permute.xlu0 %4707 }
 0x589   : > { %v4718_v32 = vpop.permute.xlu2 %4717  ;;  %4796 = vst.msk [vmem:[#allocation3 + $0x18] sm:$0xf] %vm14443_vm2, %v4704_v5  ;;  %vm14445_vm2 = vmmov %vm14439_vm0  ;;  %v4881_v5 = vpack.c.bf16 %v4849_v3, %v4849_v3 }
 0x58a   : > { %4803 = vst.msk [vmem:[#allocation3 + $0x50] sm:$0xf] %vm14439_vm0, %v4718_v32  ;;  %v4911_v32 = vsel %vm9871_vm8, %v4879_v26, 0  ;;  %v4883_v26 = vpack.c.bf16 %v4851_v7, %v4851_v7  ;;  %v5081_v7 = vld [vmem:[#allocation2 + $0x27] sm:$0xff] }
 0x58b   : > { %4798 = vst.msk [vmem:[#allocation3 + $0x28] sm:$0xf] %vm14444_vm11, %v4708_v57  ;;  %vm14446_vm11 = vmmov %vm14439_vm0  ;;  %v4877_v57 = vpack.c.bf16 %v4845_v34, %v4845_v34  ;;  %v4913_v52 = vsel %vm9871_vm8, %v4881_v5, 0 }
 0x58d   : > { %v11905_v22 = vsel %vm9871_vm8, %v4877_v57, 0 }
 0x58e   : > { %4985 = vrot.lane.b32.xlu1 %v4905_v6, %s9663_s14  ;;  %4989 = vrot.lane.b32.xlu0 %v4907_v21, %s9663_s14  ;;  %v4852_v6 = vld [vmem:[#allocation2 + $0xf1] sm:$0xff] }
 0x58f   : > { %4981 = vrot.lane.b32.xlu2 %v11875_v13, %s9663_s14  ;;  %v4848_v21 = vld [vmem:[#allocation2 + $0xd1] sm:$0xff] }
 0x590   : > { %v4710_v59 = vpop.permute.xlu1 %4709  ;;  %v4714_v36 = vpop.permute.xlu0 %4713 }
 0x591   : > { %v4724_v0 = vpop.permute.xlu2 %4723  ;;  %4799 = vst.msk [vmem:[#allocation3 + $0x30] sm:$0xf] %vm14445_vm2, %v4710_v59  ;;  %vm14448_vm2 = vmmov %vm14439_vm0  ;;  %v4882_v59 = vpack.c.bf16 %v4850_v44, %v4850_v44  ;;  %v5082_v44 = vld [vmem:[#allocation2 + $0x2f] sm:$0xff] }
 0x592   : > { %4806 = vst.msk [vmem:[#allocation3 + $0x68] sm:$0xf] %vm14439_vm0, %v4724_v0  ;;  %v11912_v0 = vpack.c.bf16 %v4848_v21, %v4848_v21 }
 0x593   : > { %4801 = vst.msk [vmem:[#allocation3 + $0x40] sm:$0xf] %vm14446_vm11, %v4714_v36  ;;  %vm14449_vm11 = vmmov %vm14439_vm0  ;;  %v4884_v36 = vpack.c.bf16 %v4852_v6, %v4852_v6  ;;  %v4914_v8 = vsel %vm14248_vm14, %v4882_v59, 0  ;;  %v4854_v6 = vld [vmem:[#allocation2 + $0x101] sm:$0xff]  ;;  %v5114_v59 = vpack.c.bf16 %v5082_v44, %v5082_v44  ;;  %v5086_v44 = vld [vmem:[#allocation2 + $0x4f] sm:$0xff] }
 0x595   : > { %v4916_v41 = vsel %vm14452_vm3, %v4884_v36, 0  ;;  %v11942_v36 = vpack.c.bf16 %v4854_v6, %v4854_v6  ;;  %v5088_v6 = vld [vmem:[#allocation2 + $0x5f] sm:$0xff] }
 0x596   : > { %4991 = vrot.lane.b32.xlu1 %v4908_v61, %s9663_s14  ;;  %4995 = vrot.lane.b32.xlu0 %v4910_v53, %s9663_s14  ;;  %v4912_v61 = vsel %vm14453_vm6, %v11912_v0, 0  ;;  %v4853_v53 = vld [vmem:[#allocation2 + $0xf9] sm:$0xff]  ;;  %vm14462_vm6 = vnez %v14031_v39 }
 0x597   : > { %4987 = vrot.lane.b32.xlu2 %v4906_v2, %s9663_s14  ;;  %v4855_v2 = vld [vmem:[#allocation2 + $0x109] sm:$0xff] }
 0x598   : > { %v4716_v10 = vpop.permute.xlu1 %4715  ;;  %v4720_v24 = vpop.permute.xlu0 %4719 }
 0x599   : > { %v4730_v38 = vpop.permute.xlu2 %4729  ;;  %4802 = vst.msk [vmem:[#allocation3 + $0x48] sm:$0xf] %vm14448_vm2, %v4716_v10  ;;  %vm14450_vm2 = vmmov %vm14439_vm0 }
 0x59a   : > { %4809 = vst.msk [vmem:[#allocation3 + $0x80] sm:$0xf] %vm14439_vm0, %v4730_v38  ;;  %v4887_v38 = vpack.c.bf16 %v4855_v2, %v4855_v2  ;;  %v5085_v2 = vld [vmem:[#allocation2 + $0x47] sm:$0xff] }
 0x59b   : > { %4804 = vst.msk [vmem:[#allocation3 + $0x58] sm:$0xf] %vm14449_vm11, %v4720_v24  ;;  %vm14451_vm11 = vmmov %vm14439_vm0  ;;  %v4885_v24 = vpack.c.bf16 %v4853_v53, %v4853_v53  ;;  %v5083_v53 = vld [vmem:[#allocation2 + $0x37] sm:$0xff] }
 0x59c   : > { %v4919_v57 = vsel %vm9871_vm8, %v4887_v38, 0  ;;  %v5117_v38 = vpack.c.bf16 %v5085_v2, %v5085_v2 }
 0x59d   : > { %v4917_v5 = vsel %vm9871_vm8, %v4885_v24, 0  ;;  %v5115_v24 = vpack.c.bf16 %v5083_v53, %v5083_v53 }
 0x59e   : > { %4997 = vrot.lane.b32.xlu1 %v4911_v32, %s9663_s14  ;;  %5001 = vrot.lane.b32.xlu0 %v4913_v52, %s9663_s14  ;;  %v11935_v32 = vsel %vm9871_vm8, %v4883_v26, 0  ;;  %v4856_v52 = vld [vmem:[#allocation2 + $0x111] sm:$0xff]  ;;  %v5113_v26 = vpack.c.bf16 %v5081_v7, %v5081_v7  ;;  %v5089_v7 = vld [vmem:[#allocation2 + $0x67] sm:$0xff] }
 0x59f   : > { %4993 = vrot.lane.b32.xlu2 %v11905_v22, %s9663_s14 }
 0x5a0   : > { %v4722_v45 = vpop.permute.xlu1 %4721  ;;  %v4726_v30 = vpop.permute.xlu0 %4725 }
 0x5a1   : > { %v4736_v49 = vpop.permute.xlu2 %4735  ;;  %4805 = vst.msk [vmem:[#allocation3 + $0x60] sm:$0xf] %vm14450_vm2, %v4722_v45  ;;  %vm14454_vm2 = vmmov %vm14439_vm0 }
 0x5a2   : > { %4812 = vst.msk [vmem:[#allocation3 + $0x98] sm:$0xf] %vm14439_vm0, %v4736_v49  ;;  %v4888_v49 = vpack.c.bf16 %v4856_v52, %v4856_v52  ;;  %v5145_v52 = vsel %vm14462_vm6, %v5113_v26, 0  ;;  %v5121_v26 = vpack.c.bf16 %v5089_v7, %v5089_v7  ;;  %vm14470_vm6 = vnez %v14046_v25 }
 0x5a3   : > { %4807 = vst.msk [vmem:[#allocation3 + $0x70] sm:$0xf] %vm14451_vm11, %v4726_v30  ;;  %vm14455_vm11 = vmmov %vm14439_vm0 }
 0x5a6   : > { %5003 = vrot.lane.b32.xlu1 %v4914_v8, %s9663_s14  ;;  %5007 = vrot.lane.b32.xlu0 %v4916_v41, %s9663_s14  ;;  %v4920_v8 = vsel %vm14220_vm5, %v4888_v49, 0  ;;  %v5146_v41 = vsel %vm9871_vm8, %v5114_v59, 0  ;;  %vm14460_vm5 = vnez %v14049_v31  ;;  %v5118_v59 = vpack.c.bf16 %v5086_v44, %v5086_v44 }
 0x5a7   : > { %4999 = vrot.lane.b32.xlu2 %v4912_v61, %s9663_s14  ;;  %v4918_v61 = vsel %vm14358_vm7, %v11942_v36, 0  ;;  %vm14461_vm7 = vnez %v14037_v62 }
 0x5a8   : > { %v4728_v3 = vpop.permute.xlu1 %4727  ;;  %v4732_v34 = vpop.permute.xlu0 %4731 }
 0x5a9   : > { %v4742_v10 = vpop.permute.xlu2 %4741  ;;  %4808 = vst.msk [vmem:[#allocation3 + $0x78] sm:$0xf] %vm14454_vm2, %v4728_v3  ;;  %vm14456_vm2 = vmmov %vm14439_vm0 }
 0x5aa   : > { %4815 = vst.msk [vmem:[#allocation3 + $0xb0] sm:$0xf] %vm14439_vm0, %v4742_v10 }
 0x5ab   : > { %4810 = vst.msk [vmem:[#allocation3 + $0x88] sm:$0xf] %vm14455_vm11, %v4732_v34  ;;  %vm14457_vm11 = vmmov %vm14439_vm0 }
 0x5ae   : > { %5009 = vrot.lane.b32.xlu1 %v4917_v5, %s9663_s14  ;;  %5013 = vrot.lane.b32.xlu0 %v4919_v57, %s9663_s14  ;;  %v5147_v5 = vsel %vm14460_vm5, %v5115_v24, 0  ;;  %v5149_v57 = vsel %vm14461_vm7, %v5117_v38, 0  ;;  %vm14468_vm7 = vnez %v14054_v60  ;;  %vm14469_vm5 = vnez %v14084_v23 }
 0x5af   : > { %5005 = vrot.lane.b32.xlu2 %v11935_v32, %s9663_s14 }
 0x5b0   : > { %v4734_v21 = vpop.permute.xlu1 %4733  ;;  %v4738_v45 = vpop.permute.xlu0 %4737 }
 0x5b1   : > { %v4748_v30 = vpop.permute.xlu2 %4747  ;;  %4811 = vst.msk [vmem:[#allocation3 + $0x90] sm:$0xf] %vm14456_vm2, %v4734_v21  ;;  %vm14458_vm2 = vmmov %vm14439_vm0  ;;  %v5084_v21 = vld [vmem:[#allocation2 + $0x3f] sm:$0xff] }
 0x5b2   : > { %4818 = vst.msk [vmem:[#allocation3 + $0xc8] sm:$0xf] %vm14439_vm0, %v4748_v30 }
 0x5b3   : > { %4813 = vst.msk [vmem:[#allocation3 + $0xa0] sm:$0xf] %vm14457_vm11, %v4738_v45  ;;  %vm14459_vm11 = vmmov %vm14439_vm0 }
 0x5b6   : > { %5015 = vrot.lane.b32.xlu1 %v4920_v8, %s9663_s14  ;;  %5211 = vrot.lane.b32.xlu0 %v5146_v41, %s9664_s15  ;;  %v5120_v8 = vpack.c.bf16 %v5088_v6, %v5088_v6  ;;  %v5116_v41 = vpack.c.bf16 %v5084_v21, %v5084_v21  ;;  %v5092_v21 = vld [vmem:[#allocation2 + $0x7f] sm:$0xff] }
 0x5b7   : > { %5011 = vrot.lane.b32.xlu2 %v4918_v61, %s9663_s14  ;;  %v5150_v61 = vsel %vm9871_vm8, %v5118_v59, 0 }
 0x5b8   : > { %v4740_v3 = vpop.permute.xlu1 %4739  ;;  %v4744_v34 = vpop.permute.xlu0 %4743  ;;  %v5152_v53 = vsel %vm9871_vm8, %v5120_v8, 0  ;;  %v5148_v2 = vsel %vm9871_vm8, %v5116_v41, 0  ;;  %v5124_v41 = vpack.c.bf16 %v5092_v21, %v5092_v21 }
 0x5b9   : > { %v4754_v10 = vpop.permute.xlu2 %4753  ;;  %4814 = vst.msk [vmem:[#allocation3 + $0xa8] sm:$0xf] %vm14458_vm2, %v4740_v3  ;;  %vm14463_vm2 = vmmov %vm14439_vm0  ;;  %v5091_v3 = vld [vmem:[#allocation2 + $0x77] sm:$0xff] }
 0x5ba   : > { %4821 = vst.msk [vmem:[#allocation3 + $0xe0] sm:$0xf] %vm14439_vm0, %v4754_v10 }
 0x5bb   : > { %4816 = vst.msk [vmem:[#allocation3 + $0xb8] sm:$0xf] %vm14459_vm11, %v4744_v34  ;;  %vm14464_vm11 = vmmov %vm14439_vm0  ;;  %v5087_v34 = vld [vmem:[#allocation2 + $0x57] sm:$0xff] }
 0x5be   : > { %5213 = vrot.lane.b32.xlu1 %v5147_v5, %s9664_s15  ;;  %5217 = vrot.lane.b32.xlu0 %v5149_v57, %s9664_s15  ;;  %v5123_v5 = vpack.c.bf16 %v5091_v3, %v5091_v3  ;;  %v5119_v57 = vpack.c.bf16 %v5087_v34, %v5087_v34  ;;  %v5095_v34 = vld [vmem:[#allocation2 + $0x97] sm:$0xff] }
 0x5bf   : > { %5209 = vrot.lane.b32.xlu2 %v5145_v52, %s9664_s15  ;;  %v5153_v52 = vsel %vm14468_vm7, %v5121_v26, 0  ;;  %vm14475_vm7 = vnez %v14064_v27 }
 0x5c0   : > { %v4746_v45 = vpop.permute.xlu1 %4745  ;;  %v4750_v30 = vpop.permute.xlu0 %4749  ;;  %v5155_v44 = vsel %vm14469_vm5, %v5123_v5, 0  ;;  %v5151_v6 = vsel %vm14470_vm6, %v5119_v57, 0  ;;  %v5127_v57 = vpack.c.bf16 %v5095_v34, %v5095_v34  ;;  %vm14474_vm5 = vnez %v14116_v16 }
 0x5c1   : > { %4817 = vst.msk [vmem:[#allocation3 + $0xc0] sm:$0xf] %vm14463_vm2, %v4746_v45  ;;  %v4760_v49 = vpop.permute.xlu2 %4759  ;;  %vm14465_vm2 = vmmov %vm14439_vm0  ;;  %v5094_v45 = vld [vmem:[#allocation2 + $0x8f] sm:$0xff] }
 0x5c2   : > { %4824 = vst.msk [vmem:[#allocation3 + $0xf8] sm:$0xf] %vm14439_vm0, %v4760_v49  ;;  %vm14466_vm0 = vcmask 388416  }
 0x5c3   : > { %4819 = vst.msk [vmem:[#allocation3 + $0xd0] sm:$0xf] %vm14464_vm11, %v4750_v30  ;;  %vm14467_vm11 = vmmov %vm14465_vm2  ;;  %v5090_v30 = vld [vmem:[#allocation2 + $0x6f] sm:$0xff] }
 0x5c6   : > { %5219 = vrot.lane.b32.xlu1 %v5150_v61, %s9664_s15  ;;  %5223 = vrot.lane.b32.xlu0 %v5152_v53, %s9664_s15  ;;  %v5126_v61 = vpack.c.bf16 %v5094_v45, %v5094_v45  ;;  %v5122_v53 = vpack.c.bf16 %v5090_v30, %v5090_v30  ;;  %v5098_v30 = vld [vmem:[#allocation2 + $0xaf] sm:$0xff] }
 0x5c7   : > { %5215 = vrot.lane.b32.xlu2 %v5148_v2, %s9664_s15  ;;  %v5156_v2 = vsel %vm9871_vm8, %v5124_v41, 0 }
 0x5c8   : > { %v4752_v10 = vpop.permute.xlu1 %4751  ;;  %v4756_v24 = vpop.permute.xlu0 %4755  ;;  %v5158_v7 = vsel %vm9871_vm8, %v5126_v61, 0  ;;  %v5154_v3 = vsel %vm9871_vm8, %v5122_v53, 0  ;;  %v5130_v53 = vpack.c.bf16 %v5098_v30, %v5098_v30 }
 0x5c9   : > { %4820 = vst.msk [vmem:[#allocation3 + $0xd8] sm:$0xf] %vm14465_vm2, %v4752_v10  ;;  %v4958_v38 = vpop.permute.xlu2 %4957  ;;  %v5097_v10 = vld [vmem:[#allocation2 + $0xa7] sm:$0xff] }
 0x5ca   : > { %5051 = vst.msk [vmem:[#allocation3 + $0x10] sm:$0xf] %vm14466_vm0, %v4958_v38 }
 0x5cb   : > { %4822 = vst.msk [vmem:[#allocation3 + $0xe8] sm:$0xf] %vm14467_vm11, %v4756_v24  ;;  %vm14471_vm11 = vmmov %vm14466_vm0  ;;  %v5093_v24 = vld [vmem:[#allocation2 + $0x87] sm:$0xff] }
 0x5ce   : > { %5225 = vrot.lane.b32.xlu1 %v5153_v52, %s9664_s15  ;;  %5229 = vrot.lane.b32.xlu0 %v5155_v44, %s9664_s15  ;;  %v5129_v52 = vpack.c.bf16 %v5097_v10, %v5097_v10  ;;  %v5125_v44 = vpack.c.bf16 %v5093_v24, %v5093_v24  ;;  %v5101_v24 = vld [vmem:[#allocation2 + $0xc7] sm:$0xff] }
 0x5cf   : > { %5221 = vrot.lane.b32.xlu2 %v5151_v6, %s9664_s15  ;;  %v5159_v6 = vsel %vm14291_vm1, %v5127_v57, 0  ;;  %vm14481_vm1 = vnez %v14376_v29 }
 0x5d0   : > { %v4758_v49 = vpop.permute.xlu1 %4757  ;;  %v4954_v59 = vpop.permute.xlu0 %4953  ;;  %v5161_v21 = vsel %vm14474_vm5, %v5129_v52, 0  ;;  %v5157_v45 = vsel %vm14475_vm7, %v5125_v44, 0  ;;  %v5133_v44 = vpack.c.bf16 %v5101_v24, %v5101_v24  ;;  %vm14480_vm5 = vnez %v14378_v19 }
 0x5d1   : > { %4823 = vst.msk [vmem:[#allocation3 + $0xf0] sm:$0xf] %vm14465_vm2, %v4758_v49  ;;  %v4964_v8 = vpop.permute.xlu2 %4963  ;;  %vm14472_vm2 = vmmov %vm14466_vm0  ;;  %v5100_v49 = vld [vmem:[#allocation2 + $0xbf] sm:$0xff]  ;;  %vm14482_vm7 = vnez %v14381_v47 }
 0x5d2   : > { %5054 = vst.msk [vmem:[#allocation3 + $0x28] sm:$0xf] %vm14466_vm0, %v4964_v8 }
 0x5d3   : > { %5049 = vst.msk [vmem:[#allocation3] sm:$0xf] %vm14471_vm11, %v4954_v59  ;;  %vm14473_vm11 = vmmov %vm14466_vm0  ;;  %v5096_v59 = vld [vmem:[#allocation2 + $0x9f] sm:$0xff] }
 0x5d6   : > { %5231 = vrot.lane.b32.xlu1 %v5156_v2, %s9664_s15  ;;  %5235 = vrot.lane.b32.xlu0 %v5158_v7, %s9664_s15  ;;  %v5132_v2 = vpack.c.bf16 %v5100_v49, %v5100_v49  ;;  %v5128_v7 = vpack.c.bf16 %v5096_v59, %v5096_v59  ;;  %v5104_v59 = vld [vmem:[#allocation2 + $0xdf] sm:$0xff] }
 0x5d7   : > { %5227 = vrot.lane.b32.xlu2 %v5154_v3, %s9664_s15  ;;  %v5162_v3 = vsel %vm9871_vm8, %v5130_v53, 0 }
 0x5d8   : > { %v4956_v38 = vpop.permute.xlu1 %4955  ;;  %v4960_v26 = vpop.permute.xlu0 %4959  ;;  %v5164_v34 = vsel %vm9871_vm8, %v5132_v2, 0  ;;  %v5160_v10 = vsel %vm9871_vm8, %v5128_v7, 0  ;;  %v5136_v7 = vpack.c.bf16 %v5104_v59, %v5104_v59 }
 0x5d9   : > { %5050 = vst.msk [vmem:[#allocation3 + $0x8] sm:$0xf] %vm14472_vm2, %v4956_v38  ;;  %v4970_v5 = vpop.permute.xlu2 %4969  ;;  %vm14476_vm2 = vmmov %vm14466_vm0  ;;  %v5103_v38 = vld [vmem:[#allocation2 + $0xd7] sm:$0xff] }
 0x5da   : > { %5057 = vst.msk [vmem:[#allocation3 + $0x40] sm:$0xf] %vm14466_vm0, %v4970_v5 }
 0x5db   : > { %5052 = vst.msk [vmem:[#allocation3 + $0x18] sm:$0xf] %vm14473_vm11, %v4960_v26  ;;  %vm14477_vm11 = vmmov %vm14466_vm0  ;;  %v5099_v26 = vld [vmem:[#allocation2 + $0xb7] sm:$0xff] }
 0x5de   : > { %5237 = vrot.lane.b32.xlu1 %v5159_v6, %s9664_s15  ;;  %5241 = vrot.lane.b32.xlu0 %v5161_v21, %s9664_s15  ;;  %v5135_v6 = vpack.c.bf16 %v5103_v38, %v5103_v38  ;;  %v5131_v21 = vpack.c.bf16 %v5099_v26, %v5099_v26  ;;  %v5107_v26 = vld [vmem:[#allocation2 + $0xf7] sm:$0xff] }
 0x5df   : > { %5233 = vrot.lane.b32.xlu2 %v5157_v45, %s9664_s15  ;;  %v5165_v45 = vsel %vm14480_vm5, %v5133_v44, 0  ;;  %vm14522_vm5 = vnez %v14196_v54 }
 0x5e0   : > { %v4962_v8 = vpop.permute.xlu1 %4961  ;;  %v4966_v41 = vpop.permute.xlu0 %4965  ;;  %v5167_v30 = vsel %vm14481_vm1, %v5135_v6, 0  ;;  %v5163_v49 = vsel %vm14482_vm7, %v5131_v21, 0  ;;  %v5139_v21 = vpack.c.bf16 %v5107_v26, %v5107_v26  ;;  %vm14487_vm1 = vnez %v14397_v37 }
 0x5e1   : > { %5053 = vst.msk [vmem:[#allocation3 + $0x20] sm:$0xf] %vm14476_vm2, %v4962_v8  ;;  %v4976_v61 = vpop.permute.xlu2 %4975  ;;  %vm14478_vm2 = vmmov %vm14466_vm0  ;;  %v5106_v8 = vld [vmem:[#allocation2 + $0xef] sm:$0xff]  ;;  %vm14526_vm7 = vnez %v14203_v14 }
 0x5e2   : > { %5060 = vst.msk [vmem:[#allocation3 + $0x58] sm:$0xf] %vm14466_vm0, %v4976_v61  ;;  %v5171_v59 = vsel %vm14395_vm12, %v5139_v21, 0  ;;  %v5337_v21 = vld [vmem:[#allocation2 + $0x28] sm:$0xff]  ;;  %vm14520_vm12 = vnez %v14198_v42 }
 0x5e3   : > { %5055 = vst.msk [vmem:[#allocation3 + $0x30] sm:$0xf] %vm14477_vm11, %v4966_v41  ;;  %vm14479_vm11 = vmmov %vm14466_vm0  ;;  %v5102_v41 = vld [vmem:[#allocation2 + $0xcf] sm:$0xff] }
 0x5e6   : > { %5243 = vrot.lane.b32.xlu1 %v5162_v3, %s9664_s15  ;;  %5247 = vrot.lane.b32.xlu0 %v5164_v34, %s9664_s15  ;;  %v5138_v3 = vpack.c.bf16 %v5106_v8, %v5106_v8  ;;  %v5134_v34 = vpack.c.bf16 %v5102_v41, %v5102_v41 }
 0x5e7   : > { %5239 = vrot.lane.b32.xlu2 %v5160_v10, %s9664_s15  ;;  %v5168_v10 = vsel %vm9871_vm8, %v5136_v7, 0 }
 0x5e8   : > { %v4968_v5 = vpop.permute.xlu1 %4967  ;;  %v4972_v57 = vpop.permute.xlu0 %4971  ;;  %v5170_v24 = vsel %vm9871_vm8, %v5138_v3, 0  ;;  %v5166_v38 = vsel %vm9871_vm8, %v5134_v34, 0 }
 0x5e9   : > { %5056 = vst.msk [vmem:[#allocation3 + $0x38] sm:$0xf] %vm14478_vm2, %v4968_v5  ;;  %v4982_v52 = vpop.permute.xlu2 %4981  ;;  %vm14483_vm2 = vmmov %vm14466_vm0  ;;  %v5109_v5 = vld [vmem:[#allocation2 + $0x107] sm:$0xff] }
 0x5ea   : > { %5063 = vst.msk [vmem:[#allocation3 + $0x70] sm:$0xf] %vm14466_vm0, %v4982_v52 }
 0x5eb   : > { %5058 = vst.msk [vmem:[#allocation3 + $0x48] sm:$0xf] %vm14479_vm11, %v4972_v57  ;;  %vm14484_vm11 = vmmov %vm14466_vm0  ;;  %v5105_v57 = vld [vmem:[#allocation2 + $0xe7] sm:$0xff] }
 0x5ee   : > { %5249 = vrot.lane.b32.xlu1 %v5165_v45, %s9664_s15  ;;  %5253 = vrot.lane.b32.xlu0 %v5167_v30, %s9664_s15  ;;  %v5141_v45 = vpack.c.bf16 %v5109_v5, %v5109_v5  ;;  %v5137_v30 = vpack.c.bf16 %v5105_v57, %v5105_v57  ;;  %v5111_v57 = vld [vmem:[#allocation2 + $0x117] sm:$0xff] }
 0x5ef   : > { %5245 = vrot.lane.b32.xlu2 %v5163_v49, %s9664_s15  ;;  %v5112_v49 = vld [vmem:[#allocation2 + $0x11f] sm:$0xff] }
 0x5f0   : > { %v4974_v61 = vpop.permute.xlu1 %4973  ;;  %v4978_v53 = vpop.permute.xlu0 %4977  ;;  %v5173_v8 = vsel %vm14392_vm10, %v5141_v45, 0  ;;  %v5169_v41 = vsel %vm14487_vm1, %v5137_v30, 0  ;;  %v5339_v45 = vld [vmem:[#allocation2 + $0x38] sm:$0xff]  ;;  %v5143_v30 = vpack.c.bf16 %v5111_v57, %v5111_v57  ;;  %vm14514_vm10 = vnez %v14039_v11 }
 0x5f1   : > { %5059 = vst.msk [vmem:[#allocation3 + $0x50] sm:$0xf] %vm14483_vm2, %v4974_v61  ;;  %v4988_v2 = vpop.permute.xlu2 %4987  ;;  %vm14485_vm2 = vmmov %vm14466_vm0  ;;  %v5110_v61 = vld [vmem:[#allocation2 + $0x10f] sm:$0xff]  ;;  %v5343_v57 = vld [vmem:[#allocation2 + $0x58] sm:$0xff]  ;;  %vm14521_vm1 = vnez %v14200_v28 }
 0x5f2   : > { %5066 = vst.msk [vmem:[#allocation3 + $0x88] sm:$0xf] %vm14466_vm0, %v4988_v2  ;;  %v5144_v2 = vpack.c.bf16 %v5112_v49, %v5112_v49  ;;  %v5369_v49 = vpack.c.bf16 %v5337_v21, %v5337_v21 }
 0x5f3   : > { %5061 = vst.msk [vmem:[#allocation3 + $0x60] sm:$0xf] %vm14484_vm11, %v4978_v53  ;;  %vm14486_vm11 = vmmov %vm14466_vm0  ;;  %v5108_v53 = vld [vmem:[#allocation2 + $0xff] sm:$0xff] }
 0x5f6   : > { %5255 = vrot.lane.b32.xlu1 %v5168_v10, %s9664_s15  ;;  %5259 = vrot.lane.b32.xlu0 %v5170_v24, %s9664_s15  ;;  %v5142_v10 = vpack.c.bf16 %v5110_v61, %v5110_v61  ;;  %v5140_v24 = vpack.c.bf16 %v5108_v53, %v5108_v53 }
 0x5f7   : > { %5251 = vrot.lane.b32.xlu2 %v5166_v38, %s9664_s15  ;;  %v5176_v38 = vsel %vm9871_vm8, %v5144_v2, 0  ;;  %v5340_v2 = vld [vmem:[#allocation2 + $0x40] sm:$0xff] }
 0x5f8   : > { %v4980_v52 = vpop.permute.xlu1 %4979  ;;  %v4984_v44 = vpop.permute.xlu0 %4983  ;;  %v5174_v26 = vsel %vm9871_vm8, %v5142_v10, 0  ;;  %v5172_v5 = vsel %vm9871_vm8, %v5140_v24, 0 }
 0x5f9   : > { %5062 = vst.msk [vmem:[#allocation3 + $0x68] sm:$0xf] %vm14485_vm2, %v4980_v52  ;;  %v4994_v6 = vpop.permute.xlu2 %4993  ;;  %vm14488_vm2 = vmmov %vm14466_vm0 }
 0x5fa   : > { %5069 = vst.msk [vmem:[#allocation3 + $0xa0] sm:$0xf] %vm14466_vm0, %v4994_v6 }
 0x5fb   : > { %5064 = vst.msk [vmem:[#allocation3 + $0x78] sm:$0xf] %vm14486_vm11, %v4984_v44  ;;  %vm14489_vm11 = vmmov %vm14466_vm0 }
 0x5fe   : > { %5261 = vrot.lane.b32.xlu1 %v5171_v59, %s9664_s15  ;;  %5265 = vrot.lane.b32.xlu0 %v5173_v8, %s9664_s15  ;;  %v5371_v59 = vpack.c.bf16 %v5339_v45, %v5339_v45  ;;  %v5175_v8 = vsel %vm14405_vm13, %v5143_v30, 0  ;;  %vm14513_vm13 = vnez %v14033_v43 }
 0x5ff   : > { %5257 = vrot.lane.b32.xlu2 %v5169_v41, %s9664_s15 }
 0x600   : > { %v4986_v7 = vpop.permute.xlu1 %4985  ;;  %v4990_v3 = vpop.permute.xlu0 %4989 }
 0x601   : > { %5065 = vst.msk [vmem:[#allocation3 + $0x80] sm:$0xf] %vm14488_vm2, %v4986_v7  ;;  %v5000_v34 = vpop.permute.xlu2 %4999  ;;  %vm14490_vm2 = vmmov %vm14466_vm0  ;;  %v5342_v7 = vld [vmem:[#allocation2 + $0x50] sm:$0xff] }
 0x602   : > { %5072 = vst.msk [vmem:[#allocation3 + $0xb8] sm:$0xf] %vm14466_vm0, %v5000_v34  ;;  %v5372_v34 = vpack.c.bf16 %v5340_v2, %v5340_v2  ;;  %v5374_v10 = vpack.c.bf16 %v5342_v7, %v5342_v7 }
 0x603   : > { %5067 = vst.msk [vmem:[#allocation3 + $0x90] sm:$0xf] %vm14489_vm11, %v4990_v3  ;;  %vm14491_vm11 = vmmov %vm14466_vm0  ;;  %v5338_v3 = vld [vmem:[#allocation2 + $0x30] sm:$0xff] }
 0x604   : > { %v5370_v24 = vpack.c.bf16 %v5338_v3, %v5338_v3 }
 0x606   : > { %5267 = vrot.lane.b32.xlu1 %v5174_v26, %s9664_s15  ;;  %5271 = vrot.lane.b32.xlu0 %v5176_v38, %s9664_s15 }
 0x607   : > { %5263 = vrot.lane.b32.xlu2 %v5172_v5, %s9664_s15 }
 0x608   : > { %v4992_v52 = vpop.permute.xlu1 %4991  ;;  %v4996_v44 = vpop.permute.xlu0 %4995 }
 0x609   : > { %5068 = vst.msk [vmem:[#allocation3 + $0x98] sm:$0xf] %vm14490_vm2, %v4992_v52  ;;  %v5006_v6 = vpop.permute.xlu2 %5005  ;;  %vm14492_vm2 = vmmov %vm14466_vm0  ;;  %v5345_v52 = vld [vmem:[#allocation2 + $0x68] sm:$0xff] }
 0x60a   : > { %5075 = vst.msk [vmem:[#allocation3 + $0xd0] sm:$0xf] %vm14466_vm0, %v5006_v6  ;;  %v5375_v6 = vpack.c.bf16 %v5343_v57, %v5343_v57  ;;  %v5377_v21 = vpack.c.bf16 %v5345_v52, %v5345_v52 }
 0x60b   : > { %5070 = vst.msk [vmem:[#allocation3 + $0xa8] sm:$0xf] %vm14491_vm11, %v4996_v44  ;;  %vm14493_vm11 = vmmov %vm14466_vm0  ;;  %v5341_v44 = vld [vmem:[#allocation2 + $0x48] sm:$0xff] }
 0x60c   : > { %v5373_v45 = vpack.c.bf16 %v5341_v44, %v5341_v44 }
 0x60e   : > { %5433 = vrot.lane.b32.xlu1 %v5369_v49, %s9665_s16  ;;  %5437 = vrot.lane.b32.xlu0 %v5371_v59, %s9665_s16 }
 0x60f   : > { %5269 = vrot.lane.b32.xlu2 %v5175_v8, %s9664_s15  ;;  %v5346_v8 = vld [vmem:[#allocation2 + $0x70] sm:$0xff] }
 0x610   : > { %v4998_v41 = vpop.permute.xlu1 %4997  ;;  %v5002_v61 = vpop.permute.xlu0 %5001 }
 0x611   : > { %5071 = vst.msk [vmem:[#allocation3 + $0xb0] sm:$0xf] %vm14492_vm2, %v4998_v41  ;;  %v5012_v53 = vpop.permute.xlu2 %5011  ;;  %vm14494_vm2 = vmmov %vm14466_vm0  ;;  %v5348_v41 = vld [vmem:[#allocation2 + $0x80] sm:$0xff] }
 0x612   : > { %5078 = vst.msk [vmem:[#allocation3 + $0xe8] sm:$0xf] %vm14466_vm0, %v5012_v53  ;;  %vm14495_vm0 = vcmask 454016   ;;  %v5378_v53 = vpack.c.bf16 %v5346_v8, %v5346_v8  ;;  %v5380_v2 = vpack.c.bf16 %v5348_v41, %v5348_v41 }
 0x613   : > { %5073 = vst.msk [vmem:[#allocation3 + $0xc0] sm:$0xf] %vm14493_vm11, %v5002_v61  ;;  %vm14496_vm11 = vmmov %vm14494_vm2  ;;  %v5344_v61 = vld [vmem:[#allocation2 + $0x60] sm:$0xff] }
 0x614   : > { %v5376_v7 = vpack.c.bf16 %v5344_v61, %v5344_v61 }
 0x616   : > { %5439 = vrot.lane.b32.xlu1 %v5372_v34, %s9665_s16  ;;  %5443 = vrot.lane.b32.xlu0 %v5374_v10, %s9665_s16 }
 0x617   : > { %5435 = vrot.lane.b32.xlu2 %v5370_v24, %s9665_s16  ;;  %v5349_v24 = vld [vmem:[#allocation2 + $0x88] sm:$0xff] }
 0x618   : > { %v5004_v38 = vpop.permute.xlu1 %5003  ;;  %v5008_v26 = vpop.permute.xlu0 %5007 }
 0x619   : > { %5074 = vst.msk [vmem:[#allocation3 + $0xc8] sm:$0xf] %vm14494_vm2, %v5004_v38  ;;  %v5210_v5 = vpop.permute.xlu2 %5209  ;;  %v5351_v38 = vld [vmem:[#allocation2 + $0x98] sm:$0xff] }
 0x61a   : > { %5305 = vst.msk [vmem:[#allocation3] sm:$0xf] %vm14495_vm0, %v5210_v5  ;;  %v5381_v5 = vpack.c.bf16 %v5349_v24, %v5349_v24  ;;  %v5383_v57 = vpack.c.bf16 %v5351_v38, %v5351_v38 }
 0x61b   : > { %5076 = vst.msk [vmem:[#allocation3 + $0xd8] sm:$0xf] %vm14496_vm11, %v5008_v26  ;;  %vm14497_vm11 = vmmov %vm14494_vm2  ;;  %v5347_v26 = vld [vmem:[#allocation2 + $0x78] sm:$0xff] }
 0x61c   : > { %v5379_v52 = vpack.c.bf16 %v5347_v26, %v5347_v26 }
 0x61e   : > { %5445 = vrot.lane.b32.xlu1 %v5375_v6, %s9665_s16  ;;  %5449 = vrot.lane.b32.xlu0 %v5377_v21, %s9665_s16 }
 0x61f   : > { %5441 = vrot.lane.b32.xlu2 %v5373_v45, %s9665_s16  ;;  %v5352_v45 = vld [vmem:[#allocation2 + $0xa0] sm:$0xff] }
 0x620   : > { %v5010_v30 = vpop.permute.xlu1 %5009  ;;  %v5014_v49 = vpop.permute.xlu0 %5013 }
 0x621   : > { %5077 = vst.msk [vmem:[#allocation3 + $0xe0] sm:$0xf] %vm14494_vm2, %v5010_v30  ;;  %v5216_v59 = vpop.permute.xlu2 %5215  ;;  %v5354_v30 = vld [vmem:[#allocation2 + $0xb0] sm:$0xff] }
 0x622   : > { %5308 = vst.msk [vmem:[#allocation3 + $0x18] sm:$0xf] %vm14495_vm0, %v5216_v59  ;;  %v5384_v59 = vpack.c.bf16 %v5352_v45, %v5352_v45  ;;  %v5386_v8 = vpack.c.bf16 %v5354_v30, %v5354_v30 }
 0x623   : > { %5079 = vst.msk [vmem:[#allocation3 + $0xf0] sm:$0xf] %vm14497_vm11, %v5014_v49  ;;  %vm14498_vm11 = vmmov %vm14495_vm0  ;;  %v5350_v49 = vld [vmem:[#allocation2 + $0x90] sm:$0xff] }
 0x624   : > { %v5382_v41 = vpack.c.bf16 %v5350_v49, %v5350_v49 }
 0x626   : > { %5451 = vrot.lane.b32.xlu1 %v5378_v53, %s9665_s16  ;;  %5455 = vrot.lane.b32.xlu0 %v5380_v2, %s9665_s16 }
 0x627   : > { %5447 = vrot.lane.b32.xlu2 %v5376_v7, %s9665_s16  ;;  %v5355_v7 = vld [vmem:[#allocation2 + $0xb8] sm:$0xff] }
 0x628   : > { %v5016_v3 = vpop.permute.xlu1 %5015  ;;  %v5212_v34 = vpop.permute.xlu0 %5211 }
 0x629   : > { %5080 = vst.msk [vmem:[#allocation3 + $0xf8] sm:$0xf] %vm14494_vm2, %v5016_v3  ;;  %v5222_v10 = vpop.permute.xlu2 %5221  ;;  %vm14499_vm2 = vmmov %vm14495_vm0  ;;  %v5357_v3 = vld [vmem:[#allocation2 + $0xc8] sm:$0xff] }
 0x62a   : > { %5311 = vst.msk [vmem:[#allocation3 + $0x30] sm:$0xf] %vm14495_vm0, %v5222_v10  ;;  %v5387_v10 = vpack.c.bf16 %v5355_v7, %v5355_v7  ;;  %v5389_v24 = vpack.c.bf16 %v5357_v3, %v5357_v3 }
 0x62b   : > { %5306 = vst.msk [vmem:[#allocation3 + $0x8] sm:$0xf] %vm14498_vm11, %v5212_v34  ;;  %vm14500_vm11 = vmmov %vm14495_vm0  ;;  %v5353_v34 = vld [vmem:[#allocation2 + $0xa8] sm:$0xff] }
 0x62c   : > { %v5385_v38 = vpack.c.bf16 %v5353_v34, %v5353_v34 }
 0x62e   : > { %5457 = vrot.lane.b32.xlu1 %v5381_v5, %s9665_s16  ;;  %5461 = vrot.lane.b32.xlu0 %v5383_v57, %s9665_s16 }
 0x62f   : > { %5453 = vrot.lane.b32.xlu2 %v5379_v52, %s9665_s16  ;;  %v5358_v52 = vld [vmem:[#allocation2 + $0xd0] sm:$0xff] }
 0x630   : > { %v5214_v44 = vpop.permute.xlu1 %5213  ;;  %v5218_v6 = vpop.permute.xlu0 %5217 }
 0x631   : > { %5307 = vst.msk [vmem:[#allocation3 + $0x10] sm:$0xf] %vm14499_vm2, %v5214_v44  ;;  %v5228_v21 = vpop.permute.xlu2 %5227  ;;  %vm14501_vm2 = vmmov %vm14495_vm0  ;;  %v5360_v44 = vld [vmem:[#allocation2 + $0xe0] sm:$0xff] }
 0x632   : > { %5314 = vst.msk [vmem:[#allocation3 + $0x48] sm:$0xf] %vm14495_vm0, %v5228_v21  ;;  %v5390_v21 = vpack.c.bf16 %v5358_v52, %v5358_v52  ;;  %v5392_v45 = vpack.c.bf16 %v5360_v44, %v5360_v44 }
 0x633   : > { %5309 = vst.msk [vmem:[#allocation3 + $0x20] sm:$0xf] %vm14500_vm11, %v5218_v6  ;;  %vm14502_vm11 = vmmov %vm14495_vm0  ;;  %v5356_v6 = vld [vmem:[#allocation2 + $0xc0] sm:$0xff] }
 0x634   : > { %v5388_v30 = vpack.c.bf16 %v5356_v6, %v5356_v6  ;;  %v5561_v6 = vld [vmem:[#allocation2 + $0x29] sm:$0xff] }
 0x636   : > { %5463 = vrot.lane.b32.xlu1 %v5384_v59, %s9665_s16  ;;  %5467 = vrot.lane.b32.xlu0 %v5386_v8, %s9665_s16 }
 0x637   : > { %5459 = vrot.lane.b32.xlu2 %v5382_v41, %s9665_s16  ;;  %v5361_v41 = vld [vmem:[#allocation2 + $0xe8] sm:$0xff] }
 0x638   : > { %v5220_v61 = vpop.permute.xlu1 %5219  ;;  %v5224_v53 = vpop.permute.xlu0 %5223 }
 0x639   : > { %5310 = vst.msk [vmem:[#allocation3 + $0x28] sm:$0xf] %vm14501_vm2, %v5220_v61  ;;  %v5234_v2 = vpop.permute.xlu2 %5233  ;;  %vm14503_vm2 = vmmov %vm14495_vm0  ;;  %v5363_v61 = vld [vmem:[#allocation2 + $0xf8] sm:$0xff] }
 0x63a   : > { %5317 = vst.msk [vmem:[#allocation3 + $0x60] sm:$0xf] %vm14495_vm0, %v5234_v2  ;;  %v5393_v2 = vpack.c.bf16 %v5361_v41, %v5361_v41  ;;  %v5395_v7 = vpack.c.bf16 %v5363_v61, %v5363_v61  ;;  %v5365_v41 = vld [vmem:[#allocation2 + $0x108] sm:$0xff] }
 0x63b   : > { %5312 = vst.msk [vmem:[#allocation3 + $0x38] sm:$0xf] %vm14502_vm11, %v5224_v53  ;;  %vm14504_vm11 = vmmov %vm14495_vm0  ;;  %v5359_v53 = vld [vmem:[#allocation2 + $0xd8] sm:$0xff]  ;;  %v5397_v61 = vpack.c.bf16 %v5365_v41, %v5365_v41 }
 0x63c   : > { %v5391_v3 = vpack.c.bf16 %v5359_v53, %v5359_v53 }
 0x63e   : > { %5469 = vrot.lane.b32.xlu1 %v5387_v10, %s9665_s16  ;;  %5473 = vrot.lane.b32.xlu0 %v5389_v24, %s9665_s16 }
 0x63f   : > { %5465 = vrot.lane.b32.xlu2 %v5385_v38, %s9665_s16  ;;  %v5364_v38 = vld [vmem:[#allocation2 + $0x100] sm:$0xff] }
 0x640   : > { %v5226_v26 = vpop.permute.xlu1 %5225  ;;  %v5230_v5 = vpop.permute.xlu0 %5229 }
 0x641   : > { %5313 = vst.msk [vmem:[#allocation3 + $0x40] sm:$0xf] %vm14503_vm2, %v5226_v26  ;;  %v5240_v57 = vpop.permute.xlu2 %5239  ;;  %vm14505_vm2 = vmmov %vm14495_vm0  ;;  %v5366_v26 = vld [vmem:[#allocation2 + $0x110] sm:$0xff] }
 0x642   : > { %5320 = vst.msk [vmem:[#allocation3 + $0x78] sm:$0xf] %vm14495_vm0, %v5240_v57  ;;  %v5396_v57 = vpack.c.bf16 %v5364_v38, %v5364_v38  ;;  %v5398_v52 = vpack.c.bf16 %v5366_v26, %v5366_v26 }
 0x643   : > { %5315 = vst.msk [vmem:[#allocation3 + $0x50] sm:$0xf] %vm14504_vm11, %v5230_v5  ;;  %vm14506_vm11 = vmmov %vm14495_vm0  ;;  %v5362_v5 = vld [vmem:[#allocation2 + $0xf0] sm:$0xff] }
 0x644   : > { %v5394_v44 = vpack.c.bf16 %v5362_v5, %v5362_v5  ;;  %v5628_v5 = vsel %vm14514_vm10, %v11822_v35, 0 }
 0x646   : > { %5475 = vrot.lane.b32.xlu1 %v5390_v21, %s9665_s16  ;;  %5479 = vrot.lane.b32.xlu0 %v5392_v45, %s9665_s16  ;;  %v5367_v21 = vld [vmem:[#allocation2 + $0x118] sm:$0xff] }
 0x647   : > { %5471 = vrot.lane.b32.xlu2 %v5388_v30, %s9665_s16 }
 0x648   : > { %v5232_v49 = vpop.permute.xlu1 %5231  ;;  %v5236_v59 = vpop.permute.xlu0 %5235 }
 0x649   : > { %5316 = vst.msk [vmem:[#allocation3 + $0x58] sm:$0xf] %vm14505_vm2, %v5232_v49  ;;  %v5246_v8 = vpop.permute.xlu2 %5245  ;;  %vm14507_vm2 = vmmov %vm14495_vm0 }
 0x64a   : > { %5323 = vst.msk [vmem:[#allocation3 + $0x90] sm:$0xf] %vm14495_vm0, %v5246_v8  ;;  %v5399_v8 = vpack.c.bf16 %v5367_v21, %v5367_v21 }
 0x64b   : > { %5318 = vst.msk [vmem:[#allocation3 + $0x68] sm:$0xf] %vm14506_vm11, %v5236_v59  ;;  %vm14508_vm11 = vmmov %vm14495_vm0  ;;  %v5593_v59 = vpack.c.bf16 %v5561_v6, %v5561_v6 }
 0x64d   : > { %v5625_v53 = vsel %vm9871_vm8, %v5593_v59, 0  ;;  %v5568_v59 = vld [vmem:[#allocation2 + $0x61] sm:$0xff] }
 0x64e   : > { %5481 = vrot.lane.b32.xlu1 %v5393_v2, %s9665_s16  ;;  %5485 = vrot.lane.b32.xlu0 %v5395_v7, %s9665_s16  ;;  %v5562_v2 = vld [vmem:[#allocation2 + $0x31] sm:$0xff] }
 0x64f   : > { %5477 = vrot.lane.b32.xlu2 %v5391_v3, %s9665_s16 }
 0x650   : > { %v5238_v34 = vpop.permute.xlu1 %5237  ;;  %v5242_v10 = vpop.permute.xlu0 %5241 }
 0x651   : > { %5319 = vst.msk [vmem:[#allocation3 + $0x70] sm:$0xf] %vm14507_vm2, %v5238_v34  ;;  %v5252_v24 = vpop.permute.xlu2 %5251  ;;  %vm14509_vm2 = vmmov %vm14495_vm0  ;;  %v5368_v34 = vld [vmem:[#allocation2 + $0x120] sm:$0xff] }
 0x652   : > { %5326 = vst.msk [vmem:[#allocation3 + $0xa8] sm:$0xf] %vm14495_vm0, %v5252_v24  ;;  %v5594_v24 = vpack.c.bf16 %v5562_v2, %v5562_v2  ;;  %v5400_v38 = vpack.c.bf16 %v5368_v34, %v5368_v34  ;;  %v5600_v2 = vpack.c.bf16 %v5568_v59, %v5568_v59 }
 0x653   : > { %5321 = vst.msk [vmem:[#allocation3 + $0x80] sm:$0xf] %vm14508_vm11, %v5242_v10  ;;  %vm14510_vm11 = vmmov %vm14495_vm0 }
 0x654   : > { %v5626_v26 = vsel %vm14513_vm13, %v5594_v24, 0  ;;  %v5569_v24 = vld [vmem:[#allocation2 + $0x69] sm:$0xff] }
 0x656   : > { %5487 = vrot.lane.b32.xlu1 %v5396_v57, %s9665_s16  ;;  %5491 = vrot.lane.b32.xlu0 %v5398_v52, %s9665_s16  ;;  %v5565_v57 = vld [vmem:[#allocation2 + $0x49] sm:$0xff]  ;;  %v5563_v52 = vld [vmem:[#allocation2 + $0x39] sm:$0xff] }
 0x657   : > { %5483 = vrot.lane.b32.xlu2 %v5394_v44, %s9665_s16 }
 0x658   : > { %v5244_v45 = vpop.permute.xlu1 %5243  ;;  %v5248_v30 = vpop.permute.xlu0 %5247 }
 0x659   : > { %5322 = vst.msk [vmem:[#allocation3 + $0x88] sm:$0xf] %vm14509_vm2, %v5244_v45  ;;  %v5258_v49 = vpop.permute.xlu2 %5257  ;;  %vm14511_vm2 = vmmov %vm14495_vm0  ;;  %v5597_v45 = vpack.c.bf16 %v5565_v57, %v5565_v57 }
 0x65a   : > { %5329 = vst.msk [vmem:[#allocation3 + $0xc0] sm:$0xf] %vm14495_vm0, %v5258_v49 }
 0x65b   : > { %5324 = vst.msk [vmem:[#allocation3 + $0x98] sm:$0xf] %vm14510_vm11, %v5248_v30  ;;  %vm14512_vm11 = vmmov %vm14495_vm0  ;;  %v5595_v30 = vpack.c.bf16 %v5563_v52, %v5563_v52  ;;  %v5629_v35 = vsel %vm9871_vm8, %v5597_v45, 0 }
 0x65d   : > { %v5627_v49 = vsel %vm9871_vm8, %v5595_v30, 0 }
 0x65e   : > { %5493 = vrot.lane.b32.xlu1 %v5399_v8, %s9665_s16  ;;  %5689 = vrot.lane.b32.xlu0 %v5625_v53, %s9666_s17  ;;  %v5566_v8 = vld [vmem:[#allocation2 + $0x51] sm:$0xff] }
 0x65f   : > { %5489 = vrot.lane.b32.xlu2 %v5397_v61, %s9665_s16 }
 0x660   : > { %v5250_v7 = vpop.permute.xlu1 %5249  ;;  %v5254_v3 = vpop.permute.xlu0 %5253 }
 0x661   : > { %5325 = vst.msk [vmem:[#allocation3 + $0xa0] sm:$0xf] %vm14511_vm2, %v5250_v7  ;;  %v5264_v10 = vpop.permute.xlu2 %5263  ;;  %vm14515_vm2 = vmmov %vm14495_vm0  ;;  %v5598_v7 = vpack.c.bf16 %v5566_v8, %v5566_v8 }
 0x662   : > { %5332 = vst.msk [vmem:[#allocation3 + $0xd8] sm:$0xf] %vm14495_vm0, %v5264_v10  ;;  %v5571_v10 = vld [vmem:[#allocation2 + $0x79] sm:$0xff] }
 0x663   : > { %5327 = vst.msk [vmem:[#allocation3 + $0xb0] sm:$0xf] %vm14512_vm11, %v5254_v3  ;;  %vm14516_vm11 = vmmov %vm14495_vm0  ;;  %v5632_v3 = vsel %vm14520_vm12, %v5600_v2, 0  ;;  %v5630_v34 = vsel %vm14522_vm5, %v5598_v7, 0  ;;  %v5603_v57 = vpack.c.bf16 %v5571_v10, %v5571_v10 }
 0x665   : > { %v5635_v52 = vsel %vm9871_vm8, %v5603_v57, 0 }
 0x666   : > { %5691 = vrot.lane.b32.xlu1 %v5626_v26, %s9666_s17  ;;  %5695 = vrot.lane.b32.xlu0 %v5628_v5, %s9666_s17 }
 0x667   : > { %5495 = vrot.lane.b32.xlu2 %v5400_v38, %s9665_s16 }
 0x668   : > { %v5256_v44 = vpop.permute.xlu1 %5255  ;;  %v5260_v6 = vpop.permute.xlu0 %5259 }
 0x669   : > { %5328 = vst.msk [vmem:[#allocation3 + $0xb8] sm:$0xf] %vm14515_vm2, %v5256_v44  ;;  %v5270_v21 = vpop.permute.xlu2 %5269  ;;  %vm14517_vm2 = vmmov %vm14495_vm0 }
 0x66a   : > { %5335 = vst.msk [vmem:[#allocation3 + $0xf0] sm:$0xf] %vm14495_vm0, %v5270_v21  ;;  %vm14518_vm0 = vcmask 519616   ;;  %v5572_v21 = vld [vmem:[#allocation2 + $0x81] sm:$0xff] }
 0x66b   : > { %5330 = vst.msk [vmem:[#allocation3 + $0xc8] sm:$0xf] %vm14516_vm11, %v5260_v6  ;;  %vm14519_vm11 = vmmov %vm14517_vm2  ;;  %v5574_v6 = vld [vmem:[#allocation2 + $0x91] sm:$0xff]  ;;  %v5604_v59 = vpack.c.bf16 %v5572_v21, %v5572_v21  ;;  %v5583_v21 = vld [vmem:[#allocation2 + $0xd9] sm:$0xff] }
 0x66e   : > { %5697 = vrot.lane.b32.xlu1 %v5629_v35, %s9666_s17  ;;  %5701 = vrot.lane.b32.xlu0 %v11845_v9, %s9666_s17  ;;  %v5634_v9 = vsel %vm14521_vm1, %v11852_v58, 0  ;;  %v5601_v58 = vpack.c.bf16 %v5569_v24, %v5569_v24  ;;  %v5580_v24 = vld [vmem:[#allocation2 + $0xc1] sm:$0xff] }
 0x66f   : > { %5693 = vrot.lane.b32.xlu2 %v5627_v49, %s9666_s17  ;;  %v5606_v49 = vpack.c.bf16 %v5574_v6, %v5574_v6 }
 0x670   : > { %v5262_v41 = vpop.permute.xlu1 %5261  ;;  %v5266_v61 = vpop.permute.xlu0 %5265  ;;  %v5633_v44 = vsel %vm9871_vm8, %v5601_v58, 0  ;;  %v5612_v58 = vpack.c.bf16 %v5580_v24, %v5580_v24  ;;  %v5587_v24 = vld [vmem:[#allocation2 + $0xf9] sm:$0xff] }
 0x671   : > { %5331 = vst.msk [vmem:[#allocation3 + $0xd0] sm:$0xf] %vm14517_vm2, %v5262_v41  ;;  %v5436_v53 = vpop.permute.xlu2 %5435  ;;  %v5638_v8 = vsel %vm14441_vm15, %v5606_v49, 0  ;;  %v5636_v41 = vsel %vm14526_vm7, %v5604_v59, 0  ;;  %vm14532_vm15 = vnez %v14209_v50  ;;  %v5615_v59 = vpack.c.bf16 %v5583_v21, %v5583_v21  ;;  %v5590_v21 = vld [vmem:[#allocation2 + $0x111] sm:$0xff] }
 0x672   : > { %5530 = vst.msk [vmem:[#allocation3 + $0x8] sm:$0xf] %vm14518_vm0, %v5436_v53  ;;  %v5575_v53 = vld [vmem:[#allocation2 + $0x99] sm:$0xff] }
 0x673   : > { %5333 = vst.msk [vmem:[#allocation3 + $0xe0] sm:$0xf] %vm14519_vm11, %v5266_v61  ;;  %vm14523_vm11 = vmmov %vm14517_vm2  ;;  %v5577_v61 = vld [vmem:[#allocation2 + $0xa9] sm:$0xff] }
 0x676   : > { %5703 = vrot.lane.b32.xlu1 %v5632_v3, %s9666_s17  ;;  %5707 = vrot.lane.b32.xlu0 %v5634_v9, %s9666_s17  ;;  %v5609_v9 = vpack.c.bf16 %v5577_v61, %v5577_v61  ;;  %v5584_v61 = vld [vmem:[#allocation2 + $0xe1] sm:$0xff] }
 0x677   : > { %5699 = vrot.lane.b32.xlu2 %v5630_v34, %s9666_s17 }
 0x678   : > { %v5268_v38 = vpop.permute.xlu1 %5267  ;;  %v5272_v26 = vpop.permute.xlu0 %5271  ;;  %v5641_v34 = vsel %vm9871_vm8, %v5609_v9, 0  ;;  %v5616_v9 = vpack.c.bf16 %v5584_v61, %v5584_v61 }
 0x679   : > { %5334 = vst.msk [vmem:[#allocation3 + $0xe8] sm:$0xf] %vm14517_vm2, %v5268_v38  ;;  %v5442_v5 = vpop.permute.xlu2 %5441  ;;  %vm14524_vm2 = vmmov %vm14518_vm0  ;;  %v5578_v38 = vld [vmem:[#allocation2 + $0xb1] sm:$0xff] }
 0x67a   : > { %5533 = vst.msk [vmem:[#allocation3 + $0x20] sm:$0xf] %vm14518_vm0, %v5442_v5 }
 0x67b   : > { %5336 = vst.msk [vmem:[#allocation3 + $0xf8] sm:$0xf] %vm14523_vm11, %v5272_v26  ;;  %vm14525_vm11 = vmmov %vm14518_vm0 }
 0x67e   : > { %5709 = vrot.lane.b32.xlu1 %v5635_v52, %s9666_s17  ;;  %5713 = vrot.lane.b32.xlu0 %v11875_v13, %s9666_s17  ;;  %v5640_v13 = vsel %vm14442_vm9, %v11882_v40, 0  ;;  %v5607_v40 = vpack.c.bf16 %v5575_v53, %v5575_v53  ;;  %v5610_v52 = vpack.c.bf16 %v5578_v38, %v5578_v38  ;;  %vm14531_vm9 = vnez %v14213_v20 }
 0x67f   : > { %5705 = vrot.lane.b32.xlu2 %v5633_v44, %s9666_s17  ;;  %v5644_v44 = vsel %vm14355_vm4, %v5612_v58, 0  ;;  %v5857_v58 = vld [vmem:[%s13832_s4 + $0x20] sm:$0xf] }
 0x680   : > { %v5434_v45 = vpop.permute.xlu1 %5433  ;;  %v5438_v30 = vpop.permute.xlu0 %5437  ;;  %v5639_v10 = vsel %vm9871_vm8, %v5607_v40, 0  ;;  %v5642_v6 = vsel %vm14532_vm15, %v5610_v52, 0  ;;  %v5955_v52 = vunpack.c.l.b16 %v5857_v58 }
 0x681   : > { %5529 = vst.msk [vmem:[#allocation3] sm:$0xf] %vm14524_vm2, %v5434_v45  ;;  %v5448_v35 = vpop.permute.xlu2 %5447  ;;  %vm14527_vm2 = vmmov %vm14518_vm0  ;;  %v5581_v45 = vld [vmem:[#allocation2 + $0xc9] sm:$0xff] }
 0x682   : > { %5536 = vst.msk [vmem:[#allocation3 + $0x38] sm:$0xf] %vm14518_vm0, %v5448_v35 }
 0x683   : > { %5531 = vst.msk [vmem:[#allocation3 + $0x10] sm:$0xf] %vm14525_vm11, %v5438_v30  ;;  %vm14528_vm11 = vmmov %vm14518_vm0 }
 0x686   : > { %5715 = vrot.lane.b32.xlu1 %v5638_v8, %s9666_s17  ;;  %5719 = vrot.lane.b32.xlu0 %v5640_v13, %s9666_s17  ;;  %v5647_v8 = vsel %vm9871_vm8, %v5615_v59, 0  ;;  %v5622_v59 = vpack.c.bf16 %v5590_v21, %v5590_v21 }
 0x687   : > { %5711 = vrot.lane.b32.xlu2 %v5636_v41, %s9666_s17  ;;  %v5586_v41 = vld [vmem:[#allocation2 + $0xf1] sm:$0xff] }
 0x688   : > { %v5440_v2 = vpop.permute.xlu1 %5439  ;;  %v5444_v7 = vpop.permute.xlu0 %5443 }
 0x689   : > { %5532 = vst.msk [vmem:[#allocation3 + $0x18] sm:$0xf] %vm14527_vm2, %v5440_v2  ;;  %v5454_v3 = vpop.permute.xlu2 %5453  ;;  %vm14529_vm2 = vmmov %vm14518_vm0 }
 0x68a   : > { %5539 = vst.msk [vmem:[#allocation3 + $0x50] sm:$0xf] %vm14518_vm0, %v5454_v3  ;;  %v5618_v3 = vpack.c.bf16 %v5586_v41, %v5586_v41 }
 0x68b   : > { %5534 = vst.msk [vmem:[#allocation3 + $0x28] sm:$0xf] %vm14528_vm11, %v5444_v7  ;;  %vm14530_vm11 = vmmov %vm14518_vm0 }
 0x68c   : > { %v5650_v40 = vsel %vm14248_vm14, %v5618_v3, 0  ;;  %vm14543_vm14 = vnez %v14165_v46 }
 0x68e   : > { %5721 = vrot.lane.b32.xlu1 %v5641_v34, %s9666_s17  ;;  %5725 = vrot.lane.b32.xlu0 %v11905_v22, %s9666_s17  ;;  %v5646_v22 = vsel %vm14531_vm9, %v11912_v0, 0  ;;  %v5613_v0 = vpack.c.bf16 %v5581_v45, %v5581_v45  ;;  %vm14537_vm9 = vnez %v14215_v55 }
 0x68f   : > { %5717 = vrot.lane.b32.xlu2 %v5639_v10, %s9666_s17  ;;  %v5648_v34 = vsel %vm14537_vm9, %v5616_v9, 0  ;;  %v5589_v10 = vld [vmem:[#allocation2 + $0x109] sm:$0xff]  ;;  %vm14550_vm9 = vmmov %vm14518_vm0 }
 0x690   : > { %v5446_v26 = vpop.permute.xlu1 %5445  ;;  %v5450_v5 = vpop.permute.xlu0 %5449  ;;  %v5645_v13 = vsel %vm9871_vm8, %v5613_v0, 0  ;;  %v5654_v0 = vsel %vm14543_vm14, %v5622_v59, 0  ;;  %vm14549_vm14 = vcmask 585216  }
 0x691   : > { %5535 = vst.msk [vmem:[#allocation3 + $0x30] sm:$0xf] %vm14529_vm2, %v5446_v26  ;;  %v5460_v57 = vpop.permute.xlu2 %5459  ;;  %vm14533_vm2 = vmmov %vm14518_vm0 }
 0x692   : > { %5542 = vst.msk [vmem:[#allocation3 + $0x68] sm:$0xf] %vm14518_vm0, %v5460_v57  ;;  %v5621_v57 = vpack.c.bf16 %v5589_v10, %v5589_v10  ;;  %vm14552_vm4 = vmmov %vm14549_vm14 }
 0x693   : > { %5537 = vst.msk [vmem:[#allocation3 + $0x40] sm:$0xf] %vm14530_vm11, %v5450_v5  ;;  %vm14534_vm11 = vmmov %vm14518_vm0 }
 0x696   : > { %5727 = vrot.lane.b32.xlu1 %v5644_v44, %s9666_s17  ;;  %5731 = vrot.lane.b32.xlu0 %v5646_v22, %s9666_s17  ;;  %v5653_v44 = vsel %vm9871_vm8, %v5621_v57, 0 }
 0x697   : > { %5723 = vrot.lane.b32.xlu2 %v5642_v6, %s9666_s17  ;;  %v5960_v6 = vpack.c.b16 %v5955_v52, %v5955_v52 }
 0x698   : > { %v5452_v30 = vpop.permute.xlu1 %5451  ;;  %v5456_v35 = vpop.permute.xlu0 %5455 }
 0x699   : > { %5538 = vst.msk [vmem:[#allocation3 + $0x48] sm:$0xf] %vm14533_vm2, %v5452_v30  ;;  %v5466_v49 = vpop.permute.xlu2 %5465  ;;  %vm14535_vm2 = vmmov %vm14518_vm0 }
 0x69a   : > { %5545 = vst.msk [vmem:[#allocation3 + $0x80] sm:$0xf] %vm14518_vm0, %v5466_v49 }
 0x69b   : > { %5540 = vst.msk [vmem:[#allocation3 + $0x58] sm:$0xf] %vm14534_vm11, %v5456_v35  ;;  %vm14536_vm11 = vmmov %vm14518_vm0 }
 0x69e   : > { %5733 = vrot.lane.b32.xlu1 %v5647_v8, %s9666_s17  ;;  %5737 = vrot.lane.b32.xlu0 %v11935_v32, %s9666_s17  ;;  %v5652_v32 = vsel %vm14452_vm3, %v11942_v36, 0  ;;  %v5619_v36 = vpack.c.bf16 %v5587_v24, %v5587_v24  ;;  %vm14542_vm3 = vmmov %vm14518_vm0  ;;  %v9576_v8 = vld [vmem:[%s13832_s4 + $0x18] sm:$0xff] }
 0x69f   : > { %5729 = vrot.lane.b32.xlu2 %v5645_v13, %s9666_s17 }
 0x6a0   : > { %v5458_v53 = vpop.permute.xlu1 %5457  ;;  %v5462_v2 = vpop.permute.xlu0 %5461  ;;  %v5651_v22 = vsel %vm9871_vm8, %v5619_v36, 0  ;;  %v6306_v36 = vld [vmem:[#allocation2 + $0xf] sm:$0xff] }
 0x6a1   : > { %5541 = vst.msk [vmem:[#allocation3 + $0x60] sm:$0xf] %vm14535_vm2, %v5458_v53  ;;  %v5472_v7 = vpop.permute.xlu2 %5471  ;;  %vm14538_vm2 = vmmov %vm14518_vm0  ;;  %v9575_v53 = vld [vmem:[%s13832_s4 + $0x10] sm:$0xff]  ;;  %v6338_v21 = vpack.c.bf16 %v6306_v36, %v6306_v36 }
 0x6a2   : > { %5548 = vst.msk [vmem:[#allocation3 + $0x98] sm:$0xf] %vm14518_vm0, %v5472_v7 }
 0x6a3   : > { %5543 = vst.msk [vmem:[#allocation3 + $0x70] sm:$0xf] %vm14536_vm11, %v5462_v2  ;;  %vm14539_vm11 = vmmov %vm14518_vm0  ;;  %v9574_v2 = vld [vmem:[%s13832_s4 + $0x8] sm:$0xff] }
 0x6a6   : > { %5739 = vrot.lane.b32.xlu1 %v5650_v40, %s9666_s17  ;;  %5743 = vrot.lane.b32.xlu0 %v5652_v32, %s9666_s17  ;;  %v9573_v40 = vld [vmem:[%s13832_s4] sm:$0xff] }
 0x6a7   : > { %5735 = vrot.lane.b32.xlu2 %v5648_v34, %s9666_s17 }
 0x6a8   : > { %v5464_v38 = vpop.permute.xlu1 %5463  ;;  %v5468_v26 = vpop.permute.xlu0 %5467 }
 0x6a9   : > { %5544 = vst.msk [vmem:[#allocation3 + $0x78] sm:$0xf] %vm14538_vm2, %v5464_v38  ;;  %v5478_v5 = vpop.permute.xlu2 %5477  ;;  %vm14540_vm2 = vcmask 1043456  }
 0x6aa   : > { %5551 = vst.msk [vmem:[#allocation3 + $0xb0] sm:$0xf] %vm14518_vm0, %v5478_v5  ;;  %v6014_v35 = vsel %vm14540_vm2, %v5960_v6, 0  ;;  %vm14544_vm2 = vmmov %vm14518_vm0  ;;  %v6305_v5 = vld [vmem:[#allocation2 + $0x7] sm:$0xff] }
 0x6ab   : > { %5546 = vst.msk [vmem:[#allocation3 + $0x88] sm:$0xf] %vm14539_vm11, %v5468_v26  ;;  %6019 = vmatpush.bf16.msra.mxu1 %v6014_v35  ;;  %vm14541_vm11 = vmmov %vm14518_vm0  ;;  %v6337_v57 = vpack.c.bf16 %v6305_v5, %v6305_v5 }
 0x6ae   : > { %5745 = vrot.lane.b32.xlu1 %v5653_v44, %s9666_s17 }
 0x6af   : > { %5741 = vrot.lane.b32.xlu2 %v5651_v22, %s9666_s17  ;;  %6020 = vmatpush.bf16.msra.mxu1 %v9576_v8 }
 0x6b0   : > { %v5470_v45 = vpop.permute.xlu1 %5469  ;;  %v5474_v30 = vpop.permute.xlu0 %5473 }
 0x6b1   : > { %5547 = vst.msk [vmem:[#allocation3 + $0x90] sm:$0xf] %vm14518_vm0, %v5470_v45  ;;  %v5484_v49 = vpop.permute.xlu2 %5483  ;;  %v6370_v45 = vsel %vm9871_vm8, %v6338_v21, 0 }
 0x6b2   : > { %5554 = vst.msk [vmem:[#allocation3 + $0xc8] sm:$0xf] %vm14541_vm11, %v5484_v49  ;;  %vm14546_vm11 = vmmov %vm14518_vm0 }
 0x6b3   : > { %5549 = vst.msk [vmem:[#allocation3 + $0xa0] sm:$0xf] %vm14542_vm3, %v5474_v30  ;;  %vm14545_vm3 = vmmov %vm14518_vm0  ;;  %6021 = vmatpush.bf16.msra.mxu1 %v9575_v53 }
 0x6b7   : > { %5747 = vrot.lane.b32.xlu2 %v5654_v0, %s9666_s17  ;;  %6022 = vmatpush.bf16.msra.mxu1 %v9574_v2 }
 0x6b8   : > { %v5476_v13 = vpop.permute.xlu1 %5475  ;;  %v5480_v41 = vpop.permute.xlu0 %5479 }
 0x6b9   : > { %5550 = vst.msk [vmem:[#allocation3 + $0xa8] sm:$0xf] %vm14544_vm2, %v5476_v13  ;;  %v5490_v61 = vpop.permute.xlu2 %5489  ;;  %vm14547_vm2 = vmmov %vm14518_vm0 }
 0x6ba   : > { %5557 = vst.msk [vmem:[#allocation3 + $0xe0] sm:$0xf] %vm14518_vm0, %v5490_v61 }
 0x6bb   : > { %5552 = vst.msk [vmem:[#allocation3 + $0xb8] sm:$0xf] %vm14545_vm3, %v5480_v41  ;;  %6023 = vmatpush.bf16.msra.mxu1 %v9573_v40  ;;  %vm14548_vm3 = vmmov %vm14518_vm0 }
 0x6c0   : > { %v5482_v7 = vpop.permute.xlu1 %5481  ;;  %v5486_v3 = vpop.permute.xlu0 %5485 }
 0x6c1   : > { %5553 = vst.msk [vmem:[#allocation3 + $0xc0] sm:$0xf] %vm14546_vm11, %v5482_v7  ;;  %v5496_v9 = vpop.permute.xlu2 %5495  ;;  %vm14551_vm11 = vmmov %vm14518_vm0 }
 0x6c2   : > { %5560 = vst.msk [vmem:[#allocation3 + $0xf8] sm:$0xf] %vm14547_vm2, %v5496_v9  ;;  %vm14553_vm2 = vmmov %vm14552_vm4 }
 0x6c3   : > { %5555 = vst.msk [vmem:[#allocation3 + $0xd0] sm:$0xf] %vm14518_vm0, %v5486_v3  ;;  %vm14554_vm0 = vnez %v14031_v39 }
 0x6c4   : > { %v6369_v58 = vsel %vm14554_vm0, %v6337_v57, 0  ;;  %vm14562_vm0 = vmmov %vm14553_vm2 }
 0x6c5   : > { %vm14563_vm15 = vmmov %vm14562_vm0 }
 0x6c8   : > { %v5488_v32 = vpop.permute.xlu1 %5487  ;;  %v5492_v34 = vpop.permute.xlu0 %5491 }
 0x6c9   : > { %5556 = vst.msk [vmem:[#allocation3 + $0xd8] sm:$0xf] %vm14548_vm3, %v5488_v32  ;;  %v5694_v10 = vpop.permute.xlu2 %5693  ;;  %vm14556_vm3 = vmmov %vm14553_vm2 }
 0x6ca   : > { %5787 = vst.msk [vmem:[#allocation3 + $0x10] sm:$0xf] %vm14549_vm14, %v5694_v10  ;;  %vm14555_vm14 = vmmov %vm14553_vm2 }
 0x6cb   : > { %5558 = vst.msk [vmem:[#allocation3 + $0xe8] sm:$0xf] %vm14550_vm9, %v5492_v34  ;;  %vm13985_vm9 = vcmask 125952  }
 0x6d0   : > { %v5494_v24 = vpop.permute.xlu1 %5493  ;;  %v5690_v38 = vpop.permute.xlu0 %5689 }
 0x6d1   : > { %5559 = vst.msk [vmem:[#allocation3 + $0xf0] sm:$0xf] %vm14551_vm11, %v5494_v24  ;;  %v5700_v26 = vpop.permute.xlu2 %5699  ;;  %vm14558_vm11 = vmmov %vm14553_vm2  ;;  %v9264_v7 = vld [vmem:[#allocation3 + $0x10] sm:$0xf] }
 0x6d2   : > { %5790 = vst.msk [vmem:[#allocation3 + $0x28] sm:$0xf] %vm14552_vm4, %v5700_v26  ;;  %vm14557_vm4 = vmmov %vm14553_vm2 }
 0x6d3   : > { %5785 = vst.msk [vmem:[#allocation3] sm:$0xf] %vm14553_vm2, %v5690_v38 }
 0x6d8   : > { %v5692_v52 = vpop.permute.xlu1 %5691  ;;  %v5696_v44 = vpop.permute.xlu0 %5695 }
 0x6d9   : > { %5786 = vst.msk [vmem:[#allocation3 + $0x8] sm:$0xf] %vm14555_vm14, %v5692_v52  ;;  %v5706_v22 = vpop.permute.xlu2 %5705  ;;  %vm14559_vm14 = vcmask 588800   ;;  %v9559_v26 = vld [vmem:[#allocation3 + $0x24] sm:$0xf0] }
 0x6da   : > { %v9260_v6 = vld [vmem:[#allocation3] sm:$0xf]  ;;  %5793 = vst.msk [vmem:[#allocation3 + $0x40] sm:$0xf] %vm14556_vm3, %v5706_v22  ;;  %vm14560_vm3 = vmmov %vm14553_vm2 }
 0x6db   : > { %6402 = vst.msk [vmem:[#allocation3] sm:$0xf] %vm13985_vm9, %v6369_v58 }
 0x6dc   : > { %5788 = vst.msk [vmem:[#allocation3 + $0x18] sm:$0xf] %vm14557_vm4, %v5696_v44  ;;  %vm14561_vm4 = vmmov %vm14553_vm2 }
 0x6e0   : > { %v9557_v30 = vld [vmem:[#allocation3 + $0x4] sm:$0xf0]  ;;  %v5698_v35 = vpop.permute.xlu1 %5697  ;;  %v5702_v49 = vpop.permute.xlu0 %5701 }
 0x6e1   : > { %6403 = vst.msk [vmem:[#allocation3 + $0x8] sm:$0xf] %vm13985_vm9, %v6370_v45  ;;  %v5712_v59 = vpop.permute.xlu2 %5711  ;;  %v9261_v0 = vor.u32 %v9557_v30, %v9260_v6 }
 0x6e2   : > { %5789 = vst.msk [vmem:[#allocation3 + $0x20] sm:$0xf] %vm14558_vm11, %v5698_v35  ;;  %vm14564_vm11 = vmmov %vm14562_vm0 }
 0x6e3   : > { %5796 = vst.msk [vmem:[#allocation3 + $0x58] sm:$0xf] %vm14553_vm2, %v5712_v59  ;;  %9338 = vmatmul.msk.bf16.vlgmr.msra.gmra.mxu1 %vm14559_vm14, %v9261_v0  ;;  %v9558_v61 = vld [vmem:[#allocation3 + $0x14] sm:$0xf0]  ;;  %vm14565_vm2 = vmmov %vm14562_vm0 }
 0x6e4   : > { %5791 = vst.msk [vmem:[#allocation3 + $0x30] sm:$0xf] %vm14560_vm3, %v5702_v49  ;;  %v9265_v9 = vor.u32 %v9558_v61, %v9264_v7  ;;  %vm14566_vm14 = vmmov %vm14562_vm0  ;;  %vm14567_vm3 = vcmask 588800   ;;  %v5591_v7 = vld [vmem:[#allocation2 + $0x119] sm:$0xff] }
 0x6e8   : > { %v5704_v8 = vpop.permute.xlu1 %5703  ;;  %v5708_v13 = vpop.permute.xlu0 %5707 }
 0x6e9   : > { %5792 = vst.msk [vmem:[#allocation3 + $0x38] sm:$0xf] %vm14561_vm4, %v5704_v8  ;;  %v5718_v41 = vpop.permute.xlu2 %5717  ;;  %vm14568_vm4 = vmmov %vm14562_vm0  ;;  %v9268_v10 = vld [vmem:[#allocation3 + $0x20] sm:$0xf] }
 0x6ea   : > { %5799 = vst.msk [vmem:[#allocation3 + $0x70] sm:$0xf] %vm14562_vm0, %v5718_v41  ;;  %v9269_v57 = vor.u32 %v9559_v26, %v9268_v10  ;;  %v9276_v8 = vld [vmem:[#allocation3 + $0x40] sm:$0xf]  ;;  %v9562_v61 = vld [vmem:[#allocation3 + $0x54] sm:$0xf0] }
 0x6eb   : > { %5794 = vst.msk [vmem:[#allocation3 + $0x48] sm:$0xf] %vm14563_vm15, %v5708_v13  ;;  %vm14569_vm15 = vmmov %vm14562_vm0  ;;  %v9272_v21 = vld [vmem:[#allocation3 + $0x30] sm:$0xf] }
 0x6f0   : > { %v5710_v53 = vpop.permute.xlu1 %5709  ;;  %v5714_v2 = vpop.permute.xlu0 %5713  ;;  %v9560_v44 = vld [vmem:[#allocation3 + $0x34] sm:$0xf0] }
 0x6f1   : > { %5795 = vst.msk [vmem:[#allocation3 + $0x50] sm:$0xf] %vm14564_vm11, %v5710_v53  ;;  %v5724_v3 = vpop.permute.xlu2 %5723  ;;  %vm14570_vm11 = vmmov %vm14562_vm0  ;;  %v9273_v30 = vor.u32 %v9560_v44, %v9272_v21  ;;  %v9288_v26 = vld [vmem:[#allocation3 + $0x70] sm:$0xf] }
 0x6f2   : > { %5802 = vst.msk [vmem:[#allocation3 + $0x88] sm:$0xf] %vm14565_vm2, %v5724_v3  ;;  %vm14571_vm2 = vmmov %vm14562_vm0  ;;  %v9561_v59 = vld [vmem:[#allocation3 + $0x44] sm:$0xf0]  ;;  %v12346_v44 = vld [vmem:[%s13833_s5] ss:$0 sm:$0xff] }
 0x6f3   : > { %5797 = vst.msk [vmem:[#allocation3 + $0x60] sm:$0xf] %vm14566_vm14, %v5714_v2  ;;  %9339 = vmatmul.msk.bf16.gmra.mxu1 %vm14567_vm3, %v9265_v9  ;;  %vm14572_vm14 = vmmov %vm14562_vm0  ;;  %v9277_v13 = vor.u32 %v9561_v59, %v9276_v8  ;;  %v5592_v2 = vld [vmem:[#allocation2 + $0x121] sm:$0xff]  ;;  %v5623_v9 = vpack.c.bf16 %v5591_v7, %v5591_v7 }
 0x6f4   : > { %v5624_v3 = vpack.c.bf16 %v5592_v2, %v5592_v2 }
 0x6f8   : > { %v5716_v40 = vpop.permute.xlu1 %5715  ;;  %v5720_v32 = vpop.permute.xlu0 %5719  ;;  %v9280_v41 = vld [vmem:[#allocation3 + $0x50] sm:$0xf] }
 0x6f9   : > { %5798 = vst.msk [vmem:[#allocation3 + $0x68] sm:$0xf] %vm14568_vm4, %v5716_v40  ;;  %v5730_v34 = vpop.permute.xlu2 %5729  ;;  %vm14573_vm4 = vmmov %vm14562_vm0  ;;  %v9281_v53 = vor.u32 %v9562_v61, %v9280_v41 }
 0x6fa   : > { %5805 = vst.msk [vmem:[#allocation3 + $0xa0] sm:$0xf] %vm14569_vm15, %v5730_v34  ;;  %vm14574_vm15 = vmmov %vm14562_vm0  ;;  %v9284_v10 = vld [vmem:[#allocation3 + $0x60] sm:$0xf] }
 0x6fb   : > { %5800 = vst.msk [vmem:[#allocation3 + $0x78] sm:$0xf] %vm14562_vm0, %v5720_v32  ;;  %v5655_v32 = vsel %vm9871_vm8, %v5623_v9, 0 }
 0x6fc   : > { %5749 = vrot.lane.b32.xlu0 %v5655_v32, %s9666_s17 }
 0x700   : > { %v5722_v24 = vpop.permute.xlu1 %5721  ;;  %v5726_v38 = vpop.permute.xlu0 %5725  ;;  %v9563_v34 = vld [vmem:[#allocation3 + $0x64] sm:$0xf0] }
 0x701   : > { %5801 = vst.msk [vmem:[#allocation3 + $0x80] sm:$0xf] %vm14570_vm11, %v5722_v24  ;;  %v5736_v5 = vpop.permute.xlu2 %5735  ;;  %vm14575_vm11 = vmmov %vm14562_vm0  ;;  %v9285_v24 = vor.u32 %v9563_v34, %v9284_v10 }
 0x702   : > { %5808 = vst.msk [vmem:[#allocation3 + $0xb8] sm:$0xf] %vm14571_vm2, %v5736_v5  ;;  %vm14576_vm2 = vmmov %vm14562_vm0 }
 0x703   : > { %5803 = vst.msk [vmem:[#allocation3 + $0x90] sm:$0xf] %vm14572_vm14, %v5726_v38  ;;  %9340 = vmatmul.msk.bf16.gmra.mxu1 %vm14567_vm3, %v9269_v57  ;;  %vm14577_vm14 = vmmov %vm14562_vm0  ;;  %v9564_v38 = vld [vmem:[#allocation3 + $0x74] sm:$0xf0] }
 0x704   : > { %v9289_v5 = vor.u32 %v9564_v38, %v9288_v26  ;;  %v6434_v57 = vld [vmem:[#allocation2 + $0x8] sm:$0xff] }
 0x708   : > { %v5728_v36 = vpop.permute.xlu1 %5727  ;;  %v5732_v58 = vpop.permute.xlu0 %5731 }
 0x709   : > { %5804 = vst.msk [vmem:[#allocation3 + $0x98] sm:$0xf] %vm14573_vm4, %v5728_v36  ;;  %v5742_v52 = vpop.permute.xlu2 %5741  ;;  %vm14578_vm4 = vmmov %vm14562_vm0  ;;  %v6466_v36 = vpack.c.bf16 %v6434_v57, %v6434_v57 }
 0x70a   : > { %5811 = vst.msk [vmem:[#allocation3 + $0xd0] sm:$0xf] %vm14574_vm15, %v5742_v52  ;;  %vm14579_vm15 = vmmov %vm14562_vm0  ;;  %v9296_v32 = vld [vmem:[#allocation3 + $0x90] sm:$0xf] }
 0x70b   : > { %5806 = vst.msk [vmem:[#allocation3 + $0xa8] sm:$0xf] %vm14562_vm0, %v5732_v58  ;;  %6530 = vrot.lane.b32.xlu2 %v6466_v36, %s9660_s29  ;;  %v6435_v58 = vld [vmem:[#allocation2 + $0x10] sm:$0xff] }
 0x70c   : > { %v6467_v52 = vpack.c.bf16 %v6435_v58, %v6435_v58 }
 0x70e   : > { %6532 = vrot.lane.b32.xlu0 %v6467_v52, %s9660_s29 }
 0x710   : > { %v5734_v22 = vpop.permute.xlu1 %5733  ;;  %v5738_v6 = vpop.permute.xlu0 %5737 }
 0x711   : > { %5807 = vst.msk [vmem:[#allocation3 + $0xb0] sm:$0xf] %vm14575_vm11, %v5734_v22  ;;  %v5748_v45 = vpop.permute.xlu2 %5747  ;;  %vm14580_vm11 = vmmov %vm14567_vm3  ;;  %v9292_v22 = vld [vmem:[#allocation3 + $0x80] sm:$0xf] }
 0x712   : > { %5814 = vst.msk [vmem:[#allocation3 + $0xe8] sm:$0xf] %vm14576_vm2, %v5748_v45  ;;  %vm14581_vm2 = vmmov %vm14567_vm3  ;;  %v9565_v45 = vld [vmem:[#allocation3 + $0x84] sm:$0xf0] }
 0x713   : > { %5809 = vst.msk [vmem:[#allocation3 + $0xc0] sm:$0xf] %vm14577_vm14, %v5738_v6  ;;  %9341 = vmatmul.msk.bf16.gmra.mxu1 %vm14567_vm3, %v9273_v30  ;;  %vm14582_vm14 = vnez %v14167_v33  ;;  %vm14583_vm3 = vmmov %vm14581_vm2  ;;  %v12352_v6 = vld [vmem:[%s13834_s6] ss:$0 sm:$0xff] }
 0x714   : > { %v5656_v40 = vsel %vm14582_vm14, %v5624_v3, 0  ;;  %vm14665_vm14 = vcmask 130048  }
 0x715   : > { %5751 = vrot.lane.b32.xlu1 %v5656_v40, %s9666_s17 }
 0x718   : > { %v5740_v35 = vpop.permute.xlu1 %5739  ;;  %v5744_v49 = vpop.permute.xlu0 %5743 }
 0x719   : > { %5810 = vst.msk [vmem:[#allocation3 + $0xc8] sm:$0xf] %vm14578_vm4, %v5740_v35  ;;  %vm14584_vm4 = vmmov %vm14581_vm2  ;;  %v9293_v35 = vor.u32 %v9565_v45, %v9292_v22 }
 0x71a   : > { %5812 = vst.msk [vmem:[#allocation3 + $0xd8] sm:$0xf] %vm14579_vm15, %v5744_v49  ;;  %vm14585_vm15 = vmmov %vm14581_vm2 }
 0x720   : > { %v5746_v0 = vpop.permute.xlu1 %5745 }
 0x721   : > { %5813 = vst.msk [vmem:[#allocation3 + $0xe0] sm:$0xf] %vm14562_vm0, %v5746_v0 }
 0x723   : > { %9342 = vmatmul.msk.bf16.gmra.mxu1 %vm14580_vm11, %v9277_v13  ;;  %vm14586_vm11 = vcmask 130048  }
 0x733   : > { %9343 = vmatmul.msk.bf16.gmra.mxu1 %vm14581_vm2, %v9281_v53  ;;  %v9566_v53 = vld [vmem:[#allocation3 + $0x94] sm:$0xf0] }
 0x743   : > { %9344 = vmatmul.msk.bf16.gmra.mxu1 %vm14583_vm3, %v9285_v24  ;;  %vm14587_vm3 = vmmov %vm14586_vm11  ;;  %v9297_v24 = vor.u32 %v9566_v53, %v9296_v32 }
 0x753   : > { %9345 = vmatmul.msk.bf16.gmra.mxu1 %vm14584_vm4, %v9289_v5  ;;  %vm14588_vm4 = vnez %v14049_v31 }
 0x760   : > { %v6025_v21 = vpop.f32.mrf.mxu1 }
 0x761   : > { %v6109_v30 = vmul.f32 %v12346_v44, %v6025_v21 }
 0x763   : > { %v6145_v49 = vadd.f32 %v12352_v6, %v6109_v30  ;;  %9346 = vmatmul.msk.bf16.gmra.mxu1 %vm14585_vm15, %v9293_v35 }
 0x765   : > { %vm6177_vm0 = vcmp.ge.f32.partialorder %v6145_v49, 0.0  ;;  %v6209_v59 = vmul.f32 0.2, %v6145_v49 }
 0x767   : > { %v6241_v0 = vsel %vm6177_vm0, %v6145_v49, %v6209_v59  ;;  %v9617_v49 = vld [vmem:[%s13835_s7 + $0x40] sm:$0xff] }
 0x768   : > { %6273 = vst.msk [vmem:[#allocation2 + $0x18] sm:$0xff] %vm14586_vm11, %v6241_v0  ;;  %v6027_v8 = vpop.f32.mrf.mxu1  ;;  %vm14589_vm11 = vmmov %vm14587_vm3  ;;  %v9567_v0 = vld [vmem:[#allocation3 + $0xa4] sm:$0xf0]  ;;  %8657 = vmatpush.bf16.msra.mxu3 %v9617_v49 }
 0x769   : > { %v6110_v13 = vmul.f32 %v12346_v44, %v6027_v8 }
 0x76b   : > { %v6146_v41 = vadd.f32 %v12352_v6, %v6110_v13 }
 0x76d   : > { %vm6178_vm2 = vcmp.ge.f32.partialorder %v6146_v41, 0.0  ;;  %v6210_v61 = vmul.f32 0.2, %v6146_v41 }
 0x76f   : > { %v6242_v2 = vsel %vm6178_vm2, %v6146_v41, %v6210_v61  ;;  %v6436_v7 = vld [vmem:[#allocation2 + $0x18] sm:$0xff] }
 0x770   : > { %v6307_v3 = vld [vmem:[#allocation2 + $0x17] sm:$0xff]  ;;  %6274 = vst.msk [vmem:[#allocation2 + $0x20] sm:$0xff] %vm14587_vm3, %v6242_v2  ;;  %v6030_v9 = vpop.f32.mrf.mxu1  ;;  %v6468_v40 = vpack.c.bf16 %v6436_v7, %v6436_v7  ;;  %v9300_v2 = vld [vmem:[#allocation3 + $0xa0] sm:$0xf] }
 0x771   : > { %v6339_v34 = vpack.c.bf16 %v6307_v3, %v6307_v3  ;;  %v6111_v10 = vmul.f32 %v12346_v44, %v6030_v9  ;;  %v9301_v9 = vor.u32 %v9567_v0, %v9300_v2 }
 0x772   : > { %6534 = vrot.lane.b32.xlu1 %v6468_v40, %s9660_s29 }
 0x773   : > { %v6371_v38 = vsel %vm14588_vm4, %v6339_v34, 0  ;;  %v6147_v26 = vadd.f32 %v12352_v6, %v6111_v10  ;;  %9347 = vmatmul.msk.bf16.gmra.mxu1 %vm14585_vm15, %v9297_v24  ;;  %vm14590_vm15 = vnez %v14037_v62  ;;  %vm14622_vm4 = vcmask 130048  }
 0x774   : > { %6404 = vst.msk [vmem:[#allocation3 + $0x10] sm:$0xf] %vm13985_vm9, %v6371_v38 }
 0x775   : > { %vm6179_vm0 = vcmp.ge.f32.partialorder %v6147_v26, 0.0  ;;  %v6211_v5 = vmul.f32 0.2, %v6147_v26 }
 0x777   : > { %v6243_v57 = vsel %vm6179_vm0, %v6147_v26, %v6211_v5  ;;  %v6437_v36 = vld [vmem:[#allocation2 + $0x20] sm:$0xff]  ;;  %vm14591_vm0 = vcmask 588800  }
 0x778   : > { %v6308_v58 = vld [vmem:[#allocation2 + $0x1f] sm:$0xff]  ;;  %6275 = vst.msk [vmem:[#allocation2 + $0x28] sm:$0xff] %vm14589_vm11, %v6243_v57  ;;  %v6032_v52 = vpop.f32.mrf.mxu1  ;;  %v6469_v22 = vpack.c.bf16 %v6437_v36, %v6437_v36 }
 0x779   : > { %v6340_v21 = vpack.c.bf16 %v6308_v58, %v6308_v58  ;;  %v6112_v45 = vmul.f32 %v12346_v44, %v6032_v52 }
 0x77a   : > { %6536 = vrot.lane.b32.xlu2 %v6469_v22, %s9660_s29 }
 0x77b   : > { %v6372_v30 = vsel %vm9871_vm8, %v6340_v21, 0  ;;  %v6148_v35 = vadd.f32 %v12352_v6, %v6112_v45 }
 0x77c   : > { %6405 = vst.msk [vmem:[#allocation3 + $0x18] sm:$0xf] %vm13985_vm9, %v6372_v30 }
 0x77d   : > { %vm6180_vm2 = vcmp.ge.f32.partialorder %v6148_v35, 0.0  ;;  %v6212_v59 = vmul.f32 0.2, %v6148_v35 }
 0x77f   : > { %v6244_v8 = vsel %vm6180_vm2, %v6148_v35, %v6212_v59  ;;  %v6438_v13 = vld [vmem:[#allocation2 + $0x28] sm:$0xff]  ;;  %vm14592_vm2 = vmmov %vm14587_vm3  ;;  %v9304_v35 = vld [vmem:[#allocation3 + $0xb0] sm:$0xf] }
 0x780   : > { %v6309_v41 = vld [vmem:[#allocation2 + $0x27] sm:$0xff]  ;;  %6276 = vst.msk [vmem:[#allocation2 + $0x30] sm:$0xff] %vm14587_vm3, %v6244_v8  ;;  %v6035_v61 = vpop.f32.mrf.mxu1  ;;  %v6470_v53 = vpack.c.bf16 %v6438_v13, %v6438_v13 }
 0x781   : > { %v6341_v7 = vpack.c.bf16 %v6309_v41, %v6309_v41  ;;  %v6113_v3 = vmul.f32 %v12346_v44, %v6035_v61  ;;  %v9568_v61 = vld [vmem:[#allocation3 + $0xb4] sm:$0xf0] }
 0x782   : > { %6538 = vrot.lane.b32.xlu0 %v6470_v53, %s9660_s29 }
 0x783   : > { %v6373_v40 = vsel %vm14590_vm15, %v6341_v7, 0  ;;  %v6149_v32 = vadd.f32 %v12352_v6, %v6113_v3  ;;  %9348 = vmatmul.msk.bf16.gmra.mxu1 %vm14591_vm0, %v9301_v9  ;;  %vm14593_vm0 = vmmov %vm14592_vm2  ;;  %v9305_v3 = vor.u32 %v9568_v61, %v9304_v35  ;;  %vm14653_vm15 = vcmask 130048  }
 0x784   : > { %6406 = vst.msk [vmem:[#allocation3 + $0x20] sm:$0xf] %vm13985_vm9, %v6373_v40 }
 0x785   : > { %vm6181_vm11 = vcmp.ge.f32.partialorder %v6149_v32, 0.0  ;;  %v6213_v34 = vmul.f32 0.2, %v6149_v32 }
 0x787   : > { %v6245_v10 = vsel %vm6181_vm11, %v6149_v32, %v6213_v34  ;;  %v6439_v24 = vld [vmem:[#allocation2 + $0x30] sm:$0xff]  ;;  %vm14594_vm11 = vcmask 588800  }
 0x788   : > { %v8137_v38 = vld [vmem:[#allocation2 + $0x29] sm:$0xff]  ;;  %6277 = vst.msk [vmem:[#allocation2 + $0x38] sm:$0xff] %vm14592_vm2, %v6245_v10  ;;  %v6037_v5 = vpop.f32.mrf.mxu1  ;;  %v6471_v57 = vpack.c.bf16 %v6439_v24, %v6439_v24 }
 0x789   : > { %v6310_v26 = vld [vmem:[#allocation2 + $0x2f] sm:$0xff]  ;;  %v8169_v36 = vpack.c.bf16 %v8137_v38, %v8137_v38  ;;  %v6114_v52 = vmul.f32 %v12346_v44, %v6037_v5 }
 0x78a   : > { %v6342_v58 = vpack.c.bf16 %v6310_v26, %v6310_v26  ;;  %6540 = vrot.lane.b32.xlu1 %v6471_v57, %s9660_s29 }
 0x78b   : > { %v8201_v22 = vsel %vm9871_vm8, %v8169_v36, 0  ;;  %v6150_v45 = vadd.f32 %v12352_v6, %v6114_v52 }
 0x78c   : > { %v6374_v21 = vsel %vm9871_vm8, %v6342_v58, 0  ;;  %8233 = vst.msk [vmem:[#allocation3 + $0x4] sm:$0xf] %vm13985_vm9, %v8201_v22 }
 0x78d   : > { %6407 = vst.msk [vmem:[#allocation3 + $0x28] sm:$0xf] %vm13985_vm9, %v6374_v21  ;;  %vm6182_vm3 = vcmp.ge.f32.partialorder %v6150_v45, 0.0  ;;  %v6214_v30 = vmul.f32 0.2, %v6150_v45 }
 0x78f   : > { %v6246_v49 = vsel %vm6182_vm3, %v6150_v45, %v6214_v30  ;;  %v6440_v59 = vld [vmem:[#allocation2 + $0x38] sm:$0xff]  ;;  %vm14595_vm3 = vmmov %vm14593_vm0 }
 0x790   : > { %v8138_v0 = vld [vmem:[#allocation2 + $0x31] sm:$0xff]  ;;  %6278 = vst.msk [vmem:[#allocation2 + $0x40] sm:$0xff] %vm14593_vm0, %v6246_v49  ;;  %v6040_v13 = vpop.f32.mrf.mxu1  ;;  %v6472_v41 = vpack.c.bf16 %v6440_v59, %v6440_v59 }
 0x791   : > { %v6311_v8 = vld [vmem:[#allocation2 + $0x37] sm:$0xff]  ;;  %v8170_v53 = vpack.c.bf16 %v8138_v0, %v8138_v0  ;;  %v6115_v7 = vmul.f32 %v12346_v44, %v6040_v13 }
 0x792   : > { %v6343_v2 = vpack.c.bf16 %v6311_v8, %v6311_v8  ;;  %6542 = vrot.lane.b32.xlu2 %v6472_v41, %s9660_s29  ;;  %v9569_v0 = vld [vmem:[#allocation3 + $0xc4] sm:$0xf0] }
 0x793   : > { %v8202_v9 = vsel %vm14513_vm13, %v8170_v53, 0  ;;  %v6151_v32 = vadd.f32 %v12352_v6, %v6115_v7  ;;  %9349 = vmatmul.msk.bf16.gmra.mxu1 %vm14594_vm11, %v9305_v3  ;;  %v9577_v22 = vld [vmem:[#allocation3 + $0x4] sm:$0xf]  ;;  %vm14596_vm11 = vmmov %vm14595_vm3  ;;  %v9308_v7 = vld [vmem:[#allocation3 + $0xc0] sm:$0xf] }
 0x794   : > { %v6375_v40 = vsel %vm14470_vm6, %v6343_v2, 0  ;;  %8234 = vst.msk [vmem:[#allocation3 + $0xc] sm:$0xf] %vm13985_vm9, %v8202_v9 }
 0x795   : > { %6408 = vst.msk [vmem:[#allocation3 + $0x30] sm:$0xf] %vm13985_vm9, %v6375_v40  ;;  %vm6183_vm2 = vcmp.ge.f32.partialorder %v6151_v32, 0.0  ;;  %v6215_v34 = vmul.f32 0.2, %v6151_v32 }
 0x797   : > { %v6247_v10 = vsel %vm6183_vm2, %v6151_v32, %v6215_v34  ;;  %v6441_v24 = vld [vmem:[#allocation2 + $0x40] sm:$0xff]  ;;  %vm14597_vm2 = vmmov %vm14595_vm3  ;;  %v9309_v32 = vor.u32 %v9569_v0, %v9308_v7  ;;  %v9570_v7 = vld [vmem:[#allocation3 + $0xd4] sm:$0xf0] }
 0x798   : > { %v8139_v38 = vld [vmem:[#allocation2 + $0x39] sm:$0xff]  ;;  %6279 = vst.msk [vmem:[#allocation2 + $0x48] sm:$0xff] %vm14595_vm3, %v6247_v10  ;;  %v6042_v5 = vpop.f32.mrf.mxu1  ;;  %v6473_v57 = vpack.c.bf16 %v6441_v24, %v6441_v24  ;;  %vm14599_vm3 = vnez %v14054_v60 }
 0x799   : > { %v6312_v26 = vld [vmem:[#allocation2 + $0x3f] sm:$0xff]  ;;  %v8171_v36 = vpack.c.bf16 %v8139_v38, %v8139_v38  ;;  %v6116_v52 = vmul.f32 %v12346_v44, %v6042_v5 }
 0x79a   : > { %v6344_v58 = vpack.c.bf16 %v6312_v26, %v6312_v26  ;;  %6544 = vrot.lane.b32.xlu0 %v6473_v57, %s9660_s29 }
 0x79b   : > { %v9358_v21 = vld [vmem:[#allocation3 + $0x8] sm:$0xf0]  ;;  %v12412_v45 = vsel %vm9871_vm8, %v8171_v36, 0  ;;  %v6152_v35 = vadd.f32 %v12352_v6, %v6116_v52 }
 0x79c   : > { %v12416_v30 = vsel %vm9871_vm8, %v6344_v58, 0  ;;  %v9361_v49 = vor.u32 %v9577_v22, %v9358_v21  ;;  %8235 = vst.msk [vmem:[#allocation3 + $0x14] sm:$0xf] %vm13985_vm9, %v12412_v45 }
 0x79d   : > { %6409 = vst.msk [vmem:[#allocation3 + $0x38] sm:$0xf] %vm13985_vm9, %v12416_v30  ;;  %vm6184_vm0 = vcmp.ge.f32.partialorder %v6152_v35, 0.0  ;;  %v6216_v59 = vmul.f32 0.2, %v6152_v35 }
 0x79e   : > { %9518 = vmatmul.msk.bf16.vlgmr.msra.gmra.mxu3 %vm14596_vm11, %v9361_v49 }
 0x79f   : > { %v6248_v8 = vsel %vm6184_vm0, %v6152_v35, %v6216_v59  ;;  %v6442_v13 = vld [vmem:[#allocation2 + $0x48] sm:$0xff]  ;;  %vm14600_vm0 = vcmask 588800   ;;  %v5752_v59 = vpop.permute.xlu1 %5751 }
 0x7a0   : > { %v8140_v41 = vld [vmem:[#allocation2 + $0x41] sm:$0xff]  ;;  %6280 = vst.msk [vmem:[#allocation2 + $0x50] sm:$0xff] %vm14597_vm2, %v6248_v8  ;;  %v6045_v53 = vpop.f32.mrf.mxu1  ;;  %v6474_v2 = vpack.c.bf16 %v6442_v13, %v6442_v13 }
 0x7a1   : > { %v6313_v61 = vld [vmem:[#allocation2 + $0x47] sm:$0xff]  ;;  %v8172_v3 = vpack.c.bf16 %v8140_v41, %v8140_v41  ;;  %v6117_v40 = vmul.f32 %v12346_v44, %v6045_v53  ;;  %v5750_v53 = vpop.permute.xlu0 %5749 }
 0x7a2   : > { %v12425_v9 = vpack.c.bf16 %v6313_v61, %v6313_v61  ;;  %6546 = vrot.lane.b32.xlu1 %v6474_v2, %s9660_s29 }
 0x7a3   : > { %v8204_v34 = vsel %vm14514_vm10, %v8172_v3, 0  ;;  %v6153_v24 = vadd.f32 %v12352_v6, %v6117_v40  ;;  %9350 = vmatmul.msk.bf16.gmra.mxu1 %vm14600_vm0, %v9309_v32  ;;  %v9579_v49 = vld [vmem:[#allocation3 + $0x14] sm:$0xf]  ;;  %vm14601_vm0 = vcmask 585216  }
 0x7a4   : > { %14598 = vst [vmem:[#allocation15_spill] sm:$0xff] %v12425_v9  ;;  %v6377_v10 = vsel %vm14599_vm3, %v12425_v9, 0  ;;  %vm14602_vm6 = vmmov %vm14601_vm0  ;;  %vm13984_vm3 = vcmask 257152  }
 0x7a5   : > { %8236 = vst.msk [vmem:[#allocation3 + $0x1c] sm:$0xf] %vm13985_vm9, %v8204_v34  ;;  %vm6185_vm11 = vcmp.ge.f32.partialorder %v6153_v24, 0.0  ;;  %v6217_v38 = vmul.f32 0.2, %v6153_v24 }
 0x7a6   : > { %6410 = vst.msk [vmem:[#allocation3 + $0x40] sm:$0xf] %vm13985_vm9, %v6377_v10 }
 0x7a7   : > { %v6249_v26 = vsel %vm6185_vm11, %v6153_v24, %v6217_v38  ;;  %v6443_v5 = vld [vmem:[#allocation2 + $0x50] sm:$0xff]  ;;  %5816 = vst.msk [vmem:[#allocation3 + $0xf8] sm:$0xf] %vm14601_vm0, %v5752_v59  ;;  %vm14603_vm0 = vmmov %vm14597_vm2  ;;  %v9312_v38 = vld [vmem:[#allocation3 + $0xd0] sm:$0xf] }
 0x7a8   : > { %v8141_v57 = vld [vmem:[#allocation2 + $0x49] sm:$0xff]  ;;  %6281 = vst.msk [vmem:[#allocation2 + $0x58] sm:$0xff] %vm14597_vm2, %v6249_v26  ;;  %v6047_v58 = vpop.f32.mrf.mxu1  ;;  %v6475_v52 = vpack.c.bf16 %v6443_v5, %v6443_v5  ;;  %v6531_v5 = vpop.permute.xlu2 %6530 }
 0x7a9   : > { %v6314_v36 = vld [vmem:[#allocation2 + $0x4f] sm:$0xff]  ;;  %v8173_v22 = vpack.c.bf16 %v8141_v57, %v8141_v57  ;;  %v6118_v35 = vmul.f32 %v12346_v44, %v6047_v58  ;;  %5815 = vst.msk [vmem:[#allocation3 + $0xf0] sm:$0xf] %vm14602_vm6, %v5750_v53  ;;  %v9313_v58 = vor.u32 %v9570_v7, %v9312_v38  ;;  %vm14605_vm6 = vnez %v14084_v23 }
 0x7aa   : > { %v6346_v21 = vpack.c.bf16 %v6314_v36, %v6314_v36  ;;  %6548 = vrot.lane.b32.xlu2 %v6475_v52, %s9660_s29  ;;  %6627 = vst.msk [vmem:[#allocation3] sm:$0xf] %vm13984_vm3, %v6531_v5  ;;  %v9316_v5 = vld [vmem:[#allocation3 + $0xe0] sm:$0xf]  ;;  %vm14611_vm3 = vcmask 130048  }
 0x7ab   : > { %v8205_v8 = vsel %vm9871_vm8, %v8173_v22, 0  ;;  %v6154_v41 = vadd.f32 %v12352_v6, %v6118_v35 }
 0x7ac   : > { %v9366_v0 = vld [vmem:[#allocation3 + $0x18] sm:$0xf0]  ;;  %v12446_v13 = vsel %vm9871_vm8, %v6346_v21, 0  ;;  %8237 = vst.msk [vmem:[#allocation3 + $0x24] sm:$0xf] %vm13985_vm9, %v8205_v8 }
 0x7ad   : > { %v9369_v61 = vor.u32 %v9579_v49, %v9366_v0  ;;  %6411 = vst.msk [vmem:[#allocation3 + $0x48] sm:$0xf] %vm13985_vm9, %v12446_v13  ;;  %vm6186_vm11 = vcmp.ge.f32.partialorder %v6154_v41, 0.0  ;;  %v6218_v2 = vmul.f32 0.2, %v6154_v41 }
 0x7af   : > { %9519 = vmatmul.msk.bf16.gmra.mxu3 %vm14597_vm2, %v9369_v61  ;;  %v6250_v3 = vsel %vm6186_vm11, %v6154_v41, %v6218_v2  ;;  %v6444_v40 = vld [vmem:[#allocation2 + $0x58] sm:$0xff]  ;;  %vm14606_vm11 = vcmask 588800  }
 0x7b0   : > { %v8142_v32 = vld [vmem:[#allocation2 + $0x51] sm:$0xff]  ;;  %6282 = vst.msk [vmem:[#allocation2 + $0x60] sm:$0xff] %vm14603_vm0, %v6250_v3  ;;  %v6050_v10 = vpop.f32.mrf.mxu1  ;;  %v6476_v24 = vpack.c.bf16 %v6444_v40, %v6444_v40 }
 0x7b1   : > { %v6315_v34 = vld [vmem:[#allocation2 + $0x57] sm:$0xff]  ;;  %v12455_v26 = vpack.c.bf16 %v8142_v32, %v8142_v32  ;;  %v6119_v36 = vmul.f32 %v12346_v44, %v6050_v10 }
 0x7b2   : > { %v12457_v57 = vpack.c.bf16 %v6315_v34, %v6315_v34  ;;  %6550 = vrot.lane.b32.xlu0 %v6476_v24, %s9660_s29 }
 0x7b3   : > { %v8206_v52 = vsel %vm14522_vm5, %v12455_v26, 0  ;;  %v6155_v21 = vadd.f32 %v12352_v6, %v6119_v36  ;;  %9351 = vmatmul.msk.bf16.gmra.mxu1 %vm14606_vm11, %v9313_v58  ;;  %v9581_v3 = vld [vmem:[#allocation3 + $0x24] sm:$0xf] }
 0x7b4   : > { %14604 = vst [vmem:[#allocation20_spill] sm:$0xff] %v12457_v57  ;;  %v6379_v22 = vsel %vm14605_vm6, %v12457_v57, 0  ;;  %vm14621_vm6 = vcmask 257152  }
 0x7b5   : > { %8238 = vst.msk [vmem:[#allocation3 + $0x2c] sm:$0xf] %vm13985_vm9, %v8206_v52  ;;  %vm6187_vm2 = vcmp.ge.f32.partialorder %v6155_v21, 0.0  ;;  %v6219_v35 = vmul.f32 0.2, %v6155_v21 }
 0x7b6   : > { %6412 = vst.msk [vmem:[#allocation3 + $0x50] sm:$0xf] %vm13985_vm9, %v6379_v22 }
 0x7b7   : > { %v6251_v49 = vsel %vm6187_vm2, %v6155_v21, %v6219_v35  ;;  %v6445_v59 = vld [vmem:[#allocation2 + $0x60] sm:$0xff]  ;;  %vm14608_vm2 = vmmov %vm14603_vm0 }
 0x7b8   : > { %v8143_v0 = vld [vmem:[#allocation2 + $0x59] sm:$0xff]  ;;  %6283 = vst.msk [vmem:[#allocation2 + $0x68] sm:$0xff] %vm14603_vm0, %v6251_v49  ;;  %v6052_v41 = vpop.f32.mrf.mxu1  ;;  %v6477_v61 = vpack.c.bf16 %v6445_v59, %v6445_v59 }
 0x7b9   : > { %v6316_v8 = vld [vmem:[#allocation2 + $0x5f] sm:$0xff]  ;;  %v8175_v53 = vpack.c.bf16 %v8143_v0, %v8143_v0  ;;  %v6120_v7 = vmul.f32 %v12346_v44, %v6052_v41  ;;  %v9571_v49 = vld [vmem:[#allocation3 + $0xe4] sm:$0xf0] }
 0x7ba   : > { %v6348_v2 = vpack.c.bf16 %v6316_v8, %v6316_v8  ;;  %6552 = vrot.lane.b32.xlu1 %v6477_v61, %s9660_s29  ;;  %v9317_v41 = vor.u32 %v9571_v49, %v9316_v5  ;;  %v7662_v54 = vld [vmem:[#allocation2 + $0x5f] sm:$0xff] }
 0x7bb   : > { %v12477_v32 = vsel %vm9871_vm8, %v8175_v53, 0  ;;  %v6156_v10 = vadd.f32 %v12352_v6, %v6120_v7 }
 0x7bc   : > { %v9374_v40 = vld [vmem:[#allocation3 + $0x28] sm:$0xf0]  ;;  %v12481_v34 = vsel %vm9871_vm8, %v6348_v2, 0  ;;  %8239 = vst.msk [vmem:[#allocation3 + $0x34] sm:$0xf] %vm13985_vm9, %v12477_v32 }
 0x7bd   : > { %14607 = vst [vmem:[#allocation21_spill] sm:$0xff] %v12481_v34  ;;  %v9377_v24 = vor.u32 %v9581_v3, %v9374_v40  ;;  %vm6188_vm11 = vcmp.ge.f32.partialorder %v6156_v10, 0.0  ;;  %v6220_v38 = vmul.f32 0.2, %v6156_v10 }
 0x7be   : > { %6413 = vst.msk [vmem:[#allocation3 + $0x58] sm:$0xf] %vm13985_vm9, %v12481_v34 }
 0x7bf   : > { %9520 = vmatmul.msk.bf16.gmra.mxu3 %vm14608_vm2, %v9377_v24  ;;  %v6252_v36 = vsel %vm6188_vm11, %v6156_v10, %v6220_v38  ;;  %v6446_v58 = vld [vmem:[#allocation2 + $0x68] sm:$0xff]  ;;  %vm14609_vm11 = vnez %v14064_v27  ;;  %vm14610_vm2 = vcmask 588800  }
 0x7c0   : > { %v8144_v52 = vld [vmem:[#allocation2 + $0x61] sm:$0xff]  ;;  %6284 = vst.msk [vmem:[#allocation2 + $0x70] sm:$0xff] %vm14603_vm0, %v6252_v36  ;;  %v6055_v21 = vpop.f32.mrf.mxu1  ;;  %v6478_v35 = vpack.c.bf16 %v6446_v58, %v6446_v58 }
 0x7c1   : > { %v6317_v22 = vld [vmem:[#allocation2 + $0x67] sm:$0xff]  ;;  %v12490_v59 = vpack.c.bf16 %v8144_v52, %v8144_v52  ;;  %v6121_v8 = vmul.f32 %v12346_v44, %v6055_v21 }
 0x7c2   : > { %v12492_v0 = vpack.c.bf16 %v6317_v22, %v6317_v22  ;;  %6554 = vrot.lane.b32.xlu2 %v6478_v35, %s9660_s29 }
 0x7c3   : > { %v8208_v61 = vsel %vm14520_vm12, %v12490_v59, 0  ;;  %v6157_v2 = vadd.f32 %v12352_v6, %v6121_v8  ;;  %9352 = vmatmul.msk.bf16.gmra.mxu1 %vm14610_vm2, %v9317_v41  ;;  %v9583_v22 = vld [vmem:[#allocation3 + $0x34] sm:$0xf]  ;;  %vm14613_vm2 = vcmask 130048  }
 0x7c4   : > { %v6381_v53 = vsel %vm14609_vm11, %v12492_v0, 0  ;;  %8240 = vst.msk [vmem:[#allocation3 + $0x3c] sm:$0xf] %vm13985_vm9, %v8208_v61  ;;  %v9320_v61 = vld [vmem:[#allocation3 + $0xf0] sm:$0xf] }
 0x7c5   : > { %6414 = vst.msk [vmem:[#allocation3 + $0x60] sm:$0xf] %vm13985_vm9, %v6381_v53  ;;  %vm6189_vm0 = vcmp.ge.f32.partialorder %v6157_v2, 0.0  ;;  %v6221_v7 = vmul.f32 0.2, %v6157_v2 }
 0x7c6   : > { %v9572_v53 = vld [vmem:[#allocation3 + $0xf4] sm:$0xf0] }
 0x7c7   : > { %v6253_v3 = vsel %vm6189_vm0, %v6157_v2, %v6221_v7  ;;  %v6447_v40 = vld [vmem:[#allocation2 + $0x70] sm:$0xff]  ;;  %vm14614_vm0 = vmmov %vm14613_vm2 }
 0x7c8   : > { %v8145_v10 = vld [vmem:[#allocation2 + $0x69] sm:$0xff]  ;;  %6285 = vst.msk [vmem:[#allocation2 + $0x78] sm:$0xff] %vm14611_vm3, %v6253_v3  ;;  %v6057_v38 = vpop.f32.mrf.mxu1  ;;  %v6479_v5 = vpack.c.bf16 %v6447_v40, %v6447_v40  ;;  %v9321_v40 = vor.u32 %v9572_v53, %v9320_v61 }
 0x7c9   : > { %v6318_v24 = vld [vmem:[#allocation2 + $0x6f] sm:$0xff]  ;;  %v8177_v36 = vpack.c.bf16 %v8145_v10, %v8145_v10  ;;  %v6122_v52 = vmul.f32 %v12346_v44, %v6057_v38 }
 0x7ca   : > { %v6350_v58 = vpack.c.bf16 %v6318_v24, %v6318_v24  ;;  %6556 = vrot.lane.b32.xlu0 %v6479_v5, %s9660_s29 }
 0x7cb   : > { %v9382_v21 = vld [vmem:[#allocation3 + $0x38] sm:$0xf0]  ;;  %v12511_v35 = vsel %vm9871_vm8, %v8177_v36, 0  ;;  %v6158_v8 = vadd.f32 %v12352_v6, %v6122_v52 }
 0x7cc   : > { %v12515_v49 = vsel %vm9871_vm8, %v6350_v58, 0  ;;  %v9385_v41 = vor.u32 %v9583_v22, %v9382_v21  ;;  %8241 = vst.msk [vmem:[#allocation3 + $0x44] sm:$0xf] %vm13985_vm9, %v12511_v35  ;;  %v6533_v58 = vpop.permute.xlu0 %6532 }
 0x7cd   : > { %14612 = vst [vmem:[#allocation23_spill] sm:$0xff] %v12515_v49  ;;  %vm6190_vm3 = vcmp.ge.f32.partialorder %v6158_v8, 0.0  ;;  %v6222_v2 = vmul.f32 0.2, %v6158_v8 }
 0x7ce   : > { %6415 = vst.msk [vmem:[#allocation3 + $0x68] sm:$0xf] %vm13985_vm9, %v12515_v49  ;;  %vm14616_vm9 = vcmask 257152  }
 0x7cf   : > { %9521 = vmatmul.msk.bf16.gmra.mxu3 %vm14613_vm2, %v9385_v41  ;;  %v6254_v7 = vsel %vm6190_vm3, %v6158_v8, %v6222_v2  ;;  %v6448_v3 = vld [vmem:[#allocation2 + $0x78] sm:$0xff]  ;;  %6628 = vst.msk [vmem:[#allocation3 + $0x8] sm:$0xf] %vm14616_vm9, %v6533_v58  ;;  %vm14617_vm3 = vnez %v14078_v15  ;;  %vm14618_vm2 = vcmask 588800  }
 0x7d0   : > { %v8146_v10 = vld [vmem:[#allocation2 + $0x71] sm:$0xff]  ;;  %6286 = vst.msk [vmem:[#allocation2 + $0x80] sm:$0xff] %vm14614_vm0, %v6254_v7  ;;  %v6060_v38 = vpop.f32.mrf.mxu1  ;;  %v6480_v5 = vpack.c.bf16 %v6448_v3, %v6448_v3  ;;  %vm14619_vm0 = vcmask 125952  }
 0x7d1   : > { %v6319_v24 = vld [vmem:[#allocation2 + $0x77] sm:$0xff]  ;;  %v12524_v36 = vpack.c.bf16 %v8146_v10, %v8146_v10  ;;  %v6123_v22 = vmul.f32 %v12346_v44, %v6060_v38  ;;  %vm14620_vm11 = vmmov %vm14619_vm0 }
 0x7d2   : > { %v12526_v52 = vpack.c.bf16 %v6319_v24, %v6319_v24  ;;  %6558 = vrot.lane.b32.xlu1 %v6480_v5, %s9660_s29 }
 0x7d3   : > { %v8210_v21 = vsel %vm14521_vm1, %v12524_v36, 0  ;;  %v6159_v41 = vadd.f32 %v12352_v6, %v6123_v22  ;;  %9353 = vmatmul.msk.bf16.gmra.mxu1 %vm14618_vm2, %v9321_v40  ;;  %v9585_v22 = vld [vmem:[#allocation3 + $0x44] sm:$0xf]  ;;  %vm14626_vm2 = vcmask 130048  }
 0x7d4   : > { %14615 = vst [vmem:[#allocation5_spill] sm:$0xff] %v12526_v52  ;;  %v6383_v8 = vsel %vm14617_vm3, %v12526_v52, 0  ;;  %v6537_v61 = vpop.permute.xlu2 %6536 }
 0x7d5   : > { %8242 = vst.msk [vmem:[#allocation3 + $0x4c] sm:$0xf] %vm14619_vm0, %v8210_v21  ;;  %vm6191_vm9 = vcmp.ge.f32.partialorder %v6159_v41, 0.0  ;;  %v6223_v53 = vmul.f32 0.2, %v6159_v41 }
 0x7d6   : > { %6416 = vst.msk [vmem:[#allocation3 + $0x70] sm:$0xf] %vm14620_vm11, %v6383_v8 }
 0x7d7   : > { %6630 = vst.msk [vmem:[#allocation3 + $0x18] sm:$0xf] %vm14621_vm6, %v6537_v61  ;;  %v6255_v2 = vsel %vm6191_vm9, %v6159_v41, %v6223_v53  ;;  %v6449_v7 = vld [vmem:[#allocation2 + $0x80] sm:$0xff]  ;;  %vm14625_vm6 = vmmov %vm14619_vm0  ;;  %vm14629_vm9 = vnez %v14116_v16 }
 0x7d8   : > { %v8147_v3 = vld [vmem:[#allocation2 + $0x79] sm:$0xff]  ;;  %6287 = vst.msk [vmem:[#allocation2 + $0x88] sm:$0xff] %vm14622_vm4, %v6255_v2  ;;  %v6062_v24 = vpop.f32.mrf.mxu1  ;;  %v6481_v38 = vpack.c.bf16 %v6449_v7, %v6449_v7  ;;  %vm14624_vm4 = vmmov %vm14619_vm0 }
 0x7d9   : > { %v6320_v10 = vld [vmem:[#allocation2 + $0x7f] sm:$0xff]  ;;  %v8179_v5 = vpack.c.bf16 %v8147_v3, %v8147_v3  ;;  %v6124_v40 = vmul.f32 %v12346_v44, %v6062_v24  ;;  %vm14627_vm0 = vmmov %vm14626_vm2 }
 0x7da   : > { %v6352_v58 = vpack.c.bf16 %v6320_v10, %v6320_v10  ;;  %6560 = vrot.lane.b32.xlu2 %v6481_v38, %s9660_s29  ;;  %vm14634_vm3 = vmmov %vm14627_vm0 }
 0x7db   : > { %v12547_v8 = vsel %vm9871_vm8, %v8179_v5, 0  ;;  %v6160_v61 = vadd.f32 %v12352_v6, %v6124_v40 }
 0x7dc   : > { %v9390_v21 = vld [vmem:[#allocation3 + $0x48] sm:$0xf0]  ;;  %v12551_v41 = vsel %vm9871_vm8, %v6352_v58, 0  ;;  %8243 = vst.msk [vmem:[#allocation3 + $0x54] sm:$0xf] %vm14624_vm4, %v12547_v8 }
 0x7dd   : > { %14623 = vst [vmem:[#allocation12_spill] sm:$0xff] %v12551_v41  ;;  %v9393_v53 = vor.u32 %v9585_v22, %v9390_v21  ;;  %vm6192_vm11 = vcmp.ge.f32.partialorder %v6160_v61, 0.0  ;;  %v6224_v2 = vmul.f32 0.2, %v6160_v61 }
 0x7de   : > { %6417 = vst.msk [vmem:[#allocation3 + $0x78] sm:$0xf] %vm14625_vm6, %v12551_v41  ;;  %vm14630_vm6 = vmmov %vm14624_vm4 }
 0x7df   : > { %9522 = vmatmul.msk.bf16.gmra.mxu3 %vm14626_vm2, %v9393_v53  ;;  %v6256_v7 = vsel %vm6192_vm11, %v6160_v61, %v6224_v2  ;;  %v6450_v3 = vld [vmem:[#allocation2 + $0x88] sm:$0xff]  ;;  %vm14631_vm2 = vcmask 257152  }
 0x7e0   : > { %v8148_v10 = vld [vmem:[#allocation2 + $0x81] sm:$0xff]  ;;  %6288 = vst.msk [vmem:[#allocation2 + $0x90] sm:$0xff] %vm14627_vm0, %v6256_v7  ;;  %v6065_v38 = vpop.f32.mrf.mxu1  ;;  %v6482_v5 = vpack.c.bf16 %v6450_v3, %v6450_v3 }
 0x7e1   : > { %v6321_v24 = vld [vmem:[#allocation2 + $0x87] sm:$0xff]  ;;  %v12560_v58 = vpack.c.bf16 %v8148_v10, %v8148_v10  ;;  %v6125_v22 = vmul.f32 %v12346_v44, %v6065_v38 }
 0x7e2   : > { %v12562_v40 = vpack.c.bf16 %v6321_v24, %v6321_v24  ;;  %6562 = vrot.lane.b32.xlu0 %v6482_v5, %s9660_s29 }
 0x7e3   : > { %v8212_v21 = vsel %vm14526_vm7, %v12560_v58, 0  ;;  %v6161_v53 = vadd.f32 %v12352_v6, %v6125_v22 }
 0x7e4   : > { %14628 = vst [vmem:[#allocation9_spill] sm:$0xff] %v12562_v40  ;;  %v6385_v61 = vsel %vm14629_vm9, %v12562_v40, 0  ;;  %v6535_v2 = vpop.permute.xlu1 %6534  ;;  %vm14641_vm9 = vcmask 130048  }
 0x7e5   : > { %8244 = vst.msk [vmem:[#allocation3 + $0x5c] sm:$0xf] %vm14624_vm4, %v8212_v21  ;;  %vm6193_vm11 = vcmp.ge.f32.partialorder %v6161_v53, 0.0  ;;  %v6225_v7 = vmul.f32 0.2, %v6161_v53 }
 0x7e6   : > { %6418 = vst.msk [vmem:[#allocation3 + $0x80] sm:$0xf] %vm14630_vm6, %v6385_v61  ;;  %v9587_v21 = vld [vmem:[#allocation3 + $0x54] sm:$0xf]  ;;  %vm14633_vm6 = vmmov %vm14624_vm4 }
 0x7e7   : > { %6629 = vst.msk [vmem:[#allocation3 + $0x10] sm:$0xf] %vm14631_vm2, %v6535_v2  ;;  %v6257_v3 = vsel %vm6193_vm11, %v6161_v53, %v6225_v7  ;;  %v6451_v10 = vld [vmem:[#allocation2 + $0x90] sm:$0xff] }
 0x7e8   : > { %v8149_v24 = vld [vmem:[#allocation2 + $0x89] sm:$0xff]  ;;  %6289 = vst.msk [vmem:[#allocation2 + $0x98] sm:$0xff] %vm14627_vm0, %v6257_v3  ;;  %v6067_v5 = vpop.f32.mrf.mxu1  ;;  %v6483_v27 = vpack.c.bf16 %v6451_v10, %v6451_v10 }
 0x7e9   : > { %v6322_v38 = vld [vmem:[#allocation2 + $0x8f] sm:$0xff]  ;;  %v8181_v52 = vpack.c.bf16 %v8149_v24, %v8149_v24  ;;  %v6126_v22 = vmul.f32 %v12346_v44, %v6067_v5 }
 0x7ea   : > { %v6354_v15 = vpack.c.bf16 %v6322_v38, %v6322_v38  ;;  %6564 = vrot.lane.b32.xlu1 %v6483_v27, %s9660_s29 }
 0x7eb   : > { %v12581_v40 = vsel %vm9871_vm8, %v8181_v52, 0  ;;  %v6162_v2 = vadd.f32 %v12352_v6, %v6126_v22 }
 0x7ec   : > { %v9398_v61 = vld [vmem:[#allocation3 + $0x58] sm:$0xf0]  ;;  %v12585_v53 = vsel %vm9871_vm8, %v6354_v15, 0  ;;  %8245 = vst.msk [vmem:[#allocation3 + $0x64] sm:$0xf] %vm14624_vm4, %v12581_v40  ;;  %v6543_v3 = vpop.permute.xlu2 %6542  ;;  %vm14636_vm4 = vnez %v14205_v18 }
 0x7ed   : > { %14632 = vst [vmem:[#allocation7_spill] sm:$0xff] %v12585_v53  ;;  %v9401_v7 = vor.u32 %v9587_v21, %v9398_v61  ;;  %vm6194_vm11 = vcmp.ge.f32.partialorder %v6162_v2, 0.0  ;;  %v6226_v27 = vmul.f32 0.2, %v6162_v2 }
 0x7ee   : > { %6419 = vst.msk [vmem:[#allocation3 + $0x88] sm:$0xf] %vm14633_vm6, %v12585_v53  ;;  %vm14637_vm6 = vnez %v14381_v47 }
 0x7ef   : > { %6633 = vst.msk [vmem:[#allocation3 + $0x30] sm:$0xf] %vm14631_vm2, %v6543_v3  ;;  %9523 = vmatmul.msk.bf16.gmra.mxu3 %vm14627_vm0, %v9401_v7  ;;  %v6258_v52 = vsel %vm6194_vm11, %v6162_v2, %v6226_v27  ;;  %v6452_v10 = vld [vmem:[#allocation2 + $0x98] sm:$0xff]  ;;  %vm14640_vm0 = vcmask 257152  }
 0x7f0   : > { %v8150_v15 = vld [vmem:[#allocation2 + $0x91] sm:$0xff]  ;;  %6290 = vst.msk [vmem:[#allocation2 + $0xa0] sm:$0xff] %vm14634_vm3, %v6258_v52  ;;  %v6070_v38 = vpop.f32.mrf.mxu1  ;;  %v6484_v5 = vpack.c.bf16 %v6452_v10, %v6452_v10  ;;  %vm14638_vm3 = vcmask 125952  }
 0x7f1   : > { %v6323_v24 = vld [vmem:[#allocation2 + $0x97] sm:$0xff]  ;;  %v12595_v22 = vpack.c.bf16 %v8150_v15, %v8150_v15  ;;  %v6127_v61 = vmul.f32 %v12346_v44, %v6070_v38  ;;  %vm14639_vm11 = vmmov %vm14638_vm3 }
 0x7f2   : > { %v12597_v21 = vpack.c.bf16 %v6323_v24, %v6323_v24  ;;  %6566 = vrot.lane.b32.xlu2 %v6484_v5, %s9660_s29 }
 0x7f3   : > { %v8214_v7 = vsel %vm14636_vm4, %v12595_v22, 0  ;;  %v6163_v3 = vadd.f32 %v12352_v6, %v6127_v61 }
 0x7f4   : > { %14635 = vst [vmem:[#allocation14_spill] sm:$0xff] %v12597_v21  ;;  %v6387_v2 = vsel %vm14637_vm6, %v12597_v21, 0  ;;  %v6539_v27 = vpop.permute.xlu0 %6538 }
 0x7f5   : > { %8246 = vst.msk [vmem:[#allocation3 + $0x6c] sm:$0xf] %vm14638_vm3, %v8214_v7  ;;  %vm6195_vm2 = vcmp.ge.f32.partialorder %v6163_v3, 0.0  ;;  %v6227_v52 = vmul.f32 0.2, %v6163_v3 }
 0x7f6   : > { %6420 = vst.msk [vmem:[#allocation3 + $0x90] sm:$0xf] %vm14639_vm11, %v6387_v2  ;;  %v9589_v7 = vld [vmem:[#allocation3 + $0x64] sm:$0xf] }
 0x7f7   : > { %6631 = vst.msk [vmem:[#allocation3 + $0x20] sm:$0xf] %vm14640_vm0, %v6539_v27  ;;  %v6259_v10 = vsel %vm6195_vm2, %v6163_v3, %v6227_v52  ;;  %v6453_v15 = vld [vmem:[#allocation2 + $0xa0] sm:$0xff]  ;;  %vm14644_vm2 = vmmov %vm14640_vm0  ;;  %vm14645_vm0 = vcmask 130048  }
 0x7f8   : > { %v8151_v24 = vld [vmem:[#allocation2 + $0x99] sm:$0xff]  ;;  %6291 = vst.msk [vmem:[#allocation2 + $0xa8] sm:$0xff] %vm14641_vm9, %v6259_v10  ;;  %v6072_v5 = vpop.f32.mrf.mxu1  ;;  %v6485_v47 = vpack.c.bf16 %v6453_v15, %v6453_v15  ;;  %vm14643_vm9 = vmmov %vm14638_vm3 }
 0x7f9   : > { %v6324_v38 = vld [vmem:[#allocation2 + $0x9f] sm:$0xff]  ;;  %v8183_v53 = vpack.c.bf16 %v8151_v24, %v8151_v24  ;;  %v6128_v61 = vmul.f32 %v12346_v44, %v6072_v5  ;;  %vm14646_vm6 = vmmov %vm14645_vm0 }
 0x7fa   : > { %v6356_v16 = vpack.c.bf16 %v6324_v38, %v6324_v38  ;;  %6568 = vrot.lane.b32.xlu0 %v6485_v47, %s9660_s29 }
 0x7fb   : > { %v12616_v21 = vsel %vm9871_vm8, %v8183_v53, 0  ;;  %v6164_v27 = vadd.f32 %v12352_v6, %v6128_v61 }
 0x7fc   : > { %v9406_v2 = vld [vmem:[#allocation3 + $0x68] sm:$0xf0]  ;;  %v12620_v3 = vsel %vm9871_vm8, %v6356_v16, 0  ;;  %8247 = vst.msk [vmem:[#allocation3 + $0x74] sm:$0xf] %vm14643_vm9, %v12616_v21  ;;  %v6541_v10 = vpop.permute.xlu1 %6540  ;;  %vm14648_vm9 = vnez %v14207_v17 }
 0x7fd   : > { %14642 = vst [vmem:[#allocation11_spill] sm:$0xff] %v12620_v3  ;;  %v9409_v52 = vor.u32 %v9589_v7, %v9406_v2  ;;  %vm6196_vm11 = vcmp.ge.f32.partialorder %v6164_v27, 0.0  ;;  %v6228_v47 = vmul.f32 0.2, %v6164_v27 }
 0x7fe   : > { %6421 = vst.msk [vmem:[#allocation3 + $0x98] sm:$0xf] %vm14638_vm3, %v12620_v3  ;;  %vm14649_vm3 = vnez %v14378_v19 }
 0x7ff   : > { %6632 = vst.msk [vmem:[#allocation3 + $0x28] sm:$0xf] %vm14644_vm2, %v6541_v10  ;;  %9524 = vmatmul.msk.bf16.gmra.mxu3 %vm14645_vm0, %v9409_v52  ;;  %v6260_v53 = vsel %vm6196_vm11, %v6164_v27, %v6228_v47  ;;  %v6454_v15 = vld [vmem:[#allocation2 + $0xa8] sm:$0xff]  ;;  %vm14652_vm0 = vcmask 257152  }
 0x800   : > { %v8152_v16 = vld [vmem:[#allocation2 + $0xa1] sm:$0xff]  ;;  %6292 = vst.msk [vmem:[#allocation2 + $0xb0] sm:$0xff] %vm14646_vm6, %v6260_v53  ;;  %v6075_v38 = vpop.f32.mrf.mxu1  ;;  %v6486_v5 = vpack.c.bf16 %v6454_v15, %v6454_v15  ;;  %vm14650_vm6 = vcmask 125952  }
 0x801   : > { %v6325_v24 = vld [vmem:[#allocation2 + $0xa7] sm:$0xff]  ;;  %v12630_v61 = vpack.c.bf16 %v8152_v16, %v8152_v16  ;;  %v6129_v2 = vmul.f32 %v12346_v44, %v6075_v38  ;;  %vm14651_vm11 = vmmov %vm14650_vm6 }
 0x802   : > { %v12632_v7 = vpack.c.bf16 %v6325_v24, %v6325_v24  ;;  %6570 = vrot.lane.b32.xlu1 %v6486_v5, %s9660_s29 }
 0x803   : > { %v8216_v52 = vsel %vm14648_vm9, %v12630_v61, 0  ;;  %v6165_v10 = vadd.f32 %v12352_v6, %v6129_v2 }
 0x804   : > { %14647 = vst [vmem:[#allocation16_spill] sm:$0xff] %v12632_v7  ;;  %v6389_v27 = vsel %vm14649_vm3, %v12632_v7, 0  ;;  %v6549_v47 = vpop.permute.xlu2 %6548 }
 0x805   : > { %8248 = vst.msk [vmem:[#allocation3 + $0x7c] sm:$0xf] %vm14650_vm6, %v8216_v52  ;;  %vm6197_vm2 = vcmp.ge.f32.partialorder %v6165_v10, 0.0  ;;  %v6229_v53 = vmul.f32 0.2, %v6165_v10 }
 0x806   : > { %6422 = vst.msk [vmem:[#allocation3 + $0xa0] sm:$0xf] %vm14651_vm11, %v6389_v27  ;;  %v9591_v52 = vld [vmem:[#allocation3 + $0x74] sm:$0xf] }
 0x807   : > { %6636 = vst.msk [vmem:[#allocation3 + $0x48] sm:$0xf] %vm14652_vm0, %v6549_v47  ;;  %v6261_v15 = vsel %vm6197_vm2, %v6165_v10, %v6229_v53  ;;  %v6455_v16 = vld [vmem:[#allocation2 + $0xb0] sm:$0xff]  ;;  %vm14656_vm2 = vmmov %vm14652_vm0  ;;  %vm14657_vm0 = vcmask 130048  }
 0x808   : > { %v8153_v24 = vld [vmem:[#allocation2 + $0xa9] sm:$0xff]  ;;  %6293 = vst.msk [vmem:[#allocation2 + $0xb8] sm:$0xff] %vm14653_vm15, %v6261_v15  ;;  %v6077_v5 = vpop.f32.mrf.mxu1  ;;  %v6487_v19 = vpack.c.bf16 %v6455_v16, %v6455_v16  ;;  %vm14655_vm15 = vmmov %vm14650_vm6 }
 0x809   : > { %v6326_v38 = vld [vmem:[#allocation2 + $0xaf] sm:$0xff]  ;;  %v8185_v7 = vpack.c.bf16 %v8153_v24, %v8153_v24  ;;  %v6130_v2 = vmul.f32 %v12346_v44, %v6077_v5  ;;  %vm14658_vm3 = vmmov %vm14657_vm0 }
 0x80a   : > { %v6358_v3 = vpack.c.bf16 %v6326_v38, %v6326_v38  ;;  %6572 = vrot.lane.b32.xlu2 %v6487_v19, %s9660_s29 }
 0x80b   : > { %v12651_v34 = vsel %vm9871_vm8, %v8185_v7, 0  ;;  %v6166_v47 = vadd.f32 %v12352_v6, %v6130_v2 }
 0x80c   : > { %v9414_v27 = vld [vmem:[#allocation3 + $0x78] sm:$0xf0]  ;;  %v12655_v10 = vsel %vm9871_vm8, %v6358_v3, 0  ;;  %8249 = vst.msk [vmem:[#allocation3 + $0x84] sm:$0xf] %vm14655_vm15, %v12651_v34  ;;  %v6545_v15 = vpop.permute.xlu0 %6544  ;;  %vm14660_vm15 = vnez %v14209_v50 }
 0x80d   : > { %14654 = vst [vmem:[#allocation28_spill] sm:$0xff] %v12655_v10  ;;  %v9417_v53 = vor.u32 %v9591_v52, %v9414_v27  ;;  %vm6198_vm11 = vcmp.ge.f32.partialorder %v6166_v47, 0.0  ;;  %v6230_v19 = vmul.f32 0.2, %v6166_v47 }
 0x80e   : > { %6423 = vst.msk [vmem:[#allocation3 + $0xa8] sm:$0xf] %vm14650_vm6, %v12655_v10  ;;  %vm14661_vm6 = vnez %v14376_v29 }
 0x80f   : > { %6634 = vst.msk [vmem:[#allocation3 + $0x38] sm:$0xf] %vm14656_vm2, %v6545_v15  ;;  %9525 = vmatmul.msk.bf16.gmra.mxu3 %vm14657_vm0, %v9417_v53  ;;  %v6262_v7 = vsel %vm6198_vm11, %v6166_v47, %v6230_v19  ;;  %v6456_v16 = vld [vmem:[#allocation2 + $0xb8] sm:$0xff]  ;;  %vm14664_vm0 = vcmask 257152  }
 0x810   : > { %v8154_v3 = vld [vmem:[#allocation2 + $0xb1] sm:$0xff]  ;;  %6294 = vst.msk [vmem:[#allocation2 + $0xc0] sm:$0xff] %vm14658_vm3, %v6262_v7  ;;  %v6080_v38 = vpop.f32.mrf.mxu1  ;;  %v6488_v5 = vpack.c.bf16 %v6456_v16, %v6456_v16  ;;  %vm14662_vm3 = vcmask 125952  }
 0x811   : > { %v6327_v24 = vld [vmem:[#allocation2 + $0xb7] sm:$0xff]  ;;  %v12665_v2 = vpack.c.bf16 %v8154_v3, %v8154_v3  ;;  %v6131_v27 = vmul.f32 %v12346_v44, %v6080_v38  ;;  %vm14663_vm11 = vmmov %vm14662_vm3 }
 0x812   : > { %v12667_v52 = vpack.c.bf16 %v6327_v24, %v6327_v24  ;;  %6574 = vrot.lane.b32.xlu0 %v6488_v5, %s9660_s29 }
 0x813   : > { %v8218_v53 = vsel %vm14660_vm15, %v12665_v2, 0  ;;  %v6167_v15 = vadd.f32 %v12352_v6, %v6131_v27  ;;  %vm14677_vm15 = vcmask 130048  }
 0x814   : > { %14659 = vst [vmem:[#allocation29_spill] sm:$0xff] %v12667_v52  ;;  %v6391_v47 = vsel %vm14661_vm6, %v12667_v52, 0  ;;  %v6547_v19 = vpop.permute.xlu1 %6546 }
 0x815   : > { %8250 = vst.msk [vmem:[#allocation3 + $0x8c] sm:$0xf] %vm14662_vm3, %v8218_v53  ;;  %vm6199_vm2 = vcmp.ge.f32.partialorder %v6167_v15, 0.0  ;;  %v6231_v7 = vmul.f32 0.2, %v6167_v15 }
 0x816   : > { %6424 = vst.msk [vmem:[#allocation3 + $0xb0] sm:$0xf] %vm14663_vm11, %v6391_v47  ;;  %v9593_v53 = vld [vmem:[#allocation3 + $0x84] sm:$0xf] }
 0x817   : > { %6635 = vst.msk [vmem:[#allocation3 + $0x40] sm:$0xf] %vm14664_vm0, %v6547_v19  ;;  %v6263_v16 = vsel %vm6199_vm2, %v6167_v15, %v6231_v7  ;;  %v6457_v3 = vld [vmem:[#allocation2 + $0xc0] sm:$0xff]  ;;  %vm14668_vm2 = vmmov %vm14664_vm0  ;;  %vm14669_vm0 = vcmask 130048  }
 0x818   : > { %v8155_v24 = vld [vmem:[#allocation2 + $0xb9] sm:$0xff]  ;;  %6295 = vst.msk [vmem:[#allocation2 + $0xc8] sm:$0xff] %vm14665_vm14, %v6263_v16  ;;  %v6082_v5 = vpop.f32.mrf.mxu1  ;;  %v6489_v29 = vpack.c.bf16 %v6457_v3, %v6457_v3  ;;  %vm14667_vm14 = vmmov %vm14662_vm3 }
 0x819   : > { %v6328_v38 = vld [vmem:[#allocation2 + $0xbf] sm:$0xff]  ;;  %v8187_v52 = vpack.c.bf16 %v8155_v24, %v8155_v24  ;;  %v6132_v27 = vmul.f32 %v12346_v44, %v6082_v5  ;;  %vm14670_vm6 = vmmov %vm14669_vm0 }
 0x81a   : > { %v6360_v10 = vpack.c.bf16 %v6328_v38, %v6328_v38  ;;  %6576 = vrot.lane.b32.xlu1 %v6489_v29, %s9660_s29 }
 0x81b   : > { %v12686_v49 = vsel %vm9871_vm8, %v8187_v52, 0  ;;  %v6168_v19 = vadd.f32 %v12352_v6, %v6132_v27 }
 0x81c   : > { %v9422_v47 = vld [vmem:[#allocation3 + $0x88] sm:$0xf0]  ;;  %v12690_v15 = vsel %vm9871_vm8, %v6360_v10, 0  ;;  %8251 = vst.msk [vmem:[#allocation3 + $0x94] sm:$0xf] %vm14667_vm14, %v12686_v49  ;;  %v6555_v16 = vpop.permute.xlu2 %6554  ;;  %vm14672_vm14 = vnez %v14211_v63 }
 0x81d   : > { %14666 = vst [vmem:[#allocation30_spill] sm:$0xff] %v12690_v15  ;;  %v9425_v7 = vor.u32 %v9593_v53, %v9422_v47  ;;  %vm6200_vm11 = vcmp.ge.f32.partialorder %v6168_v19, 0.0  ;;  %v6232_v29 = vmul.f32 0.2, %v6168_v19 }
 0x81e   : > { %6425 = vst.msk [vmem:[#allocation3 + $0xb8] sm:$0xf] %vm14662_vm3, %v12690_v15  ;;  %vm14673_vm3 = vnez %v14397_v37 }
 0x81f   : > { %6639 = vst.msk [vmem:[#allocation3 + $0x60] sm:$0xf] %vm14668_vm2, %v6555_v16  ;;  %9526 = vmatmul.msk.bf16.gmra.mxu3 %vm14669_vm0, %v9425_v7  ;;  %v6264_v52 = vsel %vm6200_vm11, %v6168_v19, %v6232_v29  ;;  %v6458_v3 = vld [vmem:[#allocation2 + $0xc8] sm:$0xff]  ;;  %vm14676_vm0 = vcmask 257152  }
 0x820   : > { %v8156_v10 = vld [vmem:[#allocation2 + $0xc1] sm:$0xff]  ;;  %6296 = vst.msk [vmem:[#allocation2 + $0xd0] sm:$0xff] %vm14670_vm6, %v6264_v52  ;;  %v6085_v38 = vpop.f32.mrf.mxu1  ;;  %v6490_v5 = vpack.c.bf16 %v6458_v3, %v6458_v3  ;;  %vm14674_vm6 = vcmask 125952  }
 0x821   : > { %v6329_v24 = vld [vmem:[#allocation2 + $0xc7] sm:$0xff]  ;;  %v12700_v27 = vpack.c.bf16 %v8156_v10, %v8156_v10  ;;  %v6133_v47 = vmul.f32 %v12346_v44, %v6085_v38  ;;  %vm14675_vm11 = vmmov %vm14674_vm6 }
 0x822   : > { %v12702_v53 = vpack.c.bf16 %v6329_v24, %v6329_v24  ;;  %6578 = vrot.lane.b32.xlu2 %v6490_v5, %s9660_s29 }
 0x823   : > { %v8220_v7 = vsel %vm14672_vm14, %v12700_v27, 0  ;;  %v6169_v16 = vadd.f32 %v12352_v6, %v6133_v47  ;;  %v12720_v6 = vld [vmem:[%s13833_s5] ss:$0 sm:$0xff]  ;;  %vm14689_vm14 = vcmask 130048  }
 0x824   : > { %14671 = vst [vmem:[#allocation31_spill] sm:$0xff] %v12702_v53  ;;  %v6393_v19 = vsel %vm14673_vm3, %v12702_v53, 0  ;;  %v6551_v29 = vpop.permute.xlu0 %6550 }
 0x825   : > { %8252 = vst.msk [vmem:[#allocation3 + $0x9c] sm:$0xf] %vm14674_vm6, %v8220_v7  ;;  %vm6201_vm2 = vcmp.ge.f32.partialorder %v6169_v16, 0.0  ;;  %v6233_v52 = vmul.f32 0.2, %v6169_v16 }
 0x826   : > { %6426 = vst.msk [vmem:[#allocation3 + $0xc0] sm:$0xf] %vm14675_vm11, %v6393_v19  ;;  %v9595_v7 = vld [vmem:[#allocation3 + $0x94] sm:$0xf] }
 0x827   : > { %6637 = vst.msk [vmem:[#allocation3 + $0x50] sm:$0xf] %vm14676_vm0, %v6551_v29  ;;  %v6265_v44 = vsel %vm6201_vm2, %v6169_v16, %v6233_v52  ;;  %v6459_v3 = vld [vmem:[#allocation2 + $0xd0] sm:$0xff]  ;;  %v12735_v52 = vld [vmem:[%s13834_s6] ss:$0 sm:$0xff]  ;;  %vm14680_vm2 = vmmov %vm14676_vm0  ;;  %vm14681_vm0 = vcmask 130048  }
 0x828   : > { %v8157_v10 = vld [vmem:[#allocation2 + $0xc9] sm:$0xff]  ;;  %6297 = vst.msk [vmem:[#allocation2 + $0xd8] sm:$0xff] %vm14677_vm15, %v6265_v44  ;;  %v6087_v38 = vpop.f32.mrf.mxu1  ;;  %v6491_v5 = vpack.c.bf16 %v6459_v3, %v6459_v3  ;;  %vm14679_vm15 = vmmov %vm14674_vm6 }
 0x829   : > { %v6330_v24 = vld [vmem:[#allocation2 + $0xcf] sm:$0xff]  ;;  %v8189_v37 = vpack.c.bf16 %v8157_v10, %v8157_v10  ;;  %v6134_v47 = vmul.f32 %v12720_v6, %v6087_v38  ;;  %vm14682_vm3 = vmmov %vm14681_vm0 }
 0x82a   : > { %v6362_v15 = vpack.c.bf16 %v6330_v24, %v6330_v24  ;;  %6580 = vrot.lane.b32.xlu0 %v6491_v5, %s9660_s29 }
 0x82b   : > { %v12726_v16 = vsel %vm9871_vm8, %v8189_v37, 0  ;;  %v6170_v44 = vadd.f32 %v12735_v52, %v6134_v47 }
 0x82c   : > { %v9430_v19 = vld [vmem:[#allocation3 + $0x98] sm:$0xf0]  ;;  %v12730_v29 = vsel %vm9871_vm8, %v6362_v15, 0  ;;  %8253 = vst.msk [vmem:[#allocation3 + $0xa4] sm:$0xf] %vm14679_vm15, %v12726_v16  ;;  %v6553_v10 = vpop.permute.xlu1 %6552  ;;  %vm14684_vm15 = vnez %v14213_v20 }
 0x82d   : > { %14678 = vst [vmem:[#allocation32_spill] sm:$0xff] %v12730_v29  ;;  %v9433_v3 = vor.u32 %v9595_v7, %v9430_v19  ;;  %vm6202_vm11 = vcmp.ge.f32.partialorder %v6170_v44, 0.0  ;;  %v6234_v37 = vmul.f32 0.2, %v6170_v44 }
 0x82e   : > { %6427 = vst.msk [vmem:[#allocation3 + $0xc8] sm:$0xf] %vm14674_vm6, %v12730_v29  ;;  %vm14685_vm6 = vnez %v14394_v4 }
 0x82f   : > { %6638 = vst.msk [vmem:[#allocation3 + $0x58] sm:$0xf] %vm14680_vm2, %v6553_v10  ;;  %9527 = vmatmul.msk.bf16.gmra.mxu3 %vm14681_vm0, %v9433_v3  ;;  %v6266_v15 = vsel %vm6202_vm11, %v6170_v44, %v6234_v37  ;;  %v6460_v24 = vld [vmem:[#allocation2 + $0xd8] sm:$0xff]  ;;  %vm14688_vm0 = vcmask 257152  }
 0x830   : > { %v8158_v38 = vld [vmem:[#allocation2 + $0xd1] sm:$0xff]  ;;  %6298 = vst.msk [vmem:[#allocation2 + $0xe0] sm:$0xff] %vm14682_vm3, %v6266_v15  ;;  %v6090_v47 = vpop.f32.mrf.mxu1  ;;  %v6492_v7 = vpack.c.bf16 %v6460_v24, %v6460_v24  ;;  %vm14686_vm3 = vcmask 125952  }
 0x831   : > { %v6331_v5 = vld [vmem:[#allocation2 + $0xd7] sm:$0xff]  ;;  %v12745_v19 = vpack.c.bf16 %v8158_v38, %v8158_v38  ;;  %v6135_v29 = vmul.f32 %v12720_v6, %v6090_v47  ;;  %vm14687_vm11 = vmmov %vm14686_vm3 }
 0x832   : > { %v12747_v53 = vpack.c.bf16 %v6331_v5, %v6331_v5  ;;  %6582 = vrot.lane.b32.xlu1 %v6492_v7, %s9660_s29 }
 0x833   : > { %v8222_v3 = vsel %vm14684_vm15, %v12745_v19, 0  ;;  %v6171_v10 = vadd.f32 %v12735_v52, %v6135_v29 }
 0x834   : > { %14683 = vst [vmem:[#allocation33_spill] sm:$0xff] %v12747_v53  ;;  %v6395_v44 = vsel %vm14685_vm6, %v12747_v53, 0  ;;  %v6561_v37 = vpop.permute.xlu2 %6560 }
 0x835   : > { %8254 = vst.msk [vmem:[#allocation3 + $0xac] sm:$0xf] %vm14686_vm3, %v8222_v3  ;;  %vm6203_vm2 = vcmp.ge.f32.partialorder %v6171_v10, 0.0  ;;  %v6235_v15 = vmul.f32 0.2, %v6171_v10 }
 0x836   : > { %6428 = vst.msk [vmem:[#allocation3 + $0xd0] sm:$0xf] %vm14687_vm11, %v6395_v44  ;;  %v9597_v3 = vld [vmem:[#allocation3 + $0xa4] sm:$0xf] }
 0x837   : > { %6642 = vst.msk [vmem:[#allocation3 + $0x78] sm:$0xf] %vm14688_vm0, %v6561_v37  ;;  %v6267_v24 = vsel %vm6203_vm2, %v6171_v10, %v6235_v15  ;;  %v6461_v38 = vld [vmem:[#allocation2 + $0xe0] sm:$0xff]  ;;  %vm14692_vm2 = vmmov %vm14688_vm0  ;;  %vm14693_vm0 = vcmask 130048  }
 0x838   : > { %v8159_v5 = vld [vmem:[#allocation2 + $0xd9] sm:$0xff]  ;;  %6299 = vst.msk [vmem:[#allocation2 + $0xe8] sm:$0xff] %vm14689_vm14, %v6267_v24  ;;  %v6092_v7 = vpop.f32.mrf.mxu1  ;;  %v6493_v4 = vpack.c.bf16 %v6461_v38, %v6461_v38  ;;  %vm14691_vm14 = vmmov %vm14686_vm3 }
 0x839   : > { %v6332_v47 = vld [vmem:[#allocation2 + $0xdf] sm:$0xff]  ;;  %v8191_v53 = vpack.c.bf16 %v8159_v5, %v8159_v5  ;;  %v6136_v29 = vmul.f32 %v12720_v6, %v6092_v7  ;;  %vm14694_vm6 = vmmov %vm14693_vm0 }
 0x83a   : > { %v6364_v41 = vpack.c.bf16 %v6332_v47, %v6332_v47  ;;  %6584 = vrot.lane.b32.xlu2 %v6493_v4, %s9660_s29 }
 0x83b   : > { %v12766_v25 = vsel %vm9871_vm8, %v8191_v53, 0  ;;  %v6172_v37 = vadd.f32 %v12735_v52, %v6136_v29 }
 0x83c   : > { %v9438_v44 = vld [vmem:[#allocation3 + $0xa8] sm:$0xf0]  ;;  %v12770_v10 = vsel %vm9871_vm8, %v6364_v41, 0  ;;  %8255 = vst.msk [vmem:[#allocation3 + $0xb4] sm:$0xf] %vm14691_vm14, %v12766_v25  ;;  %v6557_v24 = vpop.permute.xlu0 %6556  ;;  %vm14696_vm14 = vnez %v14215_v55 }
 0x83d   : > { %14690 = vst [vmem:[#allocation34_spill] sm:$0xff] %v12770_v10  ;;  %v9441_v15 = vor.u32 %v9597_v3, %v9438_v44  ;;  %vm6204_vm11 = vcmp.ge.f32.partialorder %v6172_v37, 0.0  ;;  %v6236_v4 = vmul.f32 0.2, %v6172_v37 }
 0x83e   : > { %6429 = vst.msk [vmem:[#allocation3 + $0xd8] sm:$0xf] %vm14686_vm3, %v12770_v10  ;;  %vm14697_vm3 = vnez %v14391_v51 }
 0x83f   : > { %6640 = vst.msk [vmem:[#allocation3 + $0x68] sm:$0xf] %vm14692_vm2, %v6557_v24  ;;  %9528 = vmatmul.msk.bf16.gmra.mxu3 %vm14693_vm0, %v9441_v15  ;;  %v6268_v53 = vsel %vm6204_vm11, %v6172_v37, %v6236_v4  ;;  %v6462_v38 = vld [vmem:[#allocation2 + $0xe8] sm:$0xff]  ;;  %vm14700_vm0 = vcmask 257152  }
 0x840   : > { %v8160_v41 = vld [vmem:[#allocation2 + $0xe1] sm:$0xff]  ;;  %6300 = vst.msk [vmem:[#allocation2 + $0xf0] sm:$0xff] %vm14694_vm6, %v6268_v53  ;;  %v6095_v47 = vpop.f32.mrf.mxu1  ;;  %v6494_v7 = vpack.c.bf16 %v6462_v38, %v6462_v38  ;;  %vm14698_vm6 = vcmask 125952  }
 0x841   : > { %v6333_v5 = vld [vmem:[#allocation2 + $0xe7] sm:$0xff]  ;;  %v12780_v29 = vpack.c.bf16 %v8160_v41, %v8160_v41  ;;  %v6137_v44 = vmul.f32 %v12720_v6, %v6095_v47  ;;  %vm14699_vm11 = vmmov %vm14698_vm6 }
 0x842   : > { %v12782_v3 = vpack.c.bf16 %v6333_v5, %v6333_v5  ;;  %6586 = vrot.lane.b32.xlu0 %v6494_v7, %s9660_s29 }
 0x843   : > { %v8224_v15 = vsel %vm14696_vm14, %v12780_v29, 0  ;;  %v6173_v24 = vadd.f32 %v12735_v52, %v6137_v44  ;;  %vm14701_vm14 = vcmask 130048  }
 0x844   : > { %14695 = vst [vmem:[#allocation35_spill] sm:$0xff] %v12782_v3  ;;  %v6397_v37 = vsel %vm14697_vm3, %v12782_v3, 0  ;;  %v6559_v4 = vpop.permute.xlu1 %6558  ;;  %v6659_v3 = vld [vmem:[#allocation2 + $0x9] sm:$0xff]  ;;  %vm14713_vm3 = vcmask 257152  }
 0x845   : > { %8256 = vst.msk [vmem:[#allocation3 + $0xbc] sm:$0xf] %vm14698_vm6, %v8224_v15  ;;  %vm6205_vm2 = vcmp.ge.f32.partialorder %v6173_v24, 0.0  ;;  %v6237_v53 = vmul.f32 0.2, %v6173_v24 }
 0x846   : > { %6430 = vst.msk [vmem:[#allocation3 + $0xe0] sm:$0xf] %vm14699_vm11, %v6397_v37  ;;  %v9599_v37 = vld [vmem:[#allocation3 + $0xb4] sm:$0xf] }
 0x847   : > { %6641 = vst.msk [vmem:[#allocation3 + $0x70] sm:$0xf] %vm14700_vm0, %v6559_v4  ;;  %v6269_v38 = vsel %vm6205_vm2, %v6173_v24, %v6237_v53  ;;  %v6463_v41 = vld [vmem:[#allocation2 + $0xf0] sm:$0xff]  ;;  %vm14704_vm2 = vmmov %vm14700_vm0  ;;  %vm14705_vm0 = vcmask 130048  }
 0x848   : > { %v8161_v5 = vld [vmem:[#allocation2 + $0xe9] sm:$0xff]  ;;  %6301 = vst.msk [vmem:[#allocation2 + $0xf8] sm:$0xff] %vm14701_vm14, %v6269_v38  ;;  %v6097_v7 = vpop.f32.mrf.mxu1  ;;  %v6495_v51 = vpack.c.bf16 %v6463_v41, %v6463_v41  ;;  %v6691_v41 = vpack.c.bf16 %v6659_v3, %v6659_v3  ;;  %vm14703_vm14 = vmmov %vm14698_vm6 }
 0x849   : > { %v6334_v47 = vld [vmem:[#allocation2 + $0xef] sm:$0xff]  ;;  %v8193_v10 = vpack.c.bf16 %v8161_v5, %v8161_v5  ;;  %v6138_v15 = vmul.f32 %v12720_v6, %v6097_v7 }
 0x84a   : > { %v6366_v44 = vpack.c.bf16 %v6334_v47, %v6334_v47  ;;  %6588 = vrot.lane.b32.xlu1 %v6495_v51, %s9660_s29 }
 0x84b   : > { %v12801_v4 = vsel %vm9871_vm8, %v8193_v10, 0  ;;  %v6174_v53 = vadd.f32 %v12735_v52, %v6138_v15  ;;  %v12814_v10 = vpop.f32.mrf.mxu3 }
 0x84c   : > { %v9446_v9 = vld [vmem:[#allocation3 + $0xb8] sm:$0xf0]  ;;  %v12805_v24 = vsel %vm9871_vm8, %v6366_v44, 0  ;;  %8257 = vst.msk [vmem:[#allocation3 + $0xc4] sm:$0xf] %vm14703_vm14, %v12801_v4  ;;  %v6567_v5 = vpop.permute.xlu2 %6566  ;;  %vm14707_vm14 = vmmov %vm14705_vm0 }
 0x84d   : > { %14702 = vst [vmem:[#allocation36_spill] sm:$0xff] %v12805_v24  ;;  %v9449_v38 = vor.u32 %v9599_v37, %v9446_v9  ;;  %vm6206_vm11 = vcmp.ge.f32.partialorder %v6174_v53, 0.0  ;;  %v6238_v51 = vmul.f32 0.2, %v6174_v53  ;;  %v6723_v9 = vsel %vm9871_vm8, %v6691_v41, 0 }
 0x84e   : > { %6431 = vst.msk [vmem:[#allocation3 + $0xe8] sm:$0xf] %vm14698_vm6, %v12805_v24  ;;  %vm14709_vm6 = vnez %v14217_v1 }
 0x84f   : > { %6645 = vst.msk [vmem:[#allocation3 + $0x90] sm:$0xf] %vm14704_vm2, %v6567_v5  ;;  %9529 = vmatmul.msk.bf16.gmra.mxu3 %vm14705_vm0, %v9449_v38  ;;  %v6270_v47 = vsel %vm6206_vm11, %v6174_v53, %v6238_v51  ;;  %v6464_v3 = vld [vmem:[#allocation2 + $0xf8] sm:$0xff]  ;;  %v6662_v53 = vld [vmem:[#allocation2 + $0x21] sm:$0xff]  ;;  %vm14710_vm11 = vnez %v14404_v12  ;;  %vm14711_vm2 = vcmask 125952  }
 0x850   : > { %14706 = vst [vmem:[#allocation37_spill] sm:$0xff] %v12814_v10  ;;  %v8162_v7 = vld [vmem:[#allocation2 + $0xf1] sm:$0xff]  ;;  %v6100_v15 = vpop.f32.mrf.mxu1  ;;  %v6496_v37 = vpack.c.bf16 %v6464_v3, %v6464_v3  ;;  %vm14712_vm0 = vmmov %vm14711_vm2 }
 0x851   : > { %v6335_v44 = vld [vmem:[#allocation2 + $0xf7] sm:$0xff]  ;;  %6302 = vst.msk [vmem:[#allocation2 + $0x100] sm:$0xff] %vm14707_vm14, %v6270_v47  ;;  %v12819_v24 = vpack.c.bf16 %v8162_v7, %v8162_v7  ;;  %v6139_v5 = vmul.f32 %v12720_v6, %v6100_v15  ;;  %v12836_v7 = vpack.c.bf16 %v6662_v53, %v6662_v53 }
 0x852   : > { %v12821_v60 = vpack.c.bf16 %v6335_v44, %v6335_v44  ;;  %6787 = vrot.lane.b32.xlu1 %v6723_v9, %s9662_s13  ;;  %6590 = vrot.lane.b32.xlu2 %v6496_v37, %s9660_s29  ;;  %v6660_v38 = vld [vmem:[#allocation2 + $0x11] sm:$0xff] }
 0x853   : > { %v8226_v41 = vsel %vm14709_vm6, %v12819_v24, 0  ;;  %v6175_v47 = vadd.f32 %v12735_v52, %v6139_v5  ;;  %v6692_v44 = vpack.c.bf16 %v6660_v38, %v6660_v38  ;;  %vm14714_vm6 = vcmask 130048   ;;  %v9601_v38 = vld [vmem:[#allocation3 + $0xc4] sm:$0xf] }
 0x854   : > { %14708 = vst [vmem:[#allocation38_spill] sm:$0xff] %v12821_v60  ;;  %v6399_v51 = vsel %vm14710_vm11, %v12821_v60, 0  ;;  %v6563_v3 = vpop.permute.xlu0 %6562 }
 0x855   : > { %8258 = vst.msk [vmem:[#allocation3 + $0xcc] sm:$0xf] %vm14711_vm2, %v8226_v41  ;;  %vm6207_vm14 = vcmp.ge.f32.partialorder %v6175_v47, 0.0  ;;  %v6239_v9 = vmul.f32 0.2, %v6175_v47  ;;  %v12839_v41 = vpop.f32.mrf.mxu3  ;;  %v6724_v53 = vsel %vm14513_vm13, %v6692_v44, 0 }
 0x856   : > { %6432 = vst.msk [vmem:[#allocation3 + $0xf0] sm:$0xf] %vm14712_vm0, %v6399_v51  ;;  %v6726_v51 = vsel %vm14514_vm10, %v12836_v7, 0  ;;  %vm14717_vm2 = vcmask 257152  }
 0x857   : > { %6643 = vst.msk [vmem:[#allocation3 + $0x80] sm:$0xf] %vm14713_vm3, %v6563_v3  ;;  %v6271_v15 = vsel %vm6207_vm14, %v6175_v47, %v6239_v9  ;;  %v6663_v3 = vld [vmem:[#allocation2 + $0x29] sm:$0xff]  ;;  %vm14715_vm3 = vmmov %vm14712_vm0  ;;  %vm14719_vm14 = vnez %v14153_v48 }
 0x858   : > { %v6465_v37 = vld [vmem:[#allocation2 + $0x100] sm:$0xff]  ;;  %6303 = vst.msk [vmem:[#allocation2 + $0x108] sm:$0xff] %vm14714_vm6, %v6271_v15  ;;  %vm14716_vm6 = vmmov %vm14712_vm0  ;;  %vm14718_vm0 = vcmask 130048  }
 0x859   : > { %v8163_v10 = vld [vmem:[#allocation2 + $0xf9] sm:$0xff]  ;;  %v6497_v12 = vpack.c.bf16 %v6465_v37, %v6465_v37  ;;  %v6695_v37 = vpack.c.bf16 %v6663_v3, %v6663_v3 }
 0x85a   : > { %v6336_v57 = vld [vmem:[#allocation2 + $0xff] sm:$0xff]  ;;  %v8195_v5 = vpack.c.bf16 %v8163_v10, %v8163_v10  ;;  %6793 = vrot.lane.b32.xlu1 %v6726_v51, %s9662_s13  ;;  %6789 = vrot.lane.b32.xlu2 %v6724_v53, %s9662_s13 }
 0x85b   : > { %v6368_v60 = vpack.c.bf16 %v6336_v57, %v6336_v57  ;;  %6592 = vrot.lane.b32.xlu0 %v6497_v12, %s9660_s29  ;;  %v6661_v15 = vld [vmem:[#allocation2 + $0x19] sm:$0xff]  ;;  %s9667_s29 = smov 80  }
 0x85c   : > { %v9454_v47 = vld [vmem:[#allocation3 + $0xc8] sm:$0xf0]  ;;  %v12850_v10 = vsel %vm9871_vm8, %v8195_v5, 0  ;;  %v6565_v44 = vpop.permute.xlu1 %6564  ;;  %v6693_v5 = vpack.c.bf16 %v6661_v15, %v6661_v15 }
 0x85d   : > { %v6400_v57 = vsel %vm9871_vm8, %v6368_v60, 0  ;;  %v9457_v9 = vor.u32 %v9601_v38, %v9454_v47  ;;  %8259 = vst.msk [vmem:[#allocation3 + $0xd4] sm:$0xf] %vm14715_vm3, %v12850_v10  ;;  %v12864_v60 = vsel %vm9871_vm8, %v6695_v37, 0  ;;  %v6666_v38 = vld [vmem:[#allocation2 + $0x41] sm:$0xff]  ;;  %v12877_v47 = vpop.f32.mrf.mxu3 }
 0x85e   : > { %6433 = vst.msk [vmem:[#allocation3 + $0xf8] sm:$0xf] %vm14716_vm6, %v6400_v57  ;;  %v12872_v12 = vsel %vm9871_vm8, %v6693_v5, 0  ;;  %v6664_v57 = vld [vmem:[#allocation2 + $0x31] sm:$0xff]  ;;  %vm14720_vm6 = vmmov %vm14717_vm2 }
 0x85f   : > { %6644 = vst.msk [vmem:[#allocation3 + $0x88] sm:$0xf] %vm14717_vm2, %v6565_v44  ;;  %9530 = vmatmul.msk.bf16.gmra.mxu3 %vm14718_vm0, %v9457_v9  ;;  %v8164_v51 = vld [vmem:[#allocation2 + $0x101] sm:$0xff]  ;;  %v12883_v9 = vpack.c.bf16 %v6666_v38, %v6666_v38  ;;  %v12885_v15 = vpack.c.bf16 %v6664_v57, %v6664_v57  ;;  %v6732_v44 = vsel %vm14521_vm1, %v12455_v26, 0  ;;  %v6667_v57 = vld [vmem:[#allocation2 + $0x49] sm:$0xff] }
 0x860   : > { %v12860_v53 = vpack.c.bf16 %v8164_v51, %v8164_v51 }
 0x861   : > { %v6730_v37 = vsel %vm14520_vm12, %v12883_v9, 0  ;;  %v6728_v5 = vsel %vm14522_vm5, %v12885_v15, 0 }
 0x862   : > { %6799 = vrot.lane.b32.xlu1 %v12412_v45, %s9662_s13  ;;  %6795 = vrot.lane.b32.xlu2 %v12864_v60, %s9662_s13  ;;  %v8228_v3 = vsel %vm14719_vm14, %v12860_v53, 0 }
 0x863   : > { %6791 = vrot.lane.b32.xlu0 %v12872_v12, %s9662_s13  ;;  %8260 = vst.msk [vmem:[#allocation3 + $0xdc] sm:$0xf] %vm14715_vm3, %v8228_v3  ;;  %vm14721_vm3 = vmmov %vm14717_vm2 }
 0x864   : > { %v6573_v45 = vpop.permute.xlu2 %6572  ;;  %v9603_v51 = vld [vmem:[#allocation3 + $0xd4] sm:$0xf] }
 0x865   : > { %6648 = vst.msk [vmem:[#allocation3 + $0xa8] sm:$0xf] %vm14720_vm6, %v6573_v45  ;;  %v12899_v26 = vpop.f32.mrf.mxu3  ;;  %vm14722_vm6 = vmmov %vm14717_vm2 }
 0x86a   : > { %6805 = vrot.lane.b32.xlu1 %v6732_v44, %s9662_s13  ;;  %6801 = vrot.lane.b32.xlu2 %v6730_v37, %s9662_s13  ;;  %v9462_v38 = vld [vmem:[#allocation3 + $0xd8] sm:$0xf0]  ;;  %v6699_v44 = vpack.c.bf16 %v6667_v57, %v6667_v57 }
 0x86b   : > { %6797 = vrot.lane.b32.xlu0 %v6728_v5, %s9662_s13  ;;  %v9465_v3 = vor.u32 %v9603_v51, %v9462_v38  ;;  %v6738_v51 = vsel %vm14648_vm9, %v12560_v58, 0 }
 0x86c   : > { %v6569_v45 = vpop.permute.xlu0 %6568  ;;  %v12909_v37 = vsel %vm9871_vm8, %v6699_v44, 0 }
 0x86d   : > { %6646 = vst.msk [vmem:[#allocation3 + $0x98] sm:$0xf] %vm14717_vm2, %v6569_v45 }
 0x86f   : > { %9531 = vmatmul.msk.bf16.gmra.mxu3 %vm14718_vm0, %v9465_v3  ;;  %vm14723_vm0 = vnez %v14211_v63 }
 0x870   : > { %v6742_v58 = vsel %vm14723_vm0, %v12630_v61, 0  ;;  %vm14729_vm0 = vnez %v14215_v55 }
 0x872   : > { %6811 = vrot.lane.b32.xlu1 %v12511_v35, %s9662_s13  ;;  %6807 = vrot.lane.b32.xlu2 %v12477_v32, %s9662_s13  ;;  %v6736_v35 = vsel %vm14636_vm4, %v12524_v36, 0  ;;  %v6734_v32 = vsel %vm14526_vm7, %v12490_v59, 0  ;;  %v6744_v59 = vsel %vm14684_vm15, %v12665_v2, 0  ;;  %vm14728_vm15 = vnez %v14217_v1 }
 0x873   : > { %6803 = vrot.lane.b32.xlu0 %v12909_v37, %s9662_s13 }
 0x874   : > { %v6571_v5 = vpop.permute.xlu1 %6570 }
 0x875   : > { %6647 = vst.msk [vmem:[#allocation3 + $0xa0] sm:$0xf] %vm14721_vm3, %v6571_v5  ;;  %vm14724_vm3 = vnez %v14209_v50 }
 0x87a   : > { %6817 = vrot.lane.b32.xlu1 %v6738_v51, %s9662_s13  ;;  %6813 = vrot.lane.b32.xlu2 %v6736_v35, %s9662_s13 }
 0x87b   : > { %6809 = vrot.lane.b32.xlu0 %v6734_v32, %s9662_s13 }
 0x87c   : > { %v6579_v38 = vpop.permute.xlu2 %6578 }
 0x87d   : > { %6651 = vst.msk [vmem:[#allocation3 + $0xc0] sm:$0xf] %vm14722_vm6, %v6579_v38  ;;  %vm14725_vm6 = vmmov %vm14717_vm2  ;;  %v6920_v38 = vld [vmem:[#allocation2 + $0x37] sm:$0xff] }
 0x87e   : > { %vm14726_vm11 = vmmov %vm14725_vm6 }
 0x882   : > { %6823 = vrot.lane.b32.xlu1 %v12616_v21, %s9662_s13  ;;  %6819 = vrot.lane.b32.xlu2 %v12581_v40, %s9662_s13  ;;  %v6740_v40 = vsel %vm14724_vm3, %v12595_v22, 0  ;;  %v6102_v21 = vpop.f32.mrf.mxu1 }
 0x883   : > { %6815 = vrot.lane.b32.xlu0 %v12547_v8, %s9662_s13  ;;  %v6140_v2 = vmul.f32 %v12720_v6, %v6102_v21  ;;  %v6750_v6 = vsel %vm14719_vm14, %v12780_v29, 0 }
 0x884   : > { %v6575_v36 = vpop.permute.xlu0 %6574 }
 0x885   : > { %6649 = vst.msk [vmem:[#allocation3 + $0xb0] sm:$0xf] %vm14717_vm2, %v6575_v36  ;;  %v6176_v3 = vadd.f32 %v12735_v52, %v6140_v2  ;;  %v6918_v36 = vld [vmem:[#allocation2 + $0x27] sm:$0xff] }
 0x887   : > { %vm6208_vm2 = vcmp.ge.f32.partialorder %v6176_v3, 0.0  ;;  %v6240_v61 = vmul.f32 0.2, %v6176_v3 }
 0x889   : > { %v6272_v57 = vsel %vm6208_vm2, %v6176_v3, %v6240_v61  ;;  %vm14730_vm2 = vnez %v14165_v46 }
 0x88a   : > { %6829 = vrot.lane.b32.xlu1 %v6744_v59, %s9662_s13  ;;  %6825 = vrot.lane.b32.xlu2 %v6742_v58, %s9662_s13  ;;  %v6752_v32 = vsel %vm14730_vm2, %v12819_v24, 0  ;;  %v6916_v59 = vld [vmem:[#allocation2 + $0x17] sm:$0xff] }
 0x88b   : > { %6821 = vrot.lane.b32.xlu0 %v6740_v40, %s9662_s13  ;;  %v6948_v2 = vpack.c.bf16 %v6916_v59, %v6916_v59 }
 0x88c   : > { %v6577_v8 = vpop.permute.xlu1 %6576 }
 0x88d   : > { %6650 = vst.msk [vmem:[#allocation3 + $0xb8] sm:$0xf] %vm14725_vm6, %v6577_v8  ;;  %vm14727_vm6 = vcmask 130048   ;;  %v12997_v8 = vpack.c.bf16 %v6920_v38, %v6920_v38 }
 0x88e   : > { %6304 = vst.msk [vmem:[#allocation2 + $0x110] sm:$0xff] %vm14727_vm6, %v6272_v57  ;;  %vm14731_vm6 = vcmask 125952  }
 0x88f   : > { %vm14732_vm14 = vmmov %vm14731_vm6 }
 0x892   : > { %6835 = vrot.lane.b32.xlu1 %v12726_v16, %s9662_s13  ;;  %6831 = vrot.lane.b32.xlu2 %v12686_v49, %s9662_s13  ;;  %v6748_v16 = vsel %vm14728_vm15, %v12745_v19, 0  ;;  %v6917_v19 = vld [vmem:[#allocation2 + $0x1f] sm:$0xff]  ;;  %vm14733_vm15 = vnez %v14167_v33 }
 0x893   : > { %6827 = vrot.lane.b32.xlu0 %v12651_v34, %s9662_s13  ;;  %v6746_v34 = vsel %vm14729_vm0, %v12700_v27, 0  ;;  %v6949_v35 = vpack.c.bf16 %v6917_v19, %v6917_v19  ;;  %v14743_v19 = vld [vmem:[#allocation8_spill] sm:$0xff] }
 0x894   : > { %v6585_v22 = vpop.permute.xlu2 %6584  ;;  %vm14744_vm3 = vnez %v14743_v19 }
 0x895   : > { %6654 = vst.msk [vmem:[#allocation3 + $0xd8] sm:$0xf] %vm14726_vm11, %v6585_v22  ;;  %v8165_v52 = vld [vmem:[#allocation2 + $0x109] sm:$0xff]  ;;  %v8166_v45 = vld [vmem:[#allocation2 + $0x111] sm:$0xff] }
 0x896   : > { %v8197_v29 = vpack.c.bf16 %v8165_v52, %v8165_v52  ;;  %v8198_v44 = vpack.c.bf16 %v8166_v45, %v8166_v45 }
 0x898   : > { %v8229_v27 = vsel %vm9871_vm8, %v8197_v29, 0  ;;  %v8230_v5 = vsel %vm14730_vm2, %v8198_v44, 0  ;;  %vm6883_vm2 = vcmask 388352   ;;  %v14742_v44 = vld [vmem:[#allocation20_spill] sm:$0xff] }
 0x899   : > { %8261 = vst.msk [vmem:[#allocation3 + $0xe4] sm:$0xf] %vm14731_vm6, %v8229_v27  ;;  %vm14735_vm6 = vcmask 130048   ;;  %v6988_v27 = vsel %vm14744_vm3, %v14742_v44, 0 }
 0x89a   : > { %6841 = vrot.lane.b32.xlu1 %v6750_v6, %s9662_s13  ;;  %6837 = vrot.lane.b32.xlu2 %v6748_v16, %s9662_s13  ;;  %8262 = vst.msk [vmem:[#allocation3 + $0xec] sm:$0xf] %vm14732_vm14, %v8230_v5  ;;  %vm14734_vm14 = vmmov %vm14726_vm11  ;;  %v6919_v6 = vld [vmem:[#allocation2 + $0x2f] sm:$0xff]  ;;  %v14746_v5 = vld [vmem:[#allocation6_spill] sm:$0xff] }
 0x89b   : > { %6833 = vrot.lane.b32.xlu0 %v6746_v34, %s9662_s13  ;;  %vm14747_vm9 = vnez %v14746_v5  ;;  %v9616_v5 = vld [vmem:[%s13835_s7 + $0x38] sm:$0xff] }
 0x89c   : > { %v6581_v49 = vpop.permute.xlu0 %6580  ;;  %8561 = vmatpush.bf16.msra.mxu2 %v9616_v5  ;;  %v7666_v5 = vld [vmem:[#allocation2 + $0x7f] sm:$0xff] }
 0x89d   : > { %6652 = vst.msk [vmem:[#allocation3 + $0xc8] sm:$0xf] %vm14726_vm11, %v6581_v49  ;;  %v6951_v49 = vpack.c.bf16 %v6919_v6, %v6919_v6 }
 0x89f   : > { %v13021_v52 = vsel %vm9871_vm8, %v6951_v49, 0 }
 0x8a0   : > { %v9605_v58 = vld [vmem:[#allocation3 + $0xe4] sm:$0xf] }
 0x8a1   : > { %v9470_v21 = vld [vmem:[#allocation3 + $0xe8] sm:$0xf0] }
 0x8a2   : > { %6843 = vrot.lane.b32.xlu2 %v12801_v4, %s9662_s13  ;;  %6847 = vrot.lane.b32.xlu1 %v12850_v10, %s9662_s13  ;;  %v12982_v4 = vpop.f32.mrf.mxu3  ;;  %v6981_v10 = vsel %vm9871_vm8, %v6949_v35, 0  ;;  %v9473_v3 = vor.u32 %v9605_v58, %v9470_v21  ;;  %v14751_v58 = vld [vmem:[#allocation14_spill] sm:$0xff] }
 0x8a3   : > { %6839 = vrot.lane.b32.xlu0 %v12766_v25, %s9662_s13  ;;  %v6754_v25 = vsel %vm14733_vm15, %v12860_v53, 0  ;;  %v12999_v53 = vpack.c.bf16 %v6918_v36, %v6918_v36  ;;  %vm14737_vm15 = vnez %v14049_v31 }
 0x8a4   : > { %v6583_v51 = vpop.permute.xlu1 %6582  ;;  %v7721_v11 = vsel %vm14737_vm15, %v12997_v8, 0 }
 0x8a5   : > { %6653 = vst.msk [vmem:[#allocation3 + $0xd0] sm:$0xf] %vm14726_vm11, %v6583_v51  ;;  %vm14736_vm11 = vnez %v14037_v62  ;;  %v6982_v22 = vsel %vm14737_vm15, %v12999_v53, 0  ;;  %vm8104_vm15 = vcmask 1044352  }
 0x8a6   : > { %v6984_v24 = vsel %vm14736_vm11, %v12997_v8, 0 }
 0x8aa   : > { %7046 = vrot.lane.b32.xlu1 %v6981_v10, %s9664_s15  ;;  %6849 = vrot.lane.b32.xlu2 %v6754_v25, %s9662_s13  ;;  %v13001_v61 = vpop.f32.mrf.mxu3  ;;  %v14749_v25 = vld [vmem:[#allocation23_spill] sm:$0xff] }
 0x8ab   : > { %6845 = vrot.lane.b32.xlu0 %v6752_v32, %s9662_s13  ;;  %9532 = vmatmul.msk.bf16.gmra.mxu3 %vm14735_vm6, %v9473_v3  ;;  %vm14739_vm6 = vcmask 257152   ;;  %v14750_v32 = vld [vmem:[#allocation21_spill] sm:$0xff]  ;;  %s9668_s13 = smov 96  }
 0x8ac   : > { %v6591_v40 = vpop.permute.xlu2 %6590  ;;  %vm14740_vm0 = vmmov %vm14739_vm6  ;;  %v14755_v3 = vld [vmem:[#allocation13_spill] sm:$0xff] }
 0x8ad   : > { %6657 = vst.msk [vmem:[#allocation3 + $0xf0] sm:$0xf] %vm14734_vm14, %v6591_v40  ;;  %vm14738_vm14 = vnez %v14031_v39  ;;  %v14752_v40 = vld [vmem:[#allocation19_spill] sm:$0xff]  ;;  %vm14756_vm7 = vnez %v14755_v3  ;;  %v7465_v39 = vsel %vm14514_vm10, %v12885_v15, 0  ;;  %vm7622_vm10 = vcmask 781952  }
 0x8ae   : > { %v6980_v57 = vsel %vm14738_vm14, %v6948_v2, 0  ;;  %vm14753_vm4 = vnez %v14752_v40  ;;  %v14754_v2 = vld [vmem:[#allocation9_spill] sm:$0xff]  ;;  %v7658_v15 = vld [vmem:[#allocation2 + $0x3f] sm:$0xff] }
 0x8af   : > { %v6996_v21 = vsel %vm14753_vm4, %v14751_v58, 0 }
 0x8b2   : > { %7052 = vrot.lane.b32.xlu1 %v6984_v24, %s9664_s15  ;;  %7048 = vrot.lane.b32.xlu2 %v6982_v22, %s9664_s15  ;;  %v6994_v24 = vsel %vm14756_vm7, %v14754_v2, 0  ;;  %v14757_v22 = vld [vmem:[#allocation5_spill] sm:$0xff] }
 0x8b3   : > { %7044 = vrot.lane.b32.xlu0 %v6980_v57, %s9664_s15  ;;  %v14758_v57 = vld [vmem:[#allocation10_spill] sm:$0xff] }
 0x8b4   : > { %v6790_v16 = vpop.permute.xlu2 %6789  ;;  %v6587_v34 = vpop.permute.xlu0 %6586 }
 0x8b5   : > { %6885 = vst.msk [vmem:[#allocation3 + $0x8] sm:$0xf] %vm6883_vm2, %v6790_v16 }
 0x8b6   : > { %6655 = vst.msk [vmem:[#allocation3 + $0xe0] sm:$0xf] %vm14739_vm6, %v6587_v34  ;;  %vm14741_vm6 = vnez %v14084_v23 }
 0x8ba   : > { %7058 = vrot.lane.b32.xlu1 %v12446_v13, %s9664_s15  ;;  %7054 = vrot.lane.b32.xlu2 %v12416_v30, %s9664_s15  ;;  %v6990_v13 = vsel %vm14741_vm6, %v12492_v0, 0  ;;  %v14745_v30 = vld [vmem:[#allocation15_spill] sm:$0xff]  ;;  %v14748_v0 = vld [vmem:[#allocation12_spill] sm:$0xff]  ;;  %vm14759_vm6 = vnez %v14758_v57 }
 0x8bb   : > { %7050 = vrot.lane.b32.xlu0 %v13021_v52, %s9664_s15  ;;  %v6986_v51 = vsel %vm14747_vm9, %v14745_v30, 0  ;;  %v6992_v6 = vsel %vm14759_vm6, %v14757_v22, 0  ;;  %v14773_v22 = vld [vmem:[#allocation32_spill] sm:$0xff] }
 0x8bc   : > { %v6589_v45 = vpop.permute.xlu1 %6588  ;;  %v6796_v29 = vpop.permute.xlu2 %6795 }
 0x8bd   : > { %6656 = vst.msk [vmem:[#allocation3 + $0xe8] sm:$0xf] %vm14740_vm0, %v6589_v45  ;;  %v14760_v45 = vld [vmem:[#allocation28_spill] sm:$0xff] }
 0x8be   : > { %6888 = vst.msk [vmem:[#allocation3 + $0x20] sm:$0xf] %vm6883_vm2, %v6796_v29  ;;  %v14761_v29 = vld [vmem:[#allocation11_spill] sm:$0xff] }
 0x8c2   : > { %7064 = vrot.lane.b32.xlu1 %v6990_v13, %s9664_s15  ;;  %7060 = vrot.lane.b32.xlu2 %v6988_v27, %s9664_s15  ;;  %v14762_v13 = vld [vmem:[#allocation7_spill] sm:$0xff] }
 0x8c3   : > { %7056 = vrot.lane.b32.xlu0 %v6986_v51, %s9664_s15  ;;  %v14763_v51 = vld [vmem:[#allocation31_spill] sm:$0xff] }
 0x8c4   : > { %v6788_v35 = vpop.permute.xlu1 %6787  ;;  %v6802_v10 = vpop.permute.xlu2 %6801 }
 0x8c5   : > { %6884 = vst.msk [vmem:[#allocation3] sm:$0xf] %vm6883_vm2, %v6788_v35  ;;  %v14764_v35 = vld [vmem:[#allocation25_spill] sm:$0xff] }
 0x8c6   : > { %6891 = vst.msk [vmem:[#allocation3 + $0x38] sm:$0xf] %vm6883_vm2, %v6802_v10 }
 0x8ca   : > { %7070 = vrot.lane.b32.xlu1 %v14748_v0, %s9664_s15  ;;  %7066 = vrot.lane.b32.xlu2 %v14749_v25, %s9664_s15  ;;  %v14766_v0 = vld [vmem:[#allocation29_spill] sm:$0xff]  ;;  %v14767_v25 = vld [vmem:[#allocation18_spill] sm:$0xff] }
 0x8cb   : > { %7062 = vrot.lane.b32.xlu0 %v14750_v32, %s9664_s15  ;;  %vm14768_vm4 = vnez %v14767_v25 }
 0x8cc   : > { %v6794_v38 = vpop.permute.xlu1 %6793  ;;  %v6808_v36 = vpop.permute.xlu2 %6807  ;;  %v7000_v32 = vsel %vm14768_vm4, %v14766_v0, 0 }
 0x8cd   : > { %6887 = vst.msk [vmem:[#allocation3 + $0x18] sm:$0xf] %vm6883_vm2, %v6794_v38  ;;  %v6593_v59 = vpop.permute.xlu0 %6592  ;;  %v14769_v38 = vld [vmem:[#allocation16_spill] sm:$0xff] }
 0x8ce   : > { %6894 = vst.msk [vmem:[#allocation3 + $0x50] sm:$0xf] %vm6883_vm2, %v6808_v36  ;;  %v14770_v36 = vld [vmem:[#allocation17_spill] sm:$0xff] }
 0x8cf   : > { %6658 = vst.msk [vmem:[#allocation3 + $0xf8] sm:$0xf] %vm14740_vm0, %v6593_v59  ;;  %vm14765_vm0 = vnez %v14764_v35  ;;  %vm14771_vm7 = vnez %v14770_v36 }
 0x8d0   : > { %v7002_v10 = vsel %vm14765_vm0, %v14763_v51, 0  ;;  %v6998_v59 = vsel %vm14771_vm7, %v14769_v38, 0  ;;  %v14781_v51 = vld [vmem:[#allocation33_spill] sm:$0xff] }
 0x8d2   : > { %7076 = vrot.lane.b32.xlu1 %v6996_v21, %s9664_s15  ;;  %7072 = vrot.lane.b32.xlu2 %v6994_v24, %s9664_s15  ;;  %v14772_v24 = vld [vmem:[#allocation34_spill] sm:$0xff] }
 0x8d3   : > { %7068 = vrot.lane.b32.xlu0 %v6992_v6, %s9664_s15  ;;  %v14774_v6 = vld [vmem:[#allocation30_spill] sm:$0xff] }
 0x8d4   : > { %v6800_v16 = vpop.permute.xlu1 %6799  ;;  %v6814_v34 = vpop.permute.xlu2 %6813 }
 0x8d5   : > { %6890 = vst.msk [vmem:[#allocation3 + $0x30] sm:$0xf] %vm6883_vm2, %v6800_v16  ;;  %v6792_v49 = vpop.permute.xlu0 %6791 }
 0x8d6   : > { %6897 = vst.msk [vmem:[#allocation3 + $0x68] sm:$0xf] %vm6883_vm2, %v6814_v34 }
 0x8d7   : > { %6886 = vst.msk [vmem:[#allocation3 + $0x10] sm:$0xf] %vm6883_vm2, %v6792_v49 }
 0x8da   : > { %7082 = vrot.lane.b32.xlu1 %v14760_v45, %s9664_s15  ;;  %7078 = vrot.lane.b32.xlu2 %v14761_v29, %s9664_s15  ;;  %v14775_v45 = vld [vmem:[#allocation38_spill] sm:$0xff]  ;;  %v14776_v29 = vld [vmem:[#allocation27_spill] sm:$0xff] }
 0x8db   : > { %7074 = vrot.lane.b32.xlu0 %v14762_v13, %s9664_s15  ;;  %vm14777_vm0 = vnez %v14776_v29 }
 0x8dc   : > { %v6806_v44 = vpop.permute.xlu1 %6805  ;;  %v6820_v27 = vpop.permute.xlu2 %6819  ;;  %v7008_v13 = vsel %vm14777_vm0, %v14775_v45, 0 }
 0x8dd   : > { %6893 = vst.msk [vmem:[#allocation3 + $0x48] sm:$0xf] %vm6883_vm2, %v6806_v44  ;;  %v6798_v30 = vpop.permute.xlu0 %6797  ;;  %v14778_v44 = vld [vmem:[#allocation35_spill] sm:$0xff] }
 0x8de   : > { %6900 = vst.msk [vmem:[#allocation3 + $0x80] sm:$0xf] %vm6883_vm2, %v6820_v27  ;;  %v14779_v27 = vld [vmem:[#allocation24_spill] sm:$0xff] }
 0x8df   : > { %6889 = vst.msk [vmem:[#allocation3 + $0x28] sm:$0xf] %vm6883_vm2, %v6798_v30  ;;  %vm14780_vm4 = vnez %v14779_v27 }
 0x8e0   : > { %v7006_v30 = vsel %vm14780_vm4, %v14778_v44, 0  ;;  %v7175_v44 = vld [vmem:[#allocation2 + $0x28] sm:$0xff] }
 0x8e1   : > { %v7207_v43 = vpack.c.bf16 %v7175_v44, %v7175_v44 }
 0x8e2   : > { %7088 = vrot.lane.b32.xlu1 %v7002_v10, %s9664_s15  ;;  %7084 = vrot.lane.b32.xlu2 %v7000_v32, %s9664_s15  ;;  %v14782_v10 = vld [vmem:[#allocation22_spill] sm:$0xff] }
 0x8e3   : > { %7080 = vrot.lane.b32.xlu0 %v6998_v59, %s9664_s15  ;;  %vm14783_vm7 = vnez %v14782_v10 }
 0x8e4   : > { %v6812_v58 = vpop.permute.xlu1 %6811  ;;  %v6826_v21 = vpop.permute.xlu2 %6825  ;;  %v7004_v0 = vsel %vm14783_vm7, %v14781_v51, 0 }
 0x8e5   : > { %6896 = vst.msk [vmem:[#allocation3 + $0x60] sm:$0xf] %vm6883_vm2, %v6812_v58  ;;  %v6804_v2 = vpop.permute.xlu0 %6803  ;;  %v7173_v58 = vld [vmem:[#allocation2 + $0x18] sm:$0xff] }
 0x8e6   : > { %6903 = vst.msk [vmem:[#allocation3 + $0x98] sm:$0xf] %vm6883_vm2, %v6826_v21  ;;  %v7205_v21 = vpack.c.bf16 %v7173_v58, %v7173_v58  ;;  %v7914_v58 = vld [vmem:[#allocation2 + $0x38] sm:$0xff] }
 0x8e7   : > { %6892 = vst.msk [vmem:[#allocation3 + $0x40] sm:$0xf] %vm6883_vm2, %v6804_v2  ;;  %v14784_v2 = vld [vmem:[#allocation36_spill] sm:$0xff] }
 0x8ea   : > { %7094 = vrot.lane.b32.xlu1 %v14772_v24, %s9664_s15  ;;  %7090 = vrot.lane.b32.xlu2 %v14773_v22, %s9664_s15 }
 0x8eb   : > { %7086 = vrot.lane.b32.xlu0 %v14774_v6, %s9664_s15 }
 0x8ec   : > { %v6818_v16 = vpop.permute.xlu1 %6817  ;;  %v6832_v34 = vpop.permute.xlu2 %6831 }
 0x8ed   : > { %6899 = vst.msk [vmem:[#allocation3 + $0x78] sm:$0xf] %vm6883_vm2, %v6818_v16  ;;  %v6810_v49 = vpop.permute.xlu0 %6809  ;;  %v7174_v16 = vld [vmem:[#allocation2 + $0x20] sm:$0xff] }
 0x8ee   : > { %6906 = vst.msk [vmem:[#allocation3 + $0xb0] sm:$0xf] %vm6883_vm2, %v6832_v34  ;;  %v7206_v34 = vpack.c.bf16 %v7174_v16, %v7174_v16  ;;  %v7690_v16 = vpack.c.bf16 %v7658_v15, %v7658_v15 }
 0x8ef   : > { %6895 = vst.msk [vmem:[#allocation3 + $0x58] sm:$0xf] %vm6883_vm2, %v6810_v49 }
 0x8f0   : > { %v7722_v8 = vsel %vm9871_vm8, %v7690_v16, 0 }
 0x8f2   : > { %7100 = vrot.lane.b32.xlu1 %v7008_v13, %s9664_s15  ;;  %7096 = vrot.lane.b32.xlu2 %v7006_v30, %s9664_s15 }
 0x8f3   : > { %7092 = vrot.lane.b32.xlu0 %v7004_v0, %s9664_s15  ;;  %v7913_v0 = vld [vmem:[#allocation2 + $0x30] sm:$0xff] }
 0x8f4   : > { %v6824_v32 = vpop.permute.xlu1 %6823  ;;  %v6838_v38 = vpop.permute.xlu2 %6837 }
 0x8f5   : > { %6902 = vst.msk [vmem:[#allocation3 + $0x90] sm:$0xf] %vm6883_vm2, %v6824_v32  ;;  %v6816_v59 = vpop.permute.xlu0 %6815  ;;  %v7945_v32 = vpack.c.bf16 %v7913_v0, %v7913_v0 }
 0x8f6   : > { %6909 = vst.msk [vmem:[#allocation3 + $0xc8] sm:$0xf] %vm6883_vm2, %v6838_v38 }
 0x8f7   : > { %6898 = vst.msk [vmem:[#allocation3 + $0x70] sm:$0xf] %vm6883_vm2, %v6816_v59 }
 0x8fa   : > { %7526 = vrot.lane.b32.xlu1 %v12872_v12, %s9667_s29  ;;  %7269 = vrot.lane.b32.xlu2 %v7205_v21, %s9666_s17  ;;  %v7463_v12 = vsel %vm14513_vm13, %v12836_v7, 0  ;;  %v7719_v7 = vsel %vm14738_vm14, %v12999_v53, 0  ;;  %vm7140_vm13 = vcmask 519552   ;;  %v7946_v21 = vpack.c.bf16 %v7914_v58, %v7914_v58 }
 0x8fb   : > { %7098 = vrot.lane.b32.xlu0 %v14784_v2, %s9664_s15  ;;  %vm14790_vm14 = vnez %v14752_v40 }
 0x8fc   : > { %v6830_v24 = vpop.permute.xlu1 %6829  ;;  %v6844_v22 = vpop.permute.xlu2 %6843 }
 0x8fd   : > { %6905 = vst.msk [vmem:[#allocation3 + $0xa8] sm:$0xf] %vm6883_vm2, %v6830_v24  ;;  %v6822_v6 = vpop.permute.xlu0 %6821 }
 0x8fe   : > { %6912 = vst.msk [vmem:[#allocation3 + $0xe0] sm:$0xf] %vm6883_vm2, %v6844_v22 }
 0x8ff   : > { %6901 = vst.msk [vmem:[#allocation3 + $0x88] sm:$0xf] %vm6883_vm2, %v6822_v6  ;;  %v7178_v6 = vld [vmem:[#allocation2 + $0x40] sm:$0xff] }
 0x900   : > { %v7210_v31 = vpack.c.bf16 %v7178_v6, %v7178_v6  ;;  %v7694_v6 = vpack.c.bf16 %v7662_v54, %v7662_v54 }
 0x902   : > { %7785 = vrot.lane.b32.xlu1 %v13021_v52, %s9668_s13  ;;  %7528 = vrot.lane.b32.xlu2 %v7463_v12, %s9667_s29 }
 0x903   : > { %7271 = vrot.lane.b32.xlu0 %v7206_v34, %s9666_s17  ;;  %v7402_v34 = vld [vmem:[#allocation2 + $0x39] sm:$0xff] }
 0x904   : > { %v6836_v49 = vpop.permute.xlu1 %6835  ;;  %v6850_v45 = vpop.permute.xlu2 %6849  ;;  %v7434_v44 = vpack.c.bf16 %v7402_v34, %v7402_v34 }
 0x905   : > { %6908 = vst.msk [vmem:[#allocation3 + $0xc0] sm:$0xf] %vm6883_vm2, %v6836_v49  ;;  %v6828_v13 = vpop.permute.xlu0 %6827 }
 0x906   : > { %6915 = vst.msk [vmem:[#allocation3 + $0xf8] sm:$0xf] %vm6883_vm2, %v6850_v45 }
 0x907   : > { %6904 = vst.msk [vmem:[#allocation3 + $0xa0] sm:$0xf] %vm6883_vm2, %v6828_v13 }
 0x90a   : > { %7273 = vrot.lane.b32.xlu1 %v7207_v43, %s9666_s17  ;;  %8008 = vrot.lane.b32.xlu2 %v7207_v43, %s9669_s21 }
 0x90b   : > { %7783 = vrot.lane.b32.xlu0 %v7719_v7, %s9668_s13  ;;  %v7466_v7 = vsel %vm9871_vm8, %v7434_v44, 0  ;;  %v7407_v44 = vld [vmem:[#allocation2 + $0x61] sm:$0xff] }
 0x90c   : > { %v6842_v52 = vpop.permute.xlu1 %6841  ;;  %v7049_v30 = vpop.permute.xlu2 %7048 }
 0x90d   : > { %6911 = vst.msk [vmem:[#allocation3 + $0xd8] sm:$0xf] %vm6883_vm2, %v6842_v52  ;;  %v6834_v51 = vpop.permute.xlu0 %6833  ;;  %v7660_v52 = vld [vmem:[#allocation2 + $0x4f] sm:$0xff] }
 0x90e   : > { %7143 = vst.msk [vmem:[#allocation3 + $0x10] sm:$0xf] %vm7140_vm13, %v7049_v30 }
 0x90f   : > { %6907 = vst.msk [vmem:[#allocation3 + $0xb8] sm:$0xf] %vm6883_vm2, %v6834_v51 }
 0x912   : > { %7532 = vrot.lane.b32.xlu1 %v7465_v39, %s9667_s29  ;;  %7275 = vrot.lane.b32.xlu2 %v7945_v32, %s9666_s17  ;;  %v7692_v39 = vpack.c.bf16 %v7660_v52, %v7660_v52 }
 0x913   : > { %8010 = vrot.lane.b32.xlu0 %v7945_v32, %s9669_s21  ;;  %v7917_v32 = vld [vmem:[#allocation2 + $0x50] sm:$0xff] }
 0x914   : > { %v6848_v53 = vpop.permute.xlu1 %6847  ;;  %v7055_v38 = vpop.permute.xlu2 %7054  ;;  %v7949_v62 = vpack.c.bf16 %v7917_v32, %v7917_v32 }
 0x915   : > { %6914 = vst.msk [vmem:[#allocation3 + $0xf0] sm:$0xf] %vm6883_vm2, %v6848_v53  ;;  %v6840_v59 = vpop.permute.xlu0 %6839  ;;  %v7724_v53 = vsel %vm9871_vm8, %v7692_v39, 0  ;;  %v7663_v39 = vld [vmem:[#allocation2 + $0x67] sm:$0xff] }
 0x916   : > { %7146 = vst.msk [vmem:[#allocation3 + $0x28] sm:$0xf] %vm7140_vm13, %v7055_v38  ;;  %v7467_v38 = vsel %vm14522_vm5, %v12883_v9, 0  ;;  %v7405_v9 = vld [vmem:[#allocation2 + $0x51] sm:$0xff]  ;;  %vm7365_vm5 = vcmask 650752  }
 0x917   : > { %6910 = vst.msk [vmem:[#allocation3 + $0xd0] sm:$0xf] %vm6883_vm2, %v6840_v59  ;;  %v7437_v16 = vpack.c.bf16 %v7405_v9, %v7405_v9 }
 0x91a   : > { %8012 = vrot.lane.b32.xlu1 %v7946_v21, %s9669_s21  ;;  %7787 = vrot.lane.b32.xlu2 %v7721_v11, %s9668_s13  ;;  %v7916_v11 = vld [vmem:[#allocation2 + $0x48] sm:$0xff] }
 0x91b   : > { %7530 = vrot.lane.b32.xlu0 %v12864_v60, %s9667_s29  ;;  %v7659_v60 = vld [vmem:[#allocation2 + $0x47] sm:$0xff]  ;;  %v7948_v15 = vpack.c.bf16 %v7916_v11, %v7916_v11 }
 0x91c   : > { %v7047_v2 = vpop.permute.xlu1 %7046  ;;  %v7061_v24 = vpop.permute.xlu2 %7060  ;;  %v7691_v13 = vpack.c.bf16 %v7659_v60, %v7659_v60 }
 0x91d   : > { %7142 = vst.msk [vmem:[#allocation3 + $0x8] sm:$0xf] %vm7140_vm13, %v7047_v2  ;;  %v6846_v22 = vpop.permute.xlu0 %6845 }
 0x91e   : > { %7149 = vst.msk [vmem:[#allocation3 + $0x40] sm:$0xf] %vm7140_vm13, %v7061_v24  ;;  %v7723_v43 = vsel %vm14736_vm11, %v7691_v13, 0  ;;  %vm14789_vm11 = vnez %v14755_v3 }
 0x91f   : > { %6913 = vst.msk [vmem:[#allocation3 + $0xe8] sm:$0xf] %vm6883_vm2, %v6846_v22  ;;  %vm14788_vm2 = vnez %v14207_v17 }
 0x922   : > { %7279 = vrot.lane.b32.xlu1 %v7210_v31, %s9666_s17  ;;  %8014 = vrot.lane.b32.xlu2 %v7210_v31, %s9669_s21  ;;  %v7469_v31 = vsel %vm14520_vm12, %v7437_v16, 0  ;;  %vm14786_vm12 = vnez %v14203_v14 }
 0x923   : > { %7789 = vrot.lane.b32.xlu0 %v7722_v8, %s9668_s13  ;;  %v7661_v8 = vld [vmem:[#allocation2 + $0x57] sm:$0xff] }
 0x924   : > { %v7053_v12 = vpop.permute.xlu1 %7052  ;;  %v7067_v49 = vpop.permute.xlu2 %7066 }
 0x925   : > { %7145 = vst.msk [vmem:[#allocation3 + $0x20] sm:$0xf] %vm7140_vm13, %v7053_v12  ;;  %v7045_v45 = vpop.permute.xlu0 %7044 }
 0x926   : > { %7152 = vst.msk [vmem:[#allocation3 + $0x58] sm:$0xf] %vm7140_vm13, %v7067_v49  ;;  %v7181_v49 = vld [vmem:[#allocation2 + $0x58] sm:$0xff] }
 0x927   : > { %7141 = vst.msk [vmem:[#allocation3] sm:$0xf] %vm7140_vm13, %v7045_v45  ;;  %v7693_v45 = vpack.c.bf16 %v7661_v8, %v7661_v8  ;;  %v7213_v42 = vpack.c.bf16 %v7181_v49, %v7181_v49  ;;  %v9612_v8 = vld [vmem:[%s13835_s7 + $0x18] sm:$0xff]  ;;  %v7408_v49 = vld [vmem:[#allocation2 + $0x69] sm:$0xff] }
 0x929   : > { %v7725_v13 = vsel %vm14747_vm9, %v7693_v45, 0  ;;  %v9611_v45 = vld [vmem:[%s13835_s7 + $0x10] sm:$0xff]  ;;  %vm7879_vm9 = vcmask 913152  }
 0x92a   : > { %7791 = vrot.lane.b32.xlu1 %v7723_v43, %s9668_s13  ;;  %7534 = vrot.lane.b32.xlu2 %v7466_v7, %s9667_s29 }
 0x92b   : > { %7277 = vrot.lane.b32.xlu0 %v7946_v21, %s9666_s17 }
 0x92c   : > { %v7059_v30 = vpop.permute.xlu1 %7058  ;;  %v7073_v51 = vpop.permute.xlu2 %7072 }
 0x92d   : > { %7148 = vst.msk [vmem:[#allocation3 + $0x38] sm:$0xf] %vm7140_vm13, %v7059_v30  ;;  %v7051_v0 = vpop.permute.xlu0 %7050  ;;  %v7439_v30 = vpack.c.bf16 %v7407_v44, %v7407_v44 }
 0x92e   : > { %7155 = vst.msk [vmem:[#allocation3 + $0x70] sm:$0xf] %vm7140_vm13, %v7073_v51  ;;  %v7919_v51 = vld [vmem:[#allocation2 + $0x60] sm:$0xff] }
 0x92f   : > { %7144 = vst.msk [vmem:[#allocation3 + $0x18] sm:$0xf] %vm7140_vm13, %v7051_v0  ;;  %v7951_v0 = vpack.c.bf16 %v7919_v51, %v7919_v51  ;;  %v7471_v32 = vsel %vm14521_vm1, %v7439_v30, 0  ;;  %vm14785_vm1 = vnez %v14084_v23 }
 0x932   : > { %8018 = vrot.lane.b32.xlu1 %v7949_v62, %s9669_s21  ;;  %7793 = vrot.lane.b32.xlu2 %v7724_v53, %s9668_s13  ;;  %v9615_v53 = vld [vmem:[%s13835_s7 + $0x30] sm:$0xff] }
 0x933   : > { %7536 = vrot.lane.b32.xlu0 %v7467_v38, %s9667_s29  ;;  %8562 = vmatpush.bf16.msra.mxu2 %v9615_v53  ;;  %v7923_v53 = vld [vmem:[#allocation2 + $0x80] sm:$0xff] }
 0x934   : > { %v7065_v59 = vpop.permute.xlu1 %7064  ;;  %v7079_v58 = vpop.permute.xlu2 %7078 }
 0x935   : > { %7151 = vst.msk [vmem:[#allocation3 + $0x50] sm:$0xf] %vm7140_vm13, %v7065_v59  ;;  %v7057_v21 = vpop.permute.xlu0 %7056 }
 0x936   : > { %7158 = vst.msk [vmem:[#allocation3 + $0x88] sm:$0xf] %vm7140_vm13, %v7079_v58  ;;  %v7920_v58 = vld [vmem:[#allocation2 + $0x68] sm:$0xff] }
 0x937   : > { %7147 = vst.msk [vmem:[#allocation3 + $0x30] sm:$0xf] %vm7140_vm13, %v7057_v21  ;;  %v7695_v21 = vpack.c.bf16 %v7663_v39, %v7663_v39  ;;  %v7952_v54 = vpack.c.bf16 %v7920_v58, %v7920_v58 }
 0x939   : > { %v7727_v9 = vsel %vm14744_vm3, %v7695_v21, 0  ;;  %vm14787_vm3 = vnez %v14205_v18 }
 0x93a   : > { %7538 = vrot.lane.b32.xlu1 %v12909_v37, %s9667_s29  ;;  %7281 = vrot.lane.b32.xlu2 %v7948_v15, %s9666_s17  ;;  %v7726_v37 = vsel %vm9871_vm8, %v7694_v6, 0 }
 0x93b   : > { %8016 = vrot.lane.b32.xlu0 %v7948_v15, %s9669_s21  ;;  %v9614_v15 = vld [vmem:[%s13835_s7 + $0x28] sm:$0xff] }
 0x93c   : > { %v7071_v2 = vpop.permute.xlu1 %7070  ;;  %v7085_v24 = vpop.permute.xlu2 %7084  ;;  %8563 = vmatpush.bf16.msra.mxu2 %v9614_v15 }
 0x93d   : > { %7154 = vst.msk [vmem:[#allocation3 + $0x68] sm:$0xf] %vm7140_vm13, %v7071_v2  ;;  %v7063_v22 = vpop.permute.xlu0 %7062 }
 0x93e   : > { %7161 = vst.msk [vmem:[#allocation3 + $0xa0] sm:$0xf] %vm7140_vm13, %v7085_v24  ;;  %v7664_v24 = vld [vmem:[#allocation2 + $0x6f] sm:$0xff] }
 0x93f   : > { %7150 = vst.msk [vmem:[#allocation3 + $0x48] sm:$0xf] %vm7140_vm13, %v7063_v22  ;;  %v9613_v22 = vld [vmem:[%s13835_s7 + $0x20] sm:$0xff] }
 0x940   : > { %8564 = vmatpush.bf16.msra.mxu2 %v9613_v22 }
 0x942   : > { %7797 = vrot.lane.b32.xlu1 %v7726_v37, %s9668_s13  ;;  %7540 = vrot.lane.b32.xlu2 %v7469_v31, %s9667_s29  ;;  %v7184_v37 = vld [vmem:[#allocation2 + $0x70] sm:$0xff]  ;;  %v7696_v31 = vpack.c.bf16 %v7664_v24, %v7664_v24  ;;  %v7922_v24 = vld [vmem:[#allocation2 + $0x78] sm:$0xff] }
 0x943   : > { %7283 = vrot.lane.b32.xlu0 %v7949_v62, %s9666_s17  ;;  %v7406_v62 = vld [vmem:[#allocation2 + $0x59] sm:$0xff]  ;;  %v7954_v22 = vpack.c.bf16 %v7922_v24, %v7922_v24 }
 0x944   : > { %v7077_v60 = vpop.permute.xlu1 %7076  ;;  %v7091_v34 = vpop.permute.xlu2 %7090  ;;  %v7438_v11 = vpack.c.bf16 %v7406_v62, %v7406_v62  ;;  %8565 = vmatpush.bf16.msra.mxu2 %v9612_v8  ;;  %v7670_v24 = vld [vmem:[#allocation2 + $0x9f] sm:$0xff] }
 0x945   : > { %7157 = vst.msk [vmem:[#allocation3 + $0x80] sm:$0xf] %vm7140_vm13, %v7077_v60  ;;  %v7069_v12 = vpop.permute.xlu0 %7068  ;;  %v7216_v60 = vpack.c.bf16 %v7184_v37, %v7184_v37 }
 0x946   : > { %7164 = vst.msk [vmem:[#allocation3 + $0xb8] sm:$0xf] %vm7140_vm13, %v7091_v34  ;;  %v7470_v2 = vsel %vm9871_vm8, %v7438_v11, 0  ;;  %v7728_v34 = vsel %vm9871_vm8, %v7696_v31, 0  ;;  %v7410_v11 = vld [vmem:[#allocation2 + $0x79] sm:$0xff] }
 0x947   : > { %7153 = vst.msk [vmem:[#allocation3 + $0x60] sm:$0xf] %vm7140_vm13, %v7069_v12  ;;  %v7665_v12 = vld [vmem:[#allocation2 + $0x77] sm:$0xff] }
 0x948   : > { %8566 = vmatpush.bf16.msra.mxu2 %v9611_v45 }
 0x94a   : > { %7285 = vrot.lane.b32.xlu1 %v7213_v42, %s9666_s17  ;;  %8020 = vrot.lane.b32.xlu2 %v7213_v42, %s9669_s21 }
 0x94b   : > { %7795 = vrot.lane.b32.xlu0 %v7725_v13, %s9668_s13 }
 0x94c   : > { %v7083_v43 = vpop.permute.xlu1 %7082  ;;  %v7097_v7 = vpop.permute.xlu2 %7096 }
 0x94d   : > { %7160 = vst.msk [vmem:[#allocation3 + $0x98] sm:$0xf] %vm7140_vm13, %v7083_v43  ;;  %v7075_v52 = vpop.permute.xlu0 %7074  ;;  %v7697_v43 = vpack.c.bf16 %v7665_v12, %v7665_v12 }
 0x94e   : > { %7167 = vst.msk [vmem:[#allocation3 + $0xd0] sm:$0xf] %vm7140_vm13, %v7097_v7  ;;  %v7440_v7 = vpack.c.bf16 %v7408_v49, %v7408_v49  ;;  %v7667_v49 = vld [vmem:[#allocation2 + $0x87] sm:$0xff] }
 0x94f   : > { %7156 = vst.msk [vmem:[#allocation3 + $0x78] sm:$0xf] %vm7140_vm13, %v7075_v52  ;;  %v9610_v52 = vld [vmem:[%s13835_s7 + $0x8] sm:$0xff]  ;;  %v7729_v30 = vsel %vm14785_vm1, %v7697_v43, 0  ;;  %vm14792_vm1 = vnez %v14211_v63 }
 0x950   : > { %v7472_v51 = vsel %vm9871_vm8, %v7440_v7, 0  ;;  %8567 = vmatpush.bf16.msra.mxu2 %v9610_v52  ;;  %v7187_v43 = vld [vmem:[#allocation2 + $0x88] sm:$0xff]  ;;  %v7413_v52 = vld [vmem:[#allocation2 + $0x91] sm:$0xff] }
 0x951   : > { %v7219_v7 = vpack.c.bf16 %v7187_v43, %v7187_v43 }
 0x952   : > { %7544 = vrot.lane.b32.xlu1 %v7471_v32, %s9667_s29  ;;  %7287 = vrot.lane.b32.xlu2 %v7951_v0, %s9666_s17  ;;  %v9609_v32 = vld [vmem:[%s13835_s7] sm:$0xff] }
 0x953   : > { %8022 = vrot.lane.b32.xlu0 %v7951_v0, %s9669_s21  ;;  %v7409_v0 = vld [vmem:[#allocation2 + $0x71] sm:$0xff] }
 0x954   : > { %v7089_v38 = vpop.permute.xlu1 %7088  ;;  %v7270_v59 = vpop.permute.xlu2 %7269  ;;  %8568 = vmatpush.bf16.msra.mxu2 %v9609_v32 }
 0x955   : > { %7163 = vst.msk [vmem:[#allocation3 + $0xb0] sm:$0xf] %vm7140_vm13, %v7089_v38  ;;  %v7081_v28 = vpop.permute.xlu0 %7080  ;;  %v7698_v38 = vpack.c.bf16 %v7666_v5, %v7666_v5 }
 0x956   : > { %7366 = vst.msk [vmem:[#allocation3] sm:$0xf] %vm7365_vm5, %v7270_v59  ;;  %v7441_v59 = vpack.c.bf16 %v7409_v0, %v7409_v0 }
 0x957   : > { %7159 = vst.msk [vmem:[#allocation3 + $0x90] sm:$0xf] %vm7140_vm13, %v7081_v28  ;;  %v7955_v28 = vpack.c.bf16 %v7923_v53, %v7923_v53  ;;  %v7730_v58 = vsel %vm9871_vm8, %v7698_v38, 0  ;;  %v7669_v38 = vld [vmem:[#allocation2 + $0x97] sm:$0xff] }
 0x958   : > { %v7473_v21 = vsel %vm14786_vm12, %v7441_v59, 0  ;;  %v7412_v59 = vld [vmem:[#allocation2 + $0x89] sm:$0xff]  ;;  %vm14793_vm12 = vnez %v14770_v36 }
 0x95a   : > { %8024 = vrot.lane.b32.xlu1 %v7952_v54, %s9669_s21  ;;  %7799 = vrot.lane.b32.xlu2 %v7727_v9, %s9668_s13 }
 0x95b   : > { %7542 = vrot.lane.b32.xlu0 %v7470_v2, %s9667_s29  ;;  %v7442_v2 = vpack.c.bf16 %v7410_v11, %v7410_v11  ;;  %v7926_v11 = vld [vmem:[#allocation2 + $0x98] sm:$0xff] }
 0x95c   : > { %v7095_v6 = vpop.permute.xlu1 %7094  ;;  %v7529_v16 = vpop.permute.xlu2 %7528  ;;  %v7958_v17 = vpack.c.bf16 %v7926_v11, %v7926_v11 }
 0x95d   : > { %7166 = vst.msk [vmem:[#allocation3 + $0xc8] sm:$0xf] %vm7140_vm13, %v7095_v6  ;;  %v7087_v19 = vpop.permute.xlu0 %7086  ;;  %v7474_v14 = vsel %vm9871_vm8, %v7442_v2, 0  ;;  %v7668_v6 = vld [vmem:[#allocation2 + $0x8f] sm:$0xff] }
 0x95e   : > { %7162 = vst.msk [vmem:[#allocation3 + $0xa8] sm:$0xf] %vm7140_vm13, %v7087_v19  ;;  %v7411_v19 = vld [vmem:[#allocation2 + $0x81] sm:$0xff]  ;;  %v7700_v8 = vpack.c.bf16 %v7668_v6, %v7668_v6 }
 0x962   : > { %7291 = vrot.lane.b32.xlu1 %v7216_v60, %s9666_s17  ;;  %8026 = vrot.lane.b32.xlu2 %v7216_v60, %s9669_s21  ;;  %v7443_v60 = vpack.c.bf16 %v7411_v19, %v7411_v19  ;;  %v7190_v19 = vld [vmem:[#allocation2 + $0xa0] sm:$0xff] }
 0x963   : > { %7801 = vrot.lane.b32.xlu0 %v7728_v34, %s9668_s13  ;;  %v7732_v34 = vsel %vm9871_vm8, %v7700_v8, 0  ;;  %v7222_v8 = vpack.c.bf16 %v7190_v19, %v7190_v19 }
 0x964   : > { %v7101_v42 = vpop.permute.xlu1 %7100  ;;  %v8009_v13 = vpop.permute.xlu2 %8008  ;;  %v7475_v12 = vsel %vm14787_vm3, %v7443_v60, 0  ;;  %vm14794_vm3 = vnez %v14213_v20 }
 0x965   : > { %7169 = vst.msk [vmem:[#allocation3 + $0xe0] sm:$0xf] %vm7140_vm13, %v7101_v42  ;;  %v7093_v44 = vpop.permute.xlu0 %7092 }
 0x966   : > { %7165 = vst.msk [vmem:[#allocation3 + $0xc0] sm:$0xf] %vm7140_vm13, %v7093_v44 }
 0x96a   : > { %7803 = vrot.lane.b32.xlu1 %v7729_v30, %s9668_s13  ;;  %7546 = vrot.lane.b32.xlu2 %v7472_v51, %s9667_s29 }
 0x96b   : > { %7289 = vrot.lane.b32.xlu0 %v7952_v54, %s9666_s17 }
 0x96c   : > { %v7527_v39 = vpop.permute.xlu1 %7526  ;;  %v7276_v23 = vpop.permute.xlu2 %7275 }
 0x96d   : > { %7623 = vst.msk [vmem:[#allocation3] sm:$0xf] %vm7622_vm10, %v7527_v39  ;;  %v7099_v62 = vpop.permute.xlu0 %7098  ;;  %v7445_v39 = vpack.c.bf16 %v7413_v52, %v7413_v52  ;;  %v7415_v52 = vld [vmem:[#allocation2 + $0xa1] sm:$0xff] }
 0x96e   : > { %7369 = vst.msk [vmem:[#allocation3 + $0x18] sm:$0xf] %vm7365_vm5, %v7276_v23  ;;  %v7188_v23 = vld [vmem:[#allocation2 + $0x90] sm:$0xff] }
 0x96f   : > { %7168 = vst.msk [vmem:[#allocation3 + $0xd8] sm:$0xf] %vm7140_vm13, %v7099_v62  ;;  %v7220_v57 = vpack.c.bf16 %v7188_v23, %v7188_v23  ;;  %v7477_v53 = vsel %vm14788_vm2, %v7445_v39, 0  ;;  %vm14795_vm2 = vnez %v14767_v25 }
 0x972   : > { %8030 = vrot.lane.b32.xlu1 %v7955_v28, %s9669_s21  ;;  %7805 = vrot.lane.b32.xlu2 %v7730_v58, %s9668_s13 }
 0x973   : > { %7548 = vrot.lane.b32.xlu0 %v7473_v21, %s9667_s29 }
 0x974   : > { %v7786_v15 = vpop.permute.xlu1 %7785  ;;  %v7788_v54 = vpop.permute.xlu2 %7787 }
 0x975   : > { %v7272_v9 = vpop.permute.xlu0 %7271 }
 0x976   : > { %7367 = vst.msk [vmem:[#allocation3 + $0x8] sm:$0xf] %vm7365_vm5, %v7272_v9 }
 0x977   : > { %7624 = vst.msk [vmem:[#allocation3 + $0x8] sm:$0xf] %vm7622_vm10, %v7529_v16 }
 0x978   : > { %7881 = vst.msk [vmem:[#allocation3 + $0x8] sm:$0xf] %vm7879_vm9, %v7786_v15  ;;  %v7701_v15 = vpack.c.bf16 %v7669_v38, %v7669_v38 }
 0x97a   : > { %7550 = vrot.lane.b32.xlu1 %v7474_v14, %s9667_s29  ;;  %7293 = vrot.lane.b32.xlu2 %v7954_v22, %s9666_s17  ;;  %v7733_v9 = vsel %vm14789_vm11, %v7701_v15, 0  ;;  %vm14796_vm11 = vnez %v14764_v35 }
 0x97b   : > { %8028 = vrot.lane.b32.xlu0 %v7954_v22, %s9669_s21 }
 0x97c   : > { %v7274_v37 = vpop.permute.xlu1 %7273  ;;  %v8015_v31 = vpop.permute.xlu2 %8014 }
 0x97d   : > { %7368 = vst.msk [vmem:[#allocation3 + $0x10] sm:$0xf] %vm7365_vm5, %v7274_v37  ;;  %v7784_v16 = vpop.permute.xlu0 %7783  ;;  %v7702_v37 = vpack.c.bf16 %v7670_v24, %v7670_v24 }
 0x97e   : > { %7880 = vst.msk [vmem:[#allocation3] sm:$0xf] %vm7879_vm9, %v7784_v16 }
 0x97f   : > { %8105 = vst.msk [vmem:[#allocation3] sm:$0xf] %vm8104_vm15, %v8009_v13  ;;  %v7699_v13 = vpack.c.bf16 %v7667_v49, %v7667_v49  ;;  %v7734_v60 = vsel %vm9871_vm8, %v7702_v37, 0 }
 0x981   : > { %v7731_v18 = vsel %vm14759_vm6, %v7699_v13, 0  ;;  %vm14791_vm6 = vnez %v14209_v50 }
 0x982   : > { %7809 = vrot.lane.b32.xlu1 %v7732_v34, %s9668_s13  ;;  %7552 = vrot.lane.b32.xlu2 %v7475_v12, %s9667_s29  ;;  %v7671_v34 = vld [vmem:[#allocation2 + $0xa7] sm:$0xff]  ;;  %v7414_v12 = vld [vmem:[#allocation2 + $0x99] sm:$0xff] }
 0x983   : > { %7295 = vrot.lane.b32.xlu0 %v7955_v28, %s9666_s17  ;;  %v7446_v43 = vpack.c.bf16 %v7414_v12, %v7414_v12 }
 0x984   : > { %v7533_v45 = vpop.permute.xlu1 %7532  ;;  %v7535_v42 = vpop.permute.xlu2 %7534 }
 0x985   : > { %7626 = vst.msk [vmem:[#allocation3 + $0x18] sm:$0xf] %vm7622_vm10, %v7533_v45  ;;  %v8011_v44 = vpop.permute.xlu0 %8010 }
 0x986   : > { %8106 = vst.msk [vmem:[#allocation3 + $0x8] sm:$0xf] %vm8104_vm15, %v8011_v44  ;;  %v9356_v0 = vld [vmem:[#allocation3] sm:$0xf]  ;;  %v7703_v44 = vpack.c.bf16 %v7671_v34, %v7671_v34 }
 0x988   : > { %v7735_v13 = vsel %vm14790_vm14, %v7703_v44, 0  ;;  %vm14797_vm14 = vnez %v14215_v55 }
 0x98a   : > { %7297 = vrot.lane.b32.xlu1 %v7219_v7, %s9666_s17  ;;  %8032 = vrot.lane.b32.xlu2 %v7219_v7, %s9669_s21  ;;  %v7478_v7 = vsel %vm9871_vm8, %v7446_v43, 0 }
 0x98b   : > { %7807 = vrot.lane.b32.xlu0 %v7731_v18, %s9668_s13  ;;  %v7672_v18 = vld [vmem:[#allocation2 + $0xaf] sm:$0xff] }
 0x98c   : > { %v8013_v30 = vpop.permute.xlu1 %8012  ;;  %v7794_v51 = vpop.permute.xlu2 %7793  ;;  %v7704_v40 = vpack.c.bf16 %v7672_v18, %v7672_v18 }
 0x98d   : > { %v7531_v5 = vpop.permute.xlu0 %7530  ;;  %v9578_v32 = vld [vmem:[#allocation3 + $0x4] sm:$0xf0] }
 0x98e   : > { %7625 = vst.msk [vmem:[#allocation3 + $0x10] sm:$0xf] %vm7622_vm10, %v7531_v5  ;;  %v9357_v62 = vor.u32 %v9578_v32, %v9356_v0  ;;  %v7929_v0 = vld [vmem:[#allocation2 + $0xb0] sm:$0xff]  ;;  %v7447_v32 = vpack.c.bf16 %v7415_v52, %v7415_v52  ;;  %v7736_v23 = vsel %vm9871_vm8, %v7704_v40, 0  ;;  %v7194_v52 = vld [vmem:[#allocation2 + $0xc0] sm:$0xff] }
 0x98f   : > { %7882 = vst.msk [vmem:[#allocation3 + $0x10] sm:$0xf] %vm7879_vm9, %v7788_v54  ;;  %v7444_v54 = vpack.c.bf16 %v7412_v59, %v7412_v59  ;;  %v7961_v39 = vpack.c.bf16 %v7929_v0, %v7929_v0 }
 0x990   : > { %8107 = vst.msk [vmem:[#allocation3 + $0x10] sm:$0xf] %vm8104_vm15, %v8013_v30  ;;  %8569 = vmatmul.bf16.vlgmr.msra.gmra.mxu2 %v9357_v62  ;;  %v7479_v62 = vsel %vm14791_vm6, %v7447_v32, 0  ;;  %vm14798_vm6 = vnez %v14217_v1 }
 0x991   : > { %v7476_v2 = vsel %vm9871_vm8, %v7444_v54, 0 }
 0x992   : > { %7556 = vrot.lane.b32.xlu1 %v7477_v53, %s9667_s29  ;;  %7299 = vrot.lane.b32.xlu2 %v7220_v57, %s9666_s17 }
 0x993   : > { %8034 = vrot.lane.b32.xlu0 %v7220_v57, %s9669_s21  ;;  %v7416_v57 = vld [vmem:[#allocation2 + $0xa9] sm:$0xff] }
 0x994   : > { %v7280_v28 = vpop.permute.xlu1 %7279  ;;  %v7282_v58 = vpop.permute.xlu2 %7281 }
 0x995   : > { %7371 = vst.msk [vmem:[#allocation3 + $0x28] sm:$0xf] %vm7365_vm5, %v7280_v28  ;;  %v7790_v21 = vpop.permute.xlu0 %7789  ;;  %v7448_v28 = vpack.c.bf16 %v7416_v57, %v7416_v57 }
 0x996   : > { %7372 = vst.msk [vmem:[#allocation3 + $0x30] sm:$0xf] %vm7365_vm5, %v7282_v58  ;;  %v7191_v58 = vld [vmem:[#allocation2 + $0xa8] sm:$0xff] }
 0x997   : > { %7883 = vst.msk [vmem:[#allocation3 + $0x18] sm:$0xf] %vm7879_vm9, %v7790_v21  ;;  %v9364_v3 = vld [vmem:[#allocation3 + $0x10] sm:$0xf]  ;;  %v7480_v50 = vsel %vm9871_vm8, %v7448_v28, 0  ;;  %v7223_v54 = vpack.c.bf16 %v7191_v58, %v7191_v58 }
 0x998   : > { %8108 = vst.msk [vmem:[#allocation3 + $0x18] sm:$0xf] %vm8104_vm15, %v8015_v31 }
 0x99a   : > { %8036 = vrot.lane.b32.xlu1 %v7958_v17, %s9669_s21  ;;  %7811 = vrot.lane.b32.xlu2 %v7733_v9, %s9668_s13  ;;  %v7417_v9 = vld [vmem:[#allocation2 + $0xb1] sm:$0xff] }
 0x99b   : > { %7554 = vrot.lane.b32.xlu0 %v7476_v2, %s9667_s29 }
 0x99c   : > { %v7792_v22 = vpop.permute.xlu1 %7791  ;;  %v7541_v14 = vpop.permute.xlu2 %7540 }
 0x99d   : > { %v7278_v6 = vpop.permute.xlu0 %7277 }
 0x99e   : > { %7370 = vst.msk [vmem:[#allocation3 + $0x20] sm:$0xf] %vm7365_vm5, %v7278_v6  ;;  %v7449_v6 = vpack.c.bf16 %v7417_v9, %v7417_v9  ;;  %v7677_v9 = vld [vmem:[#allocation2 + $0xd7] sm:$0xff] }
 0x99f   : > { %7627 = vst.msk [vmem:[#allocation3 + $0x20] sm:$0xf] %vm7622_vm10, %v7535_v42  ;;  %v9580_v31 = vld [vmem:[#allocation3 + $0x14] sm:$0xf0] }
 0x9a0   : > { %7884 = vst.msk [vmem:[#allocation3 + $0x20] sm:$0xf] %vm7879_vm9, %v7792_v22  ;;  %v9365_v16 = vor.u32 %v9580_v31, %v9364_v3  ;;  %v7481_v37 = vsel %vm14792_vm1, %v7449_v6, 0  ;;  %v7673_v3 = vld [vmem:[#allocation2 + $0xb7] sm:$0xff]  ;;  %v7709_v6 = vpack.c.bf16 %v7677_v9, %v7677_v9  ;;  %vm14803_vm1 = vnez %v14167_v33 }
 0x9a1   : > { %v7705_v34 = vpack.c.bf16 %v7673_v3, %v7673_v3 }
 0x9a2   : > { %8574 = vmatmul.bf16.gmra.mxu2 %v9365_v16  ;;  %7303 = vrot.lane.b32.xlu1 %v7222_v8, %s9666_s17 }
 0x9a3   : > { %8038 = vrot.lane.b32.xlu2 %v7222_v8, %s9669_s21  ;;  %7813 = vrot.lane.b32.xlu0 %v7734_v60, %s9668_s13  ;;  %v7193_v60 = vld [vmem:[#allocation2 + $0xb8] sm:$0xff]  ;;  %v7737_v63 = vsel %vm14793_vm12, %v7705_v34, 0 }
 0x9a4   : > { %v8019_v49 = vpop.permute.xlu1 %8018  ;;  %v8021_v45 = vpop.permute.xlu2 %8020  ;;  %v7225_v12 = vpack.c.bf16 %v7193_v60, %v7193_v60 }
 0x9a5   : > { %v7537_v42 = vpop.permute.xlu0 %7536 }
 0x9a6   : > { %7628 = vst.msk [vmem:[#allocation3 + $0x28] sm:$0xf] %vm7622_vm10, %v7537_v42 }
 0x9a7   : > { %7885 = vst.msk [vmem:[#allocation3 + $0x28] sm:$0xf] %vm7879_vm9, %v7794_v51 }
 0x9a8   : > { %8110 = vst.msk [vmem:[#allocation3 + $0x28] sm:$0xf] %vm8104_vm15, %v8019_v49  ;;  %v7419_v49 = vld [vmem:[#allocation2 + $0xc1] sm:$0xff] }
 0x9aa   : > { %7815 = vrot.lane.b32.xlu1 %v7735_v13, %s9668_s13 }
 0x9ab   : > { %7558 = vrot.lane.b32.xlu2 %v7478_v7, %s9667_s29  ;;  %7301 = vrot.lane.b32.xlu0 %v7958_v17, %s9666_s17  ;;  %v7674_v17 = vld [vmem:[#allocation2 + $0xbf] sm:$0xff]  ;;  %v7451_v7 = vpack.c.bf16 %v7419_v49, %v7419_v49 }
 0x9ac   : > { %v7539_v30 = vpop.permute.xlu1 %7538  ;;  %v7288_v5 = vpop.permute.xlu2 %7287 }
 0x9ad   : > { %7629 = vst.msk [vmem:[#allocation3 + $0x30] sm:$0xf] %vm7622_vm10, %v7539_v30  ;;  %v8017_v51 = vpop.permute.xlu0 %8016  ;;  %v7483_v36 = vsel %vm14794_vm3, %v7451_v7, 0  ;;  %v7226_v30 = vpack.c.bf16 %v7194_v52, %v7194_v52  ;;  %v7197_v52 = vld [vmem:[#allocation2 + $0xd8] sm:$0xff] }
 0x9ae   : > { %7375 = vst.msk [vmem:[#allocation3 + $0x48] sm:$0xf] %vm7365_vm5, %v7288_v5  ;;  %v7675_v5 = vld [vmem:[#allocation2 + $0xc7] sm:$0xff] }
 0x9af   : > { %8109 = vst.msk [vmem:[#allocation3 + $0x20] sm:$0xf] %vm8104_vm15, %v8017_v51  ;;  %v9582_v11 = vld [vmem:[#allocation3 + $0x24] sm:$0xf0] }
 0x9b0   : > { %v7418_v51 = vld [vmem:[#allocation2 + $0xb9] sm:$0xff] }
 0x9b1   : > { %v7450_v20 = vpack.c.bf16 %v7418_v51, %v7418_v51  ;;  %v7229_v51 = vpack.c.bf16 %v7197_v52, %v7197_v52 }
 0x9b2   : > { %8042 = vrot.lane.b32.xlu1 %v7961_v39, %s9669_s21 }
 0x9b3   : > { %7817 = vrot.lane.b32.xlu2 %v7736_v23, %s9668_s13  ;;  %7560 = vrot.lane.b32.xlu0 %v7479_v62, %s9667_s29  ;;  %v7707_v23 = vpack.c.bf16 %v7675_v5, %v7675_v5 }
 0x9b4   : > { %v7798_v53 = vpop.permute.xlu1 %7797  ;;  %v7800_v38 = vpop.permute.xlu2 %7799 }
 0x9b5   : > { %v7284_v59 = vpop.permute.xlu0 %7283  ;;  %v7739_v57 = vsel %vm14795_vm2, %v7707_v23, 0 }
 0x9b6   : > { %7373 = vst.msk [vmem:[#allocation3 + $0x38] sm:$0xf] %vm7365_vm5, %v7284_v59  ;;  %v9372_v21 = vld [vmem:[#allocation3 + $0x20] sm:$0xf] }
 0x9b7   : > { %7630 = vst.msk [vmem:[#allocation3 + $0x38] sm:$0xf] %vm7622_vm10, %v7541_v14  ;;  %v9373_v15 = vor.u32 %v9582_v11, %v9372_v21  ;;  %v7706_v14 = vpack.c.bf16 %v7674_v17, %v7674_v17  ;;  %v7196_v21 = vld [vmem:[#allocation2 + $0xd0] sm:$0xff] }
 0x9b8   : > { %7887 = vst.msk [vmem:[#allocation3 + $0x38] sm:$0xf] %vm7879_vm9, %v7798_v53  ;;  %v7482_v53 = vsel %vm9871_vm8, %v7450_v20, 0 }
 0x9b9   : > { %8579 = vmatmul.bf16.gmra.mxu2 %v9373_v15  ;;  %v7738_v19 = vsel %vm9871_vm8, %v7706_v14, 0 }
 0x9ba   : > { %7562 = vrot.lane.b32.xlu1 %v7480_v50, %s9667_s29 }
 0x9bb   : > { %7305 = vrot.lane.b32.xlu2 %v7223_v54, %s9666_s17  ;;  %8040 = vrot.lane.b32.xlu0 %v7223_v54, %s9669_s21  ;;  %v7228_v54 = vpack.c.bf16 %v7196_v21, %v7196_v21  ;;  %v7199_v21 = vld [vmem:[#allocation2 + $0xe8] sm:$0xff] }
 0x9bc   : > { %v7286_v2 = vpop.permute.xlu1 %7285  ;;  %v8027_v24 = vpop.permute.xlu2 %8026 }
 0x9bd   : > { %7374 = vst.msk [vmem:[#allocation3 + $0x40] sm:$0xf] %vm7365_vm5, %v7286_v2  ;;  %v7796_v22 = vpop.permute.xlu0 %7795  ;;  %v7420_v2 = vld [vmem:[#allocation2 + $0xc9] sm:$0xff] }
 0x9be   : > { %7886 = vst.msk [vmem:[#allocation3 + $0x30] sm:$0xf] %vm7879_vm9, %v7796_v22 }
 0x9bf   : > { %8111 = vst.msk [vmem:[#allocation3 + $0x30] sm:$0xf] %vm8104_vm15, %v8021_v45 }
 0x9c2   : > { %7821 = vrot.lane.b32.xlu1 %v7738_v19, %s9668_s13  ;;  %v7452_v19 = vpack.c.bf16 %v7420_v2, %v7420_v2 }
 0x9c3   : > { %7564 = vrot.lane.b32.xlu2 %v7481_v37, %s9667_s29  ;;  %7307 = vrot.lane.b32.xlu0 %v7961_v39, %s9666_s17  ;;  %v7932_v39 = vld [vmem:[#allocation2 + $0xc8] sm:$0xff]  ;;  %v7741_v37 = vsel %vm14796_vm11, %v7709_v6, 0  ;;  %vm14805_vm11 = vcmask 130048  }
 0x9c4   : > { %v7545_v31 = vpop.permute.xlu1 %7544  ;;  %v7547_v16 = vpop.permute.xlu2 %7546  ;;  %v7964_v62 = vpack.c.bf16 %v7932_v39, %v7932_v39  ;;  %v7484_v3 = vsel %vm9871_vm8, %v7452_v19, 0  ;;  %v7681_v19 = vld [vmem:[#allocation2 + $0xf7] sm:$0xff] }
 0x9c5   : > { %7632 = vst.msk [vmem:[#allocation3 + $0x48] sm:$0xf] %vm7622_vm10, %v7545_v31  ;;  %v8023_v8 = vpop.permute.xlu0 %8022  ;;  %v7678_v31 = vld [vmem:[#allocation2 + $0xdf] sm:$0xff] }
 0x9c6   : > { %8112 = vst.msk [vmem:[#allocation3 + $0x38] sm:$0xf] %vm8104_vm15, %v8023_v8  ;;  %v9380_v43 = vld [vmem:[#allocation3 + $0x30] sm:$0xf]  ;;  %v7710_v35 = vpack.c.bf16 %v7678_v31, %v7678_v31 }
 0x9ca   : > { %7309 = vrot.lane.b32.xlu1 %v7225_v12, %s9666_s17 }
 0x9cb   : > { %8044 = vrot.lane.b32.xlu2 %v7225_v12, %s9669_s21  ;;  %7819 = vrot.lane.b32.xlu0 %v7737_v63, %s9668_s13  ;;  %v7935_v12 = vld [vmem:[#allocation2 + $0xe0] sm:$0xff] }
 0x9cc   : > { %v8025_v45 = vpop.permute.xlu1 %8024  ;;  %v7806_v42 = vpop.permute.xlu2 %7805  ;;  %v7967_v49 = vpack.c.bf16 %v7935_v12, %v7935_v12 }
 0x9cd   : > { %v7543_v44 = vpop.permute.xlu0 %7542  ;;  %v9584_v13 = vld [vmem:[#allocation3 + $0x34] sm:$0xf0] }
 0x9ce   : > { %7631 = vst.msk [vmem:[#allocation3 + $0x40] sm:$0xf] %vm7622_vm10, %v7543_v44  ;;  %v9381_v18 = vor.u32 %v9584_v13, %v9380_v43  ;;  %v7422_v44 = vld [vmem:[#allocation2 + $0xd9] sm:$0xff] }
 0x9cf   : > { %7888 = vst.msk [vmem:[#allocation3 + $0x40] sm:$0xf] %vm7879_vm9, %v7800_v38  ;;  %v7676_v38 = vld [vmem:[#allocation2 + $0xcf] sm:$0xff] }
 0x9d0   : > { %8113 = vst.msk [vmem:[#allocation3 + $0x40] sm:$0xf] %vm8104_vm15, %v8025_v45  ;;  %8584 = vmatmul.bf16.gmra.mxu2 %v9381_v18  ;;  %v7708_v11 = vpack.c.bf16 %v7676_v38, %v7676_v38  ;;  %v7742_v45 = vsel %vm9871_vm8, %v7710_v35, 0  ;;  %v7454_v18 = vpack.c.bf16 %v7422_v44, %v7422_v44  ;;  %v7679_v38 = vld [vmem:[#allocation2 + $0xe7] sm:$0xff] }
 0x9d2   : > { %7568 = vrot.lane.b32.xlu1 %v7483_v36, %s9667_s29  ;;  %v7740_v17 = vsel %vm9871_vm8, %v7708_v11, 0  ;;  %v7486_v55 = vsel %vm9871_vm8, %v7454_v18, 0  ;;  %v7711_v11 = vpack.c.bf16 %v7679_v38, %v7679_v38 }
 0x9d3   : > { %7311 = vrot.lane.b32.xlu2 %v7226_v30, %s9666_s17  ;;  %8046 = vrot.lane.b32.xlu0 %v7226_v30, %s9669_s21 }
 0x9d4   : > { %v7292_v0 = vpop.permute.xlu1 %7291  ;;  %v7294_v40 = vpop.permute.xlu2 %7293  ;;  %v7743_v1 = vsel %vm14783_vm7, %v7711_v11, 0  ;;  %vm14799_vm7 = vnez %v14153_v48  ;;  %v6947_v11 = vld [vmem:[#allocation2 + $0x10f] sm:$0xff] }
 0x9d5   : > { %7377 = vst.msk [vmem:[#allocation3 + $0x58] sm:$0xf] %vm7365_vm5, %v7292_v0  ;;  %v7802_v32 = vpop.permute.xlu0 %7801  ;;  %v7680_v0 = vld [vmem:[#allocation2 + $0xef] sm:$0xff] }
 0x9d6   : > { %7378 = vst.msk [vmem:[#allocation3 + $0x60] sm:$0xf] %vm7365_vm5, %v7294_v40  ;;  %v7423_v40 = vld [vmem:[#allocation2 + $0xe1] sm:$0xff]  ;;  %v7712_v20 = vpack.c.bf16 %v7680_v0, %v7680_v0 }
 0x9d7   : > { %7889 = vst.msk [vmem:[#allocation3 + $0x48] sm:$0xf] %vm7879_vm9, %v7802_v32  ;;  %v9388_v15 = vld [vmem:[#allocation3 + $0x40] sm:$0xf] }
 0x9d8   : > { %8114 = vst.msk [vmem:[#allocation3 + $0x48] sm:$0xf] %vm8104_vm15, %v8027_v24 }
 0x9da   : > { %8048 = vrot.lane.b32.xlu1 %v7964_v62, %s9669_s21 }
 0x9db   : > { %7823 = vrot.lane.b32.xlu2 %v7739_v57, %s9668_s13  ;;  %7566 = vrot.lane.b32.xlu0 %v7482_v53, %s9667_s29  ;;  %v7744_v57 = vsel %vm9871_vm8, %v7712_v20, 0 }
 0x9dc   : > { %v7804_v59 = vpop.permute.xlu1 %7803  ;;  %v7553_v28 = vpop.permute.xlu2 %7552 }
 0x9dd   : > { %v7290_v58 = vpop.permute.xlu0 %7289 }
 0x9de   : > { %7376 = vst.msk [vmem:[#allocation3 + $0x50] sm:$0xf] %vm7365_vm5, %v7290_v58 }
 0x9df   : > { %7633 = vst.msk [vmem:[#allocation3 + $0x50] sm:$0xf] %vm7622_vm10, %v7547_v16  ;;  %v9586_v25 = vld [vmem:[#allocation3 + $0x44] sm:$0xf0] }
 0x9e0   : > { %7890 = vst.msk [vmem:[#allocation3 + $0x50] sm:$0xf] %vm7879_vm9, %v7804_v59  ;;  %v9389_v50 = vor.u32 %v9586_v25, %v9388_v15  ;;  %v7421_v16 = vld [vmem:[#allocation2 + $0xd1] sm:$0xff]  ;;  %v7231_v15 = vpack.c.bf16 %v7199_v21, %v7199_v21 }
 0x9e1   : > { %v7453_v63 = vpack.c.bf16 %v7421_v16, %v7421_v16  ;;  %v7425_v25 = vld [vmem:[#allocation2 + $0xf1] sm:$0xff] }
 0x9e2   : > { %8589 = vmatmul.bf16.gmra.mxu2 %v9389_v50  ;;  %7315 = vrot.lane.b32.xlu1 %v7228_v54, %s9666_s17 }
 0x9e3   : > { %8050 = vrot.lane.b32.xlu2 %v7228_v54, %s9669_s21  ;;  %7825 = vrot.lane.b32.xlu0 %v7740_v17, %s9668_s13 }
 0x9e4   : > { %v8031_v24 = vpop.permute.xlu1 %8030  ;;  %v8033_v22 = vpop.permute.xlu2 %8032 }
 0x9e5   : > { %v7549_v14 = vpop.permute.xlu0 %7548 }
 0x9e6   : > { %7634 = vst.msk [vmem:[#allocation3 + $0x58] sm:$0xf] %vm7622_vm10, %v7549_v14  ;;  %v7200_v14 = vld [vmem:[#allocation2 + $0xf0] sm:$0xff] }
 0x9e7   : > { %7891 = vst.msk [vmem:[#allocation3 + $0x58] sm:$0xf] %vm7879_vm9, %v7806_v42  ;;  %v7485_v42 = vsel %vm14797_vm14, %v7453_v63, 0  ;;  %v7232_v6 = vpack.c.bf16 %v7200_v14, %v7200_v14  ;;  %v7682_v63 = vld [vmem:[#allocation2 + $0xff] sm:$0xff] }
 0x9e8   : > { %8116 = vst.msk [vmem:[#allocation3 + $0x58] sm:$0xf] %vm8104_vm15, %v8031_v24  ;;  %v7457_v24 = vpack.c.bf16 %v7425_v25, %v7425_v25  ;;  %v6979_v25 = vpack.c.bf16 %v6947_v11, %v6947_v11 }
 0x9ea   : > { %7827 = vrot.lane.b32.xlu1 %v7741_v37, %s9668_s13  ;;  %v7489_v10 = vsel %vm14799_vm7, %v7457_v24, 0  ;;  %v7424_v37 = vld [vmem:[#allocation2 + $0xe9] sm:$0xff]  ;;  %v7011_v24 = vsel %vm9871_vm8, %v6979_v25, 0 }
 0x9eb   : > { %7570 = vrot.lane.b32.xlu2 %v7484_v3, %s9667_s29  ;;  %7313 = vrot.lane.b32.xlu0 %v7964_v62, %s9666_s17  ;;  %v7455_v62 = vpack.c.bf16 %v7423_v40, %v7423_v40  ;;  %v7456_v48 = vpack.c.bf16 %v7424_v37, %v7424_v37 }
 0x9ec   : > { %v7551_v8 = vpop.permute.xlu1 %7550  ;;  %v7300_v60 = vpop.permute.xlu2 %7299 }
 0x9ed   : > { %7635 = vst.msk [vmem:[#allocation3 + $0x60] sm:$0xf] %vm7622_vm10, %v7551_v8  ;;  %v8029_v34 = vpop.permute.xlu0 %8028  ;;  %v7487_v53 = vsel %vm14798_vm6, %v7455_v62, 0  ;;  %v7938_v8 = vld [vmem:[#allocation2 + $0xf8] sm:$0xff]  ;;  %v7488_v35 = vsel %vm9871_vm8, %v7456_v48, 0 }
 0x9ee   : > { %7381 = vst.msk [vmem:[#allocation3 + $0x78] sm:$0xf] %vm7365_vm5, %v7300_v60  ;;  %v7713_v60 = vpack.c.bf16 %v7681_v19, %v7681_v19 }
 0x9ef   : > { %8115 = vst.msk [vmem:[#allocation3 + $0x50] sm:$0xf] %vm8104_vm15, %v8029_v34  ;;  %v9588_v30 = vld [vmem:[#allocation3 + $0x54] sm:$0xf0]  ;;  %v7970_v34 = vpack.c.bf16 %v7938_v8, %v7938_v8 }
 0x9f0   : > { %v7745_v12 = vsel %vm14780_vm4, %v7713_v60, 0  ;;  %vm14800_vm4 = vnez %v14165_v46  ;;  %v7429_v60 = vld [vmem:[#allocation2 + $0x111] sm:$0xff] }
 0x9f2   : > { %8054 = vrot.lane.b32.xlu1 %v7967_v49, %s9669_s21 }
 0x9f3   : > { %7829 = vrot.lane.b32.xlu2 %v7742_v45, %s9668_s13  ;;  %7572 = vrot.lane.b32.xlu0 %v7485_v42, %s9667_s29 }
 0x9f4   : > { %v7810_v43 = vpop.permute.xlu1 %7809  ;;  %v7812_v13 = vpop.permute.xlu2 %7811 }
 0x9f5   : > { %v7296_v7 = vpop.permute.xlu0 %7295 }
 0x9f6   : > { %7379 = vst.msk [vmem:[#allocation3 + $0x68] sm:$0xf] %vm7365_vm5, %v7296_v7  ;;  %v9396_v36 = vld [vmem:[#allocation3 + $0x50] sm:$0xf] }
 0x9f7   : > { %7636 = vst.msk [vmem:[#allocation3 + $0x68] sm:$0xf] %vm7622_vm10, %v7553_v28  ;;  %v9397_v5 = vor.u32 %v9588_v30, %v9396_v36  ;;  %v7427_v30 = vld [vmem:[#allocation2 + $0x101] sm:$0xff] }
 0x9f8   : > { %7893 = vst.msk [vmem:[#allocation3 + $0x68] sm:$0xf] %vm7879_vm9, %v7810_v43  ;;  %v7939_v43 = vld [vmem:[#allocation2 + $0x100] sm:$0xff] }
 0x9f9   : > { %8594 = vmatmul.bf16.gmra.mxu2 %v9397_v5  ;;  %v7971_v52 = vpack.c.bf16 %v7939_v43, %v7939_v43  ;;  %v7685_v43 = vld [vmem:[#allocation2 + $0x117] sm:$0xff] }
 0x9fa   : > { %7574 = vrot.lane.b32.xlu1 %v7486_v55, %s9667_s29 }
 0x9fb   : > { %7317 = vrot.lane.b32.xlu2 %v7229_v51, %s9666_s17  ;;  %8052 = vrot.lane.b32.xlu0 %v7229_v51, %s9669_s21  ;;  %v7459_v51 = vpack.c.bf16 %v7427_v30, %v7427_v30 }
 0x9fc   : > { %v7298_v32 = vpop.permute.xlu1 %7297 }
 0x9fd   : > { %7380 = vst.msk [vmem:[#allocation3 + $0x70] sm:$0xf] %vm7365_vm5, %v7298_v32  ;;  %v8039_v39 = vpop.permute.xlu2 %8038  ;;  %v7808_v23 = vpop.permute.xlu0 %7807  ;;  %v7491_v32 = vsel %vm14800_vm4, %v7459_v51, 0  ;;  %vm14806_vm4 = vmmov %vm14805_vm11 }
 0x9fe   : > { %7892 = vst.msk [vmem:[#allocation3 + $0x60] sm:$0xf] %vm7879_vm9, %v7808_v23  ;;  %v7426_v23 = vld [vmem:[#allocation2 + $0xf9] sm:$0xff] }
 0x9ff   : > { %8117 = vst.msk [vmem:[#allocation3 + $0x60] sm:$0xf] %vm8104_vm15, %v8033_v22 }
 0xa02   : > { %7833 = vrot.lane.b32.xlu1 %v7744_v57, %s9668_s13  ;;  %v7940_v57 = vld [vmem:[#allocation2 + $0x108] sm:$0xff] }
 0xa03   : > { %7576 = vrot.lane.b32.xlu2 %v7487_v53, %s9667_s29  ;;  %7319 = vrot.lane.b32.xlu0 %v7967_v49, %s9666_s17  ;;  %v7972_v46 = vpack.c.bf16 %v7940_v57, %v7940_v57 }
 0xa04   : > { %v7557_v59 = vpop.permute.xlu1 %7556 }
 0xa05   : > { %7638 = vst.msk [vmem:[#allocation3 + $0x78] sm:$0xf] %vm7622_vm10, %v7557_v59  ;;  %v7559_v28 = vpop.permute.xlu2 %7558  ;;  %v8035_v58 = vpop.permute.xlu0 %8034  ;;  %v7458_v59 = vpack.c.bf16 %v7426_v23, %v7426_v23  ;;  %v7943_v23 = vld [vmem:[#allocation2 + $0x120] sm:$0xff] }
 0xa06   : > { %8118 = vst.msk [vmem:[#allocation3 + $0x68] sm:$0xf] %vm8104_vm15, %v8035_v58  ;;  %v9404_v9 = vld [vmem:[#allocation3 + $0x60] sm:$0xf] }
 0xa07   : > { %v7490_v21 = vsel %vm9871_vm8, %v7458_v59, 0  ;;  %v14804_v59 = vld [vmem:[#allocation37_spill] sm:$0xff] }
 0xa0a   : > { %7321 = vrot.lane.b32.xlu1 %v7231_v15, %s9666_s17 }
 0xa0b   : > { %8056 = vrot.lane.b32.xlu2 %v7231_v15, %s9669_s21  ;;  %7831 = vrot.lane.b32.xlu0 %v7743_v1, %s9668_s13 }
 0xa0c   : > { %v8037_v50 = vpop.permute.xlu1 %8036 }
 0xa0d   : > { %v7818_v54 = vpop.permute.xlu2 %7817  ;;  %v7555_v17 = vpop.permute.xlu0 %7554  ;;  %v9590_v2 = vld [vmem:[#allocation3 + $0x64] sm:$0xf0] }
 0xa0e   : > { %7637 = vst.msk [vmem:[#allocation3 + $0x70] sm:$0xf] %vm7622_vm10, %v7555_v17  ;;  %v9405_v22 = vor.u32 %v9590_v2, %v9404_v9  ;;  %v7941_v9 = vld [vmem:[#allocation2 + $0x110] sm:$0xff] }
 0xa0f   : > { %7894 = vst.msk [vmem:[#allocation3 + $0x70] sm:$0xf] %vm7879_vm9, %v7812_v13  ;;  %v7714_v13 = vpack.c.bf16 %v7682_v63, %v7682_v63  ;;  %v7973_v29 = vpack.c.bf16 %v7941_v9, %v7941_v9 }
 0xa10   : > { %8119 = vst.msk [vmem:[#allocation3 + $0x70] sm:$0xf] %vm8104_vm15, %v8037_v50  ;;  %8599 = vmatmul.bf16.gmra.mxu2 %v9405_v22  ;;  %v7428_v22 = vld [vmem:[#allocation2 + $0x109] sm:$0xff] }
 0xa11   : > { %v7746_v36 = vsel %vm9871_vm8, %v7714_v13, 0  ;;  %v7460_v19 = vpack.c.bf16 %v7428_v22, %v7428_v22 }
 0xa12   : > { %7580 = vrot.lane.b32.xlu1 %v7489_v10, %s9667_s29 }
 0xa13   : > { %7323 = vrot.lane.b32.xlu2 %v7232_v6, %s9666_s17  ;;  %8058 = vrot.lane.b32.xlu0 %v7232_v6, %s9669_s21  ;;  %v13468_v44 = vpop.f32.mrf.mxu2 }
 0xa14   : > { %v7304_v3 = vpop.permute.xlu1 %7303 }
 0xa15   : > { %7383 = vst.msk [vmem:[#allocation3 + $0x88] sm:$0xf] %vm7365_vm5, %v7304_v3  ;;  %v7306_v31 = vpop.permute.xlu2 %7305  ;;  %v7814_v16 = vpop.permute.xlu0 %7813  ;;  %v7686_v3 = vld [vmem:[#allocation2 + $0x11f] sm:$0xff] }
 0xa16   : > { %7384 = vst.msk [vmem:[#allocation3 + $0x90] sm:$0xf] %vm7365_vm5, %v7306_v31  ;;  %v7492_v31 = vsel %vm9871_vm8, %v7460_v19, 0  ;;  %v7718_v48 = vpack.c.bf16 %v7686_v3, %v7686_v3 }
 0xa17   : > { %7895 = vst.msk [vmem:[#allocation3 + $0x78] sm:$0xf] %vm7879_vm9, %v7814_v16  ;;  %v9412_v27 = vld [vmem:[#allocation3 + $0x70] sm:$0xf] }
 0xa18   : > { %8120 = vst.msk [vmem:[#allocation3 + $0x78] sm:$0xf] %vm8104_vm15, %v8039_v39  ;;  %v7683_v39 = vld [vmem:[#allocation2 + $0x107] sm:$0xff]  ;;  %v14801_v16 = vld [vmem:[#allocation26_spill] sm:$0xff] }
 0xa19   : > { %v7715_v38 = vpack.c.bf16 %v7683_v39, %v7683_v39 }
 0xa1a   : > { %8060 = vrot.lane.b32.xlu1 %v7970_v34, %s9669_s21 }
 0xa1b   : > { %7835 = vrot.lane.b32.xlu2 %v7745_v12, %s9668_s13  ;;  %7578 = vrot.lane.b32.xlu0 %v7488_v35, %s9667_s29  ;;  %v13479_v40 = vpop.f32.mrf.mxu2  ;;  %v7747_v58 = vsel %vm14777_vm0, %v7715_v38, 0  ;;  %vm14802_vm0 = vnez %v14801_v16 }
 0xa1c   : > { %v7816_v49 = vpop.permute.xlu1 %7815  ;;  %v7010_v8 = vsel %vm14802_vm0, %v7715_v38, 0  ;;  %v8662_v9 = vadd.f32 %v12839_v41, %v13479_v40 }
 0xa1d   : > { %v7565_v45 = vpop.permute.xlu2 %7564  ;;  %v7302_v42 = vpop.permute.xlu0 %7301 }
 0xa1e   : > { %7382 = vst.msk [vmem:[#allocation3 + $0x80] sm:$0xf] %vm7365_vm5, %v7302_v42 }
 0xa1f   : > { %7639 = vst.msk [vmem:[#allocation3 + $0x80] sm:$0xf] %vm7622_vm10, %v7559_v28  ;;  %v9592_v7 = vld [vmem:[#allocation3 + $0x74] sm:$0xf0] }
 0xa20   : > { %7896 = vst.msk [vmem:[#allocation3 + $0x80] sm:$0xf] %vm7879_vm9, %v7816_v49  ;;  %v9413_v18 = vor.u32 %v9592_v7, %v9412_v27  ;;  %v7461_v49 = vpack.c.bf16 %v7429_v60, %v7429_v60  ;;  %v7942_v27 = vld [vmem:[#allocation2 + $0x118] sm:$0xff] }
 0xa21   : > { %v7974_v51 = vpack.c.bf16 %v7942_v27, %v7942_v27 }
 0xa22   : > { %8604 = vmatmul.bf16.gmra.mxu2 %v9413_v18  ;;  %7325 = vrot.lane.b32.xlu1 %v7970_v34, %s9666_s17  ;;  %v7493_v42 = vsel %vm14803_vm1, %v7461_v49, 0 }
 0xa23   : > { %8062 = vrot.lane.b32.xlu2 %v7971_v52, %s9669_s21  ;;  %7837 = vrot.lane.b32.xlu0 %v7746_v36, %s9668_s13 }
 0xa24   : > { %v8043_v5 = vpop.permute.xlu1 %8042 }
 0xa25   : > { %v8045_v55 = vpop.permute.xlu2 %8044  ;;  %v7561_v0 = vpop.permute.xlu0 %7560 }
 0xa26   : > { %7640 = vst.msk [vmem:[#allocation3 + $0x88] sm:$0xf] %vm7622_vm10, %v7561_v0  ;;  %v13491_v28 = vpop.f32.mrf.mxu2  ;;  %v13533_v0 = vpop.f32.mrf.mxu3 }
 0xa27   : > { %7897 = vst.msk [vmem:[#allocation3 + $0x88] sm:$0xf] %vm7879_vm9, %v7818_v54 }
 0xa28   : > { %8122 = vst.msk [vmem:[#allocation3 + $0x88] sm:$0xf] %vm8104_vm15, %v8043_v5  ;;  %v7717_v5 = vpack.c.bf16 %v7685_v43, %v7685_v43 }
 0xa2a   : > { %7584 = vrot.lane.b32.xlu1 %v7491_v32, %s9667_s29  ;;  %v7749_v32 = vsel %vm14802_vm0, %v7717_v5, 0  ;;  %vm14807_vm0 = vmmov %vm14806_vm4 }
 0xa2b   : > { %7327 = vrot.lane.b32.xlu2 %v7971_v52, %s9666_s17  ;;  %7102 = vrot.lane.b32.xlu0 %v7746_v36, %s9664_s15 }
 0xa2c   : > { %v7563_v20 = vpop.permute.xlu1 %7562 }
 0xa2d   : > { %7641 = vst.msk [vmem:[#allocation3 + $0x90] sm:$0xf] %vm7622_vm10, %v7563_v20  ;;  %v7312_v62 = vpop.permute.xlu2 %7311  ;;  %v8041_v53 = vpop.permute.xlu0 %8040 }
 0xa2e   : > { %7387 = vst.msk [vmem:[#allocation3 + $0xa8] sm:$0xf] %vm7365_vm5, %v7312_v62  ;;  %v13508_v14 = vpop.f32.mrf.mxu2  ;;  %v8676_v38 = vpop.f32.mrf.mxu3 }
 0xa2f   : > { %8121 = vst.msk [vmem:[#allocation3 + $0x80] sm:$0xf] %vm8104_vm15, %v8041_v53  ;;  %v9594_v17 = vld [vmem:[#allocation3 + $0x84] sm:$0xf0]  ;;  %v7975_v53 = vpack.c.bf16 %v7943_v23, %v7943_v23  ;;  %v8667_v40 = vadd.f32 %v12899_v26, %v13508_v14 }
 0xa32   : > { %8064 = vrot.lane.b32.xlu1 %v7972_v46, %s9669_s21 }
 0xa33   : > { %7839 = vrot.lane.b32.xlu2 %v7747_v58, %s9668_s13  ;;  %7582 = vrot.lane.b32.xlu0 %v7490_v21, %s9667_s29  ;;  %v13552_v58 = vld [vmem:[%s13836_s8] ss:$0 sm:$0xff] }
 0xa34   : > { %v7822_v15 = vpop.permute.xlu1 %7821  ;;  %v8744_v19 = vmul.f32 %v13552_v58, %v8662_v9  ;;  %v8746_v26 = vmul.f32 %v13552_v58, %v8667_v40  ;;  %v8910_v9 = vld [vmem:[%s13838_s10 + $0x18] sm:$0xff] }
 0xa35   : > { %v7824_v1 = vpop.permute.xlu2 %7823  ;;  %v7308_v50 = vpop.permute.xlu0 %7307 }
 0xa36   : > { %v9420_v54 = vld [vmem:[#allocation3 + $0x80] sm:$0xf]  ;;  %7385 = vst.msk [vmem:[#allocation3 + $0x98] sm:$0xf] %vm7365_vm5, %v7308_v50  ;;  %v13569_v22 = vpop.f32.mrf.mxu3 }
 0xa37   : > { %v9421_v2 = vor.u32 %v9594_v17, %v9420_v54  ;;  %7642 = vst.msk [vmem:[#allocation3 + $0x98] sm:$0xf] %vm7622_vm10, %v7565_v45  ;;  %v7750_v45 = vsel %vm9871_vm8, %v7718_v48, 0  ;;  %v13561_v54 = vld [vmem:[%s13837_s9] ss:$0 sm:$0xff] }
 0xa38   : > { %7899 = vst.msk [vmem:[#allocation3 + $0x98] sm:$0xf] %vm7879_vm9, %v7822_v15  ;;  %v8907_v48 = vld [vmem:[%s13838_s10] sm:$0xff] }
 0xa39   : > { %8609 = vmatmul.bf16.gmra.mxu2 %v9421_v2 }
 0xa3a   : > { %7106 = vrot.lane.b32.xlu1 %v7011_v24, %s9664_s15 }
 0xa3b   : > { %8066 = vrot.lane.b32.xlu2 %v7973_v29, %s9669_s21  ;;  %7841 = vrot.lane.b32.xlu0 %v7011_v24, %s9668_s13 }
 0xa3c   : > { %v7310_v10 = vpop.permute.xlu1 %7309  ;;  %v8580_v34 = vpop.f32.mrf.mxu2 }
 0xa3d   : > { %7386 = vst.msk [vmem:[#allocation3 + $0xa0] sm:$0xf] %vm7365_vm5, %v7310_v10  ;;  %v8051_v6 = vpop.permute.xlu2 %8050  ;;  %v7820_v37 = vpop.permute.xlu0 %7819 }
 0xa3e   : > { %7898 = vst.msk [vmem:[#allocation3 + $0x90] sm:$0xf] %vm7879_vm9, %v7820_v37 }
 0xa3f   : > { %8123 = vst.msk [vmem:[#allocation3 + $0x90] sm:$0xf] %vm8104_vm15, %v8045_v55 }
 0xa42   : > { %7586 = vrot.lane.b32.xlu1 %v7492_v31, %s9667_s29 }
 0xa43   : > { %7329 = vrot.lane.b32.xlu2 %v7972_v46, %s9666_s17  ;;  %7104 = vrot.lane.b32.xlu0 %v7010_v8, %s9664_s15  ;;  %v8660_v46 = vadd.f32 %v14804_v59, %v13468_v44 }
 0xa44   : > { %v7569_v12 = vpop.permute.xlu1 %7568  ;;  %v13529_v18 = vpop.f32.mrf.mxu2 }
 0xa45   : > { %7644 = vst.msk [vmem:[#allocation3 + $0xa8] sm:$0xf] %vm7622_vm10, %v7569_v12  ;;  %v7571_v35 = vpop.permute.xlu2 %7570  ;;  %v8047_v63 = vpop.permute.xlu0 %8046  ;;  %v8743_v50 = vmul.f32 %v13552_v58, %v8660_v46 }
 0xa46   : > { %8124 = vst.msk [vmem:[#allocation3 + $0x98] sm:$0xf] %vm8104_vm15, %v8047_v63  ;;  %v9428_v36 = vld [vmem:[#allocation3 + $0x90] sm:$0xf]  ;;  %v8681_v63 = vpop.f32.mrf.mxu3 }
 0xa47   : > { %v8779_v2 = vadd.f32 %v13561_v54, %v8743_v50 }
 0xa49   : > { %v8843_v37 = vmul.f32 0.2, %v8779_v2  ;;  %vm8811_vm12 = vcmp.ge.f32.partialorder %v8779_v2, 0.0 }
 0xa4a   : > { %7845 = vrot.lane.b32.xlu1 %v7750_v45, %s9668_s13 }
 0xa4b   : > { %7588 = vrot.lane.b32.xlu2 %v7493_v42, %s9667_s29  ;;  %7331 = vrot.lane.b32.xlu0 %v7973_v29, %s9666_s17  ;;  %v8670_v29 = vadd.f32 %v12982_v4, %v8580_v34  ;;  %v8780_v4 = vadd.f32 %v13561_v54, %v8744_v19  ;;  %v8875_v60 = vsel %vm8811_vm12, %v8779_v2, %v8843_v37  ;;  %s411_s29 = scalar_lea.vmem %s13840_s12, %s14839_s24 }
 0xa4c   : > { %v8049_v13 = vpop.permute.xlu1 %8048  ;;  %v8665_v34 = vadd.f32 %v12877_v47, %v13491_v28  ;;  %v8939_v14 = vmul.f32 %v8907_v48, %v8875_v60  ;;  %v8782_v47 = vadd.f32 %v13561_v54, %v8746_v26  ;;  %v8672_v28 = vadd.f32 %v13001_v61, %v13529_v18  ;;  %v8911_v61 = vld [vmem:[%s13838_s10 + $0x20] sm:$0xff] }
 0xa4d   : > { %v7830_v7 = vpop.permute.xlu2 %7829  ;;  %v7567_v52 = vpop.permute.xlu0 %7566  ;;  %v9596_v30 = vld [vmem:[#allocation3 + $0x94] sm:$0xf0]  ;;  %v8747_v3 = vmul.f32 %v13552_v58, %v8670_v29  ;;  %v8844_v49 = vmul.f32 0.2, %v8780_v4  ;;  %vm8812_vm3 = vcmp.ge.f32.partialorder %v8780_v4, 0.0  ;;  %v8914_v29 = vld [vmem:[%s13838_s10 + $0x38] sm:$0xff] }
 0xa4e   : > { %7643 = vst.msk [vmem:[#allocation3 + $0xa0] sm:$0xf] %vm7622_vm10, %v7567_v52  ;;  %v9429_v55 = vor.u32 %v9596_v30, %v9428_v36  ;;  %v8745_v43 = vmul.f32 %v13552_v58, %v8665_v34  ;;  %vm8814_vm14 = vcmp.ge.f32.partialorder %v8782_v47, 0.0  ;;  %v8684_v59 = vpop.f32.mrf.mxu3 }
 0xa4f   : > { %7900 = vst.msk [vmem:[#allocation3 + $0xa0] sm:$0xf] %vm7879_vm9, %v7824_v1  ;;  %v8783_v31 = vadd.f32 %v13561_v54, %v8747_v3  ;;  %v8876_v27 = vsel %vm8812_vm3, %v8780_v4, %v8844_v49 }
 0xa50   : > { %8125 = vst.msk [vmem:[#allocation3 + $0xa0] sm:$0xf] %vm8104_vm15, %v8049_v13  ;;  %8614 = vmatmul.bf16.gmra.mxu2 %v9429_v55  ;;  %v8971_v13 = vsel %vm14805_vm11, %v8939_v14, 0.0  ;;  %v8781_v18 = vadd.f32 %v13561_v54, %v8745_v43  ;;  %vm14809_vm11 = vmmov %vm14807_vm0  ;;  %v8912_v43 = vld [vmem:[%s13838_s10 + $0x28] sm:$0xff] }
 0xa51   : > { %v8847_v45 = vmul.f32 0.2, %v8783_v31  ;;  %vm8815_vm2 = vcmp.ge.f32.partialorder %v8783_v31, 0.0 }
 0xa52   : > { %v8845_v46 = vmul.f32 0.2, %v8781_v18  ;;  %vm8813_vm7 = vcmp.ge.f32.partialorder %v8781_v18, 0.0 }
 0xa53   : > { %8068 = vrot.lane.b32.xlu2 %v7974_v51, %s9669_s21  ;;  %7843 = vrot.lane.b32.xlu0 %v7749_v32, %s9668_s13  ;;  %v13541_v62 = vpop.f32.mrf.mxu2  ;;  %v8879_v55 = vsel %vm8815_vm2, %v8783_v31, %v8847_v45  ;;  %vm14808_vm2 = vmmov %vm14807_vm0 }
 0xa54   : > { %v7316_v39 = vpop.permute.xlu1 %7315  ;;  %v8675_v52 = vadd.f32 %v13533_v0, %v13541_v62  ;;  %v8943_v62 = vmul.f32 %v8911_v61, %v8879_v55  ;;  %v8877_v19 = vsel %vm8813_vm7, %v8781_v18, %v8845_v46 }
 0xa55   : > { %7389 = vst.msk [vmem:[#allocation3 + $0xb8] sm:$0xf] %vm7365_vm5, %v7316_v39  ;;  %v7318_v20 = vpop.permute.xlu2 %7317  ;;  %v7826_v57 = vpop.permute.xlu0 %7825 }
 0xa56   : > { %7390 = vst.msk [vmem:[#allocation3 + $0xc0] sm:$0xf] %vm7365_vm5, %v7318_v20  ;;  %v8748_v20 = vmul.f32 %v13552_v58, %v8672_v28  ;;  %v8917_v28 = vld [vmem:[%s13838_s10 + $0x50] sm:$0xff] }
 0xa57   : > { %7901 = vst.msk [vmem:[#allocation3 + $0xa8] sm:$0xf] %vm7879_vm9, %v7826_v57  ;;  %v9436_v1 = vld [vmem:[#allocation3 + $0xa0] sm:$0xf]  ;;  %v8846_v57 = vmul.f32 0.2, %v8782_v47 }
 0xa58   : > { %8126 = vst.msk [vmem:[#allocation3 + $0xa8] sm:$0xf] %vm8104_vm15, %v8051_v6 }
 0xa5b   : > { %8070 = vrot.lane.b32.xlu0 %v7975_v53, %s9669_s21  ;;  %v8587_v44 = vpop.f32.mrf.mxu2  ;;  %v8749_v53 = vmul.f32 %v13552_v58, %v8675_v52 }
 0xa5c   : > { %v7828_v21 = vpop.permute.xlu1 %7827  ;;  %v8677_v16 = vadd.f32 %v8676_v38, %v8587_v44 }
 0xa5d   : > { %v13554_v11 = vpop.permute.xlu2 %7576  ;;  %v7314_v15 = vpop.permute.xlu0 %7313  ;;  %v8785_v50 = vadd.f32 %v13561_v54, %v8749_v53  ;;  %v8915_v53 = vld [vmem:[%s13838_s10 + $0x40] sm:$0xff] }
 0xa5e   : > { %7388 = vst.msk [vmem:[#allocation3 + $0xb0] sm:$0xf] %vm7365_vm5, %v7314_v15  ;;  %v8750_v42 = vmul.f32 %v13552_v58, %v8677_v16 }
 0xa5f   : > { %v9598_v25 = vld [vmem:[#allocation3 + $0xa4] sm:$0xf0]  ;;  %7645 = vst.msk [vmem:[#allocation3 + $0xb0] sm:$0xf] %vm7622_vm10, %v7571_v35  ;;  %v8849_v40 = vmul.f32 0.2, %v8785_v50 }
 0xa60   : > { %v9437_v17 = vor.u32 %v9598_v25, %v9436_v1  ;;  %7902 = vst.msk [vmem:[#allocation3 + $0xb0] sm:$0xf] %vm7879_vm9, %v7828_v21  ;;  %v8786_v36 = vadd.f32 %v13561_v54, %v8750_v42  ;;  %v8784_v21 = vadd.f32 %v13561_v54, %v8748_v20  ;;  %v8983_v1 = vsel %vm14807_vm0, %v8943_v62, 0.0 }
 0xa61   : > { %v8878_v25 = vsel %vm8814_vm14, %v8782_v47, %v8846_v57  ;;  %vm8817_vm3 = vcmp.ge.f32.partialorder %v8785_v50, 0.0 }
 0xa62   : > { %8619 = vmatmul.bf16.gmra.mxu2 %v9437_v17  ;;  %v8850_v38 = vmul.f32 0.2, %v8786_v36  ;;  %vm8818_vm6 = vcmp.ge.f32.partialorder %v8786_v36, 0.0  ;;  %vm8816_vm12 = vcmp.ge.f32.partialorder %v8784_v21, 0.0  ;;  %v8881_v47 = vsel %vm8817_vm3, %v8785_v50, %v8849_v40  ;;  %vm14812_vm3 = vmmov %vm14807_vm0 }
 0xa64   : > { %v8055_v24 = vpop.permute.xlu1 %8054  ;;  %v8882_v2 = vsel %vm8818_vm6, %v8786_v36, %v8850_v38  ;;  %vm14810_vm6 = vmmov %vm14807_vm0 }
 0xa65   : > { %v13571_v10 = vpop.permute.xlu2 %8056  ;;  %v7573_v6 = vpop.permute.xlu0 %7572  ;;  %v8946_v4 = vmul.f32 %v8914_v29, %v8882_v2 }
 0xa66   : > { %7646 = vst.msk [vmem:[#allocation3 + $0xb8] sm:$0xf] %vm7622_vm10, %v7573_v6  ;;  %v8590_v41 = vpop.f32.mrf.mxu2 }
 0xa67   : > { %7903 = vst.msk [vmem:[#allocation3 + $0xb8] sm:$0xf] %vm7879_vm9, %v7830_v7  ;;  %v8908_v7 = vld [vmem:[%s13838_s10 + $0x8] sm:$0xff]  ;;  %v8992_v26 = vsel %vm14809_vm11, %v8946_v4, 0.0  ;;  %vm14813_vm11 = vmmov %vm14807_vm0 }
 0xa68   : > { %8128 = vst.msk [vmem:[#allocation3 + $0xb8] sm:$0xf] %vm8104_vm15, %v8055_v24  ;;  %v8940_v23 = vmul.f32 %v8908_v7, %v8876_v27  ;;  %v8913_v7 = vld [vmem:[%s13838_s10 + $0x30] sm:$0xff] }
 0xa69   : > { %v8945_v18 = vmul.f32 %v8913_v7, %v8881_v47 }
 0xa6a   : > { %v8974_v15 = vsel %vm14806_vm4, %v8940_v23, 0.0 }
 0xa6b   : > { %v8989_v62 = vsel %vm14812_vm3, %v8945_v18, 0.0 }
 0xa6c   : > { %v7575_v8 = vpop.permute.xlu1 %7574 }
 0xa6d   : > { %7647 = vst.msk [vmem:[#allocation3 + $0xc0] sm:$0xf] %vm7622_vm10, %v7575_v8  ;;  %v7324_v12 = vpop.permute.xlu2 %7323  ;;  %v8053_v35 = vpop.permute.xlu0 %8052  ;;  %v8848_v8 = vmul.f32 0.2, %v8784_v21 }
 0xa6e   : > { %7393 = vst.msk [vmem:[#allocation3 + $0xd8] sm:$0xf] %vm7365_vm5, %v7324_v12  ;;  %v8592_v30 = vpop.f32.mrf.mxu2  ;;  %v8686_v12 = vpop.f32.mrf.mxu3 }
 0xa6f   : > { %8127 = vst.msk [vmem:[#allocation3 + $0xb0] sm:$0xf] %vm8104_vm15, %v8053_v35  ;;  %v9600_v39 = vld [vmem:[#allocation3 + $0xb4] sm:$0xf0]  ;;  %v8682_v24 = vadd.f32 %v8681_v63, %v8592_v30  ;;  %v8880_v42 = vsel %vm8816_vm12, %v8784_v21, %v8848_v8  ;;  %vm14811_vm12 = vmmov %vm14807_vm0 }
 0xa70   : > { %v8944_v30 = vmul.f32 %v8912_v43, %v8880_v42 }
 0xa71   : > { %v8752_v60 = vmul.f32 %v13552_v58, %v8682_v24 }
 0xa74   : > { %v7834_v5 = vpop.permute.xlu1 %7833  ;;  %8972 = vadd.xlane.f32.xlu1 %v8971_v13  ;;  %v8788_v13 = vadd.f32 %v13561_v54, %v8752_v60 }
 0xa75   : > { %v7320_v51 = vpop.permute.xlu0 %7319  ;;  %v7836_v48 = vpop.permute.xlu2 %7835 }
 0xa76   : > { %v9444_v32 = vld [vmem:[#allocation3 + $0xb0] sm:$0xf]  ;;  %7391 = vst.msk [vmem:[#allocation3 + $0xc8] sm:$0xf] %vm7365_vm5, %v7320_v51  ;;  %v8852_v51 = vmul.f32 0.2, %v8788_v13 }
 0xa77   : > { %v9445_v0 = vor.u32 %v9600_v39, %v9444_v32  ;;  %7648 = vst.msk [vmem:[#allocation3 + $0xc8] sm:$0xf] %vm7622_vm10, %v13554_v11  ;;  %v8680_v11 = vadd.f32 %v13569_v22, %v8590_v41  ;;  %v8909_v22 = vld [vmem:[%s13838_s10 + $0x10] sm:$0xff]  ;;  %v8942_v41 = vmul.f32 %v8910_v9, %v8878_v25  ;;  %vm8820_vm4 = vcmp.ge.f32.partialorder %v8788_v13, 0.0 }
 0xa78   : > { %7905 = vst.msk [vmem:[#allocation3 + $0xc8] sm:$0xf] %vm7879_vm9, %v7834_v5  ;;  %v8941_v16 = vmul.f32 %v8909_v22, %v8877_v19  ;;  %v8986_v39 = vsel %vm14807_vm0, %v8944_v30, 0.0  ;;  %v8884_v38 = vsel %vm8820_vm4, %v8788_v13, %v8852_v51  ;;  %v8918_v19 = vld [vmem:[%s13838_s10 + $0x58] sm:$0xff]  ;;  %vm14816_vm4 = vmmov %vm14807_vm0 }
 0xa79   : > { %8624 = vmatmul.bf16.gmra.mxu2 %v9445_v0  ;;  %v8751_v31 = vmul.f32 %v13552_v58, %v8680_v11  ;;  %v8980_v63 = vsel %vm14808_vm2, %v8942_v41, 0.0  ;;  %v8167_v30 = vld [vmem:[#allocation2 + $0x119] sm:$0xff] }
 0xa7a   : > { %v8977_v45 = vsel %vm14810_vm6, %v8941_v16, 0.0  ;;  %v8919_v16 = vld [vmem:[%s13838_s10 + $0x60] sm:$0xff]  ;;  %v8199_v18 = vpack.c.bf16 %v8167_v30, %v8167_v30 }
 0xa7b   : > { %v8787_v14 = vadd.f32 %v13561_v54, %v8751_v31 }
 0xa7c   : > { %v8595_v44 = vpop.f32.mrf.mxu2  ;;  %8975 = vadd.xlane.f32.xlu2 %v8974_v15  ;;  %v7322_v17 = vpop.permute.xlu1 %7321  ;;  %8984 = vadd.xlane.f32.xlu1 %v8983_v1 }
 0xa7d   : > { %v8685_v6 = vadd.f32 %v8684_v59, %v8595_v44  ;;  %7392 = vst.msk [vmem:[#allocation3 + $0xd0] sm:$0xf] %vm7365_vm5, %v7322_v17  ;;  %v7832_v37 = vpop.permute.xlu0 %7831  ;;  %v8851_v55 = vmul.f32 0.2, %v8787_v14  ;;  %vm8819_vm7 = vcmp.ge.f32.partialorder %v8787_v14, 0.0  ;;  %v8063_v32 = vpop.permute.xlu2 %8062  ;;  %v8916_v59 = vld [vmem:[%s13838_s10 + $0x48] sm:$0xff] }
 0xa7e   : > { %7904 = vst.msk [vmem:[#allocation3 + $0xc0] sm:$0xf] %vm7879_vm9, %v7832_v37  ;;  %v8689_v1 = vpop.f32.mrf.mxu3  ;;  %v8948_v44 = vmul.f32 %v8916_v59, %v8884_v38 }
 0xa7f   : > { %v8753_v3 = vmul.f32 %v13552_v58, %v8685_v6  ;;  %8129 = vst.msk [vmem:[#allocation3 + $0xc0] sm:$0xf] %vm8104_vm15, %v13571_v10  ;;  %v8883_v57 = vsel %vm8819_vm7, %v8787_v14, %v8851_v55  ;;  %vm14815_vm7 = vmmov %vm14807_vm0 }
 0xa80   : > { %v8947_v50 = vmul.f32 %v8915_v53, %v8883_v57 }
 0xa81   : > { %v8789_v34 = vadd.f32 %v13561_v54, %v8753_v3 }
 0xa82   : > { %v8995_v9 = vsel %vm14813_vm11, %v8947_v50, 0.0 }
 0xa83   : > { %v8853_v35 = vmul.f32 0.2, %v8789_v34  ;;  %vm8821_vm14 = vcmp.ge.f32.partialorder %v8789_v34, 0.0 }
 0xa84   : > { %v8597_v49 = vpop.f32.mrf.mxu2  ;;  %8981 = vadd.xlane.f32.xlu2 %v8980_v63  ;;  %v7581_v10 = vpop.permute.xlu1 %7580  ;;  %8993 = vadd.xlane.f32.xlu1 %v8992_v26 }
 0xa85   : > { %v8687_v27 = vadd.f32 %v8686_v12, %v8597_v49  ;;  %7650 = vst.msk [vmem:[#allocation3 + $0xd8] sm:$0xf] %vm7622_vm10, %v7581_v10  ;;  %8978 = vadd.xlane.f32.xlu0 %v8977_v45  ;;  %v8885_v52 = vsel %vm8821_vm14, %v8789_v34, %v8853_v35  ;;  %v8059_v36 = vpop.permute.xlu0 %8058  ;;  %vm14814_vm14 = vmmov %vm14807_vm0  ;;  %v7328_v22 = vpop.permute.xlu2 %7327 }
 0xa86   : > { %8130 = vst.msk [vmem:[#allocation3 + $0xc8] sm:$0xf] %vm8104_vm15, %v8059_v36  ;;  %v8949_v5 = vmul.f32 %v8917_v28, %v8885_v52  ;;  %v9452_v21 = vld [vmem:[#allocation3 + $0xc0] sm:$0xf]  ;;  %v8998_v24 = vsel %vm14814_vm14, %v8948_v44, 0.0  ;;  %v8691_v40 = vpop.f32.mrf.mxu3  ;;  %v8920_v28 = vld [vmem:[%s13838_s10 + $0x68] sm:$0xff]  ;;  %vm14821_vm14 = vmmov %vm14816_vm4 }
 0xa87   : > { %v8754_v61 = vmul.f32 %v13552_v58, %v8687_v27 }
 0xa88   : > { %v9001_v23 = vsel %vm14811_vm12, %v8949_v5, 0.0  ;;  %v8168_v5 = vld [vmem:[#allocation2 + $0x121] sm:$0xff]  ;;  %vm14817_vm12 = vmmov %vm14812_vm3  ;;  %vm14818_vm3 = vcmask 125952  }
 0xa89   : > { %v8790_v20 = vadd.f32 %v13561_v54, %v8754_v61  ;;  %v8200_v51 = vpack.c.bf16 %v8168_v5, %v8168_v5 }
 0xa8b   : > { %v8854_v11 = vmul.f32 0.2, %v8790_v20  ;;  %vm8822_vm2 = vcmp.ge.f32.partialorder %v8790_v20, 0.0 }
 0xa8c   : > { %8987 = vadd.xlane.f32.xlu2 %v8986_v39  ;;  %v8061_v0 = vpop.permute.xlu1 %8060  ;;  %9002 = vadd.xlane.f32.xlu1 %v9001_v23  ;;  %v8231_v23 = vsel %vm9871_vm8, %v8199_v18, 0  ;;  %vm14820_vm8 = vmmov %vm14816_vm4 }
 0xa8d   : > { %8990 = vadd.xlane.f32.xlu0 %v8989_v62  ;;  %v7579_v46 = vpop.permute.xlu0 %7578  ;;  %v9602_v15 = vld [vmem:[#allocation3 + $0xc4] sm:$0xf0]  ;;  %v8886_v6 = vsel %vm8822_vm2, %v8790_v20, %v8854_v11  ;;  %v7840_v49 = vpop.permute.xlu2 %7839  ;;  %v8232_v20 = vsel %vm14803_vm1, %v8200_v51, 0  ;;  %8263 = vst.msk [vmem:[#allocation3 + $0xf4] sm:$0xf] %vm14818_vm3, %v8231_v23  ;;  %vm14819_vm2 = vmmov %vm14818_vm3 }
 0xa8e   : > { %7649 = vst.msk [vmem:[#allocation3 + $0xd0] sm:$0xf] %vm7622_vm10, %v7579_v46  ;;  %v9453_v25 = vor.u32 %v9602_v15, %v9452_v21  ;;  %v8950_v41 = vmul.f32 %v8918_v19, %v8886_v6  ;;  %v8694_v13 = vpop.f32.mrf.mxu3 }
 0xa8f   : > { %7906 = vst.msk [vmem:[#allocation3 + $0xd0] sm:$0xf] %vm7879_vm9, %v7836_v48 }
 0xa90   : > { %8131 = vst.msk [vmem:[#allocation3 + $0xd0] sm:$0xf] %vm8104_vm15, %v8061_v0  ;;  %8629 = vmatmul.bf16.gmra.mxu2 %v9453_v25  ;;  %v9004_v60 = vsel %vm14815_vm7, %v8950_v41, 0.0 }
 0xa91   : > { %8264 = vst.msk [vmem:[#allocation3 + $0xfc] sm:$0xf] %vm14819_vm2, %v8232_v20 }
 0xa93   : > { %v8600_v17 = vpop.f32.mrf.mxu2 }
 0xa94   : > { %v8690_v2 = vadd.f32 %v8689_v1, %v8600_v17  ;;  %8996 = vadd.xlane.f32.xlu2 %v8995_v9  ;;  %v7326_v29 = vpop.permute.xlu1 %7325  ;;  %v9607_v50 = vld [vmem:[#allocation3 + $0xf4] sm:$0xf] }
 0xa95   : > { %7394 = vst.msk [vmem:[#allocation3 + $0xe0] sm:$0xf] %vm7365_vm5, %v7326_v29  ;;  %8999 = vadd.xlane.f32.xlu0 %v8998_v24  ;;  %v7838_v3 = vpop.permute.xlu0 %7837  ;;  %v8067_v0 = vpop.permute.xlu2 %8066  ;;  %v8922_v29 = vld [vmem:[%s13838_s10 + $0x78] sm:$0xff] }
 0xa96   : > { %v8755_v37 = vmul.f32 %v13552_v58, %v8690_v2  ;;  %7907 = vst.msk [vmem:[#allocation3 + $0xd8] sm:$0xf] %vm7879_vm9, %v7838_v3  ;;  %v8696_v38 = vpop.f32.mrf.mxu3 }
 0xa97   : > { %8132 = vst.msk [vmem:[#allocation3 + $0xd8] sm:$0xf] %vm8104_vm15, %v8063_v32  ;;  %v9460_v14 = vld [vmem:[#allocation3 + $0xd0] sm:$0xf] }
 0xa98   : > { %v8791_v4 = vadd.f32 %v13561_v54, %v8755_v37  ;;  %v9478_v44 = vld [vmem:[#allocation3 + $0xf8] sm:$0xf0] }
 0xa99   : > { %v9481_v9 = vor.u32 %v9607_v50, %v9478_v44 }
 0xa9a   : > { %v8855_v31 = vmul.f32 0.2, %v8791_v4  ;;  %vm8823_vm6 = vcmp.ge.f32.partialorder %v8791_v4, 0.0 }
 0xa9b   : > { %v8602_v8 = vpop.f32.mrf.mxu2  ;;  %9533 = vmatmul.msk.bf16.gmra.mxu3 %vm14821_vm14, %v9481_v9 }
 0xa9c   : > { %v8692_v48 = vadd.f32 %v8691_v40, %v8602_v8  ;;  %9005 = vadd.xlane.f32.xlu2 %v9004_v60  ;;  %v7585_v34 = vpop.permute.xlu1 %7584  ;;  %v8887_v12 = vsel %vm8823_vm6, %v8791_v4, %v8855_v31  ;;  %vm14822_vm6 = vmmov %vm14816_vm4 }
 0xa9d   : > { %v8951_v35 = vmul.f32 %v8919_v16, %v8887_v12  ;;  %v7103_v26 = vpop.permute.xlu0 %7102  ;;  %v7330_v17 = vpop.permute.xlu2 %7329 }
 0xa9e   : > { %v8756_v63 = vmul.f32 %v13552_v58, %v8692_v48  ;;  %7170 = vst.msk [vmem:[#allocation3 + $0xe8] sm:$0xf] %vm7140_vm13, %v7103_v26  ;;  %v9604_v45 = vld [vmem:[#allocation3 + $0xd4] sm:$0xf0]  ;;  %v8699_v40 = vpop.f32.mrf.mxu3 }
 0xa9f   : > { %v9007_v10 = vsel %vm14816_vm4, %v8951_v35, 0.0  ;;  %7395 = vst.msk [vmem:[#allocation3 + $0xe8] sm:$0xf] %vm7365_vm5, %v7328_v22  ;;  %v9461_v43 = vor.u32 %v9604_v45, %v9460_v14 }
 0xaa0   : > { %v8792_v42 = vadd.f32 %v13561_v54, %v8756_v63  ;;  %9008 = vadd.xlane.f32.xlu0 %v9007_v10  ;;  %7652 = vst.msk [vmem:[#allocation3 + $0xe8] sm:$0xf] %vm7622_vm10, %v7585_v34  ;;  %v8923_v63 = vld [vmem:[%s13838_s10 + $0x80] sm:$0xff] }
 0xaa1   : > { %8634 = vmatmul.bf16.gmra.mxu2 %v9461_v43 }
 0xaa2   : > { %v8856_v47 = vmul.f32 0.2, %v8792_v42  ;;  %vm8824_vm0 = vcmp.ge.f32.partialorder %v8792_v42, 0.0 }
 0xaa4   : > { %v8065_v27 = vpop.permute.xlu1 %8064  ;;  %v8888_v7 = vsel %vm8824_vm0, %v8792_v42, %v8856_v47 }
 0xaa5   : > { %v8605_v52 = vpop.f32.mrf.mxu2  ;;  %v8952_v36 = vmul.f32 %v8920_v28, %v8888_v7  ;;  %v7583_v61 = vpop.permute.xlu0 %7582  ;;  %v8924_v7 = vld [vmem:[%s13838_s10 + $0x88] sm:$0xff] }
 0xaa6   : > { %v8695_v55 = vadd.f32 %v8694_v13, %v8605_v52  ;;  %7651 = vst.msk [vmem:[#allocation3 + $0xe0] sm:$0xf] %vm7622_vm10, %v7583_v61  ;;  %v7589_v16 = vpop.permute.xlu2 %7588  ;;  %v8701_v26 = vpop.f32.mrf.mxu3 }
 0xaa7   : > { %v9010_v32 = vsel %vm14817_vm12, %v8952_v36, 0.0  ;;  %7908 = vst.msk [vmem:[#allocation3 + $0xe0] sm:$0xf] %vm7879_vm9, %v7840_v49 }
 0xaa8   : > { %v8757_v39 = vmul.f32 %v13552_v58, %v8695_v55  ;;  %9011 = vadd.xlane.f32.xlu1 %v9010_v32  ;;  %8133 = vst.msk [vmem:[#allocation3 + $0xe0] sm:$0xf] %vm8104_vm15, %v8065_v27 }
 0xaaa   : > { %v8793_v62 = vadd.f32 %v13561_v54, %v8757_v39 }
 0xaac   : > { %v8857_v57 = vmul.f32 0.2, %v8793_v62  ;;  %v7107_v53 = vpop.permute.xlu1 %7106  ;;  %vm8825_vm11 = vcmp.ge.f32.partialorder %v8793_v62, 0.0 }
 0xaad   : > { %v8607_v59 = vpop.f32.mrf.mxu2  ;;  %7172 = vst.msk [vmem:[#allocation3 + $0xf8] sm:$0xf] %vm7140_vm13, %v7107_v53  ;;  %v7842_v46 = vpop.permute.xlu0 %7841 }
 0xaae   : > { %v8697_v33 = vadd.f32 %v8696_v38, %v8607_v59  ;;  %v8889_v21 = vsel %vm8825_vm11, %v8793_v62, %v8857_v57  ;;  %7909 = vst.msk [vmem:[#allocation3 + $0xe8] sm:$0xf] %vm7879_vm9, %v7842_v46  ;;  %v8069_v45 = vpop.permute.xlu2 %8068  ;;  %v8704_v5 = vpop.f32.mrf.mxu3  ;;  %v8925_v57 = vld [vmem:[%s13838_s10 + $0x90] sm:$0xff] }
 0xaaf   : > { %v8953_v15 = vmul.f32 %v8921_v56, %v8889_v21  ;;  %8134 = vst.msk [vmem:[#allocation3 + $0xe8] sm:$0xf] %vm8104_vm15, %v8067_v0  ;;  %v9468_v37 = vld [vmem:[#allocation3 + $0xe0] sm:$0xf] }
 0xab0   : > { %v8758_v1 = vmul.f32 %v13552_v58, %v8697_v33 }
 0xab1   : > { %v9013_v25 = vsel %vm14820_vm8, %v8953_v15, 0.0 }
 0xab2   : > { %v8794_v11 = vadd.f32 %v13561_v54, %v8758_v1  ;;  %9014 = vadd.xlane.f32.xlu2 %v9013_v25  ;;  %v8926_v25 = vld [vmem:[%s13838_s10 + $0x98] sm:$0xff] }
 0xab4   : > { %v8858_v2 = vmul.f32 0.2, %v8794_v11  ;;  %vm8826_vm1 = vcmp.ge.f32.partialorder %v8794_v11, 0.0  ;;  %v7587_v24 = vpop.permute.xlu1 %7586 }
 0xab5   : > { %v7105_v6 = vpop.permute.xlu0 %7104 }
 0xab6   : > { %v8890_v19 = vsel %vm8826_vm1, %v8794_v11, %v8858_v2  ;;  %7171 = vst.msk [vmem:[#allocation3 + $0xf0] sm:$0xf] %vm7140_vm13, %v7105_v6  ;;  %v9606_v3 = vld [vmem:[#allocation3 + $0xe4] sm:$0xf0]  ;;  %v8706_v20 = vpop.f32.mrf.mxu3  ;;  %v8927_v6 = vld [vmem:[%s13838_s10 + $0xa0] sm:$0xff] }
 0xab7   : > { %v8954_v22 = vmul.f32 %v8922_v29, %v8890_v19  ;;  %7396 = vst.msk [vmem:[#allocation3 + $0xf0] sm:$0xf] %vm7365_vm5, %v7330_v17  ;;  %v9469_v41 = vor.u32 %v9606_v3, %v9468_v37 }
 0xab8   : > { %7653 = vst.msk [vmem:[#allocation3 + $0xf0] sm:$0xf] %vm7622_vm10, %v7587_v24 }
 0xab9   : > { %v9016_v4 = vsel %vm14822_vm6, %v8954_v22, 0.0  ;;  %8639 = vmatmul.bf16.gmra.mxu2 %v9469_v41 }
 0xaba   : > { %9017 = vadd.xlane.f32.xlu0 %v9016_v4 }
 0xabc   : > { %v8610_v31 = vpop.f32.mrf.mxu2  ;;  %v7846_v48 = vpop.permute.xlu1 %7845 }
 0xabd   : > { %v8700_v8 = vadd.f32 %v8699_v40, %v8610_v31  ;;  %v7332_v60 = vpop.permute.xlu0 %7331 }
 0xabe   : > { %7397 = vst.msk [vmem:[#allocation3 + $0xf8] sm:$0xf] %vm7365_vm5, %v7332_v60  ;;  %vm14823_vm5 = vmmov %vm14816_vm4  ;;  %v8709_v15 = vpop.f32.mrf.mxu3 }
 0xabf   : > { %v8759_v34 = vmul.f32 %v13552_v58, %v8700_v8  ;;  %7654 = vst.msk [vmem:[#allocation3 + $0xf8] sm:$0xf] %vm7622_vm10, %v7589_v16  ;;  %vm14826_vm0 = vmmov %vm14823_vm5  ;;  %v8928_v8 = vld [vmem:[%s13838_s10 + $0xa8] sm:$0xff] }
 0xac0   : > { %7911 = vst.msk [vmem:[#allocation3 + $0xf8] sm:$0xf] %vm7879_vm9, %v7846_v48  ;;  %vm14827_vm3 = vmmov %vm14826_vm0 }
 0xac1   : > { %v8795_v12 = vadd.f32 %v13561_v54, %v8759_v34  ;;  %vm14828_vm11 = vmmov %vm14826_vm0 }
 0xac2   : > { %vm14829_vm1 = vmmov %vm14826_vm0 }
 0xac3   : > { %v8859_v35 = vmul.f32 0.2, %v8795_v12  ;;  %vm8827_vm13 = vcmp.ge.f32.partialorder %v8795_v12, 0.0  ;;  %vm14830_vm6 = vmmov %vm14826_vm0 }
 0xac4   : > { %v8612_v14 = vpop.f32.mrf.mxu2 }
 0xac5   : > { %v8702_v49 = vadd.f32 %v8701_v26, %v8612_v14  ;;  %v8891_v10 = vsel %vm8827_vm13, %v8795_v12, %v8859_v35  ;;  %v7844_v42 = vpop.permute.xlu0 %7843 }
 0xac6   : > { %v8955_v43 = vmul.f32 %v8923_v63, %v8891_v10  ;;  %7910 = vst.msk [vmem:[#allocation3 + $0xf0] sm:$0xf] %vm7879_vm9, %v7844_v42  ;;  %vm14824_vm9 = vmmov %vm14816_vm4  ;;  %v8711_v19 = vpop.f32.mrf.mxu3  ;;  %v8929_v10 = vld [vmem:[%s13838_s10 + $0xb0] sm:$0xff] }
 0xac7   : > { %v8760_v47 = vmul.f32 %v13552_v58, %v8702_v49  ;;  %8135 = vst.msk [vmem:[#allocation3 + $0xf0] sm:$0xf] %vm8104_vm15, %v8069_v45 }
 0xac8   : > { %v9019_v28 = vsel %vm14823_vm5, %v8955_v43, 0.0  ;;  %vm14831_vm5 = vmmov %vm14826_vm0 }
 0xac9   : > { %v8796_v13 = vadd.f32 %v13561_v54, %v8760_v47  ;;  %9020 = vadd.xlane.f32.xlu1 %v9019_v28 }
 0xacb   : > { %v8860_v27 = vmul.f32 0.2, %v8796_v13  ;;  %vm8828_vm10 = vcmp.ge.f32.partialorder %v8796_v13, 0.0 }
 0xacd   : > { %v8892_v52 = vsel %vm8828_vm10, %v8796_v13, %v8860_v27  ;;  %v8071_v36 = vpop.permute.xlu0 %8070 }
 0xace   : > { %v8956_v30 = vmul.f32 %v8924_v7, %v8892_v52  ;;  %8136 = vst.msk [vmem:[#allocation3 + $0xf8] sm:$0xf] %vm8104_vm15, %v8071_v36  ;;  %v9476_v18 = vld [vmem:[#allocation3 + $0xf0] sm:$0xf]  ;;  %vm14825_vm15 = vmmov %vm14816_vm4  ;;  %v8714_v12 = vpop.f32.mrf.mxu3  ;;  %v8930_v36 = vld [vmem:[%s13838_s10 + $0xb8] sm:$0xff] }
 0xad0   : > { %v9022_v55 = vsel %vm14824_vm9, %v8956_v30, 0.0  ;;  %vm14832_vm9 = vmmov %vm14826_vm0 }
 0xad1   : > { %9023 = vadd.xlane.f32.xlu2 %v9022_v55 }
 0xad3   : > { %v8615_v61 = vpop.f32.mrf.mxu2 }
 0xad4   : > { %v8705_v51 = vadd.f32 %v8704_v5, %v8615_v61 }
 0xad5   : > { %v9608_v32 = vld [vmem:[#allocation3 + $0xf4] sm:$0xf0] }
 0xad6   : > { %v8761_v39 = vmul.f32 %v13552_v58, %v8705_v51  ;;  %v9477_v23 = vor.u32 %v9608_v32, %v9476_v18  ;;  %v8716_v45 = vpop.f32.mrf.mxu3 }
 0xad8   : > { %v8797_v0 = vadd.f32 %v13561_v54, %v8761_v39  ;;  %8644 = vmatmul.bf16.gmra.mxu2 %v9477_v23 }
 0xada   : > { %v8861_v62 = vmul.f32 0.2, %v8797_v0  ;;  %vm8829_vm7 = vcmp.ge.f32.partialorder %v8797_v0, 0.0 }
 0xadb   : > { %v8617_v53 = vpop.f32.mrf.mxu2 }
 0xadc   : > { %v8707_v56 = vadd.f32 %v8706_v20, %v8617_v53  ;;  %v8893_v38 = vsel %vm8829_vm7, %v8797_v0, %v8861_v62  ;;  %v8931_v0 = vld [vmem:[%s13838_s10 + $0xc0] sm:$0xff] }
 0xadd   : > { %v8957_v59 = vmul.f32 %v8925_v57, %v8893_v38 }
 0xade   : > { %v8762_v33 = vmul.f32 %v13552_v58, %v8707_v56  ;;  %v8719_v55 = vpop.f32.mrf.mxu3 }
 0xadf   : > { %v9025_v46 = vsel %vm14825_vm15, %v8957_v59, 0.0  ;;  %vm14833_vm15 = vmmov %vm14826_vm0 }
 0xae0   : > { %v8798_v21 = vadd.f32 %v13561_v54, %v8762_v33  ;;  %9026 = vadd.xlane.f32.xlu0 %v9025_v46 }
 0xae2   : > { %v8862_v1 = vmul.f32 0.2, %v8798_v21  ;;  %vm8830_vm4 = vcmp.ge.f32.partialorder %v8798_v21, 0.0 }
 0xae4   : > { %v8894_v11 = vsel %vm8830_vm4, %v8798_v21, %v8862_v1 }
 0xae5   : > { %v8620_v50 = vpop.f32.mrf.mxu2  ;;  %v8958_v17 = vmul.f32 %v8926_v25, %v8894_v11 }
 0xae6   : > { %v8710_v44 = vadd.f32 %v8709_v15, %v8620_v50  ;;  %v8721_v39 = vpop.f32.mrf.mxu3  ;;  %v8932_v15 = vld [vmem:[%s13838_s10 + $0xc8] sm:$0xff] }
 0xae7   : > { %v9028_v2 = vsel %vm14826_vm0, %v8958_v17, 0.0 }
 0xae8   : > { %v8763_v9 = vmul.f32 %v13552_v58, %v8710_v44  ;;  %9029 = vadd.xlane.f32.xlu1 %v9028_v2 }
 0xaea   : > { %v8799_v29 = vadd.f32 %v13561_v54, %v8763_v9 }
 0xaec   : > { %v8863_v24 = vmul.f32 0.2, %v8799_v29  ;;  %vm8831_vm12 = vcmp.ge.f32.partialorder %v8799_v29, 0.0 }
 0xaed   : > { %v8622_v22 = vpop.f32.mrf.mxu2 }
 0xaee   : > { %v8712_v37 = vadd.f32 %v8711_v19, %v8622_v22  ;;  %v8895_v3 = vsel %vm8831_vm12, %v8799_v29, %v8863_v24  ;;  %v8724_v46 = vpop.f32.mrf.mxu3  ;;  %v8933_v29 = vld [vmem:[%s13838_s10 + $0xd0] sm:$0xff] }
 0xaef   : > { %v8959_v41 = vmul.f32 %v8927_v6, %v8895_v3 }
 0xaf0   : > { %v8764_v4 = vmul.f32 %v13552_v58, %v8712_v37 }
 0xaf1   : > { %v9031_v40 = vsel %vm14827_vm3, %v8959_v41, 0.0  ;;  %vm14834_vm3 = vmmov %vm14826_vm0 }
 0xaf2   : > { %v8800_v31 = vadd.f32 %v13561_v54, %v8764_v4  ;;  %9032 = vadd.xlane.f32.xlu2 %v9031_v40 }
 0xaf4   : > { %v8864_v16 = vmul.f32 0.2, %v8800_v31  ;;  %vm8832_vm2 = vcmp.ge.f32.partialorder %v8800_v31, 0.0 }
 0xaf6   : > { %v8896_v60 = vsel %vm8832_vm2, %v8800_v31, %v8864_v16  ;;  %v8726_v24 = vpop.f32.mrf.mxu3  ;;  %v8934_v31 = vld [vmem:[%s13838_s10 + $0xd8] sm:$0xff] }
 0xaf7   : > { %v8960_v48 = vmul.f32 %v8928_v8, %v8896_v60 }
 0xaf9   : > { %v9034_v34 = vsel %vm14828_vm11, %v8960_v48, 0.0  ;;  %vm14835_vm11 = vmmov %vm14826_vm0 }
 0xafa   : > { %9035 = vadd.xlane.f32.xlu0 %v9034_v34 }
 0xafc   : > { %v8625_v35 = vpop.f32.mrf.mxu2 }
 0xafd   : > { %v8715_v63 = vadd.f32 %v8714_v12, %v8625_v35 }
 0xafe   : > { %v8729_v48 = vpop.f32.mrf.mxu3 }
 0xaff   : > { %v8765_v26 = vmul.f32 %v13552_v58, %v8715_v63 }
 0xb01   : > { %v8801_v14 = vadd.f32 %v13561_v54, %v8765_v26 }
 0xb03   : > { %v8865_v49 = vmul.f32 0.2, %v8801_v14  ;;  %vm8833_vm8 = vcmp.ge.f32.partialorder %v8801_v14, 0.0 }
 0xb04   : > { %v8627_v42 = vpop.f32.mrf.mxu2 }
 0xb05   : > { %v8717_v43 = vadd.f32 %v8716_v45, %v8627_v42  ;;  %v8897_v47 = vsel %vm8833_vm8, %v8801_v14, %v8865_v49  ;;  %v8935_v14 = vld [vmem:[%s13838_s10 + $0xe0] sm:$0xff] }
 0xb06   : > { %v8961_v28 = vmul.f32 %v8929_v10, %v8897_v47  ;;  %v8731_v49 = vpop.f32.mrf.mxu3 }
 0xb07   : > { %v8766_v13 = vmul.f32 %v13552_v58, %v8717_v43 }
 0xb08   : > { %v9037_v27 = vsel %vm14829_vm1, %v8961_v28, 0.0  ;;  %vm14836_vm1 = vmmov %vm14826_vm0 }
 0xb09   : > { %v8802_v7 = vadd.f32 %v13561_v54, %v8766_v13  ;;  %9038 = vadd.xlane.f32.xlu1 %v9037_v27 }
 0xb0b   : > { %v8866_v52 = vmul.f32 0.2, %v8802_v7  ;;  %vm8834_vm14 = vcmp.ge.f32.partialorder %v8802_v7, 0.0 }
 0xb0d   : > { %v8898_v30 = vsel %vm8834_vm14, %v8802_v7, %v8866_v52  ;;  %v8936_v7 = vld [vmem:[%s13838_s10 + $0xe8] sm:$0xff] }
 0xb0e   : > { %v8962_v5 = vmul.f32 %v8930_v36, %v8898_v30 }
 0xb10   : > { %v9040_v61 = vsel %vm14830_vm6, %v8962_v5, 0.0  ;;  %vm14837_vm6 = vmmov %vm14826_vm0 }
 0xb11   : > { %9041 = vadd.xlane.f32.xlu2 %v9040_v61 }
 0xb13   : > { %v8630_v18 = vpop.f32.mrf.mxu2 }
 0xb14   : > { %v8720_v51 = vadd.f32 %v8719_v55, %v8630_v18 }
 0xb16   : > { %v8767_v32 = vmul.f32 %v13552_v58, %v8720_v51 }
 0xb18   : > { %v8803_v23 = vadd.f32 %v13561_v54, %v8767_v32 }
 0xb1a   : > { %v8867_v20 = vmul.f32 0.2, %v8803_v23  ;;  %vm8835_vm13 = vcmp.ge.f32.partialorder %v8803_v23, 0.0 }
 0xb1b   : > { %v8632_v62 = vpop.f32.mrf.mxu2 }
 0xb1c   : > { %v8722_v57 = vadd.f32 %v8721_v39, %v8632_v62  ;;  %v8899_v53 = vsel %vm8835_vm13, %v8803_v23, %v8867_v20  ;;  %v8937_v39 = vld [vmem:[%s13838_s10 + $0xf0] sm:$0xff]  ;;  %vm9106_vm13 = vcmask 0  }
 0xb1d   : > { %v8963_v56 = vmul.f32 %v8931_v0, %v8899_v53 }
 0xb1e   : > { %v8768_v38 = vmul.f32 %v13552_v58, %v8722_v57  ;;  %v8734_v5 = vpop.f32.mrf.mxu3 }
 0xb1f   : > { %v9043_v59 = vsel %vm14831_vm5, %v8963_v56, 0.0 }
 0xb20   : > { %v8804_v33 = vadd.f32 %v13561_v54, %v8768_v38  ;;  %9044 = vadd.xlane.f32.xlu0 %v9043_v59 }
 0xb22   : > { %v8868_v21 = vmul.f32 0.2, %v8804_v33  ;;  %vm8836_vm10 = vcmp.ge.f32.partialorder %v8804_v33, 0.0 }
 0xb24   : > { %v8635_v1 = vpop.f32.mrf.mxu2  ;;  %v8900_v25 = vsel %vm8836_vm10, %v8804_v33, %v8868_v21  ;;  %v8938_v33 = vld [vmem:[%s13838_s10 + $0xf8] sm:$0xff] }
 0xb25   : > { %v8725_v50 = vadd.f32 %v8724_v46, %v8635_v1  ;;  %v8964_v11 = vmul.f32 %v8932_v15, %v8900_v25  ;;  %v8976_v1 = vpop.xlane.xlu2 %8975  ;;  %v8973_v25 = vpop.xlane.xlu1 %8972 }
 0xb26   : > { %v8736_v23 = vpop.f32.mrf.mxu3 }
 0xb27   : > { %v8769_v44 = vmul.f32 %v13552_v58, %v8725_v50  ;;  %v9046_v17 = vsel %vm14832_vm9, %v8964_v11, 0.0 }
 0xb28   : > { %9047 = vadd.xlane.f32.xlu1 %v9046_v17  ;;  %v9067_v17 = vadd.f32 %v8976_v1, %v8973_v25 }
 0xb29   : > { %v8805_v9 = vadd.f32 %v13561_v54, %v8769_v44 }
 0xb2b   : > { %v8869_v2 = vmul.f32 0.2, %v8805_v9  ;;  %vm8837_vm7 = vcmp.ge.f32.partialorder %v8805_v9, 0.0 }
 0xb2c   : > { %v8637_v6 = vpop.f32.mrf.mxu2 }
 0xb2d   : > { %v8727_v19 = vadd.f32 %v8726_v24, %v8637_v6  ;;  %v8901_v22 = vsel %vm8837_vm7, %v8805_v9, %v8869_v2  ;;  %v8982_v50 = vpop.xlane.xlu2 %8981  ;;  %v8985_v11 = vpop.xlane.xlu1 %8984 }
 0xb2e   : > { %v8965_v37 = vmul.f32 %v8933_v29, %v8901_v22 }
 0xb2f   : > { %v8770_v3 = vmul.f32 %v13552_v58, %v8727_v19 }
 0xb30   : > { %v9049_v41 = vsel %vm14833_vm15, %v8965_v37, 0.0 }
 0xb31   : > { %v8806_v4 = vadd.f32 %v13561_v54, %v8770_v3  ;;  %9050 = vadd.xlane.f32.xlu2 %v9049_v41 }
 0xb33   : > { %v8870_v40 = vmul.f32 0.2, %v8806_v4  ;;  %vm8838_vm4 = vcmp.ge.f32.partialorder %v8806_v4, 0.0 }
 0xb35   : > { %v8902_v16 = vsel %vm8838_vm4, %v8806_v4, %v8870_v40  ;;  %v8988_v44 = vpop.xlane.xlu2 %8987  ;;  %v8994_v29 = vpop.xlane.xlu1 %8993 }
 0xb36   : > { %v8966_v8 = vmul.f32 %v8934_v31, %v8902_v16 }
 0xb38   : > { %v9052_v60 = vsel %vm14826_vm0, %v8966_v8, 0.0 }
 0xb39   : > { %9053 = vadd.xlane.f32.xlu0 %v9052_v60 }
 0xb3c   : > { %v8640_v34 = vpop.f32.mrf.mxu2 }
 0xb3d   : > { %v8730_v12 = vadd.f32 %v8729_v48, %v8640_v34  ;;  %v8997_v24 = vpop.xlane.xlu2 %8996  ;;  %v9003_v37 = vpop.xlane.xlu1 %9002 }
 0xb3f   : > { %v8771_v35 = vmul.f32 %v13552_v58, %v8730_v12 }
 0xb41   : > { %v8807_v63 = vadd.f32 %v13561_v54, %v8771_v35 }
 0xb43   : > { %v8871_v26 = vmul.f32 0.2, %v8807_v63  ;;  %vm8839_vm12 = vcmp.ge.f32.partialorder %v8807_v63, 0.0 }
 0xb44   : > { %v8642_v10 = vpop.f32.mrf.mxu2 }
 0xb45   : > { %v8732_v45 = vadd.f32 %v8731_v49, %v8642_v10  ;;  %v8903_v42 = vsel %vm8839_vm12, %v8807_v63, %v8871_v26  ;;  %v9006_v41 = vpop.xlane.xlu2 %9005  ;;  %v9012_v16 = vpop.xlane.xlu1 %9011 }
 0xb46   : > { %v8967_v43 = vmul.f32 %v8935_v14, %v8903_v42 }
 0xb47   : > { %v8772_v47 = vmul.f32 %v13552_v58, %v8732_v45 }
 0xb48   : > { %v9055_v28 = vsel %vm14834_vm3, %v8967_v43, 0.0 }
 0xb49   : > { %v8808_v13 = vadd.f32 %v13561_v54, %v8772_v47  ;;  %9056 = vadd.xlane.f32.xlu1 %v9055_v28 }
 0xb4b   : > { %v8872_v27 = vmul.f32 0.2, %v8808_v13  ;;  %vm8840_vm2 = vcmp.ge.f32.partialorder %v8808_v13, 0.0 }
 0xb4d   : > { %v8904_v52 = vsel %vm8840_vm2, %v8808_v13, %v8872_v27  ;;  %v9015_v8 = vpop.xlane.xlu2 %9014  ;;  %v9021_v12 = vpop.xlane.xlu1 %9020 }
 0xb4e   : > { %v8968_v36 = vmul.f32 %v8936_v7, %v8904_v52 }
 0xb50   : > { %v9058_v30 = vsel %vm14835_vm11, %v8968_v36, 0.0 }
 0xb51   : > { %9059 = vadd.xlane.f32.xlu2 %v9058_v30 }
 0xb55   : > { %v9024_v63 = vpop.xlane.xlu2 %9023 }
 0xb5b   : > { %v8645_v55 = vpop.f32.mrf.mxu2  ;;  %v9030_v45 = vpop.xlane.xlu1 %9029 }
 0xb5c   : > { %v8735_v61 = vadd.f32 %v8734_v5, %v8645_v55 }
 0xb5e   : > { %v8773_v18 = vmul.f32 %v13552_v58, %v8735_v61 }
 0xb60   : > { %v8809_v51 = vadd.f32 %v13561_v54, %v8773_v18 }
 0xb62   : > { %v8873_v32 = vmul.f32 0.2, %v8809_v51  ;;  %vm8841_vm8 = vcmp.ge.f32.partialorder %v8809_v51, 0.0 }
 0xb63   : > { %v8647_v20 = vpop.f32.mrf.mxu2 }
 0xb64   : > { %v8737_v0 = vadd.f32 %v8736_v23, %v8647_v20  ;;  %v8905_v62 = vsel %vm8841_vm8, %v8809_v51, %v8873_v32 }
 0xb65   : > { %v8969_v57 = vmul.f32 %v8937_v39, %v8905_v62  ;;  %v9033_v43 = vpop.xlane.xlu2 %9032 }
 0xb66   : > { %v8774_v53 = vmul.f32 %v13552_v58, %v8737_v0  ;;  %v8979_v58 = vpop.xlane.xlu0 %8978 }
 0xb67   : > { %v9061_v56 = vsel %vm14836_vm1, %v8969_v57, 0.0 }
 0xb68   : > { %v8810_v38 = vadd.f32 %v13561_v54, %v8774_v53  ;;  %9062 = vadd.xlane.f32.xlu0 %v9061_v56  ;;  %v9068_v54 = vadd.f32 %v9067_v17, %v8979_v58 }
 0xb6a   : > { %v8874_v59 = vmul.f32 0.2, %v8810_v38  ;;  %vm8842_vm14 = vcmp.ge.f32.partialorder %v8810_v38, 0.0  ;;  %v9069_v2 = vadd.f32 %v9068_v54, %v8982_v50 }
 0xb6c   : > { %v8906_v46 = vsel %vm8842_vm14, %v8810_v38, %v8874_v59  ;;  %v9070_v6 = vadd.f32 %v9069_v2, %v8985_v11  ;;  %v9104_v11 = vld [vmem:[#allocation4] sm:$0x1] }
 0xb6d   : > { %v8970_v21 = vmul.f32 %v8938_v33, %v8906_v46 }
 0xb6e   : > { %v8991_v9 = vpop.xlane.xlu0 %8990  ;;  %v9071_v22 = vadd.f32 %v9070_v6, %v8988_v44 }
 0xb6f   : > { %v9064_v15 = vsel %vm14837_vm6, %v8970_v21, 0.0 }
 0xb70   : > { %9065 = vadd.xlane.f32.xlu1 %v9064_v15  ;;  %v9072_v3 = vadd.f32 %v9071_v22, %v8991_v9 }
 0xb72   : > { %v9073_v40 = vadd.f32 %v9072_v3, %v8994_v29 }
 0xb74   : > { %v9074_v31 = vadd.f32 %v9073_v40, %v8997_v24 }
 0xb76   : > { %v9000_v19 = vpop.xlane.xlu0 %8999 }
 0xb77   : > { %v9075_v60 = vadd.f32 %v9074_v31, %v9000_v19 }
 0xb79   : > { %v9076_v34 = vadd.f32 %v9075_v60, %v9003_v37 }
 0xb7b   : > { %v9077_v35 = vadd.f32 %v9076_v34, %v9006_v41 }
 0xb7c   : > { %v9039_v7 = vpop.xlane.xlu1 %9038 }
 0xb7e   : > { %v9009_v4 = vpop.xlane.xlu0 %9008 }
 0xb7f   : > { %v9078_v26 = vadd.f32 %v9077_v35, %v9009_v4 }
 0xb81   : > { %v9079_v49 = vadd.f32 %v9078_v26, %v9012_v16 }
 0xb83   : > { %v9080_v10 = vadd.f32 %v9079_v49, %v9015_v8 }
 0xb84   : > { %v9042_v36 = vpop.xlane.xlu2 %9041 }
 0xb86   : > { %v9018_v48 = vpop.xlane.xlu0 %9017 }
 0xb87   : > { %v9081_v42 = vadd.f32 %v9080_v10, %v9018_v48 }
 0xb89   : > { %v9082_v47 = vadd.f32 %v9081_v42, %v9021_v12 }
 0xb8b   : > { %v9083_v13 = vadd.f32 %v9082_v47, %v9024_v63 }
 0xb8e   : > { %v9027_v14 = vpop.xlane.xlu0 %9026 }
 0xb8f   : > { %v9084_v27 = vadd.f32 %v9083_v13, %v9027_v14 }
 0xb91   : > { %v9085_v52 = vadd.f32 %v9084_v27, %v9030_v45 }
 0xb93   : > { %v9086_v30 = vadd.f32 %v9085_v52, %v9033_v43 }
 0xb96   : > { %v9036_v28 = vpop.xlane.xlu0 %9035 }
 0xb97   : > { %v9087_v55 = vadd.f32 %v9086_v30, %v9036_v28 }
 0xb99   : > { %v9088_v61 = vadd.f32 %v9087_v55, %v9039_v7 }
 0xb9b   : > { %v9048_v18 = vpop.xlane.xlu1 %9047  ;;  %v9089_v51 = vadd.f32 %v9088_v61, %v9042_v36 }
 0xb9e   : > { %v9045_v5 = vpop.xlane.xlu0 %9044 }
 0xb9f   : > { %v9090_v39 = vadd.f32 %v9089_v51, %v9045_v5 }
 0xba1   : > { %v9091_v20 = vadd.f32 %v9090_v39, %v9048_v18 }
 0xba4   : > { %v9051_v32 = vpop.xlane.xlu2 %9050 }
 0xba5   : > { %v9092_v0 = vadd.f32 %v9091_v20, %v9051_v32 }
 0xbac   : > { %v9054_v23 = vpop.xlane.xlu0 %9053 }
 0xbad   : > { %v9093_v57 = vadd.f32 %v9092_v0, %v9054_v23 }
 0xbbc   : > { %v9057_v62 = vpop.xlane.xlu1 %9056 }
 0xbbd   : > { %v9094_v56 = vadd.f32 %v9093_v57, %v9057_v62 }
 0xbc4   : > { %v9060_v53 = vpop.xlane.xlu2 %9059 }
 0xbc5   : > { %v9095_v59 = vadd.f32 %v9094_v56, %v9060_v53 }
 0xbdb   : > { %v9063_v38 = vpop.xlane.xlu0 %9062 }
 0xbdc   : > { %v9096_v33 = vadd.f32 %v9095_v59, %v9063_v38 }
 0xbe3   : > { %v9066_v46 = vpop.xlane.xlu1 %9065 }
 0xbe4   : > { %v9097_v21 = vadd.f32 %v9096_v33, %v9066_v46 }
 0xbe6   : > { %v9098_v15 = vrot.slane %v9097_v21, 4 }
 0xbe8   : > { %v9099_v1 = vadd.f32 %v9098_v15, %v9097_v21 }
 0xbea   : > { %v9100_v25 = vrot.slane %v9099_v1, 2 }
 0xbec   : > { %v9101_v50 = vadd.f32 %v9100_v25, %v9099_v1 }
 0xbee   : > { %v9102_v58 = vrot.slane %v9101_v50, 1 }
 0xbf0   : > { %v9103_v44 = vadd.f32 %v9102_v58, %v9101_v50 }
 0xbf2   : > { %v9105_v17 = vadd.f32 %v9104_v11, %v9103_v44 }
 0xbf4   : > { %9107 = vst.msk [vmem:[%s411_s29] sm:$0x1] %vm9106_vm13, %v9105_v17 }
 0xbf5 PF: > { %s24_s23 = sadd.s32 1, %s9655_s23  }
 0xbf6   : > { %p21_p4 = scmp.ge.s32.totalorder %s24_s23, 4  }
 0xbf8   :  { %23 = sbr.rel (!%p21_p4) target bundleno = 3 (0x3), region = 98 }

</bundles_post_ra>
